<compile_context>
chip_gen: v7x
topology: tpu7x:2x2x1
jax: 0.10.0
libtpu: 0.0.40
codegen_flags: <defaults>
</compile_context>

<pallas_src>
import functools

import jax
import jax.numpy as jnp
import numpy as np
from jax.experimental import pallas as pl
from jax.experimental.pallas import tpu as pltpu

LANE = 128


def _round_up(v, m):
    return ((v + m - 1) // m) * m


# ----------------------------- Pallas kernel ------------------------------- #
def vae_kernel(
    x_ref, eps_ref,
    w_e1, b_e1, w_e2, b_e2, w_e3, b_e3,
    w_hd, b_hd,                                # fused (mu | logvar) head
    w_d1, b_d1, w_d2, b_d2, w_d3, b_d3,
    w_xb, b_xb,
    tra1_o, tra2_o, tra3_o, mu_o, logvar_o, z_o, xbar_o,
    *, hid_pad,
):
    def linear(h, w_ref, b_ref):
        # bf16 operands on the MXU, f32 accumulation, f32 bias broadcast.
        return (
            jnp.dot(h.astype(jnp.bfloat16), w_ref[...],
                    preferred_element_type=jnp.float32)
            + b_ref[...]
        )

    def relu(h):
        return jnp.maximum(h, 0.0)

    x = x_ref[...]

    # ---- encoder ----
    tra1 = relu(linear(x, w_e1, b_e1))
    tra2 = relu(linear(tra1, w_e2, b_e2))
    tra3 = relu(linear(tra2, w_e3, b_e3))

    # ---- fused mu|logvar head: one MXU pass, lane-dense 2*hid_pad output ----
    head = linear(tra3, w_hd, b_hd)            # (TB, 2*hid_pad)
    mu = head[:, :hid_pad]
    logvar = head[:, hid_pad:]

    # ---- reparameterization: z = eps * exp(logvar / 2) + mu  (f32) ----
    z = eps_ref[...] * jnp.exp(logvar * 0.5) + mu

    # ---- decoder ----
    d1 = relu(linear(z, w_d1, b_d1))
    d2 = relu(linear(d1, w_d2, b_d2))
    d3 = relu(linear(d2, w_d3, b_d3))
    x_bar = jax.nn.sigmoid(linear(d3, w_xb, b_xb))

    # ---- write all outputs (all widths are multiples of 128 lanes) ----
    tra1_o[...] = tra1
    tra2_o[...] = tra2
    tra3_o[...] = tra3
    mu_o[...] = mu
    logvar_o[...] = logvar
    z_o[...] = z
    xbar_o[...] = x_bar


# ------------------------------- wrapper ------------------------------------ #
def vae_forward(x, eps, params, *, tile_b=None, vmem_budget_bytes=40 << 20):
    """params: list of 9 (W (in, out), b (1, out)) f32 tuples, forward order:
       enc_1, enc_2, enc_3, mu_l, log_sigma2_l, dec_1, dec_2, dec_3, x_bar_layer.
       Returns (tra1, tra2, tra3, mu, logvar, z, x_bar) with original widths."""
    B, n_input = x.shape
    n_enc_1 = params[0][0].shape[1]
    n_enc_2 = params[1][0].shape[1]
    n_enc_3 = params[2][0].shape[1]
    hid_dim = params[3][0].shape[1]
    n_dec_1 = params[5][0].shape[1]
    n_dec_2 = params[6][0].shape[1]
    n_dec_3 = params[7][0].shape[1]

    # --- pad every feature width to a multiple of 128 lanes -----------------
    in_p = _round_up(n_input, LANE)
    e1_p = _round_up(n_enc_1, LANE)
    e2_p = _round_up(n_enc_2, LANE)
    e3_p = _round_up(n_enc_3, LANE)
    h_p = _round_up(hid_dim, LANE)
    d1_p = _round_up(n_dec_1, LANE)
    d2_p = _round_up(n_dec_2, LANE)
    d3_p = _round_up(n_dec_3, LANE)

    def pad_wb(w, b, in_pad, out_pad):
        wp = jnp.zeros((in_pad, out_pad), jnp.bfloat16)
        wp = wp.at[: w.shape[0], : w.shape[1]].set(w.astype(jnp.bfloat16))
        bp = jnp.zeros((1, out_pad), jnp.float32)
        bp = bp.at[:, : b.shape[-1]].set(b.reshape(1, -1).astype(jnp.float32))
        return wp, bp

    w_e1, b_e1 = pad_wb(*params[0], in_p, e1_p)
    w_e2, b_e2 = pad_wb(*params[1], e1_p, e2_p)
    w_e3, b_e3 = pad_wb(*params[2], e2_p, e3_p)

    # fused (mu | logvar) head: (e3_p, 2*h_p)
    w_mu, b_mu = params[3]
    w_ls, b_ls = params[4]
    w_hd = jnp.zeros((e3_p, 2 * h_p), jnp.bfloat16)
    w_hd = w_hd.at[:n_enc_3, :hid_dim].set(w_mu.astype(jnp.bfloat16))
    w_hd = w_hd.at[:n_enc_3, h_p:h_p + hid_dim].set(w_ls.astype(jnp.bfloat16))
    b_hd = jnp.zeros((1, 2 * h_p), jnp.float32)
    b_hd = b_hd.at[:, :hid_dim].set(b_mu.reshape(1, -1).astype(jnp.float32))
    b_hd = b_hd.at[:, h_p:h_p + hid_dim].set(b_ls.reshape(1, -1).astype(jnp.float32))

    w_d1, b_d1 = pad_wb(*params[5], h_p, d1_p)
    w_d2, b_d2 = pad_wb(*params[6], d1_p, d2_p)
    w_d3, b_d3 = pad_wb(*params[7], d2_p, d3_p)
    w_xb, b_xb = pad_wb(*params[8], d3_p, in_p)

    weights = [w_e1, b_e1, w_e2, b_e2, w_e3, b_e3, w_hd, b_hd,
               w_d1, b_d1, w_d2, b_d2, w_d3, b_d3, w_xb, b_xb]

    out_widths = [e1_p, e2_p, e3_p, h_p, h_p, h_p, in_p]

    # --- pick batch tile: resident weights + double-buffered I/O under budget
    weight_bytes = sum(int(np.prod(a.shape)) * a.dtype.itemsize for a in weights)
    row_io_bytes = 4 * (in_p + h_p + sum(out_widths))   # f32 in + out per row
    if tile_b is None:
        tb = 1024
        while tb > 128 and weight_bytes + 2 * tb * row_io_bytes > vmem_budget_bytes:
            tb -= 128
        tile_b = max(128, min(tb, _round_up(B, 128)))
    b_pad = _round_up(B, tile_b)

    xp = jnp.zeros((b_pad, in_p), jnp.float32).at[:B, :n_input].set(
        x.astype(jnp.float32))
    epsp = jnp.zeros((b_pad, h_p), jnp.float32).at[:B, :hid_dim].set(
        eps.astype(jnp.float32))

    grid = (b_pad // tile_b,)

    def batch_spec(width):
        return pl.BlockSpec((tile_b, width), lambda i: (i, 0))

    def resident_spec(arr):
        return pl.BlockSpec(arr.shape, lambda i: (0, 0))

    in_specs = [batch_spec(in_p), batch_spec(h_p)] + [resident_spec(a) for a in weights]
    out_specs = tuple(batch_spec(w) for w in out_widths)
    out_shape = tuple(jax.ShapeDtypeStruct((b_pad, w), jnp.float32) for w in out_widths)

    # Advisory cost estimate for the XLA scheduler.
    mm_dims = [(in_p, e1_p), (e1_p, e2_p), (e2_p, e3_p), (e3_p, 2 * h_p),
               (h_p, d1_p), (d1_p, d2_p), (d2_p, d3_p), (d3_p, in_p)]
    flops = 2 * b_pad * sum(k * n for k, n in mm_dims)
    transcendentals = b_pad * (h_p + in_p)                 # exp for z, sigmoid for x_bar
    bytes_accessed = weight_bytes + 4 * b_pad * (in_p + h_p + sum(out_widths))

    vmem_need = weight_bytes + 2 * tile_b * row_io_bytes
    vmem_limit = int(min(max(2 * vmem_need, 32 << 20), 56 << 20))  # v7x-safe

    outs = pl.pallas_call(
        functools.partial(vae_kernel, hid_pad=h_p),
        out_shape=out_shape,
        grid=grid,
        in_specs=in_specs,
        out_specs=out_specs,
        compiler_params=pltpu.CompilerParams(
            dimension_semantics=("parallel",),
            vmem_limit_bytes=vmem_limit,
        ),
        cost_estimate=pl.CostEstimate(
            flops=flops,
            transcendentals=transcendentals,
            bytes_accessed=bytes_accessed,
        ),
    )(xp, epsp, *weights)

    true_widths = [n_enc_1, n_enc_2, n_enc_3, hid_dim, hid_dim, hid_dim, n_input]
    return tuple(o[:B, :w] for o, w in zip(outs, true_widths))


# -------------------------- parameter construction -------------------------- #
def init_params(key, dims):
    """dims: list of (fan_in, fan_out). PyTorch-style uniform init, f32."""
    params = []
    for i, (fin, fout) in enumerate(dims):
        kw, kb = jax.random.split(jax.random.fold_in(key, i))
        scale = 1.0 / jnp.sqrt(jnp.float32(fin))
        w = jax.random.uniform(kw, (fin, fout), jnp.float32, -scale, scale)
        b = jax.random.uniform(kb, (1, fout), jnp.float32, -scale, scale)
        params.append((w, b))
    return params


# --------------------------- pure-JAX reference ------------------------------ #
def vae_reference(x, eps, params):
    """Mirrors the kernel's bf16-operand / f32-accumulate matmuls."""
    def lin(h, w, b):
        return (jnp.dot(h.astype(jnp.bfloat16), w.astype(jnp.bfloat16),
                        preferred_element_type=jnp.float32)
                + b.reshape(1, -1).astype(jnp.float32))

    tra1 = jax.nn.relu(lin(x, *params[0]))
    tra2 = jax.nn.relu(lin(tra1, *params[1]))
    tra3 = jax.nn.relu(lin(tra2, *params[2]))
    mu = lin(tra3, *params[3])
    logvar = lin(tra3, *params[4])
    z = eps * jnp.exp(logvar / 2.0) + mu
    d1 = jax.nn.relu(lin(z, *params[5]))
    d2 = jax.nn.relu(lin(d1, *params[6]))
    d3 = jax.nn.relu(lin(d2, *params[7]))
    x_bar = jax.nn.sigmoid(lin(d3, *params[8]))
    return tra1, tra2, tra3, mu, logvar, z, x_bar


# ----------------------------------- main ------------------------------------ #
if __name__ == "__main__":
    # Small shapes consistent with the module: USPS images are 16x16 = 256
    # inputs; widths are scaled-down versions of the 500/500/1000 defaults and
    # intentionally NOT multiples of 128 to exercise the padding path.
    B = 256
    n_input = 256
    n_enc_1, n_enc_2, n_enc_3 = 160, 160, 320
    n_dec_1, n_dec_2, n_dec_3 = 320, 160, 160
    hid_dim = 10

    key = jax.random.PRNGKey(0)
    k_x, k_eps, k_p = jax.random.split(key, 3)

    x = jax.random.uniform(k_x, (B, n_input), jnp.float32)      # pixel-like in [0,1)
    eps = jax.random.normal(k_eps, (B, hid_dim), jnp.float32)   # replaces randn_like

    layer_dims = [
        (n_input, n_enc_1),   # enc_1
        (n_enc_1, n_enc_2),   # enc_2
        (n_enc_2, n_enc_3),   # enc_3
        (n_enc_3, hid_dim),   # mu_l
        (n_enc_3, hid_dim),   # log_sigma2_l
        (hid_dim, n_dec_1),   # dec_1
        (n_dec_1, n_dec_2),   # dec_2
        (n_dec_2, n_dec_3),   # dec_3
        (n_dec_3, n_input),   # x_bar_layer
    ]
    params = init_params(k_p, layer_dims)

    outs = vae_forward(x, eps, params)
    outs = jax.block_until_ready(outs)

    # Cross-check against pure-JAX reference (same bf16 matmul precision).
    refs = vae_reference(x, eps, params)
    names = ["tra1", "tra2", "tra3", "mu", "logvar", "z", "x_bar"]
    for name, o, r in zip(names, outs, refs):
        assert o.shape == r.shape, f"{name}: shape {o.shape} vs {r.shape}"
        assert jnp.allclose(o, r, atol=1e-2, rtol=1e-2), f"mismatch in {name}"

    print("KERNEL_OK")
</pallas_src>

<mosaic_0001>
module attributes {stable_mosaic.version = 11 : i64} {
  func.func @vae_kernel(%arg0: i32, %arg1: memref<256x256xf32, #tpu.memory_space<vmem>>, %arg2: memref<256x128xf32, #tpu.memory_space<vmem>>, %arg3: memref<256x256xbf16, #tpu.memory_space<vmem>>, %arg4: memref<1x256xf32, #tpu.memory_space<vmem>>, %arg5: memref<256x256xbf16, #tpu.memory_space<vmem>>, %arg6: memref<1x256xf32, #tpu.memory_space<vmem>>, %arg7: memref<256x384xbf16, #tpu.memory_space<vmem>>, %arg8: memref<1x384xf32, #tpu.memory_space<vmem>>, %arg9: memref<384x256xbf16, #tpu.memory_space<vmem>>, %arg10: memref<1x256xf32, #tpu.memory_space<vmem>>, %arg11: memref<128x384xbf16, #tpu.memory_space<vmem>>, %arg12: memref<1x384xf32, #tpu.memory_space<vmem>>, %arg13: memref<384x256xbf16, #tpu.memory_space<vmem>>, %arg14: memref<1x256xf32, #tpu.memory_space<vmem>>, %arg15: memref<256x256xbf16, #tpu.memory_space<vmem>>, %arg16: memref<1x256xf32, #tpu.memory_space<vmem>>, %arg17: memref<256x256xbf16, #tpu.memory_space<vmem>>, %arg18: memref<1x256xf32, #tpu.memory_space<vmem>>, %arg19: memref<256x256xf32, #tpu.memory_space<vmem>>, %arg20: memref<256x256xf32, #tpu.memory_space<vmem>>, %arg21: memref<256x384xf32, #tpu.memory_space<vmem>>, %arg22: memref<256x128xf32, #tpu.memory_space<vmem>>, %arg23: memref<256x128xf32, #tpu.memory_space<vmem>>, %arg24: memref<256x128xf32, #tpu.memory_space<vmem>>, %arg25: memref<256x256xf32, #tpu.memory_space<vmem>>) attributes {dimension_semantics = [#tpu.dimension_semantics<parallel>], iteration_bounds = array<i64: 1>, scalar_prefetch = 0 : i64, scratch_operands = 0 : i64, tpu.core_type = #tpu.core_type<tc>, window_params = [{transform_indices = @transform_0, window_bounds = array<i64: 256, 256>}, {transform_indices = @transform_1, window_bounds = array<i64: 256, 128>}, {pipeline_mode = #tpu.pipeline_mode<synchronous>, transform_indices = @transform_2, window_bounds = array<i64: 256, 256>}, {pipeline_mode = #tpu.pipeline_mode<synchronous>, transform_indices = @transform_3, window_bounds = array<i64: 1, 256>}, {pipeline_mode = #tpu.pipeline_mode<synchronous>, transform_indices = @transform_4, window_bounds = array<i64: 256, 256>}, {pipeline_mode = #tpu.pipeline_mode<synchronous>, transform_indices = @transform_5, window_bounds = array<i64: 1, 256>}, {pipeline_mode = #tpu.pipeline_mode<synchronous>, transform_indices = @transform_6, window_bounds = array<i64: 256, 384>}, {pipeline_mode = #tpu.pipeline_mode<synchronous>, transform_indices = @transform_7, window_bounds = array<i64: 1, 384>}, {pipeline_mode = #tpu.pipeline_mode<synchronous>, transform_indices = @transform_8, window_bounds = array<i64: 384, 256>}, {pipeline_mode = #tpu.pipeline_mode<synchronous>, transform_indices = @transform_9, window_bounds = array<i64: 1, 256>}, {pipeline_mode = #tpu.pipeline_mode<synchronous>, transform_indices = @transform_10, window_bounds = array<i64: 128, 384>}, {pipeline_mode = #tpu.pipeline_mode<synchronous>, transform_indices = @transform_11, window_bounds = array<i64: 1, 384>}, {pipeline_mode = #tpu.pipeline_mode<synchronous>, transform_indices = @transform_12, window_bounds = array<i64: 384, 256>}, {pipeline_mode = #tpu.pipeline_mode<synchronous>, transform_indices = @transform_13, window_bounds = array<i64: 1, 256>}, {pipeline_mode = #tpu.pipeline_mode<synchronous>, transform_indices = @transform_14, window_bounds = array<i64: 256, 256>}, {pipeline_mode = #tpu.pipeline_mode<synchronous>, transform_indices = @transform_15, window_bounds = array<i64: 1, 256>}, {pipeline_mode = #tpu.pipeline_mode<synchronous>, transform_indices = @transform_16, window_bounds = array<i64: 256, 256>}, {pipeline_mode = #tpu.pipeline_mode<synchronous>, transform_indices = @transform_17, window_bounds = array<i64: 1, 256>}, {transform_indices = @transform_18, window_bounds = array<i64: 256, 256>}, {transform_indices = @transform_19, window_bounds = array<i64: 256, 256>}, {transform_indices = @transform_20, window_bounds = array<i64: 256, 384>}, {transform_indices = @transform_21, window_bounds = array<i64: 256, 128>}, {transform_indices = @transform_22, window_bounds = array<i64: 256, 128>}, {transform_indices = @transform_23, window_bounds = array<i64: 256, 128>}, {transform_indices = @transform_24, window_bounds = array<i64: 256, 256>}]} {
    %c0 = arith.constant 0 : index
    %c0_0 = arith.constant 0 : index
    %0 = vector.load %arg1[%c0, %c0_0] : memref<256x256xf32, #tpu.memory_space<vmem>>, vector<256x256xf32>
    %1 = arith.truncf %0 : vector<256x256xf32> to vector<256x256xbf16>
    %c0_1 = arith.constant 0 : index
    %c0_2 = arith.constant 0 : index
    %2 = vector.load %arg3[%c0_1, %c0_2] : memref<256x256xbf16, #tpu.memory_space<vmem>>, vector<256x256xbf16>
    %cst = arith.constant dense<0.000000e+00> : vector<256x256xf32>
    %3 = tpu.matmul %1, %2, %cst {dimension_numbers = #tpu.dot_dimension_numbers<[1], [0], [0], [1], [0, 0, 1, 1], [], []>} : vector<256x256xbf16>, vector<256x256xbf16>, vector<256x256xf32> -> vector<256x256xf32>
    %c0_3 = arith.constant 0 : index
    %c0_4 = arith.constant 0 : index
    %4 = vector.load %arg4[%c0_3, %c0_4] : memref<1x256xf32, #tpu.memory_space<vmem>>, vector<1x256xf32>
    %5 = vector.broadcast %4 : vector<1x256xf32> to vector<256x256xf32>
    %6 = arith.addf %3, %5 : vector<256x256xf32>
    %cst_5 = arith.constant 0.000000e+00 : f32
    %7 = vector.broadcast %cst_5 : f32 to vector<256x256xf32>
    %8 = arith.maximumf %6, %7 : vector<256x256xf32>
    %9 = arith.truncf %8 : vector<256x256xf32> to vector<256x256xbf16>
    %c0_6 = arith.constant 0 : index
    %c0_7 = arith.constant 0 : index
    %10 = vector.load %arg5[%c0_6, %c0_7] : memref<256x256xbf16, #tpu.memory_space<vmem>>, vector<256x256xbf16>
    %cst_8 = arith.constant dense<0.000000e+00> : vector<256x256xf32>
    %11 = tpu.matmul %9, %10, %cst_8 {dimension_numbers = #tpu.dot_dimension_numbers<[1], [0], [0], [1], [0, 0, 1, 1], [], []>} : vector<256x256xbf16>, vector<256x256xbf16>, vector<256x256xf32> -> vector<256x256xf32>
    %c0_9 = arith.constant 0 : index
    %c0_10 = arith.constant 0 : index
    %12 = vector.load %arg6[%c0_9, %c0_10] : memref<1x256xf32, #tpu.memory_space<vmem>>, vector<1x256xf32>
    %13 = vector.broadcast %12 : vector<1x256xf32> to vector<256x256xf32>
    %14 = arith.addf %11, %13 : vector<256x256xf32>
    %cst_11 = arith.constant 0.000000e+00 : f32
    %15 = vector.broadcast %cst_11 : f32 to vector<256x256xf32>
    %16 = arith.maximumf %14, %15 : vector<256x256xf32>
    %17 = arith.truncf %16 : vector<256x256xf32> to vector<256x256xbf16>
    %c0_12 = arith.constant 0 : index
    %c0_13 = arith.constant 0 : index
    %18 = vector.load %arg7[%c0_12, %c0_13] : memref<256x384xbf16, #tpu.memory_space<vmem>>, vector<256x384xbf16>
    %cst_14 = arith.constant dense<0.000000e+00> : vector<256x384xf32>
    %19 = tpu.matmul %17, %18, %cst_14 {dimension_numbers = #tpu.dot_dimension_numbers<[1], [0], [0], [1], [0, 0, 1, 1], [], []>} : vector<256x256xbf16>, vector<256x384xbf16>, vector<256x384xf32> -> vector<256x384xf32>
    %c0_15 = arith.constant 0 : index
    %c0_16 = arith.constant 0 : index
    %20 = vector.load %arg8[%c0_15, %c0_16] : memref<1x384xf32, #tpu.memory_space<vmem>>, vector<1x384xf32>
    %21 = vector.broadcast %20 : vector<1x384xf32> to vector<256x384xf32>
    %22 = arith.addf %19, %21 : vector<256x384xf32>
    %cst_17 = arith.constant 0.000000e+00 : f32
    %23 = vector.broadcast %cst_17 : f32 to vector<256x384xf32>
    %24 = arith.maximumf %22, %23 : vector<256x384xf32>
    %25 = arith.truncf %24 : vector<256x384xf32> to vector<256x384xbf16>
    %c0_18 = arith.constant 0 : index
    %c0_19 = arith.constant 0 : index
    %26 = vector.load %arg9[%c0_18, %c0_19] : memref<384x256xbf16, #tpu.memory_space<vmem>>, vector<384x256xbf16>
    %cst_20 = arith.constant dense<0.000000e+00> : vector<256x256xf32>
    %27 = tpu.matmul %25, %26, %cst_20 {dimension_numbers = #tpu.dot_dimension_numbers<[1], [0], [0], [1], [0, 0, 1, 1], [], []>} : vector<256x384xbf16>, vector<384x256xbf16>, vector<256x256xf32> -> vector<256x256xf32>
    %c0_21 = arith.constant 0 : index
    %c0_22 = arith.constant 0 : index
    %28 = vector.load %arg10[%c0_21, %c0_22] : memref<1x256xf32, #tpu.memory_space<vmem>>, vector<1x256xf32>
    %29 = vector.broadcast %28 : vector<1x256xf32> to vector<256x256xf32>
    %30 = arith.addf %27, %29 : vector<256x256xf32>
    %31 = vector.extract_strided_slice %30 {offsets = [0, 0], sizes = [256, 128], strides = [1, 1]} : vector<256x256xf32> to vector<256x128xf32>
    %32 = vector.extract_strided_slice %30 {offsets = [0, 128], sizes = [256, 128], strides = [1, 1]} : vector<256x256xf32> to vector<256x128xf32>
    %c0_23 = arith.constant 0 : index
    %c0_24 = arith.constant 0 : index
    %33 = vector.load %arg2[%c0_23, %c0_24] : memref<256x128xf32, #tpu.memory_space<vmem>>, vector<256x128xf32>
    %cst_25 = arith.constant 5.000000e-01 : f32
    %34 = vector.broadcast %cst_25 : f32 to vector<256x128xf32>
    %35 = arith.mulf %32, %34 : vector<256x128xf32>
    %36 = math.exp %35 : vector<256x128xf32>
    %37 = arith.mulf %33, %36 : vector<256x128xf32>
    %38 = arith.addf %37, %31 : vector<256x128xf32>
    %39 = arith.truncf %38 : vector<256x128xf32> to vector<256x128xbf16>
    %c0_26 = arith.constant 0 : index
    %c0_27 = arith.constant 0 : index
    %40 = vector.load %arg11[%c0_26, %c0_27] : memref<128x384xbf16, #tpu.memory_space<vmem>>, vector<128x384xbf16>
    %cst_28 = arith.constant dense<0.000000e+00> : vector<256x384xf32>
    %41 = tpu.matmul %39, %40, %cst_28 {dimension_numbers = #tpu.dot_dimension_numbers<[1], [0], [0], [1], [0, 0, 1, 1], [], []>} : vector<256x128xbf16>, vector<128x384xbf16>, vector<256x384xf32> -> vector<256x384xf32>
    %c0_29 = arith.constant 0 : index
    %c0_30 = arith.constant 0 : index
    %42 = vector.load %arg12[%c0_29, %c0_30] : memref<1x384xf32, #tpu.memory_space<vmem>>, vector<1x384xf32>
    %43 = vector.broadcast %42 : vector<1x384xf32> to vector<256x384xf32>
    %44 = arith.addf %41, %43 : vector<256x384xf32>
    %cst_31 = arith.constant 0.000000e+00 : f32
    %45 = vector.broadcast %cst_31 : f32 to vector<256x384xf32>
    %46 = arith.maximumf %44, %45 : vector<256x384xf32>
    %47 = arith.truncf %46 : vector<256x384xf32> to vector<256x384xbf16>
    %c0_32 = arith.constant 0 : index
    %c0_33 = arith.constant 0 : index
    %48 = vector.load %arg13[%c0_32, %c0_33] : memref<384x256xbf16, #tpu.memory_space<vmem>>, vector<384x256xbf16>
    %cst_34 = arith.constant dense<0.000000e+00> : vector<256x256xf32>
    %49 = tpu.matmul %47, %48, %cst_34 {dimension_numbers = #tpu.dot_dimension_numbers<[1], [0], [0], [1], [0, 0, 1, 1], [], []>} : vector<256x384xbf16>, vector<384x256xbf16>, vector<256x256xf32> -> vector<256x256xf32>
    %c0_35 = arith.constant 0 : index
    %c0_36 = arith.constant 0 : index
    %50 = vector.load %arg14[%c0_35, %c0_36] : memref<1x256xf32, #tpu.memory_space<vmem>>, vector<1x256xf32>
    %51 = vector.broadcast %50 : vector<1x256xf32> to vector<256x256xf32>
    %52 = arith.addf %49, %51 : vector<256x256xf32>
    %cst_37 = arith.constant 0.000000e+00 : f32
    %53 = vector.broadcast %cst_37 : f32 to vector<256x256xf32>
    %54 = arith.maximumf %52, %53 : vector<256x256xf32>
    %55 = arith.truncf %54 : vector<256x256xf32> to vector<256x256xbf16>
    %c0_38 = arith.constant 0 : index
    %c0_39 = arith.constant 0 : index
    %56 = vector.load %arg15[%c0_38, %c0_39] : memref<256x256xbf16, #tpu.memory_space<vmem>>, vector<256x256xbf16>
    %cst_40 = arith.constant dense<0.000000e+00> : vector<256x256xf32>
    %57 = tpu.matmul %55, %56, %cst_40 {dimension_numbers = #tpu.dot_dimension_numbers<[1], [0], [0], [1], [0, 0, 1, 1], [], []>} : vector<256x256xbf16>, vector<256x256xbf16>, vector<256x256xf32> -> vector<256x256xf32>
    %c0_41 = arith.constant 0 : index
    %c0_42 = arith.constant 0 : index
    %58 = vector.load %arg16[%c0_41, %c0_42] : memref<1x256xf32, #tpu.memory_space<vmem>>, vector<1x256xf32>
    %59 = vector.broadcast %58 : vector<1x256xf32> to vector<256x256xf32>
    %60 = arith.addf %57, %59 : vector<256x256xf32>
    %cst_43 = arith.constant 0.000000e+00 : f32
    %61 = vector.broadcast %cst_43 : f32 to vector<256x256xf32>
    %62 = arith.maximumf %60, %61 : vector<256x256xf32>
    %63 = arith.truncf %62 : vector<256x256xf32> to vector<256x256xbf16>
    %c0_44 = arith.constant 0 : index
    %c0_45 = arith.constant 0 : index
    %64 = vector.load %arg17[%c0_44, %c0_45] : memref<256x256xbf16, #tpu.memory_space<vmem>>, vector<256x256xbf16>
    %cst_46 = arith.constant dense<0.000000e+00> : vector<256x256xf32>
    %65 = tpu.matmul %63, %64, %cst_46 {dimension_numbers = #tpu.dot_dimension_numbers<[1], [0], [0], [1], [0, 0, 1, 1], [], []>} : vector<256x256xbf16>, vector<256x256xbf16>, vector<256x256xf32> -> vector<256x256xf32>
    %c0_47 = arith.constant 0 : index
    %c0_48 = arith.constant 0 : index
    %66 = vector.load %arg18[%c0_47, %c0_48] : memref<1x256xf32, #tpu.memory_space<vmem>>, vector<1x256xf32>
    %67 = vector.broadcast %66 : vector<1x256xf32> to vector<256x256xf32>
    %68 = arith.addf %65, %67 : vector<256x256xf32>
    %69 = arith.negf %68 : vector<256x256xf32>
    %70 = math.exp %69 : vector<256x256xf32>
    %cst_49 = arith.constant 1.000000e+00 : f32
    %71 = vector.broadcast %cst_49 : f32 to vector<256x256xf32>
    %72 = arith.addf %71, %70 : vector<256x256xf32>
    %73 = arith.divf %71, %72 : vector<256x256xf32>
    %c0_50 = arith.constant 0 : index
    %c0_51 = arith.constant 0 : index
    %74 = vector.load %arg19[%c0_50, %c0_51] : memref<256x256xf32, #tpu.memory_space<vmem>>, vector<256x256xf32>
    tpu.vector_store %arg19[%c0_50, %c0_51], %8 {strides = array<i32>} : memref<256x256xf32, #tpu.memory_space<vmem>>, vector<256x256xf32>,
    %c0_52 = arith.constant 0 : index
    %c0_53 = arith.constant 0 : index
    %75 = vector.load %arg20[%c0_52, %c0_53] : memref<256x256xf32, #tpu.memory_space<vmem>>, vector<256x256xf32>
    tpu.vector_store %arg20[%c0_52, %c0_53], %16 {strides = array<i32>} : memref<256x256xf32, #tpu.memory_space<vmem>>, vector<256x256xf32>,
    %c0_54 = arith.constant 0 : index
    %c0_55 = arith.constant 0 : index
    %76 = vector.load %arg21[%c0_54, %c0_55] : memref<256x384xf32, #tpu.memory_space<vmem>>, vector<256x384xf32>
    tpu.vector_store %arg21[%c0_54, %c0_55], %24 {strides = array<i32>} : memref<256x384xf32, #tpu.memory_space<vmem>>, vector<256x384xf32>,
    %c0_56 = arith.constant 0 : index
    %c0_57 = arith.constant 0 : index
    %77 = vector.load %arg22[%c0_56, %c0_57] : memref<256x128xf32, #tpu.memory_space<vmem>>, vector<256x128xf32>
    tpu.vector_store %arg22[%c0_56, %c0_57], %31 {strides = array<i32>} : memref<256x128xf32, #tpu.memory_space<vmem>>, vector<256x128xf32>,
    %c0_58 = arith.constant 0 : index
    %c0_59 = arith.constant 0 : index
    %78 = vector.load %arg23[%c0_58, %c0_59] : memref<256x128xf32, #tpu.memory_space<vmem>>, vector<256x128xf32>
    tpu.vector_store %arg23[%c0_58, %c0_59], %32 {strides = array<i32>} : memref<256x128xf32, #tpu.memory_space<vmem>>, vector<256x128xf32>,
    %c0_60 = arith.constant 0 : index
    %c0_61 = arith.constant 0 : index
    %79 = vector.load %arg24[%c0_60, %c0_61] : memref<256x128xf32, #tpu.memory_space<vmem>>, vector<256x128xf32>
    tpu.vector_store %arg24[%c0_60, %c0_61], %38 {strides = array<i32>} : memref<256x128xf32, #tpu.memory_space<vmem>>, vector<256x128xf32>,
    %c0_62 = arith.constant 0 : index
    %c0_63 = arith.constant 0 : index
    %80 = vector.load %arg25[%c0_62, %c0_63] : memref<256x256xf32, #tpu.memory_space<vmem>>, vector<256x256xf32>
    tpu.vector_store %arg25[%c0_62, %c0_63], %73 {strides = array<i32>} : memref<256x256xf32, #tpu.memory_space<vmem>>, vector<256x256xf32>,
    return
  }
  func.func @transform_0(%arg0: i32) -> (i32, i32) {
    %c0_i32 = arith.constant 0 : i32
    %c0_i32_0 = arith.constant 0 : i32
    return %arg0, %c0_i32 : i32, i32
  }
  func.func @transform_1(%arg0: i32) -> (i32, i32) {
    %c0_i32 = arith.constant 0 : i32
    %c0_i32_0 = arith.constant 0 : i32
    return %arg0, %c0_i32 : i32, i32
  }
  func.func @transform_2(%arg0: i32) -> (i32, i32) {
    %c0_i32 = arith.constant 0 : i32
    %c0_i32_0 = arith.constant 0 : i32
    %c0_i32_1 = arith.constant 0 : i32
    return %c0_i32, %c0_i32_0 : i32, i32
  }
  func.func @transform_3(%arg0: i32) -> (i32, i32) {
    %c0_i32 = arith.constant 0 : i32
    %c0_i32_0 = arith.constant 0 : i32
    %c0_i32_1 = arith.constant 0 : i32
    return %c0_i32, %c0_i32_0 : i32, i32
  }
  func.func @transform_4(%arg0: i32) -> (i32, i32) {
    %c0_i32 = arith.constant 0 : i32
    %c0_i32_0 = arith.constant 0 : i32
    %c0_i32_1 = arith.constant 0 : i32
    return %c0_i32, %c0_i32_0 : i32, i32
  }
  func.func @transform_5(%arg0: i32) -> (i32, i32) {
    %c0_i32 = arith.constant 0 : i32
    %c0_i32_0 = arith.constant 0 : i32
    %c0_i32_1 = arith.constant 0 : i32
    return %c0_i32, %c0_i32_0 : i32, i32
  }
  func.func @transform_6(%arg0: i32) -> (i32, i32) {
    %c0_i32 = arith.constant 0 : i32
    %c0_i32_0 = arith.constant 0 : i32
    %c0_i32_1 = arith.constant 0 : i32
    return %c0_i32, %c0_i32_0 : i32, i32
  }
  func.func @transform_7(%arg0: i32) -> (i32, i32) {
    %c0_i32 = arith.constant 0 : i32
    %c0_i32_0 = arith.constant 0 : i32
    %c0_i32_1 = arith.constant 0 : i32
    return %c0_i32, %c0_i32_0 : i32, i32
  }
  func.func @transform_8(%arg0: i32) -> (i32, i32) {
    %c0_i32 = arith.constant 0 : i32
    %c0_i32_0 = arith.constant 0 : i32
    %c0_i32_1 = arith.constant 0 : i32
    return %c0_i32, %c0_i32_0 : i32, i32
  }
  func.func @transform_9(%arg0: i32) -> (i32, i32) {
    %c0_i32 = arith.constant 0 : i32
    %c0_i32_0 = arith.constant 0 : i32
    %c0_i32_1 = arith.constant 0 : i32
    return %c0_i32, %c0_i32_0 : i32, i32
  }
  func.func @transform_10(%arg0: i32) -> (i32, i32) {
    %c0_i32 = arith.constant 0 : i32
    %c0_i32_0 = arith.constant 0 : i32
    %c0_i32_1 = arith.constant 0 : i32
    return %c0_i32, %c0_i32_0 : i32, i32
  }
  func.func @transform_11(%arg0: i32) -> (i32, i32) {
    %c0_i32 = arith.constant 0 : i32
    %c0_i32_0 = arith.constant 0 : i32
    %c0_i32_1 = arith.constant 0 : i32
    return %c0_i32, %c0_i32_0 : i32, i32
  }
  func.func @transform_12(%arg0: i32) -> (i32, i32) {
    %c0_i32 = arith.constant 0 : i32
    %c0_i32_0 = arith.constant 0 : i32
    %c0_i32_1 = arith.constant 0 : i32
    return %c0_i32, %c0_i32_0 : i32, i32
  }
  func.func @transform_13(%arg0: i32) -> (i32, i32) {
    %c0_i32 = arith.constant 0 : i32
    %c0_i32_0 = arith.constant 0 : i32
    %c0_i32_1 = arith.constant 0 : i32
    return %c0_i32, %c0_i32_0 : i32, i32
  }
  func.func @transform_14(%arg0: i32) -> (i32, i32) {
    %c0_i32 = arith.constant 0 : i32
    %c0_i32_0 = arith.constant 0 : i32
    %c0_i32_1 = arith.constant 0 : i32
    return %c0_i32, %c0_i32_0 : i32, i32
  }
  func.func @transform_15(%arg0: i32) -> (i32, i32) {
    %c0_i32 = arith.constant 0 : i32
    %c0_i32_0 = arith.constant 0 : i32
    %c0_i32_1 = arith.constant 0 : i32
    return %c0_i32, %c0_i32_0 : i32, i32
  }
  func.func @transform_16(%arg0: i32) -> (i32, i32) {
    %c0_i32 = arith.constant 0 : i32
    %c0_i32_0 = arith.constant 0 : i32
    %c0_i32_1 = arith.constant 0 : i32
    return %c0_i32, %c0_i32_0 : i32, i32
  }
  func.func @transform_17(%arg0: i32) -> (i32, i32) {
    %c0_i32 = arith.constant 0 : i32
    %c0_i32_0 = arith.constant 0 : i32
    %c0_i32_1 = arith.constant 0 : i32
    return %c0_i32, %c0_i32_0 : i32, i32
  }
  func.func @transform_18(%arg0: i32) -> (i32, i32) {
    %c0_i32 = arith.constant 0 : i32
    %c0_i32_0 = arith.constant 0 : i32
    return %arg0, %c0_i32 : i32, i32
  }
  func.func @transform_19(%arg0: i32) -> (i32, i32) {
    %c0_i32 = arith.constant 0 : i32
    %c0_i32_0 = arith.constant 0 : i32
    return %arg0, %c0_i32 : i32, i32
  }
  func.func @transform_20(%arg0: i32) -> (i32, i32) {
    %c0_i32 = arith.constant 0 : i32
    %c0_i32_0 = arith.constant 0 : i32
    return %arg0, %c0_i32 : i32, i32
  }
  func.func @transform_21(%arg0: i32) -> (i32, i32) {
    %c0_i32 = arith.constant 0 : i32
    %c0_i32_0 = arith.constant 0 : i32
    return %arg0, %c0_i32 : i32, i32
  }
  func.func @transform_22(%arg0: i32) -> (i32, i32) {
    %c0_i32 = arith.constant 0 : i32
    %c0_i32_0 = arith.constant 0 : i32
    return %arg0, %c0_i32 : i32, i32
  }
  func.func @transform_23(%arg0: i32) -> (i32, i32) {
    %c0_i32 = arith.constant 0 : i32
    %c0_i32_0 = arith.constant 0 : i32
    return %arg0, %c0_i32 : i32, i32
  }
  func.func @transform_24(%arg0: i32) -> (i32, i32) {
    %c0_i32 = arith.constant 0 : i32
    %c0_i32_0 = arith.constant 0 : i32
    return %arg0, %c0_i32 : i32, i32
  }
}

</mosaic_0001>

<bundles_post_ra>
// kernel: tpu_custom_call.1
= control target key start
LH: loop header
LB: loop body
LE: loop exit
PB: predicated region body
PF: predicated region fallthrough
CT: control target
= control target key end

     0   :  { %s9807_s0 = inlined_call_operand.hbm [shape: f32[256,256], index: 0, kind: input, shape index: {}]   ;;  %s9808_s1 = inlined_call_operand.hbm [shape: f32[256,128], index: 1, kind: input, shape index: {}]   ;;  %s9809_s2 = inlined_call_operand.hbm [shape: bf16[256,256], index: 2, kind: input, shape index: {}]   ;;  %s9810_s3 = inlined_call_operand.vmem [shape: f32[1,256], index: 3, kind: input, shape index: {}]   ;;  %s9811_s4 = inlined_call_operand.hbm [shape: bf16[256,256], index: 4, kind: input, shape index: {}]   ;;  %s9812_s5 = inlined_call_operand.vmem [shape: f32[1,256], index: 5, kind: input, shape index: {}]   ;;  %s9813_s6 = inlined_call_operand.hbm [shape: bf16[256,384], index: 6, kind: input, shape index: {}]   ;;  %s9814_s7 = inlined_call_operand.vmem [shape: f32[1,384], index: 7, kind: input, shape index: {}]   ;;  %s9815_s8 = inlined_call_operand.hbm [shape: bf16[384,256], index: 8, kind: input, shape index: {}]   ;;  %s9816_s9 = inlined_call_operand.vmem [shape: f32[1,256], index: 9, kind: input, shape index: {}]   ;;  %s9817_s10 = inlined_call_operand.hbm [shape: bf16[128,384], index: 10, kind: input, shape index: {}]   ;;  %s9818_s11 = inlined_call_operand.vmem [shape: f32[1,384], index: 11, kind: input, shape index: {}]   ;;  %s9819_s12 = inlined_call_operand.hbm [shape: bf16[384,256], index: 12, kind: input, shape index: {}]   ;;  %s9820_s13 = inlined_call_operand.vmem [shape: f32[1,256], index: 13, kind: input, shape index: {}]   ;;  %s9821_s14 = inlined_call_operand.hbm [shape: bf16[256,256], index: 14, kind: input, shape index: {}]   ;;  %s9822_s15 = inlined_call_operand.vmem [shape: f32[1,256], index: 15, kind: input, shape index: {}]   ;;  %s9823_s16 = inlined_call_operand.hbm [shape: bf16[256,256], index: 16, kind: input, shape index: {}]   ;;  %s9824_s17 = inlined_call_operand.vmem [shape: f32[1,256], index: 17, kind: input, shape index: {}]   ;;  %s9825_s18 = inlined_call_operand.hbm [shape: f32[256,256], index: 18, kind: output, shape index: {0}]   ;;  %s9826_s19 = inlined_call_operand.hbm [shape: f32[256,256], index: 19, kind: output, shape index: {1}]   ;;  %s9827_s20 = inlined_call_operand.hbm [shape: f32[256,384], index: 20, kind: output, shape index: {2}]   ;;  %s9828_s21 = inlined_call_operand.hbm [shape: f32[256,128], index: 21, kind: output, shape index: {3}]   ;;  %s9829_s22 = inlined_call_operand.hbm [shape: f32[256,128], index: 22, kind: output, shape index: {4}]   ;;  %s9830_s23 = inlined_call_operand.hbm [shape: f32[256,128], index: 23, kind: output, shape index: {5}]   ;;  %s9831_s24 = inlined_call_operand.hbm [shape: f32[256,256], index: 24, kind: output, shape index: {6}]  }
   0x1   :  { %9847 = sst [smem:[#allocation39_spill]] %s9807_s0 }
   0x2   :  { %9848 = sst [smem:[#allocation40_spill]] %s9808_s1 }
   0x3   :  { %9849 = sst [smem:[#allocation41_spill]] %s9809_s2 }
   0x4   :  { %9850 = sst [smem:[#allocation42_spill]] %s9810_s3 }
   0x5   :  { %9851 = sst [smem:[#allocation43_spill]] %s9811_s4 }
   0x6   :  { %9852 = sst [smem:[#allocation44_spill]] %s9812_s5 }
   0x7   :  { %9853 = sst [smem:[#allocation45_spill]] %s9813_s6 }
   0x8   :  { %9854 = sst [smem:[#allocation46_spill]] %s9814_s7 }
   0x9   :  { %9855 = sst [smem:[#allocation47_spill]] %s9815_s8 }
   0xa   :  { %9856 = sst [smem:[#allocation48_spill]] %s9827_s20 }
   0xb   :  { %9857 = sst [smem:[#allocation49_spill]] %s9829_s22 }
   0xc   :  { %9858 = sst [smem:[#allocation50_spill]] %s9831_s24 }
   0xd   :  { %30 = vsyncpa [#allocation3], 0 }
   0xe   :  { %31 = vsyncpa [#allocation6], 0 }
   0xf   :  { %32 = vsyncpa [#allocation9], 0 }
  0x10   :  { %33 = vsyncpa [#allocation12], 0 }
  0x11   :  { %34 = vsyncpa [#allocation15], 0 }
  0x12   :  { %35 = vsyncpa [#allocation18], 0 }
  0x13   :  { %36 = vsyncpa [#allocation4], 0 }
  0x14   :  { %37 = vsyncpa [#allocation21], 0 }
  0x15   :  { %38 = vsyncpa [#allocation24], 0 }
  0x16   :  { %39 = vsyncpa [#allocation27], 0  ;;  %s8252_s5 = smov [#allocation5]   ;;  %s9859_s6 = sld [smem:[#allocation40_spill]] }
  0x17   :  { %s57_s26 = sshll.u32 %s8252_s5, 4  ;;  %s58_s26 = int_to_ptr.vmem [resolvable:$true] %s57_s26 }
  0x1c   :  { %s7858_s2 = scalar_lea.hbm %s9859_s6, 4096 }
  0x1d   :  { %p7859_p0 = scmp.ne.s32.totalorder %s9859_s6, %s7858_s2  ;;  %p7862_p1 = scmp.lt.u32.totalorder %s7858_s2, %s9859_s6 }
  0x1f   :  { %p7864_p2 = pnand %p7862_p1, %p7859_p0 }
  0x21   :  { %7867 = shalt.err (!%p7864_p2)
}
  0x22   :  { %s7868_s3 = scalar_lea.vmem %s58_s26, 4096  ;;  %p7873_p4 = scmp.lt.s32.totalorder %s58_s26, %s58_s26 }
  0x23   :  { %p7869_p3 = scmp.ne.s32.totalorder %s58_s26, %s7868_s3  ;;  %p7874_p5 = scmp.lt.s32.totalorder %s7868_s3, %s7868_s3 }
  0x25   :  { %p7875_p6 = por %p7874_p5, %p7873_p4 }
  0x27   :  { %p7876_p7 = pnand %p7875_p6, %p7869_p3 }
  0x29   :  { %7879 = shalt.err (!%p7876_p7)
}
  0x2a   :  { %s9841_s25 = smov 128   ;;  %s8254_s8 = smov 8  }
  0x2b   :  { %63 = dma.hbm_to_vmem [thread:$0]  %s9859_s6, 4096, %s58_s26, [#allocation6], %s9841_s25, %s9841_s25, %s8254_s8  }
  0x2c   :  { %s8255_s5 = smov [#allocation8]   ;;  %s8256_s28 = smov [#allocation11]  }
  0x2d   :  { %s83_s27 = sshll.u32 %s8255_s5, 4  ;;  %s111_s2 = sshll.u32 %s8256_s28, 4  ;;  %s84_s27 = int_to_ptr.vmem [resolvable:$true] %s83_s27  ;;  %s112_s2 = int_to_ptr.vmem [resolvable:$true] %s111_s2 }
  0x2e   :  { %s9860_s7 = sld [smem:[#allocation43_spill]] }
  0x34   :  { %s7880_s30 = scalar_lea.hbm %s9860_s7, 4096 }
  0x35   :  { %p7881_p8 = scmp.ne.s32.totalorder %s9860_s7, %s7880_s30  ;;  %p7884_p9 = scmp.lt.u32.totalorder %s7880_s30, %s9860_s7 }
  0x37   :  { %p7886_p10 = pnand %p7884_p9, %p7881_p8 }
  0x39   :  { %7889 = shalt.err (!%p7886_p10)
}
  0x3a   :  { %s7890_s26 = scalar_lea.vmem %s84_s27, 4096  ;;  %p7895_p12 = scmp.lt.s32.totalorder %s84_s27, %s84_s27 }
  0x3b   :  { %p7891_p11 = scmp.ne.s32.totalorder %s84_s27, %s7890_s26  ;;  %p7896_p13 = scmp.lt.s32.totalorder %s7890_s26, %s7890_s26 }
  0x3d   :  { %p7897_p0 = por %p7896_p13, %p7895_p12 }
  0x3f   :  { %p7898_p1 = pnand %p7897_p0, %p7891_p11 }
  0x41   :  { %7901 = shalt.err (!%p7898_p1)
}
  0x42   :  { %89 = dma.hbm_to_vmem [thread:$0]  %s9860_s7, 4096, %s84_s27, [#allocation9], %s9841_s25, %s9841_s25, %s8254_s8  }
  0x43   :  { %s9861_s22 = sld [smem:[#allocation47_spill]] }
  0x49   :  { %s7902_s1 = scalar_lea.hbm %s9861_s22, 6144 }
  0x4a   :  { %p7903_p2 = scmp.ne.s32.totalorder %s9861_s22, %s7902_s1  ;;  %p7906_p3 = scmp.lt.u32.totalorder %s7902_s1, %s9861_s22 }
  0x4c   :  { %p7908_p4 = pnand %p7906_p3, %p7903_p2 }
  0x4e   :  { %7911 = shalt.err (!%p7908_p4)
}
  0x4f   :  { %s7912_s30 = scalar_lea.vmem %s112_s2, 6144  ;;  %p7917_p6 = scmp.lt.s32.totalorder %s112_s2, %s112_s2 }
  0x50   :  { %p7913_p5 = scmp.ne.s32.totalorder %s112_s2, %s7912_s30  ;;  %p7918_p7 = scmp.lt.s32.totalorder %s7912_s30, %s7912_s30 }
  0x52   :  { %p7919_p8 = por %p7918_p7, %p7917_p6 }
  0x54   :  { %p7920_p9 = pnand %p7919_p8, %p7913_p5 }
  0x56   :  { %7923 = shalt.err (!%p7920_p9)
}
  0x57   :  { %117 = dma.hbm_to_vmem [thread:$0]  %s9861_s22, 6144, %s112_s2, [#allocation12], %s9841_s25, %s9841_s25, %s8254_s8  }
  0x58   :  { %s8257_s3 = smov [#allocation14]   ;;  %s8258_s6 = smov [#allocation2]  }
  0x59   :  { %s139_s26 = sshll.u32 %s8257_s3, 4  ;;  %s45_s4 = sshll.u32 %s8258_s6, 4  ;;  %s140_s26 = int_to_ptr.vmem [resolvable:$true] %s139_s26  ;;  %s46_s4 = int_to_ptr.vmem [resolvable:$true] %s45_s4 }
  0x5a   :  { %s7924_s1 = scalar_lea.hbm %s9819_s12, 6144 }
  0x5b   :  { %p7925_p10 = scmp.ne.s32.totalorder %s9819_s12, %s7924_s1  ;;  %p7928_p11 = scmp.lt.u32.totalorder %s7924_s1, %s9819_s12 }
  0x5d   :  { %p7930_p12 = pnand %p7928_p11, %p7925_p10 }
  0x5f   :  { %7933 = shalt.err (!%p7930_p12)
}
  0x60   :  { %s7934_s2 = scalar_lea.vmem %s140_s26, 6144  ;;  %p7939_p0 = scmp.lt.s32.totalorder %s140_s26, %s140_s26 }
  0x61   :  { %p7935_p13 = scmp.ne.s32.totalorder %s140_s26, %s7934_s2  ;;  %p7940_p1 = scmp.lt.s32.totalorder %s7934_s2, %s7934_s2 }
  0x63   :  { %p7941_p2 = por %p7940_p1, %p7939_p0 }
  0x65   :  { %p7942_p3 = pnand %p7941_p2, %p7935_p13 }
  0x67   :  { %7945 = shalt.err (!%p7942_p3)
}
  0x68   :  { %145 = dma.hbm_to_vmem [thread:$0]  %s9819_s12, 6144, %s140_s26, [#allocation15], %s9841_s25, %s9841_s25, %s8254_s8  }
  0x69   :  { %s9862_s3 = sld [smem:[#allocation39_spill]] }
  0x6f   :  { %s7946_s6 = scalar_lea.hbm %s9862_s3, 8192 }
  0x70   :  { %p7947_p4 = scmp.ne.s32.totalorder %s9862_s3, %s7946_s6  ;;  %p7950_p5 = scmp.lt.u32.totalorder %s7946_s6, %s9862_s3 }
  0x72   :  { %p7952_p6 = pnand %p7950_p5, %p7947_p4 }
  0x74   :  { %7955 = shalt.err (!%p7952_p6)
}
  0x75   :  { %s7956_s28 = scalar_lea.vmem %s46_s4, 8192  ;;  %p7961_p8 = scmp.lt.s32.totalorder %s46_s4, %s46_s4 }
  0x76   :  { %p7957_p7 = scmp.ne.s32.totalorder %s46_s4, %s7956_s28  ;;  %p7962_p9 = scmp.lt.s32.totalorder %s7956_s28, %s7956_s28 }
  0x78   :  { %p7963_p10 = por %p7962_p9, %p7961_p8 }
  0x7a   :  { %p7964_p11 = pnand %p7963_p10, %p7957_p7 }
  0x7c   :  { %7967 = shalt.err (!%p7964_p11)
}
  0x7d   :  { %s9843_s12 = smov 256   ;;  %s9845_s26 = smov 16  }
  0x7e   :  { %51 = dma.hbm_to_vmem [thread:$0]  %s9862_s3, 8192, %s46_s4, [#allocation3], %s9843_s12, %s9843_s12, %s9845_s26  }
  0x7f   :  { %s8261_s2 = smov [#allocation7]   ;;  %s8262_s30 = smov [#allocation10]  }
  0x80   :  { %s69_s22 = sshll.u32 %s8261_s2, 4  ;;  %s97_s27 = sshll.u32 %s8262_s30, 4  ;;  %s70_s22 = int_to_ptr.vmem [resolvable:$true] %s69_s22  ;;  %s98_s27 = int_to_ptr.vmem [resolvable:$true] %s97_s27 }
  0x81   :  { %s9863_s24 = sld [smem:[#allocation41_spill]] }
  0x87   :  { %s7968_s20 = scalar_lea.hbm %s9863_s24, 4096 }
  0x88   :  { %p7969_p12 = scmp.ne.s32.totalorder %s9863_s24, %s7968_s20  ;;  %p7972_p13 = scmp.lt.u32.totalorder %s7968_s20, %s9863_s24 }
  0x8a   :  { %p7974_p0 = pnand %p7972_p13, %p7969_p12 }
  0x8c   :  { %7977 = shalt.err (!%p7974_p0)
}
  0x8d   :  { %s7978_s4 = scalar_lea.vmem %s70_s22, 4096  ;;  %p7983_p2 = scmp.lt.s32.totalorder %s70_s22, %s70_s22 }
  0x8e   :  { %p7979_p1 = scmp.ne.s32.totalorder %s70_s22, %s7978_s4  ;;  %p7984_p3 = scmp.lt.s32.totalorder %s7978_s4, %s7978_s4 }
  0x90   :  { %p7985_p4 = por %p7984_p3, %p7983_p2 }
  0x92   :  { %p7986_p5 = pnand %p7985_p4, %p7979_p1 }
  0x94   :  { %7989 = shalt.err (!%p7986_p5)
}
  0x95   :  { %s9864_s3 = smov 128   ;;  %s9865_s30 = sld [smem:[#allocation45_spill]] }
  0x96   :  { %75 = dma.hbm_to_vmem [thread:$0]  %s9863_s24, 4096, %s70_s22, [#allocation6], %s9864_s3, %s9864_s3, %s8254_s8  }
  0x9b   :  { %s7990_s7 = scalar_lea.hbm %s9865_s30, 6144 }
  0x9c   :  { %p7991_p6 = scmp.ne.s32.totalorder %s9865_s30, %s7990_s7  ;;  %p7994_p7 = scmp.lt.u32.totalorder %s7990_s7, %s9865_s30 }
  0x9e   :  { %p7996_p8 = pnand %p7994_p7, %p7991_p6 }
  0xa0   :  { %7999 = shalt.err (!%p7996_p8)
}
  0xa1   :  { %s8000_s28 = scalar_lea.vmem %s98_s27, 6144  ;;  %p8005_p10 = scmp.lt.s32.totalorder %s98_s27, %s98_s27 }
  0xa2   :  { %p8001_p9 = scmp.ne.s32.totalorder %s98_s27, %s8000_s28  ;;  %p8006_p11 = scmp.lt.s32.totalorder %s8000_s28, %s8000_s28 }
  0xa4   :  { %p8007_p12 = por %p8006_p11, %p8005_p10 }
  0xa6   :  { %p8008_p13 = pnand %p8007_p12, %p8001_p9 }
  0xa8   :  { %8011 = shalt.err (!%p8008_p13)
}
  0xa9   :  { %s8263_s22 = smov 192   ;;  %s8264_s24 = smov 12  }
  0xaa   :  { %103 = dma.hbm_to_vmem [thread:$0]  %s9865_s30, 6144, %s98_s27, [#allocation9], %s8263_s22, %s8263_s22, %s8264_s24  }
  0xab   :  { %s8265_s0 = smov [#allocation13]   ;;  %s8266_s25 = smov [#allocation16]  }
  0xac   :  { %s125_s2 = sshll.u32 %s8265_s0, 4  ;;  %s153_s7 = sshll.u32 %s8266_s25, 4  ;;  %s126_s2 = int_to_ptr.vmem [resolvable:$true] %s125_s2  ;;  %s154_s7 = int_to_ptr.vmem [resolvable:$true] %s153_s7 }
  0xad   :  { %s8012_s1 = scalar_lea.hbm %s9817_s10, 3072 }
  0xae   :  { %p8013_p0 = scmp.ne.s32.totalorder %s9817_s10, %s8012_s1  ;;  %p8016_p1 = scmp.lt.u32.totalorder %s8012_s1, %s9817_s10 }
  0xb0   :  { %p8018_p2 = pnand %p8016_p1, %p8013_p0 }
  0xb2   :  { %8021 = shalt.err (!%p8018_p2)
}
  0xb3   :  { %s8022_s27 = scalar_lea.vmem %s126_s2, 3072  ;;  %p8027_p4 = scmp.lt.s32.totalorder %s126_s2, %s126_s2 }
  0xb4   :  { %p8023_p3 = scmp.ne.s32.totalorder %s126_s2, %s8022_s27  ;;  %p8028_p5 = scmp.lt.s32.totalorder %s8022_s27, %s8022_s27 }
  0xb6   :  { %p8029_p6 = por %p8028_p5, %p8027_p4 }
  0xb8   :  { %p8030_p7 = pnand %p8029_p6, %p8023_p3 }
  0xba   :  { %8033 = shalt.err (!%p8030_p7)
}
  0xbb   :  { %131 = dma.hbm_to_vmem [thread:$0]  %s9817_s10, 3072, %s126_s2, [#allocation12], %s8263_s22, %s8263_s22, %s8264_s24  }
  0xbc   :  { %s8034_s25 = scalar_lea.hbm %s9821_s14, 4096 }
  0xbd   :  { %p8035_p8 = scmp.ne.s32.totalorder %s9821_s14, %s8034_s25  ;;  %p8038_p9 = scmp.lt.u32.totalorder %s8034_s25, %s9821_s14 }
  0xbf   :  { %p8040_p10 = pnand %p8038_p9, %p8035_p8 }
  0xc1   :  { %8043 = shalt.err (!%p8040_p10)
}
  0xc2   :  { %s8044_s1 = scalar_lea.vmem %s154_s7, 4096  ;;  %p8049_p12 = scmp.lt.s32.totalorder %s154_s7, %s154_s7 }
  0xc3   :  { %p8045_p11 = scmp.ne.s32.totalorder %s154_s7, %s8044_s1  ;;  %p8050_p13 = scmp.lt.s32.totalorder %s8044_s1, %s8044_s1 }
  0xc5   :  { %p8051_p0 = por %p8050_p13, %p8049_p12 }
  0xc7   :  { %p8052_p1 = pnand %p8051_p0, %p8045_p11 }
  0xc9   :  { %8055 = shalt.err (!%p8052_p1)
}
  0xca   :  { %159 = dma.hbm_to_vmem [thread:$0]  %s9821_s14, 4096, %s154_s7, [#allocation15], %s9864_s3, %s9864_s3, %s8254_s8  }
  0xcb   :  { %s8267_s24 = smov [#allocation17]   ;;  %s8056_s27 = scalar_lea.hbm %s9823_s16, 4096 }
  0xcc   :  { %s167_s2 = sshll.u32 %s8267_s24, 4  ;;  %p8057_p2 = scmp.ne.s32.totalorder %s9823_s16, %s8056_s27  ;;  %s168_s2 = int_to_ptr.vmem [resolvable:$true] %s167_s2 }
  0xcd   :  { %p8060_p3 = scmp.lt.u32.totalorder %s8056_s27, %s9823_s16 }
  0xcf   :  { %p8062_p4 = pnand %p8060_p3, %p8057_p2 }
  0xd1   :  { %8065 = shalt.err (!%p8062_p4)
}
  0xd2   :  { %s8066_s25 = scalar_lea.vmem %s168_s2, 4096  ;;  %p8071_p6 = scmp.lt.s32.totalorder %s168_s2, %s168_s2 }
  0xd3   :  { %p8067_p5 = scmp.ne.s32.totalorder %s168_s2, %s8066_s25  ;;  %p8072_p7 = scmp.lt.s32.totalorder %s8066_s25, %s8066_s25 }
  0xd5   :  { %p8073_p8 = por %p8072_p7, %p8071_p6 }
  0xd7   :  { %p8074_p9 = pnand %p8073_p8, %p8067_p5 }
  0xd9   :  { %8077 = shalt.err (!%p8074_p9)
}
  0xda   :  { %173 = dma.hbm_to_vmem [thread:$0]  %s9823_s16, 4096, %s168_s2, [#allocation18], %s9864_s3, %s9864_s3, %s8254_s8  }
  0xdb   :  { %8232 = dma.done.wait [#allocation3], 8192  }
  0xdc   :  { %8233 = vsyncadd [#allocation3], 4294959104 }
  0xdd   :  { %8234 = dma.done.wait [#allocation6], 8192  }
  0xde   :  { %8235 = vsyncadd [#allocation6], 4294959104 }
  0xdf   :  { %8236 = dma.done.wait [#allocation9], 10240  }
  0xe0   :  { %8237 = vsyncadd [#allocation9], 4294957056 }
  0xe1   :  { %8238 = dma.done.wait [#allocation12], 9216  }
  0xe2   :  { %8239 = vsyncadd [#allocation12], 4294958080 }
  0xe3   :  { %8240 = dma.done.wait [#allocation15], 10240  }
  0xe4   :  { %8241 = vsyncadd [#allocation15], 4294957056 }
  0xe5   :  { %8242 = dma.done.wait [#allocation18], 4096  }
  0xe6   :  { %8243 = vsyncadd [#allocation18], 4294963200  ;;  %v7106_v0 = vld [vmem:[#allocation7 + $0x4] ss:$8 sps:$4 sm:$0xff]   ;;  %v7108_v1 = vld [vmem:[#allocation7] ss:$8 sps:$4 sm:$0xff]  }
  0xe7   :  { %507 = vmatprep.subr.bf16.mxu0 %v7106_v0  ;;  %v7109_v2 = vld [vmem:[#allocation7 + $0x14] ss:$8 sps:$4 sm:$0xff]   ;;  %v7111_v3 = vld [vmem:[#allocation7 + $0x10] ss:$8 sps:$4 sm:$0xff]   ;;  %v7112_v4 = vld [vmem:[#allocation7 + $0x24] ss:$8 sps:$4 sm:$0xff]  }
  0xe8   :  { %508 = vmatpush1.bf16.msra.mxu0 %v7108_v1  ;;  %v7114_v5 = vld [vmem:[#allocation7 + $0x20] ss:$8 sps:$4 sm:$0xff]   ;;  %v7115_v6 = vld [vmem:[#allocation7 + $0x34] ss:$8 sps:$4 sm:$0xff]   ;;  %v7117_v7 = vld [vmem:[#allocation7 + $0x30] ss:$8 sps:$4 sm:$0xff]  }
  0xe9   :  { %509 = vmatprep.subr.bf16.mxu0 %v7109_v2  ;;  %v7118_v8 = vld [vmem:[#allocation7 + $0x44] ss:$8 sps:$4 sm:$0xff]   ;;  %v7120_v9 = vld [vmem:[#allocation7 + $0x40] ss:$8 sps:$4 sm:$0xff]   ;;  %v7121_v10 = vld [vmem:[#allocation7 + $0x54] ss:$8 sps:$4 sm:$0xff]  }
  0xea   :  { %v7123_v11 = vld [vmem:[#allocation7 + $0x50] ss:$8 sps:$4 sm:$0xff]   ;;  %v7124_v12 = vld [vmem:[#allocation7 + $0x64] ss:$8 sps:$4 sm:$0xff]   ;;  %v7126_v16 = vld [vmem:[#allocation7 + $0x60] ss:$8 sps:$4 sm:$0xff]  }
  0xeb   :  { %v208_v13 = vld [vmem:[#allocation2 + $0x8] sm:$0xff]  ;;  %v210_v14 = vld [vmem:[#allocation2 + $0x18] sm:$0xff]  ;;  %v207_v38 = vld [vmem:[#allocation2] sm:$0xff]  ;;  %s9866_s26 = sld [smem:[#allocation42_spill]]  ;;  %s9867_s1 = sld [smem:[#allocation44_spill]] }
  0xec   :  { %510 = vmatpush1.bf16.msra.mxu0 %v7111_v3  ;;  %v272_v15 = vpack.c.bf16 %v210_v14, %v208_v13  ;;  %v7127_v17 = vld [vmem:[#allocation7 + $0x74] ss:$8 sps:$4 sm:$0xff]   ;;  %v7129_v18 = vld [vmem:[#allocation7 + $0x70] ss:$8 sps:$4 sm:$0xff]   ;;  %v7130_v19 = vld [vmem:[#allocation7 + $0x84] ss:$8 sps:$4 sm:$0xff]  }
  0xed   :  { %511 = vmatprep.subr.bf16.mxu0 %v7112_v4  ;;  %v7132_v20 = vld [vmem:[#allocation7 + $0x80] ss:$8 sps:$4 sm:$0xff]   ;;  %v7133_v21 = vld [vmem:[#allocation7 + $0x94] ss:$8 sps:$4 sm:$0xff]   ;;  %v7135_v22 = vld [vmem:[#allocation7 + $0x90] ss:$8 sps:$4 sm:$0xff]  }
  0xee   :  { %539 = vmatprep.mubr.bf16.mxu0 %v272_v15  ;;  %v7136_v23 = vld [vmem:[#allocation7 + $0xa4] ss:$8 sps:$4 sm:$0xff]   ;;  %v7138_v24 = vld [vmem:[#allocation7 + $0xa0] ss:$8 sps:$4 sm:$0xff]   ;;  %v7139_v25 = vld [vmem:[#allocation7 + $0xb4] ss:$8 sps:$4 sm:$0xff]  }
  0xef   :  { %v7141_v26 = vld [vmem:[#allocation7 + $0xb0] ss:$8 sps:$4 sm:$0xff]   ;;  %v7142_v27 = vld [vmem:[#allocation7 + $0xc4] ss:$8 sps:$4 sm:$0xff]   ;;  %v7144_v28 = vld [vmem:[#allocation7 + $0xc0] ss:$8 sps:$4 sm:$0xff]  }
  0xf0   :  { %512 = vmatpush1.bf16.msra.mxu0 %v7114_v5  ;;  %v7145_v29 = vld [vmem:[#allocation7 + $0xd4] ss:$8 sps:$4 sm:$0xff]   ;;  %v7147_v30 = vld [vmem:[#allocation7 + $0xd0] ss:$8 sps:$4 sm:$0xff]   ;;  %v7148_v31 = vld [vmem:[#allocation7 + $0xe4] ss:$8 sps:$4 sm:$0xff]  }
  0xf1   :  { %513 = vmatprep.subr.bf16.mxu0 %v7115_v6  ;;  %v7150_v32 = vld [vmem:[#allocation7 + $0xe0] ss:$8 sps:$4 sm:$0xff]   ;;  %v7151_v33 = vld [vmem:[#allocation7 + $0xf4] ss:$8 sps:$4 sm:$0xff]   ;;  %v7154_v34 = vld [vmem:[#allocation8 + $0x4] ss:$8 sps:$4 sm:$0xff]  }
  0xf2   :  { %v7156_v35 = vld [vmem:[#allocation8] ss:$8 sps:$4 sm:$0xff]   ;;  %v7157_v36 = vld [vmem:[#allocation8 + $0x14] ss:$8 sps:$4 sm:$0xff]   ;;  %v7153_v37 = vld [vmem:[#allocation7 + $0xf0] ss:$8 sps:$4 sm:$0xff]   ;;  %1000 = vmatprep.subr.bf16.mxu1 %v7154_v34 }
  0xf3   :  { %v209_v39 = vld [vmem:[#allocation2 + $0x10] sm:$0xff]  ;;  %v212_v40 = vld [vmem:[#allocation2 + $0x28] sm:$0xff]  ;;  %v214_v41 = vld [vmem:[#allocation2 + $0x38] sm:$0xff]  ;;  %1001 = vmatpush1.bf16.msra.mxu1 %v7156_v35  ;;  %s9868_s24 = sld [smem:[#allocation46_spill]]  ;;  %s8270_s0 = smov [#allocation23]  }
  0xf4   :  { %514 = vmatpush1.bf16.msra.mxu0 %v7117_v7  ;;  %v7159_v42 = vld [vmem:[#allocation8 + $0x10] ss:$8 sps:$4 sm:$0xff]   ;;  %v271_v43 = vpack.c.bf16 %v209_v39, %v207_v38  ;;  %1002 = vmatprep.subr.bf16.mxu1 %v7157_v36  ;;  %v7160_v44 = vld [vmem:[#allocation8 + $0x24] ss:$8 sps:$4 sm:$0xff]   ;;  %v274_v45 = vpack.c.bf16 %v214_v41, %v212_v40  ;;  %v7162_v48 = vld [vmem:[#allocation8 + $0x20] ss:$8 sps:$4 sm:$0xff]  }
  0xf5   :  { %515 = vmatprep.subr.bf16.mxu0 %v7118_v8  ;;  %v211_v46 = vld [vmem:[#allocation2 + $0x20] sm:$0xff]  ;;  %v213_v47 = vld [vmem:[#allocation2 + $0x30] sm:$0xff]  ;;  %v216_v49 = vld [vmem:[#allocation2 + $0x48] sm:$0xff]  ;;  %s6174_s25 = sshll.u32 %s8270_s0, 4  ;;  %s9643_s25 = int_to_ptr.vmem [resolvable:$true] %s6174_s25 }
  0xf6   :  { %v218_v50 = vld [vmem:[#allocation2 + $0x58] sm:$0xff]  ;;  %v7166_v53 = vld [vmem:[#allocation8 + $0x44] ss:$8 sps:$4 sm:$0xff]   ;;  %v273_v54 = vpack.c.bf16 %v213_v47, %v211_v46  ;;  %v7168_v56 = vld [vmem:[#allocation8 + $0x40] ss:$8 sps:$4 sm:$0xff]  }
  0xf7   :  { %1003 = vmatpush1.bf16.msra.mxu1 %v7159_v42  ;;  %v7163_v51 = vld [vmem:[#allocation8 + $0x34] ss:$8 sps:$4 sm:$0xff]   ;;  %v7165_v52 = vld [vmem:[#allocation8 + $0x30] ss:$8 sps:$4 sm:$0xff]   ;;  %v276_v55 = vpack.c.bf16 %v218_v50, %v216_v49  ;;  %v215_v58 = vld [vmem:[#allocation2 + $0x40] sm:$0xff] }
  0xf8   :  { %516 = vmatpush1.bf16.msra.mxu0 %v7120_v9  ;;  %1004 = vmatprep.subr.bf16.mxu1 %v7160_v44  ;;  %v7169_v57 = vld [vmem:[#allocation8 + $0x54] ss:$8 sps:$4 sm:$0xff]   ;;  %v220_v60 = vld [vmem:[#allocation2 + $0x68] sm:$0xff]  ;;  %v7171_v62 = vld [vmem:[#allocation8 + $0x50] ss:$8 sps:$4 sm:$0xff]  }
  0xf9   :  { %517 = vmatprep.subr.bf16.mxu0 %v7121_v10  ;;  %v217_v59 = vld [vmem:[#allocation2 + $0x50] sm:$0xff]  ;;  %v222_v61 = vld [vmem:[#allocation2 + $0x78] sm:$0xff]  ;;  %v7172_v63 = vld [vmem:[#allocation8 + $0x64] ss:$8 sps:$4 sm:$0xff]  }
  0xfa   :  { %v275_v0 = vpack.c.bf16 %v217_v59, %v215_v58  ;;  %v278_v1 = vpack.c.bf16 %v222_v61, %v220_v60  ;;  %v7174_v2 = vld [vmem:[#allocation8 + $0x60] ss:$8 sps:$4 sm:$0xff]   ;;  %v7175_v3 = vld [vmem:[#allocation8 + $0x74] ss:$8 sps:$4 sm:$0xff]   ;;  %v7177_v8 = vld [vmem:[#allocation8 + $0x70] ss:$8 sps:$4 sm:$0xff]  }
  0xfb   :  { %1005 = vmatpush1.bf16.msra.mxu1 %v7162_v48  ;;  %v219_v4 = vld [vmem:[#allocation2 + $0x60] sm:$0xff]  ;;  %v221_v5 = vld [vmem:[#allocation2 + $0x70] sm:$0xff]  ;;  %v224_v6 = vld [vmem:[#allocation2 + $0x88] sm:$0xff] }
  0xfc   :  { %518 = vmatpush1.bf16.msra.mxu0 %v7123_v11  ;;  %1006 = vmatprep.subr.bf16.mxu1 %v7163_v51  ;;  %v226_v7 = vld [vmem:[#allocation2 + $0x98] sm:$0xff]  ;;  %v7178_v9 = vld [vmem:[#allocation8 + $0x84] ss:$8 sps:$4 sm:$0xff]   ;;  %v277_v10 = vpack.c.bf16 %v221_v5, %v219_v4  ;;  %v225_v15 = vld [vmem:[#allocation2 + $0x90] sm:$0xff] }
  0xfd   :  { %519 = vmatprep.subr.bf16.mxu0 %v7124_v12  ;;  %v280_v11 = vpack.c.bf16 %v226_v7, %v224_v6  ;;  %v7180_v12 = vld [vmem:[#allocation8 + $0x80] ss:$8 sps:$4 sm:$0xff]   ;;  %v7181_v13 = vld [vmem:[#allocation8 + $0x94] ss:$8 sps:$4 sm:$0xff]   ;;  %v7196_v6 = vld [vmem:[#allocation8 + $0xe4] ss:$8 sps:$4 sm:$0xff]  }
  0xfe   :  { %v223_v14 = vld [vmem:[#allocation2 + $0x80] sm:$0xff]  ;;  %v233_v35 = vld [vmem:[#allocation2 + $0xd0] sm:$0xff]  ;;  %v236_v36 = vld [vmem:[#allocation2 + $0xe8] sm:$0xff] }
  0xff   :  { %1007 = vmatpush1.bf16.msra.mxu1 %v7165_v52  ;;  %v231_v34 = vld [vmem:[#allocation2 + $0xc0] sm:$0xff]  ;;  %v237_v41 = vld [vmem:[#allocation2 + $0xf0] sm:$0xff]  ;;  %v240_v42 = vld [vmem:[#allocation2 + $0x108] sm:$0xff] }
 0x100   :  { %520 = vmatpush1.bf16.msra.mxu0 %v7126_v16  ;;  %1008 = vmatprep.subr.bf16.mxu1 %v7166_v53  ;;  %v228_v16 = vld [vmem:[#allocation2 + $0xa8] sm:$0xff]  ;;  %v283_v38 = vpack.c.bf16 %v233_v35, %v231_v34  ;;  %v235_v40 = vld [vmem:[#allocation2 + $0xe0] sm:$0xff]  ;;  %v241_v47 = vld [vmem:[#allocation2 + $0x110] sm:$0xff]  ;;  %v337_v34 = vlaneseq }
 0x101   :  { %521 = vmatprep.subr.bf16.mxu0 %v7127_v17  ;;  %v230_v17 = vld [vmem:[#allocation2 + $0xb8] sm:$0xff]  ;;  %v285_v44 = vpack.c.bf16 %v237_v41, %v235_v40  ;;  %v239_v46 = vld [vmem:[#allocation2 + $0x100] sm:$0xff]  ;;  %v244_v48 = vld [vmem:[#allocation2 + $0x128] sm:$0xff] }
 0x102   :  { %v246_v49 = vld [vmem:[#allocation2 + $0x138] sm:$0xff]  ;;  %v287_v50 = vpack.c.bf16 %v241_v47, %v239_v46  ;;  %v243_v52 = vld [vmem:[#allocation2 + $0x120] sm:$0xff]  ;;  %v245_v53 = vld [vmem:[#allocation2 + $0x130] sm:$0xff]  ;;  %v8547_v35 = vshrl.u32 %v337_v34, 7 }
 0x103   :  { %1009 = vmatpush1.bf16.msra.mxu1 %v7168_v56  ;;  %v290_v51 = vpack.c.bf16 %v246_v49, %v244_v48  ;;  %v289_v56 = vpack.c.bf16 %v245_v53, %v243_v52  ;;  %v247_v58 = vld [vmem:[#allocation2 + $0x140] sm:$0xff]  ;;  %v249_v59 = vld [vmem:[#allocation2 + $0x150] sm:$0xff]  ;;  %v252_v60 = vld [vmem:[#allocation2 + $0x168] sm:$0xff] }
 0x104   :  { %522 = vmatpush1.bf16.msra.mxu0 %v7129_v18  ;;  %1010 = vmatprep.subr.bf16.mxu1 %v7169_v57  ;;  %v7183_v18 = vld [vmem:[#allocation8 + $0x90] ss:$8 sps:$4 sm:$0xff]   ;;  %v8559_v40 = vsub.s32 1, %v8547_v35  ;;  %v8576_v49 = vld [vmem:[#allocation10 + $0x48] ss:$12 sps:$4 sm:$0xff]  }
 0x105   :  { %523 = vmatprep.subr.bf16.mxu0 %v7130_v19  ;;  %v7184_v19 = vld [vmem:[#allocation8 + $0xa4] ss:$8 sps:$4 sm:$0xff]   ;;  %v254_v61 = vld [vmem:[#allocation2 + $0x178] sm:$0xff] }
 0x106   :  { %v258_v4 = vld [vmem:[#allocation2 + $0x198] sm:$0xff] }
 0x107   :  { %1011 = vmatpush1.bf16.msra.mxu1 %v7171_v62  ;;  %v291_v62 = vpack.c.bf16 %v249_v59, %v247_v58  ;;  %v8572_v46 = vld [vmem:[#allocation10 + $0x4c] ss:$12 sps:$4 sm:$0xff]  }
 0x108   :  { %524 = vmatpush1.bf16.msra.mxu0 %v7132_v20  ;;  %1012 = vmatprep.subr.bf16.mxu1 %v7172_v63  ;;  %v279_v20 = vpack.c.bf16 %v225_v15, %v223_v14  ;;  %v294_v63 = vpack.c.bf16 %v254_v61, %v252_v60  ;;  %v262_v14 = vld [vmem:[#allocation2 + $0x1b8] sm:$0xff]  ;;  %v8585_v59 = vld [vmem:[#allocation10 + $0x60] ss:$12 sps:$4 sm:$0xff]  }
 0x109   :  { %525 = vmatprep.subr.bf16.mxu0 %v7133_v21  ;;  %v282_v21 = vpack.c.bf16 %v230_v17, %v228_v16  ;;  %v259_v17 = vld [vmem:[#allocation2 + $0x1a0] sm:$0xff]  ;;  %v8588_v61 = vld [vmem:[#allocation10 + $0x7c] ss:$12 sps:$4 sm:$0xff]  }
 0x10b   :  { %1013 = vmatpush1.bf16.msra.mxu1 %v7174_v2  ;;  %v7195_v2 = vld [vmem:[#allocation8 + $0xd0] ss:$8 sps:$4 sm:$0xff]  }
 0x10c   :  { %526 = vmatpush1.bf16.msra.mxu0 %v7135_v22  ;;  %1014 = vmatprep.subr.bf16.mxu1 %v7175_v3  ;;  %v7186_v22 = vld [vmem:[#allocation8 + $0xa0] ss:$8 sps:$4 sm:$0xff]  }
 0x10d   :  { %527 = vmatprep.subr.bf16.mxu0 %v7136_v23  ;;  %v7187_v23 = vld [vmem:[#allocation8 + $0xb4] ss:$8 sps:$4 sm:$0xff]   ;;  %v256_v3 = vld [vmem:[#allocation2 + $0x188] sm:$0xff] }
 0x10e   :  { %v296_v7 = vpack.c.bf16 %v258_v4, %v256_v3  ;;  %v8592_v3 = vld [vmem:[#allocation10 + $0x78] ss:$12 sps:$4 sm:$0xff]  }
 0x10f   :  { %1015 = vmatpush1.bf16.msra.mxu1 %v7177_v8  ;;  %v7198_v8 = vld [vmem:[#allocation8 + $0xe0] ss:$8 sps:$4 sm:$0xff]  }
 0x110   :  { %528 = vmatpush1.bf16.msra.mxu0 %v7138_v24  ;;  %1016 = vmatprep.subr.bf16.mxu1 %v7178_v9  ;;  %v227_v24 = vld [vmem:[#allocation2 + $0xa0] sm:$0xff]  ;;  %v7199_v9 = vld [vmem:[#allocation8 + $0xf4] ss:$8 sps:$4 sm:$0xff]  }
 0x111   :  { %529 = vmatprep.subr.bf16.mxu0 %v7139_v25  ;;  %v229_v25 = vld [vmem:[#allocation2 + $0xb0] sm:$0xff] }
 0x113   :  { %1017 = vmatpush1.bf16.msra.mxu1 %v7180_v12  ;;  %v7201_v12 = vld [vmem:[#allocation8 + $0xf0] ss:$8 sps:$4 sm:$0xff]  }
 0x114   :  { %530 = vmatpush1.bf16.msra.mxu0 %v7141_v26  ;;  %1018 = vmatprep.subr.bf16.mxu1 %v7181_v13  ;;  %v232_v26 = vld [vmem:[#allocation2 + $0xc8] sm:$0xff] }
 0x115   :  { %531 = vmatprep.subr.bf16.mxu0 %v7142_v27  ;;  %v234_v27 = vld [vmem:[#allocation2 + $0xd8] sm:$0xff]  ;;  %v260_v13 = vld [vmem:[#allocation2 + $0x1a8] sm:$0xff] }
 0x116   :  { %v298_v16 = vpack.c.bf16 %v262_v14, %v260_v13  ;;  %v8601_v13 = vld [vmem:[#allocation10 + $0x90] ss:$12 sps:$4 sm:$0xff]  }
 0x117   :  { %1019 = vmatpush1.bf16.msra.mxu1 %v7183_v18  ;;  %v261_v18 = vld [vmem:[#allocation2 + $0x1b0] sm:$0xff] }
 0x118   :  { %532 = vmatpush1.bf16.msra.mxu0 %v7144_v28  ;;  %1020 = vmatprep.subr.bf16.mxu1 %v7184_v19  ;;  %v7189_v28 = vld [vmem:[#allocation8 + $0xb0] ss:$8 sps:$4 sm:$0xff]   ;;  %v264_v19 = vld [vmem:[#allocation2 + $0x1c8] sm:$0xff] }
 0x119   :  { %533 = vmatprep.subr.bf16.mxu0 %v7145_v29  ;;  %v7190_v29 = vld [vmem:[#allocation8 + $0xc4] ss:$8 sps:$4 sm:$0xff]  }
 0x11b   :  { %1021 = vmatpush1.bf16.msra.mxu1 %v7186_v22 }
 0x11c   :  { %534 = vmatpush1.bf16.msra.mxu0 %v7147_v30  ;;  %v281_v30 = vpack.c.bf16 %v229_v25, %v227_v24  ;;  %1022 = vmatprep.subr.bf16.mxu1 %v7187_v23  ;;  %v263_v23 = vld [vmem:[#allocation2 + $0x1c0] sm:$0xff]  ;;  %v265_v24 = vld [vmem:[#allocation2 + $0x1d0] sm:$0xff]  ;;  %v268_v25 = vld [vmem:[#allocation2 + $0x1e8] sm:$0xff] }
 0x11d   :  { %535 = vmatprep.subr.bf16.mxu0 %v7148_v31  ;;  %v284_v31 = vpack.c.bf16 %v234_v27, %v232_v26  ;;  %v270_v26 = vld [vmem:[#allocation2 + $0x1f8] sm:$0xff]  ;;  %v299_v27 = vpack.c.bf16 %v265_v24, %v263_v23  ;;  %v8614_v24 = vld [vmem:[#allocation10 + $0xc4] ss:$12 sps:$4 sm:$0xff]  }
 0x11f   :  { %1023 = vmatpush1.bf16.msra.mxu1 %v7189_v28  ;;  %v302_v28 = vpack.c.bf16 %v270_v26, %v268_v25 }
 0x120   :  { %536 = vmatpush1.bf16.msra.mxu0 %v7150_v32  ;;  %v7192_v32 = vld [vmem:[#allocation8 + $0xc0] ss:$8 sps:$4 sm:$0xff]   ;;  %1024 = vmatprep.subr.bf16.mxu1 %v7190_v29 }
 0x121   :  { %537 = vmatprep.subr.bf16.mxu0 %v7151_v33  ;;  %v7193_v33 = vld [vmem:[#allocation8 + $0xd4] ss:$8 sps:$4 sm:$0xff]   ;;  %v267_v29 = vld [vmem:[#allocation2 + $0x1e0] sm:$0xff] }
 0x123   :  { %1025 = vmatpush1.bf16.msra.mxu1 %v7192_v32  ;;  %v7202_v32 = vld [vmem:[#allocation10] ss:$12 sps:$4 sm:$0xff]  }
 0x124   :  { %538 = vmatpush1.bf16.msra.mxu0 %v7153_v37  ;;  %v238_v37 = vld [vmem:[#allocation2 + $0xf8] sm:$0xff]  ;;  %1026 = vmatprep.subr.bf16.mxu1 %v7193_v33  ;;  %v7204_v33 = vld [vmem:[#allocation10 + $0x4] ss:$12 sps:$4 sm:$0xff]  }
 0x125   :  { %v286_v39 = vpack.c.bf16 %v238_v37, %v236_v36  ;;  %1626 = vmatprep.subr.bf16.mxu0 %v7204_v33  ;;  %v8549_v36 = vld [vmem:[#allocation10 + $0x18] ss:$12 sps:$4 sm:$0xff]   ;;  %v7207_v37 = vld [vmem:[#allocation10 + $0x1c] ss:$12 sps:$4 sm:$0xff]  }
 0x127   :  { %540 = vmatmul.mubr.bf16.vlgmr.msra.gmra.mrb[0].mxu0 %v271_v43  ;;  %v242_v43 = vld [vmem:[#allocation2 + $0x118] sm:$0xff]  ;;  %1027 = vmatpush1.bf16.msra.mxu1 %v7195_v2 }
 0x128   :  { %549 = vmatprep.mubr.bf16.mxu0 %v274_v45  ;;  %v288_v45 = vpack.c.bf16 %v242_v43, %v240_v42  ;;  %1028 = vmatprep.subr.bf16.mxu1 %v7196_v6  ;;  %v8567_v43 = vld [vmem:[#allocation10 + $0x30] ss:$12 sps:$4 sm:$0xff]   ;;  %v8596_v6 = vld [vmem:[#allocation10 + $0x94] ss:$12 sps:$4 sm:$0xff]  }
 0x129   :  { %1627 = vmatpush1.bf16.msra.mxu0 %v7202_v32 }
 0x12a   :  { %1628 = vmatprep.subr.bf16.mxu0 %v7207_v37 }
 0x12b   :  { %1029 = vmatpush1.bf16.msra.mxu1 %v7198_v8 }
 0x12c   :  { %1030 = vmatprep.subr.bf16.mxu1 %v7199_v9 }
 0x12d   :  { %1629 = vmatpush1.bf16.msra.mxu0 %v8549_v36 }
 0x12f   :  { %550 = vmatmul.mubr.bf16.gmra.mrb[4].mxu0 %v273_v54  ;;  %v248_v54 = vld [vmem:[#allocation2 + $0x148] sm:$0xff]  ;;  %1031 = vmatpush1.bf16.msra.mxu1 %v7201_v12 }
 0x130   :  { %559 = vmatprep.mubr.bf16.mxu0 %v276_v55  ;;  %v250_v55 = vld [vmem:[#allocation2 + $0x158] sm:$0xff]  ;;  %6792 = vmatprep.subr.bf16.mxu1 %v7204_v33 }
 0x131   :  { %v292_v57 = vpack.c.bf16 %v250_v55, %v248_v54  ;;  %v8581_v55 = vld [vmem:[#allocation10 + $0x64] ss:$12 sps:$4 sm:$0xff]   ;;  %v8624_v33 = vld [vmem:[#allocation10 + $0xdc] ss:$12 sps:$4 sm:$0xff]  }
 0x137   :  { %560 = vmatmul.mubr.bf16.gmra.mrb[8].mxu0 %v275_v0  ;;  %v251_v0 = vld [vmem:[#allocation2 + $0x160] sm:$0xff] }
 0x138   :  { %569 = vmatprep.mubr.bf16.mxu0 %v278_v1  ;;  %v253_v1 = vld [vmem:[#allocation2 + $0x170] sm:$0xff] }
 0x139   :  { %v293_v5 = vpack.c.bf16 %v253_v1, %v251_v0 }
 0x13f   :  { %570 = vmatmul.mubr.bf16.gmra.mrb[12].mxu0 %v277_v10  ;;  %v255_v10 = vld [vmem:[#allocation2 + $0x180] sm:$0xff] }
 0x140   :  { %579 = vmatprep.mubr.bf16.mxu0 %v280_v11  ;;  %v257_v11 = vld [vmem:[#allocation2 + $0x190] sm:$0xff] }
 0x141   :  { %v295_v15 = vpack.c.bf16 %v257_v11, %v255_v10 }
 0x147   :  { %580 = vmatmul.mubr.bf16.gmra.mrb[16].mxu0 %v279_v20  ;;  %v266_v20 = vld [vmem:[#allocation2 + $0x1d8] sm:$0xff] }
 0x148   :  { %589 = vmatprep.mubr.bf16.mxu0 %v282_v21  ;;  %v297_v21 = vpack.c.bf16 %v261_v18, %v259_v17  ;;  %v300_v22 = vpack.c.bf16 %v266_v20, %v264_v19 }
 0x14f   :  { %590 = vmatmul.mubr.bf16.gmra.mrb[20].mxu0 %v281_v30  ;;  %v269_v30 = vld [vmem:[#allocation2 + $0x1f0] sm:$0xff] }
 0x150   :  { %599 = vmatprep.mubr.bf16.mxu0 %v284_v31  ;;  %v301_v31 = vpack.c.bf16 %v269_v30, %v267_v29 }
 0x157   :  { %600 = vmatmul.mubr.bf16.gmra.mrb[24].mxu0 %v283_v38  ;;  %v8552_v38 = vsub.s32 0, %v8547_v35 }
 0x158   :  { %609 = vmatprep.mubr.bf16.mxu0 %v286_v39  ;;  %v335_v39 = vld [vmem:[%s9866_s26] sm:$0x3] }
 0x159   :  { %v8562_v41 = vrot.slane %v335_v39, %v8552_v38  ;;  %v8565_v42 = vrot.slane %v335_v39, %v8559_v40 }
 0x15f   :  { %610 = vmatmul.mubr.bf16.gmra.mrb[28].mxu0 %v285_v44  ;;  %v8569_v44 = vld [vmem:[#allocation10 + $0x34] ss:$12 sps:$4 sm:$0xff]  }
 0x160   :  { %619 = vmatprep.mubr.bf16.mxu0 %v288_v45  ;;  %1630 = vmatprep.subr.bf16.mxu0 %v8569_v44 }
 0x161   :  { %1631 = vmatpush1.bf16.msra.mxu0 %v8567_v43 }
 0x162   :  { %1632 = vmatprep.subr.bf16.mxu0 %v8572_v46 }
 0x165   :  { %1633 = vmatpush1.bf16.msra.mxu0 %v8576_v49 }
 0x166   :  { %1634 = vmatprep.subr.bf16.mxu0 %v8581_v55 }
 0x167   :  { %620 = vmatmul.mubr.bf16.gmra.mrb[32].mxu0 %v287_v50 }
 0x168   :  { %629 = vmatprep.mubr.bf16.mxu0 %v290_v51 }
 0x169   :  { %1635 = vmatpush1.bf16.msra.mxu0 %v8585_v59 }
 0x16a   :  { %1636 = vmatprep.subr.bf16.mxu0 %v8588_v61 }
 0x16d   :  { %1637 = vmatpush1.bf16.msra.mxu0 %v8592_v3 }
 0x16e   :  { %1638 = vmatprep.subr.bf16.mxu0 %v8596_v6 }
 0x16f   :  { %630 = vmatmul.mubr.bf16.gmra.mrb[36].mxu0 %v289_v56 }
 0x170   :  { %639 = vmatprep.mubr.bf16.mxu0 %v292_v57 }
 0x171   :  { %1639 = vmatpush1.bf16.msra.mxu0 %v8601_v13 }
 0x177   :  { %640 = vmatmul.mubr.bf16.gmra.mrb[40].mxu0 %v291_v62 }
 0x178   :  { %649 = vmatprep.mubr.bf16.mxu0 %v294_v63 }
 0x17f   :  { %650 = vmatmul.mubr.bf16.gmra.mrb[44].mxu0 %v293_v5 }
 0x180   :  { %659 = vmatprep.mubr.bf16.mxu0 %v296_v7 }
 0x187   :  { %660 = vmatmul.mubr.bf16.gmra.mrb[48].mxu0 %v295_v15  ;;  %v8604_v15 = vld [vmem:[#allocation10 + $0xac] ss:$12 sps:$4 sm:$0xff]  }
 0x188   :  { %669 = vmatprep.mubr.bf16.mxu0 %v298_v16  ;;  %1640 = vmatprep.subr.bf16.mxu0 %v8604_v15 }
 0x18f   :  { %670 = vmatmul.mubr.bf16.gmra.mrb[52].mxu0 %v297_v21  ;;  %v8609_v21 = vld [vmem:[#allocation10 + $0xa8] ss:$12 sps:$4 sm:$0xff]  }
 0x190   :  { %679 = vmatprep.mubr.bf16.mxu0 %v300_v22  ;;  %1641 = vmatpush1.bf16.msra.mxu0 %v8609_v21 }
 0x191   :  { %1642 = vmatprep.subr.bf16.mxu0 %v8614_v24 }
 0x197   :  { %680 = vmatmul.mubr.bf16.gmra.mrb[56].mxu0 %v299_v27 }
 0x198   :  { %689 = vmatprep.mubr.bf16.mxu0 %v302_v28 }
 0x19f   :  { %690 = vmatmul.mubr.bf16.gmra.mrb[60].mxu0 %v301_v31  ;;  %v8620_v31 = vld [vmem:[#allocation10 + $0xc0] ss:$12 sps:$4 sm:$0xff]  }
 0x1a0   :  { %1643 = vmatpush1.bf16.msra.mxu0 %v8620_v31 }
 0x1a1   :  { %1644 = vmatprep.subr.bf16.mxu0 %v8624_v33 }
 0x1fa   :  { %v541_v45 = vpop.f32.mrb[0].mxu0 }
 0x1fb   :  { %v542_v47 = vadd.f32 %v541_v45, %v8562_v41  ;;  %v543_v48 = vpop.f32.mrb[1].mxu0 }
 0x1fc   :  { %v545_v50 = vpop.f32.mrb[2].mxu0  ;;  %v544_v51 = vadd.f32 %v543_v48, %v8565_v42 }
 0x1fd   :  { %v700_v52 = vmax.f32 %v542_v47, 0.0  ;;  %v546_v53 = vadd.f32 %v545_v50, %v8562_v41  ;;  %v547_v54 = vpop.f32.mrb[3].mxu0  ;;  %v8634_v47 = vld [vmem:[#allocation10 + $0xf4] ss:$12 sps:$4 sm:$0xff]  }
 0x1fe   :  { %v548_v56 = vadd.f32 %v547_v54, %v8565_v42  ;;  %v701_v57 = vmax.f32 %v544_v51, 0.0  ;;  %v8640_v54 = vld [vmem:[#allocation10 + $0xf0] ss:$12 sps:$4 sm:$0xff]  }
 0x1ff   :  { %5749 = vst [vmem:[#allocation19] sm:$0xff] %v700_v52  ;;  %v702_v58 = vmax.f32 %v546_v53, 0.0 }
 0x200   :  { %v703_v60 = vmax.f32 %v548_v56, 0.0  ;;  %5750 = vst [vmem:[#allocation19 + $0x8] sm:$0xff] %v701_v57  ;;  %v8644_v56 = vld [vmem:[#allocation10 + $0x10c] ss:$12 sps:$4 sm:$0xff]  }
 0x201   :  { %5751 = vst [vmem:[#allocation19 + $0x10] sm:$0xff] %v702_v58  ;;  %v764_v62 = vpack.c.bf16 %v702_v58, %v700_v52 }
 0x202   :  { %v551_v63 = vpop.f32.mrb[4].mxu0  ;;  %v765_v0 = vpack.c.bf16 %v703_v60, %v701_v57  ;;  %5752 = vst [vmem:[#allocation19 + $0x18] sm:$0xff] %v703_v60 }
 0x203   :  { %v552_v1 = vadd.f32 %v551_v63, %v8562_v41  ;;  %v553_v2 = vpop.f32.mrb[5].mxu0  ;;  %v8649_v63 = vld [vmem:[#allocation10 + $0x108] ss:$12 sps:$4 sm:$0xff]  }
 0x204   :  { %v554_v4 = vadd.f32 %v553_v2, %v8565_v42  ;;  %v555_v5 = vpop.f32.mrb[6].mxu0  ;;  %1032 = vmatprep.mubr.bf16.mxu1 %v765_v0 }
 0x205   :  { %v704_v7 = vmax.f32 %v552_v1, 0.0  ;;  %v556_v8 = vadd.f32 %v555_v5, %v8562_v41  ;;  %v557_v9 = vpop.f32.mrb[7].mxu0  ;;  %1033 = vmatmul.mubr.bf16.vlgmr.msra.gmra.mrb[0].mxu1 %v764_v62  ;;  %v8654_v1 = vld [vmem:[#allocation10 + $0x124] ss:$12 sps:$4 sm:$0xff]  }
 0x206   :  { %v705_v10 = vmax.f32 %v554_v4, 0.0  ;;  %v558_v11 = vadd.f32 %v557_v9, %v8565_v42  ;;  %6808 = vmatpush1.bf16.msra.mxu1 %v7202_v32 }
 0x207   :  { %5753 = vst [vmem:[#allocation19 + $0x20] sm:$0xff] %v704_v7  ;;  %v706_v12 = vmax.f32 %v556_v8, 0.0  ;;  %6793 = vmatprep.subr.bf16.mxu1 %v7207_v37  ;;  %v8660_v8 = vld [vmem:[#allocation10 + $0x120] ss:$12 sps:$4 sm:$0xff]  }
 0x208   :  { %5754 = vst [vmem:[#allocation19 + $0x28] sm:$0xff] %v705_v10  ;;  %v707_v14 = vmax.f32 %v558_v11, 0.0 }
 0x209   :  { %5755 = vst [vmem:[#allocation19 + $0x30] sm:$0xff] %v706_v12  ;;  %v766_v16 = vpack.c.bf16 %v706_v12, %v704_v7 }
 0x20a   :  { %5756 = vst [vmem:[#allocation19 + $0x38] sm:$0xff] %v707_v14  ;;  %v561_v17 = vpop.f32.mrb[8].mxu0  ;;  %v767_v18 = vpack.c.bf16 %v707_v14, %v705_v10  ;;  %6809 = vmatpush1.bf16.msra.mxu1 %v8549_v36  ;;  %v8664_v10 = vld [vmem:[#allocation10 + $0x13c] ss:$12 sps:$4 sm:$0xff]  }
 0x20b   :  { %v562_v19 = vadd.f32 %v561_v17, %v8562_v41  ;;  %v563_v20 = vpop.f32.mrb[9].mxu0  ;;  %6794 = vmatprep.subr.bf16.mxu1 %v8569_v44  ;;  %v8629_v44 = vld [vmem:[#allocation10 + $0xd8] ss:$12 sps:$4 sm:$0xff]  }
 0x20c   :  { %v564_v22 = vadd.f32 %v563_v20, %v8565_v42  ;;  %v565_v23 = vpop.f32.mrb[10].mxu0  ;;  %1042 = vmatprep.mubr.bf16.mxu1 %v767_v18  ;;  %1645 = vmatpush1.bf16.msra.mxu0 %v8629_v44  ;;  %v8669_v17 = vld [vmem:[#allocation10 + $0x138] ss:$12 sps:$4 sm:$0xff]  }
 0x20d   :  { %v708_v25 = vmax.f32 %v562_v19, 0.0  ;;  %v566_v26 = vadd.f32 %v565_v23, %v8562_v41  ;;  %v567_v27 = vpop.f32.mrb[11].mxu0  ;;  %1043 = vmatmul.mubr.bf16.gmra.mrb[4].mxu1 %v766_v16  ;;  %1646 = vmatprep.subr.bf16.mxu0 %v8634_v47  ;;  %v8674_v19 = vld [vmem:[#allocation10 + $0x154] ss:$12 sps:$4 sm:$0xff]  }
 0x20e   :  { %v709_v28 = vmax.f32 %v564_v22, 0.0  ;;  %v568_v29 = vadd.f32 %v567_v27, %v8565_v42  ;;  %6810 = vmatpush1.bf16.msra.mxu1 %v8567_v43 }
 0x20f   :  { %5757 = vst [vmem:[#allocation19 + $0x40] sm:$0xff] %v708_v25  ;;  %v710_v30 = vmax.f32 %v566_v26, 0.0  ;;  %6795 = vmatprep.subr.bf16.mxu1 %v8572_v46  ;;  %v8680_v26 = vld [vmem:[#allocation10 + $0x150] ss:$12 sps:$4 sm:$0xff]  }
 0x210   :  { %5758 = vst [vmem:[#allocation19 + $0x48] sm:$0xff] %v709_v28  ;;  %v711_v32 = vmax.f32 %v568_v29, 0.0  ;;  %1647 = vmatpush1.bf16.msra.mxu0 %v8640_v54 }
 0x211   :  { %5759 = vst [vmem:[#allocation19 + $0x50] sm:$0xff] %v710_v30  ;;  %v768_v34 = vpack.c.bf16 %v710_v30, %v708_v25  ;;  %1648 = vmatprep.subr.bf16.mxu0 %v8644_v56 }
 0x212   :  { %5760 = vst [vmem:[#allocation19 + $0x58] sm:$0xff] %v711_v32  ;;  %v571_v36 = vpop.f32.mrb[12].mxu0  ;;  %v769_v37 = vpack.c.bf16 %v711_v32, %v709_v28  ;;  %6811 = vmatpush1.bf16.msra.mxu1 %v8576_v49 }
 0x213   :  { %v572_v39 = vadd.f32 %v571_v36, %v8562_v41  ;;  %v573_v43 = vpop.f32.mrb[13].mxu0  ;;  %6796 = vmatprep.subr.bf16.mxu1 %v8581_v55 }
 0x214   :  { %v574_v45 = vadd.f32 %v573_v43, %v8565_v42  ;;  %v575_v46 = vpop.f32.mrb[14].mxu0  ;;  %1052 = vmatprep.mubr.bf16.mxu1 %v769_v37  ;;  %1649 = vmatpush1.bf16.msra.mxu0 %v8649_v63 }
 0x215   :  { %v712_v48 = vmax.f32 %v572_v39, 0.0  ;;  %v576_v49 = vadd.f32 %v575_v46, %v8562_v41  ;;  %v577_v50 = vpop.f32.mrb[15].mxu0  ;;  %1053 = vmatmul.mubr.bf16.gmra.mrb[8].mxu1 %v768_v34  ;;  %1650 = vmatprep.subr.bf16.mxu0 %v8654_v1 }
 0x216   :  { %v713_v51 = vmax.f32 %v574_v45, 0.0  ;;  %v578_v52 = vadd.f32 %v577_v50, %v8565_v42  ;;  %6812 = vmatpush1.bf16.msra.mxu1 %v8585_v59 }
 0x217   :  { %5761 = vst [vmem:[#allocation19 + $0x60] sm:$0xff] %v712_v48  ;;  %v714_v53 = vmax.f32 %v576_v49, 0.0  ;;  %6797 = vmatprep.subr.bf16.mxu1 %v8588_v61 }
 0x218   :  { %5762 = vst [vmem:[#allocation19 + $0x68] sm:$0xff] %v713_v51  ;;  %v715_v55 = vmax.f32 %v578_v52, 0.0  ;;  %1651 = vmatpush1.bf16.msra.mxu0 %v8660_v8 }
 0x219   :  { %5763 = vst [vmem:[#allocation19 + $0x70] sm:$0xff] %v714_v53  ;;  %v770_v57 = vpack.c.bf16 %v714_v53, %v712_v48  ;;  %1652 = vmatprep.subr.bf16.mxu0 %v8664_v10 }
 0x21a   :  { %5764 = vst [vmem:[#allocation19 + $0x78] sm:$0xff] %v715_v55  ;;  %v581_v58 = vpop.f32.mrb[16].mxu0  ;;  %v771_v60 = vpack.c.bf16 %v715_v55, %v713_v51  ;;  %6813 = vmatpush1.bf16.msra.mxu1 %v8592_v3 }
 0x21b   :  { %v582_v59 = vadd.f32 %v581_v58, %v8562_v41  ;;  %v583_v62 = vpop.f32.mrb[17].mxu0  ;;  %6798 = vmatprep.subr.bf16.mxu1 %v8596_v6 }
 0x21c   :  { %v584_v61 = vadd.f32 %v583_v62, %v8565_v42  ;;  %v585_v0 = vpop.f32.mrb[18].mxu0  ;;  %1062 = vmatprep.mubr.bf16.mxu1 %v771_v60  ;;  %1653 = vmatpush1.bf16.msra.mxu0 %v8669_v17 }
 0x21d   :  { %v716_v2 = vmax.f32 %v582_v59, 0.0  ;;  %v586_v3 = vadd.f32 %v585_v0, %v8562_v41  ;;  %v587_v4 = vpop.f32.mrb[19].mxu0  ;;  %1063 = vmatmul.mubr.bf16.gmra.mrb[12].mxu1 %v770_v57  ;;  %1654 = vmatprep.subr.bf16.mxu0 %v8674_v19 }
 0x21e   :  { %v717_v5 = vmax.f32 %v584_v61, 0.0  ;;  %v588_v7 = vadd.f32 %v587_v4, %v8565_v42  ;;  %6814 = vmatpush1.bf16.msra.mxu1 %v8601_v13 }
 0x21f   :  { %5765 = vst [vmem:[#allocation19 + $0x80] sm:$0xff] %v716_v2  ;;  %v718_v6 = vmax.f32 %v586_v3, 0.0  ;;  %6799 = vmatprep.subr.bf16.mxu1 %v8604_v15 }
 0x220   :  { %5766 = vst [vmem:[#allocation19 + $0x88] sm:$0xff] %v717_v5  ;;  %v719_v9 = vmax.f32 %v588_v7, 0.0  ;;  %1655 = vmatpush1.bf16.msra.mxu0 %v8680_v26 }
 0x221   :  { %5767 = vst [vmem:[#allocation19 + $0x90] sm:$0xff] %v718_v6  ;;  %v772_v11 = vpack.c.bf16 %v718_v6, %v716_v2 }
 0x222   :  { %5768 = vst [vmem:[#allocation19 + $0x98] sm:$0xff] %v719_v9  ;;  %v591_v12 = vpop.f32.mrb[20].mxu0  ;;  %v773_v14 = vpack.c.bf16 %v719_v9, %v717_v5  ;;  %6815 = vmatpush1.bf16.msra.mxu1 %v8609_v21 }
 0x223   :  { %v592_v13 = vadd.f32 %v591_v12, %v8562_v41  ;;  %v593_v16 = vpop.f32.mrb[21].mxu0  ;;  %6800 = vmatprep.subr.bf16.mxu1 %v8614_v24 }
 0x224   :  { %v594_v15 = vadd.f32 %v593_v16, %v8565_v42  ;;  %v595_v18 = vpop.f32.mrb[22].mxu0  ;;  %1072 = vmatprep.mubr.bf16.mxu1 %v773_v14 }
 0x225   :  { %v720_v20 = vmax.f32 %v592_v13, 0.0  ;;  %v596_v21 = vadd.f32 %v595_v18, %v8562_v41  ;;  %v597_v22 = vpop.f32.mrb[23].mxu0  ;;  %1073 = vmatmul.mubr.bf16.gmra.mrb[16].mxu1 %v772_v11 }
 0x226   :  { %v721_v23 = vmax.f32 %v594_v15, 0.0  ;;  %v598_v25 = vadd.f32 %v597_v22, %v8565_v42  ;;  %6816 = vmatpush1.bf16.msra.mxu1 %v8620_v31 }
 0x227   :  { %5769 = vst [vmem:[#allocation19 + $0xa0] sm:$0xff] %v720_v20  ;;  %v722_v24 = vmax.f32 %v596_v21, 0.0  ;;  %6801 = vmatprep.subr.bf16.mxu1 %v8624_v33 }
 0x228   :  { %5770 = vst [vmem:[#allocation19 + $0xa8] sm:$0xff] %v721_v23  ;;  %v723_v27 = vmax.f32 %v598_v25, 0.0 }
 0x229   :  { %5771 = vst [vmem:[#allocation19 + $0xb0] sm:$0xff] %v722_v24  ;;  %v774_v28 = vpack.c.bf16 %v722_v24, %v720_v20 }
 0x22a   :  { %5772 = vst [vmem:[#allocation19 + $0xb8] sm:$0xff] %v723_v27  ;;  %v601_v29 = vpop.f32.mrb[24].mxu0  ;;  %v775_v30 = vpack.c.bf16 %v723_v27, %v721_v23  ;;  %6817 = vmatpush1.bf16.msra.mxu1 %v8629_v44 }
 0x22b   :  { %v602_v31 = vadd.f32 %v601_v29, %v8562_v41  ;;  %v603_v32 = vpop.f32.mrb[25].mxu0  ;;  %6802 = vmatprep.subr.bf16.mxu1 %v8634_v47 }
 0x22c   :  { %v604_v33 = vadd.f32 %v603_v32, %v8565_v42  ;;  %v605_v34 = vpop.f32.mrb[26].mxu0  ;;  %1082 = vmatprep.mubr.bf16.mxu1 %v775_v30 }
 0x22d   :  { %v724_v36 = vmax.f32 %v602_v31, 0.0  ;;  %v606_v37 = vadd.f32 %v605_v34, %v8562_v41  ;;  %v607_v39 = vpop.f32.mrb[27].mxu0  ;;  %1083 = vmatmul.mubr.bf16.gmra.mrb[20].mxu1 %v774_v28 }
 0x22e   :  { %v725_v43 = vmax.f32 %v604_v33, 0.0  ;;  %v608_v45 = vadd.f32 %v607_v39, %v8565_v42  ;;  %6818 = vmatpush1.bf16.msra.mxu1 %v8640_v54 }
 0x22f   :  { %5773 = vst [vmem:[#allocation19 + $0xc0] sm:$0xff] %v724_v36  ;;  %v726_v44 = vmax.f32 %v606_v37, 0.0  ;;  %6803 = vmatprep.subr.bf16.mxu1 %v8644_v56 }
 0x230   :  { %5774 = vst [vmem:[#allocation19 + $0xc8] sm:$0xff] %v725_v43  ;;  %v727_v46 = vmax.f32 %v608_v45, 0.0 }
 0x231   :  { %5775 = vst [vmem:[#allocation19 + $0xd0] sm:$0xff] %v726_v44  ;;  %v776_v47 = vpack.c.bf16 %v726_v44, %v724_v36 }
 0x232   :  { %5776 = vst [vmem:[#allocation19 + $0xd8] sm:$0xff] %v727_v46  ;;  %v611_v48 = vpop.f32.mrb[28].mxu0  ;;  %v777_v49 = vpack.c.bf16 %v727_v46, %v725_v43  ;;  %6819 = vmatpush1.bf16.msra.mxu1 %v8649_v63 }
 0x233   :  { %v612_v50 = vadd.f32 %v611_v48, %v8562_v41  ;;  %v613_v51 = vpop.f32.mrb[29].mxu0  ;;  %6804 = vmatprep.subr.bf16.mxu1 %v8654_v1 }
 0x234   :  { %v614_v52 = vadd.f32 %v613_v51, %v8565_v42  ;;  %v615_v53 = vpop.f32.mrb[30].mxu0  ;;  %1092 = vmatprep.mubr.bf16.mxu1 %v777_v49 }
 0x235   :  { %v728_v54 = vmax.f32 %v612_v50, 0.0  ;;  %v616_v55 = vadd.f32 %v615_v53, %v8562_v41  ;;  %v617_v56 = vpop.f32.mrb[31].mxu0  ;;  %1093 = vmatmul.mubr.bf16.gmra.mrb[24].mxu1 %v776_v47 }
 0x236   :  { %v729_v57 = vmax.f32 %v614_v52, 0.0  ;;  %v618_v58 = vadd.f32 %v617_v56, %v8565_v42  ;;  %6820 = vmatpush1.bf16.msra.mxu1 %v8660_v8 }
 0x237   :  { %5777 = vst [vmem:[#allocation19 + $0xe0] sm:$0xff] %v728_v54  ;;  %v730_v60 = vmax.f32 %v616_v55, 0.0  ;;  %6805 = vmatprep.subr.bf16.mxu1 %v8664_v10 }
 0x238   :  { %5778 = vst [vmem:[#allocation19 + $0xe8] sm:$0xff] %v729_v57  ;;  %v731_v59 = vmax.f32 %v618_v58, 0.0 }
 0x239   :  { %5779 = vst [vmem:[#allocation19 + $0xf0] sm:$0xff] %v730_v60  ;;  %v778_v62 = vpack.c.bf16 %v730_v60, %v728_v54 }
 0x23a   :  { %5780 = vst [vmem:[#allocation19 + $0xf8] sm:$0xff] %v731_v59  ;;  %v621_v63 = vpop.f32.mrb[32].mxu0  ;;  %v779_v61 = vpack.c.bf16 %v731_v59, %v729_v57  ;;  %6821 = vmatpush1.bf16.msra.mxu1 %v8669_v17 }
 0x23b   :  { %v622_v0 = vadd.f32 %v621_v63, %v8562_v41  ;;  %v623_v1 = vpop.f32.mrb[33].mxu0  ;;  %6806 = vmatprep.subr.bf16.mxu1 %v8674_v19 }
 0x23c   :  { %v624_v2 = vadd.f32 %v623_v1, %v8565_v42  ;;  %v625_v3 = vpop.f32.mrb[34].mxu0  ;;  %1102 = vmatprep.mubr.bf16.mxu1 %v779_v61 }
 0x23d   :  { %v732_v4 = vmax.f32 %v622_v0, 0.0  ;;  %v626_v5 = vadd.f32 %v625_v3, %v8562_v41  ;;  %v627_v7 = vpop.f32.mrb[35].mxu0  ;;  %1103 = vmatmul.mubr.bf16.gmra.mrb[28].mxu1 %v778_v62 }
 0x23e   :  { %v733_v6 = vmax.f32 %v624_v2, 0.0  ;;  %v628_v8 = vadd.f32 %v627_v7, %v8565_v42  ;;  %6822 = vmatpush1.bf16.msra.mxu1 %v8680_v26 }
 0x23f   :  { %5781 = vst [vmem:[#allocation19 + $0x100] sm:$0xff] %v732_v4  ;;  %v734_v9 = vmax.f32 %v626_v5, 0.0 }
 0x240   :  { %5782 = vst [vmem:[#allocation19 + $0x108] sm:$0xff] %v733_v6  ;;  %v735_v10 = vmax.f32 %v628_v8, 0.0 }
 0x241   :  { %5783 = vst [vmem:[#allocation19 + $0x110] sm:$0xff] %v734_v9  ;;  %v780_v11 = vpack.c.bf16 %v734_v9, %v732_v4  ;;  %v7249_v4 = vld [vmem:[#allocation10 + $0x16c] ss:$12 sps:$4 sm:$0xff]  }
 0x242   :  { %5784 = vst [vmem:[#allocation19 + $0x118] sm:$0xff] %v735_v10  ;;  %v631_v12 = vpop.f32.mrb[36].mxu0  ;;  %v781_v14 = vpack.c.bf16 %v735_v10, %v733_v6  ;;  %v7247_v6 = vld [vmem:[#allocation10 + $0x168] ss:$12 sps:$4 sm:$0xff]   ;;  %1656 = vmatprep.subr.bf16.mxu0 %v7249_v4  ;;  %6807 = vmatprep.subr.bf16.mxu1 %v7249_v4 }
 0x243   :  { %v632_v13 = vadd.f32 %v631_v12, %v8562_v41  ;;  %v633_v16 = vpop.f32.mrb[37].mxu0  ;;  %1657 = vmatpush1.bf16.msra.mxu0 %v7247_v6  ;;  %6823 = vmatpush1.bf16.msra.mxu1 %v7247_v6 }
 0x244   :  { %v634_v17 = vadd.f32 %v633_v16, %v8565_v42  ;;  %v635_v15 = vpop.f32.mrb[38].mxu0  ;;  %1112 = vmatprep.mubr.bf16.mxu1 %v781_v14 }
 0x245   :  { %v736_v18 = vmax.f32 %v632_v13, 0.0  ;;  %v636_v19 = vadd.f32 %v635_v15, %v8562_v41  ;;  %v637_v20 = vpop.f32.mrb[39].mxu0  ;;  %1113 = vmatmul.mubr.bf16.gmra.mrb[32].mxu1 %v780_v11 }
 0x246   :  { %v737_v21 = vmax.f32 %v634_v17, 0.0  ;;  %v638_v22 = vadd.f32 %v637_v20, %v8565_v42 }
 0x247   :  { %5785 = vst [vmem:[#allocation19 + $0x120] sm:$0xff] %v736_v18  ;;  %v738_v23 = vmax.f32 %v636_v19, 0.0 }
 0x248   :  { %5786 = vst [vmem:[#allocation19 + $0x128] sm:$0xff] %v737_v21  ;;  %v739_v25 = vmax.f32 %v638_v22, 0.0 }
 0x249   :  { %5787 = vst [vmem:[#allocation19 + $0x130] sm:$0xff] %v738_v23  ;;  %v782_v24 = vpack.c.bf16 %v738_v23, %v736_v18 }
 0x24a   :  { %5788 = vst [vmem:[#allocation19 + $0x138] sm:$0xff] %v739_v25  ;;  %v641_v26 = vpop.f32.mrb[40].mxu0  ;;  %v783_v27 = vpack.c.bf16 %v739_v25, %v737_v21 }
 0x24b   :  { %v642_v28 = vadd.f32 %v641_v26, %v8562_v41  ;;  %v643_v29 = vpop.f32.mrb[41].mxu0 }
 0x24c   :  { %v644_v30 = vadd.f32 %v643_v29, %v8565_v42  ;;  %v645_v31 = vpop.f32.mrb[42].mxu0  ;;  %1122 = vmatprep.mubr.bf16.mxu1 %v783_v27 }
 0x24d   :  { %v740_v32 = vmax.f32 %v642_v28, 0.0  ;;  %v646_v33 = vadd.f32 %v645_v31, %v8562_v41  ;;  %v647_v34 = vpop.f32.mrb[43].mxu0  ;;  %1123 = vmatmul.mubr.bf16.gmra.mrb[36].mxu1 %v782_v24 }
 0x24e   :  { %v741_v36 = vmax.f32 %v644_v30, 0.0  ;;  %v648_v37 = vadd.f32 %v647_v34, %v8565_v42 }
 0x24f   :  { %5789 = vst [vmem:[#allocation19 + $0x140] sm:$0xff] %v740_v32  ;;  %v742_v39 = vmax.f32 %v646_v33, 0.0 }
 0x250   :  { %5790 = vst [vmem:[#allocation19 + $0x148] sm:$0xff] %v741_v36  ;;  %v743_v43 = vmax.f32 %v648_v37, 0.0 }
 0x251   :  { %5791 = vst [vmem:[#allocation19 + $0x150] sm:$0xff] %v742_v39  ;;  %v784_v45 = vpack.c.bf16 %v742_v39, %v740_v32 }
 0x252   :  { %5792 = vst [vmem:[#allocation19 + $0x158] sm:$0xff] %v743_v43  ;;  %v651_v44 = vpop.f32.mrb[44].mxu0  ;;  %v785_v46 = vpack.c.bf16 %v743_v43, %v741_v36 }
 0x253   :  { %v652_v47 = vadd.f32 %v651_v44, %v8562_v41  ;;  %v653_v48 = vpop.f32.mrb[45].mxu0 }
 0x254   :  { %v654_v49 = vadd.f32 %v653_v48, %v8565_v42  ;;  %v655_v50 = vpop.f32.mrb[46].mxu0  ;;  %1132 = vmatprep.mubr.bf16.mxu1 %v785_v46 }
 0x255   :  { %v744_v51 = vmax.f32 %v652_v47, 0.0  ;;  %v656_v52 = vadd.f32 %v655_v50, %v8562_v41  ;;  %v657_v53 = vpop.f32.mrb[47].mxu0  ;;  %1133 = vmatmul.mubr.bf16.gmra.mrb[40].mxu1 %v784_v45 }
 0x256   :  { %v745_v54 = vmax.f32 %v654_v49, 0.0  ;;  %v658_v55 = vadd.f32 %v657_v53, %v8565_v42 }
 0x257   :  { %5793 = vst [vmem:[#allocation19 + $0x160] sm:$0xff] %v744_v51  ;;  %v746_v56 = vmax.f32 %v656_v52, 0.0 }
 0x258   :  { %5794 = vst [vmem:[#allocation19 + $0x168] sm:$0xff] %v745_v54  ;;  %v747_v57 = vmax.f32 %v658_v55, 0.0 }
 0x259   :  { %5795 = vst [vmem:[#allocation19 + $0x170] sm:$0xff] %v746_v56  ;;  %v786_v58 = vpack.c.bf16 %v746_v56, %v744_v51 }
 0x25a   :  { %5796 = vst [vmem:[#allocation19 + $0x178] sm:$0xff] %v747_v57  ;;  %v661_v60 = vpop.f32.mrb[48].mxu0  ;;  %v787_v59 = vpack.c.bf16 %v747_v57, %v745_v54 }
 0x25b   :  { %v662_v62 = vadd.f32 %v661_v60, %v8562_v41  ;;  %v663_v63 = vpop.f32.mrb[49].mxu0  ;;  %v7250_v60 = vld [vmem:[#allocation10 + $0xc8] ss:$12 sps:$4 sm:$0xff]  }
 0x25c   :  { %v664_v61 = vadd.f32 %v663_v63, %v8565_v42  ;;  %v665_v0 = vpop.f32.mrb[50].mxu0  ;;  %1142 = vmatprep.mubr.bf16.mxu1 %v787_v59  ;;  %6608 = vmatprep.subr.bf16.mxu1 %v7250_v60  ;;  %v7277_v60 = vld [vmem:[#allocation11 + $0x34] ss:$8 sps:$4 sm:$0xff]  }
 0x25d   :  { %v748_v1 = vmax.f32 %v662_v62, 0.0  ;;  %v666_v2 = vadd.f32 %v665_v0, %v8562_v41  ;;  %v667_v3 = vpop.f32.mrb[51].mxu0  ;;  %1143 = vmatmul.mubr.bf16.gmra.mrb[44].mxu1 %v786_v58 }
 0x25e   :  { %v749_v5 = vmax.f32 %v664_v61, 0.0  ;;  %v668_v7 = vadd.f32 %v667_v3, %v8565_v42 }
 0x25f   :  { %5797 = vst [vmem:[#allocation19 + $0x180] sm:$0xff] %v748_v1  ;;  %v750_v8 = vmax.f32 %v666_v2, 0.0 }
 0x260   :  { %5798 = vst [vmem:[#allocation19 + $0x188] sm:$0xff] %v749_v5  ;;  %v751_v9 = vmax.f32 %v668_v7, 0.0 }
 0x261   :  { %v788_v10 = vpack.c.bf16 %v750_v8, %v748_v1  ;;  %5799 = vst [vmem:[#allocation19 + $0x190] sm:$0xff] %v750_v8 }
 0x262   :  { %v789_v11 = vpack.c.bf16 %v751_v9, %v749_v5  ;;  %5800 = vst [vmem:[#allocation19 + $0x198] sm:$0xff] %v751_v9  ;;  %v671_v12 = vpop.f32.mrb[52].mxu0 }
 0x263   :  { %v672_v14 = vadd.f32 %v671_v12, %v8562_v41  ;;  %v673_v13 = vpop.f32.mrb[53].mxu0  ;;  %v7266_v12 = vld [vmem:[#allocation11] ss:$8 sps:$4 sm:$0xff]  }
 0x264   :  { %v674_v16 = vadd.f32 %v673_v13, %v8565_v42  ;;  %v675_v17 = vpop.f32.mrb[54].mxu0  ;;  %1152 = vmatprep.mubr.bf16.mxu1 %v789_v11 }
 0x265   :  { %v752_v15 = vmax.f32 %v672_v14, 0.0  ;;  %v676_v18 = vadd.f32 %v675_v17, %v8562_v41  ;;  %v677_v19 = vpop.f32.mrb[55].mxu0  ;;  %1153 = vmatmul.mubr.bf16.gmra.mrb[48].mxu1 %v788_v10  ;;  %v7268_v14 = vld [vmem:[#allocation11 + $0x4] ss:$8 sps:$4 sm:$0xff]  }
 0x266   :  { %v753_v20 = vmax.f32 %v674_v16, 0.0  ;;  %v678_v21 = vadd.f32 %v677_v19, %v8565_v42  ;;  %2424 = vmatprep.subr.bf16.mxu0 %v7268_v14 }
 0x267   :  { %5801 = vst [vmem:[#allocation19 + $0x1a0] sm:$0xff] %v752_v15  ;;  %v754_v22 = vmax.f32 %v676_v18, 0.0 }
 0x268   :  { %5802 = vst [vmem:[#allocation19 + $0x1a8] sm:$0xff] %v753_v20  ;;  %v755_v23 = vmax.f32 %v678_v21, 0.0 }
 0x269   :  { %v790_v25 = vpack.c.bf16 %v754_v22, %v752_v15  ;;  %5803 = vst [vmem:[#allocation19 + $0x1b0] sm:$0xff] %v754_v22 }
 0x26a   :  { %v791_v24 = vpack.c.bf16 %v755_v23, %v753_v20  ;;  %5804 = vst [vmem:[#allocation19 + $0x1b8] sm:$0xff] %v755_v23  ;;  %v681_v26 = vpop.f32.mrb[56].mxu0  ;;  %v7269_v23 = vld [vmem:[#allocation11 + $0x10] ss:$8 sps:$4 sm:$0xff]  }
 0x26b   :  { %v682_v27 = vadd.f32 %v681_v26, %v8562_v41  ;;  %v683_v28 = vpop.f32.mrb[57].mxu0 }
 0x26c   :  { %v684_v29 = vadd.f32 %v683_v28, %v8565_v42  ;;  %v685_v30 = vpop.f32.mrb[58].mxu0  ;;  %1162 = vmatprep.mubr.bf16.mxu1 %v791_v24 }
 0x26d   :  { %v756_v31 = vmax.f32 %v682_v27, 0.0  ;;  %v686_v32 = vadd.f32 %v685_v30, %v8562_v41  ;;  %v687_v33 = vpop.f32.mrb[59].mxu0  ;;  %1163 = vmatmul.mubr.bf16.gmra.mrb[52].mxu1 %v790_v25  ;;  %v7271_v25 = vld [vmem:[#allocation11 + $0x14] ss:$8 sps:$4 sm:$0xff]  }
 0x26e   :  { %v757_v34 = vmax.f32 %v684_v29, 0.0  ;;  %v688_v36 = vadd.f32 %v687_v33, %v8565_v42 }
 0x26f   :  { %5805 = vst [vmem:[#allocation19 + $0x1c0] sm:$0xff] %v756_v31  ;;  %v758_v37 = vmax.f32 %v686_v32, 0.0 }
 0x270   :  { %5806 = vst [vmem:[#allocation19 + $0x1c8] sm:$0xff] %v757_v34  ;;  %v759_v39 = vmax.f32 %v688_v36, 0.0 }
 0x271   :  { %v792_v43 = vpack.c.bf16 %v758_v37, %v756_v31  ;;  %5807 = vst [vmem:[#allocation19 + $0x1d0] sm:$0xff] %v758_v37 }
 0x272   :  { %v793_v45 = vpack.c.bf16 %v759_v39, %v757_v34  ;;  %5808 = vst [vmem:[#allocation19 + $0x1d8] sm:$0xff] %v759_v39  ;;  %v691_v44 = vpop.f32.mrb[60].mxu0 }
 0x273   :  { %v692_v46 = vadd.f32 %v691_v44, %v8562_v41  ;;  %v693_v47 = vpop.f32.mrb[61].mxu0  ;;  %v7274_v44 = vld [vmem:[#allocation11 + $0x24] ss:$8 sps:$4 sm:$0xff]  }
 0x274   :  { %v694_v48 = vadd.f32 %v693_v47, %v8565_v42  ;;  %v695_v49 = vpop.f32.mrb[62].mxu0  ;;  %1172 = vmatprep.mubr.bf16.mxu1 %v793_v45  ;;  %v7272_v45 = vld [vmem:[#allocation11 + $0x20] ss:$8 sps:$4 sm:$0xff]  }
 0x275   :  { %v760_v50 = vmax.f32 %v692_v46, 0.0  ;;  %v696_v51 = vadd.f32 %v695_v49, %v8562_v41  ;;  %v697_v52 = vpop.f32.mrb[63].mxu0  ;;  %1173 = vmatmul.mubr.bf16.gmra.mrb[56].mxu1 %v792_v43  ;;  %v828_v41 = vld [vmem:[%s9867_s1] sm:$0x3] }
 0x276   :  { %v761_v53 = vmax.f32 %v694_v48, 0.0  ;;  %v698_v54 = vadd.f32 %v697_v52, %v8565_v42  ;;  %v8740_v59 = vrot.slane %v828_v41, %v8552_v38  ;;  %v8743_v42 = vrot.slane %v828_v41, %v8559_v40 }
 0x277   :  { %5809 = vst [vmem:[#allocation19 + $0x1e0] sm:$0xff] %v760_v50  ;;  %v762_v55 = vmax.f32 %v696_v51, 0.0 }
 0x278   :  { %5810 = vst [vmem:[#allocation19 + $0x1e8] sm:$0xff] %v761_v53  ;;  %v763_v56 = vmax.f32 %v698_v54, 0.0 }
 0x279   :  { %v794_v57 = vpack.c.bf16 %v762_v55, %v760_v50  ;;  %5811 = vst [vmem:[#allocation19 + $0x1f0] sm:$0xff] %v762_v55 }
 0x27a   :  { %v795_v58 = vpack.c.bf16 %v763_v56, %v761_v53  ;;  %5812 = vst [vmem:[#allocation19 + $0x1f8] sm:$0xff] %v763_v56 }
 0x27c   :  { %1182 = vmatprep.mubr.bf16.mxu1 %v795_v58  ;;  %v7275_v58 = vld [vmem:[#allocation11 + $0x30] ss:$8 sps:$4 sm:$0xff]  }
 0x27d   :  { %1183 = vmatmul.mubr.bf16.gmra.mrb[60].mxu1 %v794_v57 }
 0x2d8   :  { %v1034_v62 = vpop.f32.mrb[0].mxu1 }
 0x2d9   :  { %v1035_v63 = vadd.f32 %v1034_v62, %v8740_v59  ;;  %v1036_v61 = vpop.f32.mrb[1].mxu1 }
 0x2da   :  { %v1037_v0 = vadd.f32 %v1036_v61, %v8743_v42  ;;  %v1038_v1 = vpop.f32.mrb[2].mxu1 }
 0x2db   :  { %v1193_v2 = vmax.f32 %v1035_v63, 0.0  ;;  %v1039_v3 = vadd.f32 %v1038_v1, %v8740_v59  ;;  %v1040_v4 = vpop.f32.mrb[3].mxu1  ;;  %v7280_v63 = vld [vmem:[#allocation11 + $0x44] ss:$8 sps:$4 sm:$0xff]   ;;  %v7278_v1 = vld [vmem:[#allocation11 + $0x40] ss:$8 sps:$4 sm:$0xff]  }
 0x2dc   :  { %v1041_v5 = vadd.f32 %v1040_v4, %v8743_v42  ;;  %v1194_v7 = vmax.f32 %v1037_v0, 0.0 }
 0x2dd   :  { %5813 = vst [vmem:[#allocation20] sm:$0xff] %v1193_v2  ;;  %v1195_v6 = vmax.f32 %v1039_v3, 0.0 }
 0x2de   :  { %v1196_v8 = vmax.f32 %v1041_v5, 0.0  ;;  %5814 = vst [vmem:[#allocation20 + $0x8] sm:$0xff] %v1194_v7 }
 0x2df   :  { %v8749_v9 = vpack.c.bf16 %v1195_v6, %v1193_v2  ;;  %5815 = vst [vmem:[#allocation20 + $0x10] sm:$0xff] %v1195_v6 }
 0x2e0   :  { %v1044_v10 = vpop.f32.mrb[4].mxu1  ;;  %v8751_v11 = vpack.c.bf16 %v1196_v8, %v1194_v7  ;;  %5816 = vst [vmem:[#allocation20 + $0x18] sm:$0xff] %v1196_v8 }
 0x2e1   :  { %v1045_v13 = vadd.f32 %v1044_v10, %v8740_v59  ;;  %v1046_v16 = vpop.f32.mrb[5].mxu1 }
 0x2e2   :  { %v1047_v17 = vadd.f32 %v1046_v16, %v8743_v42  ;;  %v1048_v15 = vpop.f32.mrb[6].mxu1  ;;  %1658 = vmatprep.mubr.bf16.mxu0 %v8751_v11 }
 0x2e3   :  { %v1049_v18 = vadd.f32 %v1048_v15, %v8740_v59  ;;  %v1050_v19 = vpop.f32.mrb[7].mxu1  ;;  %1659 = vmatmul.mubr.bf16.vlgmr.msra.gmra.mrb[64].mxu0 %v8749_v9  ;;  %v1197_v20 = vmax.f32 %v1045_v13, 0.0  ;;  %v7283_v15 = vld [vmem:[#allocation11 + $0x54] ss:$8 sps:$4 sm:$0xff]  }
 0x2e4   :  { %v1051_v21 = vadd.f32 %v1050_v19, %v8743_v42  ;;  %v1198_v22 = vmax.f32 %v1047_v17, 0.0  ;;  %2425 = vmatpush1.bf16.msra.mxu0 %v7266_v12  ;;  %v7281_v17 = vld [vmem:[#allocation11 + $0x50] ss:$8 sps:$4 sm:$0xff]  }
 0x2e5   :  { %v1199_v24 = vmax.f32 %v1049_v18, 0.0  ;;  %5817 = vst [vmem:[#allocation20 + $0x20] sm:$0xff] %v1197_v20  ;;  %2426 = vmatprep.subr.bf16.mxu0 %v7271_v25 }
 0x2e6   :  { %v1200_v26 = vmax.f32 %v1051_v21, 0.0  ;;  %5818 = vst [vmem:[#allocation20 + $0x28] sm:$0xff] %v1198_v22 }
 0x2e7   :  { %v8759_v27 = vpack.c.bf16 %v1199_v24, %v1197_v20  ;;  %5819 = vst [vmem:[#allocation20 + $0x30] sm:$0xff] %v1199_v24 }
 0x2e8   :  { %v1054_v28 = vpop.f32.mrb[8].mxu1  ;;  %v8761_v29 = vpack.c.bf16 %v1200_v26, %v1198_v22  ;;  %5820 = vst [vmem:[#allocation20 + $0x38] sm:$0xff] %v1200_v26  ;;  %2427 = vmatpush1.bf16.msra.mxu0 %v7269_v23 }
 0x2e9   :  { %v1055_v30 = vadd.f32 %v1054_v28, %v8740_v59  ;;  %v1056_v31 = vpop.f32.mrb[9].mxu1  ;;  %2428 = vmatprep.subr.bf16.mxu0 %v7274_v44 }
 0x2ea   :  { %v1057_v32 = vadd.f32 %v1056_v31, %v8743_v42  ;;  %v1058_v33 = vpop.f32.mrb[10].mxu1  ;;  %1668 = vmatprep.mubr.bf16.mxu0 %v8761_v29 }
 0x2eb   :  { %v1059_v34 = vadd.f32 %v1058_v33, %v8740_v59  ;;  %v1060_v36 = vpop.f32.mrb[11].mxu1  ;;  %1669 = vmatmul.mubr.bf16.gmra.mrb[68].mxu0 %v8759_v27  ;;  %v1201_v37 = vmax.f32 %v1055_v30, 0.0 }
 0x2ec   :  { %v1061_v39 = vadd.f32 %v1060_v36, %v8743_v42  ;;  %v1202_v43 = vmax.f32 %v1057_v32, 0.0  ;;  %2429 = vmatpush1.bf16.msra.mxu0 %v7272_v45  ;;  %v7286_v36 = vld [vmem:[#allocation11 + $0x64] ss:$8 sps:$4 sm:$0xff]  }
 0x2ed   :  { %v1203_v46 = vmax.f32 %v1059_v34, 0.0  ;;  %5821 = vst [vmem:[#allocation20 + $0x40] sm:$0xff] %v1201_v37  ;;  %2430 = vmatprep.subr.bf16.mxu0 %v7277_v60  ;;  %v7284_v34 = vld [vmem:[#allocation11 + $0x60] ss:$8 sps:$4 sm:$0xff]   ;;  %v7292_v60 = vld [vmem:[#allocation11 + $0x84] ss:$8 sps:$4 sm:$0xff]  }
 0x2ee   :  { %v1204_v47 = vmax.f32 %v1061_v39, 0.0  ;;  %5822 = vst [vmem:[#allocation20 + $0x48] sm:$0xff] %v1202_v43 }
 0x2ef   :  { %v8769_v48 = vpack.c.bf16 %v1203_v46, %v1201_v37  ;;  %5823 = vst [vmem:[#allocation20 + $0x50] sm:$0xff] %v1203_v46 }
 0x2f0   :  { %v1064_v49 = vpop.f32.mrb[12].mxu1  ;;  %v8771_v50 = vpack.c.bf16 %v1204_v47, %v1202_v43  ;;  %5824 = vst [vmem:[#allocation20 + $0x58] sm:$0xff] %v1204_v47  ;;  %2431 = vmatpush1.bf16.msra.mxu0 %v7275_v58 }
 0x2f1   :  { %v1065_v51 = vadd.f32 %v1064_v49, %v8740_v59  ;;  %v1066_v52 = vpop.f32.mrb[13].mxu1  ;;  %2432 = vmatprep.subr.bf16.mxu0 %v7280_v63  ;;  %v7290_v63 = vld [vmem:[#allocation11 + $0x80] ss:$8 sps:$4 sm:$0xff]  }
 0x2f2   :  { %v1067_v53 = vadd.f32 %v1066_v52, %v8743_v42  ;;  %v1068_v54 = vpop.f32.mrb[14].mxu1  ;;  %1678 = vmatprep.mubr.bf16.mxu0 %v8771_v50 }
 0x2f3   :  { %v1069_v55 = vadd.f32 %v1068_v54, %v8740_v59  ;;  %v1070_v56 = vpop.f32.mrb[15].mxu1  ;;  %1679 = vmatmul.mubr.bf16.gmra.mrb[72].mxu0 %v8769_v48  ;;  %v1205_v57 = vmax.f32 %v1065_v51, 0.0 }
 0x2f4   :  { %v1071_v41 = vadd.f32 %v1070_v56, %v8743_v42  ;;  %v1206_v62 = vmax.f32 %v1067_v53, 0.0  ;;  %2433 = vmatpush1.bf16.msra.mxu0 %v7278_v1  ;;  %v7289_v56 = vld [vmem:[#allocation11 + $0x74] ss:$8 sps:$4 sm:$0xff]  }
 0x2f5   :  { %v1207_v61 = vmax.f32 %v1069_v55, 0.0  ;;  %5825 = vst [vmem:[#allocation20 + $0x60] sm:$0xff] %v1205_v57  ;;  %2434 = vmatprep.subr.bf16.mxu0 %v7283_v15  ;;  %v7287_v55 = vld [vmem:[#allocation11 + $0x70] ss:$8 sps:$4 sm:$0xff]  }
 0x2f6   :  { %v1208_v0 = vmax.f32 %v1071_v41, 0.0  ;;  %5826 = vst [vmem:[#allocation20 + $0x68] sm:$0xff] %v1206_v62 }
 0x2f7   :  { %v8779_v2 = vpack.c.bf16 %v1207_v61, %v1205_v57  ;;  %5827 = vst [vmem:[#allocation20 + $0x70] sm:$0xff] %v1207_v61 }
 0x2f8   :  { %v1074_v3 = vpop.f32.mrb[16].mxu1  ;;  %v8781_v4 = vpack.c.bf16 %v1208_v0, %v1206_v62  ;;  %5828 = vst [vmem:[#allocation20 + $0x78] sm:$0xff] %v1208_v0  ;;  %2435 = vmatpush1.bf16.msra.mxu0 %v7281_v17  ;;  %v7295_v17 = vld [vmem:[#allocation11 + $0x94] ss:$8 sps:$4 sm:$0xff]  }
 0x2f9   :  { %v1075_v5 = vadd.f32 %v1074_v3, %v8740_v59  ;;  %v1076_v7 = vpop.f32.mrb[17].mxu1  ;;  %2436 = vmatprep.subr.bf16.mxu0 %v7286_v36  ;;  %v7296_v36 = vld [vmem:[#allocation11 + $0xa0] ss:$8 sps:$4 sm:$0xff]  }
 0x2fa   :  { %v1077_v6 = vadd.f32 %v1076_v7, %v8743_v42  ;;  %v1078_v8 = vpop.f32.mrb[18].mxu1  ;;  %1688 = vmatprep.mubr.bf16.mxu0 %v8781_v4 }
 0x2fb   :  { %v1079_v10 = vadd.f32 %v1078_v8, %v8740_v59  ;;  %v1080_v12 = vpop.f32.mrb[19].mxu1  ;;  %1689 = vmatmul.mubr.bf16.gmra.mrb[76].mxu0 %v8779_v2  ;;  %v1209_v14 = vmax.f32 %v1075_v5, 0.0 }
 0x2fc   :  { %v1081_v13 = vadd.f32 %v1080_v12, %v8743_v42  ;;  %v1210_v16 = vmax.f32 %v1077_v6, 0.0  ;;  %2437 = vmatpush1.bf16.msra.mxu0 %v7284_v34 }
 0x2fd   :  { %v1211_v18 = vmax.f32 %v1079_v10, 0.0  ;;  %5829 = vst [vmem:[#allocation20 + $0x80] sm:$0xff] %v1209_v14  ;;  %2438 = vmatprep.subr.bf16.mxu0 %v7289_v56 }
 0x2fe   :  { %v1212_v19 = vmax.f32 %v1081_v13, 0.0  ;;  %5830 = vst [vmem:[#allocation20 + $0x88] sm:$0xff] %v1210_v16 }
 0x2ff   :  { %v8789_v20 = vpack.c.bf16 %v1211_v18, %v1209_v14  ;;  %5831 = vst [vmem:[#allocation20 + $0x90] sm:$0xff] %v1211_v18 }
 0x300   :  { %v1084_v21 = vpop.f32.mrb[20].mxu1  ;;  %v8791_v22 = vpack.c.bf16 %v1212_v19, %v1210_v16  ;;  %5832 = vst [vmem:[#allocation20 + $0x98] sm:$0xff] %v1212_v19  ;;  %2439 = vmatpush1.bf16.msra.mxu0 %v7287_v55  ;;  %v7293_v16 = vld [vmem:[#allocation11 + $0x90] ss:$8 sps:$4 sm:$0xff]  }
 0x301   :  { %v1085_v23 = vadd.f32 %v1084_v21, %v8740_v59  ;;  %v1086_v25 = vpop.f32.mrb[21].mxu1  ;;  %2440 = vmatprep.subr.bf16.mxu0 %v7292_v60  ;;  %v7301_v60 = vld [vmem:[#allocation11 + $0xb4] ss:$8 sps:$4 sm:$0xff]  }
 0x302   :  { %v1087_v24 = vadd.f32 %v1086_v25, %v8743_v42  ;;  %v1088_v26 = vpop.f32.mrb[22].mxu1  ;;  %1698 = vmatprep.mubr.bf16.mxu0 %v8791_v22 }
 0x303   :  { %v1089_v28 = vadd.f32 %v1088_v26, %v8740_v59  ;;  %v1090_v30 = vpop.f32.mrb[23].mxu1  ;;  %1699 = vmatmul.mubr.bf16.gmra.mrb[80].mxu0 %v8789_v20  ;;  %v1213_v31 = vmax.f32 %v1085_v23, 0.0 }
 0x304   :  { %v1091_v32 = vadd.f32 %v1090_v30, %v8743_v42  ;;  %v1214_v33 = vmax.f32 %v1087_v24, 0.0  ;;  %2441 = vmatpush1.bf16.msra.mxu0 %v7290_v63  ;;  %v7304_v63 = vld [vmem:[#allocation11 + $0xc4] ss:$8 sps:$4 sm:$0xff]  }
 0x305   :  { %v1215_v37 = vmax.f32 %v1089_v28, 0.0  ;;  %5833 = vst [vmem:[#allocation20 + $0xa0] sm:$0xff] %v1213_v31  ;;  %2442 = vmatprep.subr.bf16.mxu0 %v7295_v17 }
 0x306   :  { %v1216_v39 = vmax.f32 %v1091_v32, 0.0  ;;  %5834 = vst [vmem:[#allocation20 + $0xa8] sm:$0xff] %v1214_v33 }
 0x307   :  { %v8799_v43 = vpack.c.bf16 %v1215_v37, %v1213_v31  ;;  %5835 = vst [vmem:[#allocation20 + $0xb0] sm:$0xff] %v1215_v37  ;;  %v7298_v37 = vld [vmem:[#allocation11 + $0xa4] ss:$8 sps:$4 sm:$0xff]  }
 0x308   :  { %v1094_v45 = vpop.f32.mrb[24].mxu1  ;;  %v8801_v44 = vpack.c.bf16 %v1216_v39, %v1214_v33  ;;  %5836 = vst [vmem:[#allocation20 + $0xb8] sm:$0xff] %v1216_v39  ;;  %2443 = vmatpush1.bf16.msra.mxu0 %v7293_v16 }
 0x309   :  { %v1095_v46 = vadd.f32 %v1094_v45, %v8740_v59  ;;  %v1096_v47 = vpop.f32.mrb[25].mxu1  ;;  %2444 = vmatprep.subr.bf16.mxu0 %v7298_v37 }
 0x30a   :  { %v1097_v49 = vadd.f32 %v1096_v47, %v8743_v42  ;;  %v1098_v51 = vpop.f32.mrb[26].mxu1  ;;  %1708 = vmatprep.mubr.bf16.mxu0 %v8801_v44 }
 0x30b   :  { %v1099_v52 = vadd.f32 %v1098_v51, %v8740_v59  ;;  %v1100_v53 = vpop.f32.mrb[27].mxu1  ;;  %1709 = vmatmul.mubr.bf16.gmra.mrb[84].mxu0 %v8799_v43  ;;  %v1217_v54 = vmax.f32 %v1095_v46, 0.0 }
 0x30c   :  { %v1101_v57 = vadd.f32 %v1100_v53, %v8743_v42  ;;  %v1218_v58 = vmax.f32 %v1097_v49, 0.0  ;;  %2445 = vmatpush1.bf16.msra.mxu0 %v7296_v36 }
 0x30d   :  { %v1219_v41 = vmax.f32 %v1099_v52, 0.0  ;;  %5837 = vst [vmem:[#allocation20 + $0xc0] sm:$0xff] %v1217_v54  ;;  %2446 = vmatprep.subr.bf16.mxu0 %v7301_v60 }
 0x30e   :  { %v1220_v62 = vmax.f32 %v1101_v57, 0.0  ;;  %5838 = vst [vmem:[#allocation20 + $0xc8] sm:$0xff] %v1218_v58 }
 0x30f   :  { %v8809_v61 = vpack.c.bf16 %v1219_v41, %v1217_v54  ;;  %5839 = vst [vmem:[#allocation20 + $0xd0] sm:$0xff] %v1219_v41 }
 0x310   :  { %v1104_v0 = vpop.f32.mrb[28].mxu1  ;;  %v8811_v1 = vpack.c.bf16 %v1220_v62, %v1218_v58  ;;  %5840 = vst [vmem:[#allocation20 + $0xd8] sm:$0xff] %v1220_v62  ;;  %v7299_v58 = vld [vmem:[#allocation11 + $0xb0] ss:$8 sps:$4 sm:$0xff]  }
 0x311   :  { %v1105_v3 = vadd.f32 %v1104_v0, %v8740_v59  ;;  %v1106_v5 = vpop.f32.mrb[29].mxu1  ;;  %2447 = vmatpush1.bf16.msra.mxu0 %v7299_v58 }
 0x312   :  { %v1107_v7 = vadd.f32 %v1106_v5, %v8743_v42  ;;  %v1108_v6 = vpop.f32.mrb[30].mxu1  ;;  %1718 = vmatprep.mubr.bf16.mxu0 %v8811_v1  ;;  %v7302_v5 = vld [vmem:[#allocation11 + $0xc0] ss:$8 sps:$4 sm:$0xff]   ;;  %2448 = vmatprep.subr.bf16.mxu0 %v7304_v63 }
 0x313   :  { %v1109_v8 = vadd.f32 %v1108_v6, %v8740_v59  ;;  %v1110_v10 = vpop.f32.mrb[31].mxu1  ;;  %1719 = vmatmul.mubr.bf16.gmra.mrb[88].mxu0 %v8809_v61  ;;  %v1221_v12 = vmax.f32 %v1105_v3, 0.0 }
 0x314   :  { %v1111_v14 = vadd.f32 %v1110_v10, %v8743_v42  ;;  %v1222_v13 = vmax.f32 %v1107_v7, 0.0 }
 0x315   :  { %v1223_v15 = vmax.f32 %v1109_v8, 0.0  ;;  %5841 = vst [vmem:[#allocation20 + $0xe0] sm:$0xff] %v1221_v12  ;;  %2449 = vmatpush1.bf16.msra.mxu0 %v7302_v5 }
 0x316   :  { %v1224_v18 = vmax.f32 %v1111_v14, 0.0  ;;  %5842 = vst [vmem:[#allocation20 + $0xe8] sm:$0xff] %v1222_v13 }
 0x317   :  { %v8819_v19 = vpack.c.bf16 %v1223_v15, %v1221_v12  ;;  %5843 = vst [vmem:[#allocation20 + $0xf0] sm:$0xff] %v1223_v15 }
 0x318   :  { %v1114_v21 = vpop.f32.mrb[32].mxu1  ;;  %v8821_v23 = vpack.c.bf16 %v1224_v18, %v1222_v13  ;;  %5844 = vst [vmem:[#allocation20 + $0xf8] sm:$0xff] %v1224_v18 }
 0x319   :  { %v1115_v25 = vadd.f32 %v1114_v21, %v8740_v59  ;;  %v1116_v24 = vpop.f32.mrb[33].mxu1 }
 0x31a   :  { %v1117_v26 = vadd.f32 %v1116_v24, %v8743_v42  ;;  %v1118_v28 = vpop.f32.mrb[34].mxu1  ;;  %1728 = vmatprep.mubr.bf16.mxu0 %v8821_v23  ;;  %v7307_v24 = vld [vmem:[#allocation11 + $0xd4] ss:$8 sps:$4 sm:$0xff]  }
 0x31b   :  { %v1119_v30 = vadd.f32 %v1118_v28, %v8740_v59  ;;  %v1120_v31 = vpop.f32.mrb[35].mxu1  ;;  %1729 = vmatmul.mubr.bf16.gmra.mrb[92].mxu0 %v8819_v19  ;;  %v1225_v32 = vmax.f32 %v1115_v25, 0.0  ;;  %v7305_v25 = vld [vmem:[#allocation11 + $0xd0] ss:$8 sps:$4 sm:$0xff]   ;;  %2450 = vmatprep.subr.bf16.mxu0 %v7307_v24 }
 0x31c   :  { %v1121_v33 = vadd.f32 %v1120_v31, %v8743_v42  ;;  %v1226_v34 = vmax.f32 %v1117_v26, 0.0  ;;  %2451 = vmatpush1.bf16.msra.mxu0 %v7305_v25  ;;  %v7251_v25 = vld [vmem:[#allocation10 + $0x8] ss:$12 sps:$4 sm:$0xff]  }
 0x31d   :  { %v1227_v39 = vmax.f32 %v1119_v30, 0.0  ;;  %5845 = vst [vmem:[#allocation20 + $0x100] sm:$0xff] %v1225_v32 }
 0x31e   :  { %v1228_v45 = vmax.f32 %v1121_v33, 0.0  ;;  %5846 = vst [vmem:[#allocation20 + $0x108] sm:$0xff] %v1226_v34 }
 0x31f   :  { %v8829_v46 = vpack.c.bf16 %v1227_v39, %v1225_v32  ;;  %5847 = vst [vmem:[#allocation20 + $0x110] sm:$0xff] %v1227_v39 }
 0x320   :  { %v1124_v47 = vpop.f32.mrb[36].mxu1  ;;  %v8831_v49 = vpack.c.bf16 %v1228_v45, %v1226_v34  ;;  %5848 = vst [vmem:[#allocation20 + $0x118] sm:$0xff] %v1228_v45 }
 0x321   :  { %v1125_v51 = vadd.f32 %v1124_v47, %v8740_v59  ;;  %v1126_v52 = vpop.f32.mrb[37].mxu1 }
 0x322   :  { %v1127_v53 = vadd.f32 %v1126_v52, %v8743_v42  ;;  %v1128_v54 = vpop.f32.mrb[38].mxu1  ;;  %1738 = vmatprep.mubr.bf16.mxu0 %v8831_v49 }
 0x323   :  { %v1129_v55 = vadd.f32 %v1128_v54, %v8740_v59  ;;  %v1130_v56 = vpop.f32.mrb[39].mxu1  ;;  %1739 = vmatmul.mubr.bf16.gmra.mrb[96].mxu0 %v8829_v46  ;;  %v1229_v57 = vmax.f32 %v1125_v51, 0.0  ;;  %v7310_v54 = vld [vmem:[#allocation11 + $0xe4] ss:$8 sps:$4 sm:$0xff]  }
 0x324   :  { %v1131_v41 = vadd.f32 %v1130_v56, %v8743_v42  ;;  %v1230_v62 = vmax.f32 %v1127_v53, 0.0  ;;  %v7308_v53 = vld [vmem:[#allocation11 + $0xe0] ss:$8 sps:$4 sm:$0xff]   ;;  %2452 = vmatprep.subr.bf16.mxu0 %v7310_v54  ;;  %v7316_v54 = vld [vmem:[#allocation11 + $0x104] ss:$8 sps:$4 sm:$0xff]  }
 0x325   :  { %v1231_v0 = vmax.f32 %v1129_v55, 0.0  ;;  %5849 = vst [vmem:[#allocation20 + $0x120] sm:$0xff] %v1229_v57  ;;  %2453 = vmatpush1.bf16.msra.mxu0 %v7308_v53 }
 0x326   :  { %v1232_v3 = vmax.f32 %v1131_v41, 0.0  ;;  %5850 = vst [vmem:[#allocation20 + $0x128] sm:$0xff] %v1230_v62 }
 0x327   :  { %v8839_v7 = vpack.c.bf16 %v1231_v0, %v1229_v57  ;;  %5851 = vst [vmem:[#allocation20 + $0x130] sm:$0xff] %v1231_v0 }
 0x328   :  { %v1134_v6 = vpop.f32.mrb[40].mxu1  ;;  %v8841_v8 = vpack.c.bf16 %v1232_v3, %v1230_v62  ;;  %5852 = vst [vmem:[#allocation20 + $0x138] sm:$0xff] %v1232_v3 }
 0x329   :  { %v1135_v10 = vadd.f32 %v1134_v6, %v8740_v59  ;;  %v1136_v12 = vpop.f32.mrb[41].mxu1 }
 0x32a   :  { %v1137_v14 = vadd.f32 %v1136_v12, %v8743_v42  ;;  %v1138_v13 = vpop.f32.mrb[42].mxu1  ;;  %1748 = vmatprep.mubr.bf16.mxu0 %v8841_v8 }
 0x32b   :  { %v1139_v16 = vadd.f32 %v1138_v13, %v8740_v59  ;;  %v1140_v17 = vpop.f32.mrb[43].mxu1  ;;  %1749 = vmatmul.mubr.bf16.gmra.mrb[100].mxu0 %v8839_v7  ;;  %v1233_v15 = vmax.f32 %v1135_v10, 0.0  ;;  %v7313_v10 = vld [vmem:[#allocation11 + $0xf4] ss:$8 sps:$4 sm:$0xff]   ;;  %v7311_v13 = vld [vmem:[#allocation11 + $0xf0] ss:$8 sps:$4 sm:$0xff]  }
 0x32c   :  { %v1141_v18 = vadd.f32 %v1140_v17, %v8743_v42  ;;  %v1234_v21 = vmax.f32 %v1137_v14, 0.0  ;;  %2454 = vmatprep.subr.bf16.mxu0 %v7313_v10 }
 0x32d   :  { %v1235_v26 = vmax.f32 %v1139_v16, 0.0  ;;  %5853 = vst [vmem:[#allocation20 + $0x140] sm:$0xff] %v1233_v15  ;;  %2455 = vmatpush1.bf16.msra.mxu0 %v7311_v13 }
 0x32e   :  { %v1236_v28 = vmax.f32 %v1141_v18, 0.0  ;;  %5854 = vst [vmem:[#allocation20 + $0x148] sm:$0xff] %v1234_v21  ;;  %2617 = vmatprep.subr.bf16.mxu0 %v7316_v54  ;;  %v7261_v54 = vld [vmem:[#allocation10 + $0x80] ss:$12 sps:$4 sm:$0xff]  }
 0x32f   :  { %v8849_v30 = vpack.c.bf16 %v1235_v26, %v1233_v15  ;;  %5855 = vst [vmem:[#allocation20 + $0x150] sm:$0xff] %v1235_v26 }
 0x330   :  { %v1144_v31 = vpop.f32.mrb[44].mxu1  ;;  %v8851_v32 = vpack.c.bf16 %v1236_v28, %v1234_v21  ;;  %5856 = vst [vmem:[#allocation20 + $0x158] sm:$0xff] %v1236_v28  ;;  %v7252_v28 = vld [vmem:[#allocation10 + $0xe0] ss:$12 sps:$4 sm:$0xff]  }
 0x331   :  { %v1145_v33 = vadd.f32 %v1144_v31, %v8740_v59  ;;  %v1146_v34 = vpop.f32.mrb[45].mxu1 }
 0x332   :  { %v1147_v36 = vadd.f32 %v1146_v34, %v8743_v42  ;;  %v1148_v37 = vpop.f32.mrb[46].mxu1  ;;  %1758 = vmatprep.mubr.bf16.mxu0 %v8851_v32 }
 0x333   :  { %v1149_v39 = vadd.f32 %v1148_v37, %v8740_v59  ;;  %v1150_v45 = vpop.f32.mrb[47].mxu1  ;;  %1759 = vmatmul.mubr.bf16.gmra.mrb[104].mxu0 %v8849_v30  ;;  %v1237_v47 = vmax.f32 %v1145_v33, 0.0 }
 0x334   :  { %v1151_v51 = vadd.f32 %v1150_v45, %v8743_v42  ;;  %v1238_v52 = vmax.f32 %v1147_v36, 0.0 }
 0x335   :  { %v1239_v55 = vmax.f32 %v1149_v39, 0.0  ;;  %5857 = vst [vmem:[#allocation20 + $0x160] sm:$0xff] %v1237_v47 }
 0x336   :  { %v1240_v56 = vmax.f32 %v1151_v51, 0.0  ;;  %5858 = vst [vmem:[#allocation20 + $0x168] sm:$0xff] %v1238_v52 }
 0x337   :  { %v8859_v57 = vpack.c.bf16 %v1239_v55, %v1237_v47  ;;  %5859 = vst [vmem:[#allocation20 + $0x170] sm:$0xff] %v1239_v55  ;;  %v7253_v47 = vld [vmem:[#allocation10 + $0x20] ss:$12 sps:$4 sm:$0xff]  }
 0x338   :  { %v1154_v58 = vpop.f32.mrb[48].mxu1  ;;  %v8861_v60 = vpack.c.bf16 %v1240_v56, %v1238_v52  ;;  %5860 = vst [vmem:[#allocation20 + $0x178] sm:$0xff] %v1240_v56  ;;  %v7254_v52 = vld [vmem:[#allocation10 + $0xf8] ss:$12 sps:$4 sm:$0xff]  }
 0x339   :  { %v1155_v41 = vadd.f32 %v1154_v58, %v8740_v59  ;;  %v1156_v62 = vpop.f32.mrb[49].mxu1 }
 0x33a   :  { %v1157_v63 = vadd.f32 %v1156_v62, %v8743_v42  ;;  %v1158_v0 = vpop.f32.mrb[50].mxu1  ;;  %1768 = vmatprep.mubr.bf16.mxu0 %v8861_v60 }
 0x33b   :  { %v1241_v3 = vmax.f32 %v1155_v41, 0.0  ;;  %v1159_v5 = vadd.f32 %v1158_v0, %v8740_v59  ;;  %v1160_v6 = vpop.f32.mrb[51].mxu1  ;;  %1769 = vmatmul.mubr.bf16.gmra.mrb[108].mxu0 %v8859_v57  ;;  %v7255_v41 = vld [vmem:[#allocation10 + $0x38] ss:$12 sps:$4 sm:$0xff]   ;;  %v7256_v0 = vld [vmem:[#allocation10 + $0x110] ss:$12 sps:$4 sm:$0xff]  }
 0x33c   :  { %v1242_v12 = vmax.f32 %v1157_v63, 0.0  ;;  %v1161_v14 = vadd.f32 %v1160_v6, %v8743_v42 }
 0x33d   :  { %5861 = vst [vmem:[#allocation20 + $0x180] sm:$0xff] %v1241_v3  ;;  %v1243_v16 = vmax.f32 %v1159_v5, 0.0 }
 0x33e   :  { %5862 = vst [vmem:[#allocation20 + $0x188] sm:$0xff] %v1242_v12  ;;  %v1244_v17 = vmax.f32 %v1161_v14, 0.0 }
 0x33f   :  { %v8869_v15 = vpack.c.bf16 %v1243_v16, %v1241_v3  ;;  %5863 = vst [vmem:[#allocation20 + $0x190] sm:$0xff] %v1243_v16  ;;  %v7257_v16 = vld [vmem:[#allocation10 + $0x50] ss:$12 sps:$4 sm:$0xff]  }
 0x340   :  { %v8871_v18 = vpack.c.bf16 %v1244_v17, %v1242_v12  ;;  %5864 = vst [vmem:[#allocation20 + $0x198] sm:$0xff] %v1244_v17  ;;  %v1164_v21 = vpop.f32.mrb[52].mxu1 }
 0x341   :  { %v1165_v24 = vadd.f32 %v1164_v21, %v8740_v59  ;;  %v1166_v26 = vpop.f32.mrb[53].mxu1  ;;  %v7258_v21 = vld [vmem:[#allocation10 + $0x128] ss:$12 sps:$4 sm:$0xff]  }
 0x342   :  { %v1167_v31 = vadd.f32 %v1166_v26, %v8743_v42  ;;  %v1168_v33 = vpop.f32.mrb[54].mxu1  ;;  %1778 = vmatprep.mubr.bf16.mxu1 %v8871_v18 }
 0x343   :  { %v1245_v34 = vmax.f32 %v1165_v24, 0.0  ;;  %v1169_v36 = vadd.f32 %v1168_v33, %v8740_v59  ;;  %v1170_v37 = vpop.f32.mrb[55].mxu1  ;;  %1779 = vmatmul.mubr.bf16.vlgmr.msra.gmra.mrb[64].mxu1 %v8869_v15 }
 0x344   :  { %v1246_v39 = vmax.f32 %v1167_v31, 0.0  ;;  %v1171_v45 = vadd.f32 %v1170_v37, %v8743_v42  ;;  %6609 = vmatpush3.bf16.msra.mxu1 %v7251_v25  ;;  %v7259_v31 = vld [vmem:[#allocation10 + $0x68] ss:$12 sps:$4 sm:$0xff]  }
 0x345   :  { %5865 = vst [vmem:[#allocation20 + $0x1a0] sm:$0xff] %v1245_v34  ;;  %v1247_v51 = vmax.f32 %v1169_v36, 0.0  ;;  %6610 = vmatprep.subr.bf16.mxu1 %v7252_v28  ;;  %v7260_v36 = vld [vmem:[#allocation10 + $0x140] ss:$12 sps:$4 sm:$0xff]  }
 0x346   :  { %5866 = vst [vmem:[#allocation20 + $0x1a8] sm:$0xff] %v1246_v39  ;;  %v1248_v53 = vmax.f32 %v1171_v45, 0.0 }
 0x347   :  { %v8879_v55 = vpack.c.bf16 %v1247_v51, %v1245_v34  ;;  %5867 = vst [vmem:[#allocation20 + $0x1b0] sm:$0xff] %v1247_v51 }
 0x348   :  { %v8881_v56 = vpack.c.bf16 %v1248_v53, %v1246_v39  ;;  %5868 = vst [vmem:[#allocation20 + $0x1b8] sm:$0xff] %v1248_v53  ;;  %6611 = vmatpush3.bf16.msra.mxu1 %v7253_v47  ;;  %v1174_v58 = vpop.f32.mrb[56].mxu1 }
 0x349   :  { %v1175_v62 = vadd.f32 %v1174_v58, %v8740_v59  ;;  %v1176_v63 = vpop.f32.mrb[57].mxu1  ;;  %6612 = vmatprep.subr.bf16.mxu1 %v7254_v52 }
 0x34a   :  { %v1177_v3 = vadd.f32 %v1176_v63, %v8743_v42  ;;  %v1178_v5 = vpop.f32.mrb[58].mxu1  ;;  %1788 = vmatprep.mubr.bf16.mxu1 %v8881_v56 }
 0x34b   :  { %v1249_v6 = vmax.f32 %v1175_v62, 0.0  ;;  %v1179_v10 = vadd.f32 %v1178_v5, %v8740_v59  ;;  %v1180_v12 = vpop.f32.mrb[59].mxu1  ;;  %1789 = vmatmul.mubr.bf16.gmra.mrb[68].mxu1 %v8879_v55 }
 0x34c   :  { %v1250_v14 = vmax.f32 %v1177_v3, 0.0  ;;  %v1181_v13 = vadd.f32 %v1180_v12, %v8743_v42  ;;  %6613 = vmatpush3.bf16.msra.mxu1 %v7255_v41  ;;  %v7262_v41 = vld [vmem:[#allocation10 + $0x158] ss:$12 sps:$4 sm:$0xff]   ;;  %v7264_v3 = vld [vmem:[#allocation10 + $0x170] ss:$12 sps:$4 sm:$0xff]  }
 0x34d   :  { %5869 = vst [vmem:[#allocation20 + $0x1c0] sm:$0xff] %v1249_v6  ;;  %v1251_v17 = vmax.f32 %v1179_v10, 0.0  ;;  %6614 = vmatprep.subr.bf16.mxu1 %v7256_v0 }
 0x34e   :  { %5870 = vst [vmem:[#allocation20 + $0x1c8] sm:$0xff] %v1250_v14  ;;  %v1252_v25 = vmax.f32 %v1181_v13, 0.0 }
 0x34f   :  { %v8889_v24 = vpack.c.bf16 %v1251_v17, %v1249_v6  ;;  %5871 = vst [vmem:[#allocation20 + $0x1d0] sm:$0xff] %v1251_v17 }
 0x350   :  { %v8891_v26 = vpack.c.bf16 %v1252_v25, %v1250_v14  ;;  %5872 = vst [vmem:[#allocation20 + $0x1d8] sm:$0xff] %v1252_v25  ;;  %6615 = vmatpush3.bf16.msra.mxu1 %v7257_v16  ;;  %v1184_v28 = vpop.f32.mrb[60].mxu1  ;;  %v7317_v14 = vld [vmem:[#allocation11 + $0x110] ss:$8 sps:$4 sm:$0xff]   ;;  %v7322_v16 = vld [vmem:[#allocation11 + $0x124] ss:$8 sps:$4 sm:$0xff]  }
 0x351   :  { %v1185_v33 = vadd.f32 %v1184_v28, %v8740_v59  ;;  %v1186_v34 = vpop.f32.mrb[61].mxu1  ;;  %6616 = vmatprep.subr.bf16.mxu1 %v7258_v21 }
 0x352   :  { %v1187_v37 = vadd.f32 %v1186_v34, %v8743_v42  ;;  %v1188_v39 = vpop.f32.mrb[62].mxu1  ;;  %1798 = vmatprep.mubr.bf16.mxu1 %v8891_v26 }
 0x353   :  { %v1253_v45 = vmax.f32 %v1185_v33, 0.0  ;;  %v1189_v47 = vadd.f32 %v1188_v39, %v8740_v59  ;;  %v1190_v51 = vpop.f32.mrb[63].mxu1  ;;  %1799 = vmatmul.mubr.bf16.gmra.mrb[72].mxu1 %v8889_v24  ;;  %v7263_v59 = vld [vmem:[#allocation10 + $0x98] ss:$12 sps:$4 sm:$0xff]  }
 0x354   :  { %v1254_v52 = vmax.f32 %v1187_v37, 0.0  ;;  %v1191_v53 = vadd.f32 %v1190_v51, %v8743_v42  ;;  %6617 = vmatpush3.bf16.msra.mxu1 %v7259_v31  ;;  %v7265_v42 = vld [vmem:[#allocation10 + $0xb0] ss:$12 sps:$4 sm:$0xff]   ;;  %v7320_v31 = vld [vmem:[#allocation11 + $0x120] ss:$8 sps:$4 sm:$0xff]  }
 0x355   :  { %5873 = vst [vmem:[#allocation20 + $0x1e0] sm:$0xff] %v1253_v45  ;;  %v1255_v58 = vmax.f32 %v1189_v47, 0.0  ;;  %6618 = vmatprep.subr.bf16.mxu1 %v7260_v36  ;;  %v7325_v36 = vld [vmem:[#allocation11 + $0x134] ss:$8 sps:$4 sm:$0xff]  }
 0x356   :  { %5874 = vst [vmem:[#allocation20 + $0x1e8] sm:$0xff] %v1254_v52  ;;  %v1256_v62 = vmax.f32 %v1191_v53, 0.0 }
 0x357   :  { %v8899_v63 = vpack.c.bf16 %v1255_v58, %v1253_v45  ;;  %5875 = vst [vmem:[#allocation20 + $0x1f0] sm:$0xff] %v1255_v58 }
 0x358   :  { %v8901_v0 = vpack.c.bf16 %v1256_v62, %v1254_v52  ;;  %5876 = vst [vmem:[#allocation20 + $0x1f8] sm:$0xff] %v1256_v62  ;;  %6619 = vmatpush3.bf16.msra.mxu1 %v7261_v54  ;;  %v7323_v52 = vld [vmem:[#allocation11 + $0x130] ss:$8 sps:$4 sm:$0xff]   ;;  %v7328_v54 = vld [vmem:[#allocation11 + $0x144] ss:$8 sps:$4 sm:$0xff]  }
 0x359   :  { %6620 = vmatprep.subr.bf16.mxu1 %v7262_v41 }
 0x35a   :  { %1808 = vmatprep.mubr.bf16.mxu1 %v8901_v0 }
 0x35b   :  { %1809 = vmatmul.mubr.bf16.gmra.mrb[76].mxu1 %v8899_v63 }
 0x35c   :  { %6621 = vmatpush3.bf16.msra.mxu1 %v7263_v59  ;;  %1851 = vmatprep.mubr.bf16.mxu1 %v8751_v11 }
 0x35d   :  { %6622 = vmatprep.subr.bf16.mxu1 %v7264_v3  ;;  %v7326_v3 = vld [vmem:[#allocation11 + $0x140] ss:$8 sps:$4 sm:$0xff]  }
 0x360   :  { %6623 = vmatpush3.bf16.msra.mxu1 %v7265_v42 }
 0x363   :  { %1852 = vmatmul.mubr.bf16.vlgmr.msra.gmra.mrb[80].mxu1 %v8749_v9  ;;  %v8929_v9 = vld [vmem:[%s9868_s24] sm:$0x7] }
 0x364   :  { %1859 = vmatprep.mubr.bf16.mxu1 %v8761_v29  ;;  %v8934_v11 = vrot.slane %v8929_v9, %v8552_v38 }
 0x36b   :  { %1860 = vmatmul.mubr.bf16.gmra.mrb[84].mxu1 %v8759_v27  ;;  %v8939_v27 = vrot.slane %v8929_v9, %v8559_v40 }
 0x36c   :  { %1867 = vmatprep.mubr.bf16.mxu1 %v8771_v50 }
 0x373   :  { %1868 = vmatmul.mubr.bf16.gmra.mrb[88].mxu1 %v8769_v48 }
 0x374   :  { %1875 = vmatprep.mubr.bf16.mxu1 %v8781_v4 }
 0x37b   :  { %1876 = vmatmul.mubr.bf16.gmra.mrb[92].mxu1 %v8779_v2 }
 0x37c   :  { %1883 = vmatprep.mubr.bf16.mxu1 %v8791_v22 }
 0x383   :  { %1884 = vmatmul.mubr.bf16.gmra.mrb[96].mxu1 %v8789_v20 }
 0x384   :  { %1891 = vmatprep.mubr.bf16.mxu1 %v8801_v44 }
 0x38b   :  { %1892 = vmatmul.mubr.bf16.gmra.mrb[100].mxu1 %v8799_v43 }
 0x38c   :  { %1899 = vmatprep.mubr.bf16.mxu1 %v8811_v1 }
 0x393   :  { %1900 = vmatmul.mubr.bf16.gmra.mrb[104].mxu1 %v8809_v61 }
 0x394   :  { %1907 = vmatprep.mubr.bf16.mxu1 %v8821_v23 }
 0x39b   :  { %1908 = vmatmul.mubr.bf16.gmra.mrb[108].mxu1 %v8819_v19 }
 0x39c   :  { %1915 = vmatprep.mubr.bf16.mxu1 %v8831_v49 }
 0x3a3   :  { %1916 = vmatmul.mubr.bf16.gmra.mrb[112].mxu1 %v8829_v46 }
 0x3a4   :  { %1923 = vmatprep.mubr.bf16.mxu1 %v8841_v8 }
 0x3ab   :  { %1924 = vmatmul.mubr.bf16.gmra.mrb[116].mxu1 %v8839_v7  ;;  %v7314_v7 = vld [vmem:[#allocation11 + $0x100] ss:$8 sps:$4 sm:$0xff]  }
 0x3ac   :  { %1931 = vmatprep.mubr.bf16.mxu1 %v8851_v32  ;;  %v7319_v32 = vld [vmem:[#allocation11 + $0x114] ss:$8 sps:$4 sm:$0xff]  }
 0x3b3   :  { %1932 = vmatmul.mubr.bf16.gmra.mrb[120].mxu1 %v8849_v30 }
 0x3b4   :  { %1939 = vmatprep.mubr.bf16.mxu1 %v8861_v60 }
 0x3b6   :  { %v1660_v29 = vpop.f32.mrb[64].mxu0 }
 0x3b7   :  { %v1661_v48 = vadd.f32 %v1660_v29, %v8934_v11  ;;  %v1662_v50 = vpop.f32.mrb[65].mxu0 }
 0x3b8   :  { %v1663_v2 = vadd.f32 %v1662_v50, %v8939_v27  ;;  %v1664_v4 = vpop.f32.mrb[66].mxu0 }
 0x3b9   :  { %v1980_v20 = vmax.f32 %v1661_v48, 0.0  ;;  %v1665_v22 = vadd.f32 %v1664_v4, %v8934_v11  ;;  %v1666_v43 = vpop.f32.mrb[67].mxu0  ;;  %v7331_v48 = vld [vmem:[#allocation11 + $0x154] ss:$8 sps:$4 sm:$0xff]  }
 0x3ba   :  { %v1981_v44 = vmax.f32 %v1663_v2, 0.0  ;;  %v1667_v61 = vadd.f32 %v1666_v43, %v8939_v27  ;;  %v7329_v43 = vld [vmem:[#allocation11 + $0x150] ss:$8 sps:$4 sm:$0xff]  }
 0x3bb   :  { %5877 = vst [vmem:[#allocation22] sm:$0xff] %v1980_v20  ;;  %v1983_v1 = vmax.f32 %v1665_v22, 0.0  ;;  %1940 = vmatmul.mubr.bf16.gmra.mrb[124].mxu1 %v8859_v57 }
 0x3bc   :  { %5878 = vst [vmem:[#allocation22 + $0x8] sm:$0xff] %v1981_v44  ;;  %v1984_v19 = vmax.f32 %v1667_v61, 0.0  ;;  %1947 = vmatprep.mubr.bf16.mxu1 %v8871_v18  ;;  %v7334_v61 = vld [vmem:[#allocation11 + $0x164] ss:$8 sps:$4 sm:$0xff]  }
 0x3bd   :  { %v2076_v23 = vpack.c.bf16 %v1983_v1, %v1980_v20  ;;  %5880 = vst [vmem:[#allocation22 + $0x18] sm:$0xff] %v1983_v1 }
 0x3be   :  { %v2077_v46 = vpack.c.bf16 %v1984_v19, %v1981_v44  ;;  %5881 = vst [vmem:[#allocation22 + $0x20] sm:$0xff] %v1984_v19  ;;  %v1670_v49 = vpop.f32.mrb[68].mxu0 }
 0x3bf   :  { %v1671_v8 = vadd.f32 %v1670_v49, %v8934_v11  ;;  %v1672_v30 = vpop.f32.mrb[69].mxu0  ;;  %v7332_v49 = vld [vmem:[#allocation11 + $0x160] ss:$8 sps:$4 sm:$0xff]  }
 0x3c0   :  { %v1673_v60 = vadd.f32 %v1672_v30, %v8939_v27  ;;  %v1674_v5 = vpop.f32.mrb[70].mxu0  ;;  %2456 = vmatprep.mubr.bf16.mxu0 %v2077_v46  ;;  %v7337_v30 = vld [vmem:[#allocation11 + $0x174] ss:$8 sps:$4 sm:$0xff]  }
 0x3c1   :  { %v1986_v6 = vmax.f32 %v1671_v8, 0.0  ;;  %v1675_v57 = vadd.f32 %v1674_v5, %v8934_v11  ;;  %v1676_v10 = vpop.f32.mrb[71].mxu0  ;;  %2457 = vmatmul.mubr.bf16.vlgmr.msra.gmra.mrb[112].mxu0 %v2076_v23 }
 0x3c2   :  { %v1987_v18 = vmax.f32 %v1673_v60, 0.0  ;;  %v1677_v12 = vadd.f32 %v1676_v10, %v8939_v27  ;;  %2618 = vmatpush1.bf16.msra.mxu0 %v7314_v7  ;;  %v7335_v10 = vld [vmem:[#allocation11 + $0x170] ss:$8 sps:$4 sm:$0xff]  }
 0x3c3   :  { %5883 = vst [vmem:[#allocation22 + $0x30] sm:$0xff] %v1986_v6  ;;  %v1989_v13 = vmax.f32 %v1675_v57, 0.0  ;;  %1948 = vmatmul.mubr.bf16.gmra.mrb[128].mxu1 %v8869_v15  ;;  %2619 = vmatprep.subr.bf16.mxu0 %v7319_v32 }
 0x3c4   :  { %5884 = vst [vmem:[#allocation22 + $0x38] sm:$0xff] %v1987_v18  ;;  %v1990_v17 = vmax.f32 %v1677_v12, 0.0  ;;  %1955 = vmatprep.mubr.bf16.mxu1 %v8881_v56 }
 0x3c5   :  { %v2079_v21 = vpack.c.bf16 %v1989_v13, %v1986_v6  ;;  %5886 = vst [vmem:[#allocation22 + $0x48] sm:$0xff] %v1989_v13 }
 0x3c6   :  { %v2080_v25 = vpack.c.bf16 %v1990_v17, %v1987_v18  ;;  %5887 = vst [vmem:[#allocation22 + $0x50] sm:$0xff] %v1990_v17  ;;  %v1680_v28 = vpop.f32.mrb[72].mxu0  ;;  %2620 = vmatpush1.bf16.msra.mxu0 %v7317_v14  ;;  %v8268_v14 = vmov 0  }
 0x3c7   :  { %v1681_v33 = vadd.f32 %v1680_v28, %v8934_v11  ;;  %v1682_v34 = vpop.f32.mrb[73].mxu0  ;;  %2621 = vmatprep.subr.bf16.mxu0 %v7322_v16 }
 0x3c8   :  { %v1683_v15 = vadd.f32 %v1682_v34, %v8939_v27  ;;  %v1684_v37 = vpop.f32.mrb[74].mxu0  ;;  %2466 = vmatprep.mubr.bf16.mxu0 %v2080_v25 }
 0x3c9   :  { %v1992_v39 = vmax.f32 %v1681_v33, 0.0  ;;  %v1685_v45 = vadd.f32 %v1684_v37, %v8934_v11  ;;  %v1686_v56 = vpop.f32.mrb[75].mxu0  ;;  %2467 = vmatmul.mubr.bf16.gmra.mrb[116].mxu0 %v2079_v21 }
 0x3ca   :  { %v1993_v47 = vmax.f32 %v1683_v15, 0.0  ;;  %v1687_v51 = vadd.f32 %v1686_v56, %v8939_v27  ;;  %2622 = vmatpush1.bf16.msra.mxu0 %v7320_v31 }
 0x3cb   :  { %5889 = vst [vmem:[#allocation22 + $0x60] sm:$0xff] %v1992_v39  ;;  %v1995_v53 = vmax.f32 %v1685_v45, 0.0  ;;  %1956 = vmatmul.mubr.bf16.gmra.mrb[132].mxu1 %v8879_v55  ;;  %2623 = vmatprep.subr.bf16.mxu0 %v7325_v36 }
 0x3cc   :  { %5890 = vst [vmem:[#allocation22 + $0x68] sm:$0xff] %v1993_v47  ;;  %v1996_v58 = vmax.f32 %v1687_v51, 0.0  ;;  %1963 = vmatprep.mubr.bf16.mxu1 %v8891_v26 }
 0x3cd   :  { %v2082_v41 = vpack.c.bf16 %v1995_v53, %v1992_v39  ;;  %5892 = vst [vmem:[#allocation22 + $0x78] sm:$0xff] %v1995_v53 }
 0x3ce   :  { %v2083_v62 = vpack.c.bf16 %v1996_v58, %v1993_v47  ;;  %5893 = vst [vmem:[#allocation22 + $0x80] sm:$0xff] %v1996_v58  ;;  %v1690_v59 = vpop.f32.mrb[76].mxu0  ;;  %2624 = vmatpush1.bf16.msra.mxu0 %v7323_v52 }
 0x3cf   :  { %v1691_v42 = vadd.f32 %v1690_v59, %v8934_v11  ;;  %v1692_v29 = vpop.f32.mrb[77].mxu0  ;;  %2625 = vmatprep.subr.bf16.mxu0 %v7328_v54 }
 0x3d0   :  { %v1693_v55 = vadd.f32 %v1692_v29, %v8939_v27  ;;  %v1694_v50 = vpop.f32.mrb[78].mxu0  ;;  %2476 = vmatprep.mubr.bf16.mxu0 %v2083_v62 }
 0x3d1   :  { %v1998_v2 = vmax.f32 %v1691_v42, 0.0  ;;  %v1695_v4 = vadd.f32 %v1694_v50, %v8934_v11  ;;  %v1696_v26 = vpop.f32.mrb[79].mxu0  ;;  %2477 = vmatmul.mubr.bf16.gmra.mrb[120].mxu0 %v2082_v41 }
 0x3d2   :  { %v1999_v20 = vmax.f32 %v1693_v55, 0.0  ;;  %v1697_v22 = vadd.f32 %v1696_v26, %v8939_v27  ;;  %2626 = vmatpush1.bf16.msra.mxu0 %v7326_v3 }
 0x3d3   :  { %5895 = vst [vmem:[#allocation22 + $0x90] sm:$0xff] %v1998_v2  ;;  %v2001_v44 = vmax.f32 %v1695_v4, 0.0  ;;  %1964 = vmatmul.mubr.bf16.gmra.mrb[136].mxu1 %v8889_v24  ;;  %2627 = vmatprep.subr.bf16.mxu0 %v7331_v48 }
 0x3d4   :  { %5896 = vst [vmem:[#allocation22 + $0x98] sm:$0xff] %v1999_v20  ;;  %v2002_v1 = vmax.f32 %v1697_v22, 0.0  ;;  %1971 = vmatprep.mubr.bf16.mxu1 %v8901_v0 }
 0x3d5   :  { %v2085_v19 = vpack.c.bf16 %v2001_v44, %v1998_v2  ;;  %5898 = vst [vmem:[#allocation22 + $0xa8] sm:$0xff] %v2001_v44 }
 0x3d6   :  { %v2086_v23 = vpack.c.bf16 %v2002_v1, %v1999_v20  ;;  %5899 = vst [vmem:[#allocation22 + $0xb0] sm:$0xff] %v2002_v1  ;;  %v1700_v46 = vpop.f32.mrb[80].mxu0  ;;  %2628 = vmatpush1.bf16.msra.mxu0 %v7329_v43 }
 0x3d7   :  { %v1701_v7 = vadd.f32 %v1700_v46, %v8934_v11  ;;  %v1702_v8 = vpop.f32.mrb[81].mxu0  ;;  %2629 = vmatprep.subr.bf16.mxu0 %v7334_v61 }
 0x3d8   :  { %v1703_v24 = vadd.f32 %v1702_v8, %v8939_v27  ;;  %v1704_v32 = vpop.f32.mrb[82].mxu0  ;;  %2486 = vmatprep.mubr.bf16.mxu0 %v2086_v23 }
 0x3d9   :  { %v2004_v60 = vmax.f32 %v1701_v7, 0.0  ;;  %v1705_v5 = vadd.f32 %v1704_v32, %v8934_v11  ;;  %v1706_v0 = vpop.f32.mrb[83].mxu0  ;;  %2487 = vmatmul.mubr.bf16.gmra.mrb[124].mxu0 %v2085_v19 }
 0x3da   :  { %v2005_v6 = vmax.f32 %v1703_v24, 0.0  ;;  %v1707_v57 = vadd.f32 %v1706_v0, %v8939_v27  ;;  %2630 = vmatpush1.bf16.msra.mxu0 %v7332_v49 }
 0x3db   :  { %5901 = vst [vmem:[#allocation22 + $0xc0] sm:$0xff] %v2004_v60  ;;  %v2007_v18 = vmax.f32 %v1705_v5, 0.0  ;;  %1972 = vmatmul.mubr.bf16.gmra.mrb[140].mxu1 %v8899_v63  ;;  %2631 = vmatprep.subr.bf16.mxu0 %v7337_v30 }
 0x3dc   :  { %5902 = vst [vmem:[#allocation22 + $0xc8] sm:$0xff] %v2005_v6  ;;  %v2008_v12 = vmax.f32 %v1707_v57, 0.0  ;;  %3227 = vmatprep.mubr.bf16.mxu1 %v8268_v14 }
 0x3dd   :  { %v2088_v13 = vpack.c.bf16 %v2007_v18, %v2004_v60  ;;  %5904 = vst [vmem:[#allocation22 + $0xd8] sm:$0xff] %v2007_v18 }
 0x3de   :  { %v2089_v16 = vpack.c.bf16 %v2008_v12, %v2005_v6  ;;  %5905 = vst [vmem:[#allocation22 + $0xe0] sm:$0xff] %v2008_v12  ;;  %v1710_v17 = vpop.f32.mrb[84].mxu0  ;;  %2632 = vmatpush1.bf16.msra.mxu0 %v7335_v10 }
 0x3df   :  { %v1711_v21 = vadd.f32 %v1710_v17, %v8934_v11  ;;  %v1712_v25 = vpop.f32.mrb[85].mxu0 }
 0x3e0   :  { %v1713_v28 = vadd.f32 %v1712_v25, %v8939_v27  ;;  %v1714_v31 = vpop.f32.mrb[86].mxu0  ;;  %2496 = vmatprep.mubr.bf16.mxu0 %v2089_v16 }
 0x3e1   :  { %v2010_v63 = vmax.f32 %v1711_v21, 0.0  ;;  %v1715_v33 = vadd.f32 %v1714_v31, %v8934_v11  ;;  %v1716_v34 = vpop.f32.mrb[87].mxu0  ;;  %2497 = vmatmul.mubr.bf16.gmra.mrb[128].mxu0 %v2088_v13 }
 0x3e2   :  { %v2011_v36 = vmax.f32 %v1713_v28, 0.0  ;;  %v1717_v15 = vadd.f32 %v1716_v34, %v8939_v27 }
 0x3e3   :  { %5907 = vst [vmem:[#allocation22 + $0xf0] sm:$0xff] %v2010_v63  ;;  %v2013_v37 = vmax.f32 %v1715_v33, 0.0 }
 0x3e4   :  { %5908 = vst [vmem:[#allocation22 + $0xf8] sm:$0xff] %v2011_v36  ;;  %v2014_v39 = vmax.f32 %v1717_v15, 0.0 }
 0x3e5   :  { %v2091_v45 = vpack.c.bf16 %v2013_v37, %v2010_v63  ;;  %5910 = vst [vmem:[#allocation22 + $0x108] sm:$0xff] %v2013_v37 }
 0x3e6   :  { %v2092_v56 = vpack.c.bf16 %v2014_v39, %v2011_v36  ;;  %5911 = vst [vmem:[#allocation22 + $0x110] sm:$0xff] %v2014_v39  ;;  %v1720_v47 = vpop.f32.mrb[88].mxu0 }
 0x3e7   :  { %v1721_v51 = vadd.f32 %v1720_v47, %v8934_v11  ;;  %v1722_v52 = vpop.f32.mrb[89].mxu0 }
 0x3e8   :  { %v1723_v53 = vadd.f32 %v1722_v52, %v8939_v27  ;;  %v1724_v54 = vpop.f32.mrb[90].mxu0  ;;  %2506 = vmatprep.mubr.bf16.mxu0 %v2092_v56 }
 0x3e9   :  { %v2016_v58 = vmax.f32 %v1721_v51, 0.0  ;;  %v1725_v41 = vadd.f32 %v1724_v54, %v8934_v11  ;;  %v1726_v62 = vpop.f32.mrb[91].mxu0  ;;  %2507 = vmatmul.mubr.bf16.gmra.mrb[132].mxu0 %v2091_v45 }
 0x3ea   :  { %v2017_v59 = vmax.f32 %v1723_v53, 0.0  ;;  %v1727_v3 = vadd.f32 %v1726_v62, %v8939_v27 }
 0x3eb   :  { %5913 = vst [vmem:[#allocation22 + $0x120] sm:$0xff] %v2016_v58  ;;  %v2019_v42 = vmax.f32 %v1725_v41, 0.0 }
 0x3ec   :  { %5914 = vst [vmem:[#allocation22 + $0x128] sm:$0xff] %v2017_v59  ;;  %v2020_v29 = vmax.f32 %v1727_v3, 0.0 }
 0x3ed   :  { %v2094_v48 = vpack.c.bf16 %v2019_v42, %v2016_v58  ;;  %5916 = vst [vmem:[#allocation22 + $0x138] sm:$0xff] %v2019_v42 }
 0x3ee   :  { %v2095_v55 = vpack.c.bf16 %v2020_v29, %v2017_v59  ;;  %5917 = vst [vmem:[#allocation22 + $0x140] sm:$0xff] %v2020_v29  ;;  %v1730_v50 = vpop.f32.mrb[92].mxu0 }
 0x3ef   :  { %v1731_v2 = vadd.f32 %v1730_v50, %v8934_v11  ;;  %v1732_v4 = vpop.f32.mrb[93].mxu0 }
 0x3f0   :  { %v1733_v26 = vadd.f32 %v1732_v4, %v8939_v27  ;;  %v1734_v20 = vpop.f32.mrb[94].mxu0  ;;  %2516 = vmatprep.mubr.bf16.mxu0 %v2095_v55 }
 0x3f1   :  { %v2022_v22 = vmax.f32 %v1731_v2, 0.0  ;;  %v1735_v43 = vadd.f32 %v1734_v20, %v8934_v11  ;;  %v1736_v44 = vpop.f32.mrb[95].mxu0  ;;  %2517 = vmatmul.mubr.bf16.gmra.mrb[136].mxu0 %v2094_v48 }
 0x3f2   :  { %v2023_v61 = vmax.f32 %v1733_v26, 0.0  ;;  %v1737_v1 = vadd.f32 %v1736_v44, %v8939_v27 }
 0x3f3   :  { %5919 = vst [vmem:[#allocation22 + $0x150] sm:$0xff] %v2022_v22  ;;  %v2025_v19 = vmax.f32 %v1735_v43, 0.0 }
 0x3f4   :  { %5920 = vst [vmem:[#allocation22 + $0x158] sm:$0xff] %v2023_v61  ;;  %v2026_v23 = vmax.f32 %v1737_v1, 0.0 }
 0x3f5   :  { %v2097_v46 = vpack.c.bf16 %v2025_v19, %v2022_v22  ;;  %5922 = vst [vmem:[#allocation22 + $0x168] sm:$0xff] %v2025_v19 }
 0x3f6   :  { %v2098_v49 = vpack.c.bf16 %v2026_v23, %v2023_v61  ;;  %5923 = vst [vmem:[#allocation22 + $0x170] sm:$0xff] %v2026_v23  ;;  %v1740_v7 = vpop.f32.mrb[96].mxu0 }
 0x3f7   :  { %v1741_v8 = vadd.f32 %v1740_v7, %v8934_v11  ;;  %v1742_v30 = vpop.f32.mrb[97].mxu0 }
 0x3f8   :  { %v1743_v24 = vadd.f32 %v1742_v30, %v8939_v27  ;;  %v1744_v32 = vpop.f32.mrb[98].mxu0  ;;  %2526 = vmatprep.mubr.bf16.mxu0 %v2098_v49 }
 0x3f9   :  { %v2028_v60 = vmax.f32 %v1741_v8, 0.0  ;;  %v1745_v5 = vadd.f32 %v1744_v32, %v8934_v11  ;;  %v1746_v0 = vpop.f32.mrb[99].mxu0  ;;  %2527 = vmatmul.mubr.bf16.gmra.mrb[140].mxu0 %v2097_v46 }
 0x3fa   :  { %v2029_v6 = vmax.f32 %v1743_v24, 0.0  ;;  %v1747_v57 = vadd.f32 %v1746_v0, %v8939_v27 }
 0x3fb   :  { %5925 = vst [vmem:[#allocation22 + $0x180] sm:$0xff] %v2028_v60  ;;  %v2031_v10 = vmax.f32 %v1745_v5, 0.0 }
 0x3fc   :  { %5926 = vst [vmem:[#allocation22 + $0x188] sm:$0xff] %v2029_v6  ;;  %v2032_v18 = vmax.f32 %v1747_v57, 0.0 }
 0x3fd   :  { %v2100_v12 = vpack.c.bf16 %v2031_v10, %v2028_v60  ;;  %5928 = vst [vmem:[#allocation22 + $0x198] sm:$0xff] %v2031_v10 }
 0x3fe   :  { %v2101_v13 = vpack.c.bf16 %v2032_v18, %v2029_v6  ;;  %5929 = vst [vmem:[#allocation22 + $0x1a0] sm:$0xff] %v2032_v18  ;;  %v1750_v16 = vpop.f32.mrb[100].mxu0 }
 0x3ff   :  { %v1751_v17 = vadd.f32 %v1750_v16, %v8934_v11  ;;  %v1752_v21 = vpop.f32.mrb[101].mxu0 }
 0x400   :  { %v1753_v25 = vadd.f32 %v1752_v21, %v8939_v27  ;;  %v1754_v28 = vpop.f32.mrb[102].mxu0  ;;  %2536 = vmatprep.mubr.bf16.mxu0 %v2101_v13 }
 0x401   :  { %v2034_v31 = vmax.f32 %v1751_v17, 0.0  ;;  %v1755_v63 = vadd.f32 %v1754_v28, %v8934_v11  ;;  %v1756_v33 = vpop.f32.mrb[103].mxu0  ;;  %2537 = vmatmul.mubr.bf16.gmra.mrb[144].mxu0 %v2100_v12 }
 0x402   :  { %v2035_v34 = vmax.f32 %v1753_v25, 0.0  ;;  %v1757_v36 = vadd.f32 %v1756_v33, %v8939_v27 }
 0x403   :  { %5931 = vst [vmem:[#allocation22 + $0x1b0] sm:$0xff] %v2034_v31  ;;  %v2037_v15 = vmax.f32 %v1755_v63, 0.0 }
 0x404   :  { %5932 = vst [vmem:[#allocation22 + $0x1b8] sm:$0xff] %v2035_v34  ;;  %v2038_v37 = vmax.f32 %v1757_v36, 0.0 }
 0x405   :  { %v2103_v39 = vpack.c.bf16 %v2037_v15, %v2034_v31  ;;  %5934 = vst [vmem:[#allocation22 + $0x1c8] sm:$0xff] %v2037_v15 }
 0x406   :  { %v2104_v45 = vpack.c.bf16 %v2038_v37, %v2035_v34  ;;  %5935 = vst [vmem:[#allocation22 + $0x1d0] sm:$0xff] %v2038_v37  ;;  %v1760_v56 = vpop.f32.mrb[104].mxu0 }
 0x407   :  { %v1761_v47 = vadd.f32 %v1760_v56, %v8934_v11  ;;  %v1762_v51 = vpop.f32.mrb[105].mxu0 }
 0x408   :  { %v1763_v52 = vadd.f32 %v1762_v51, %v8939_v27  ;;  %v1764_v53 = vpop.f32.mrb[106].mxu0  ;;  %2546 = vmatprep.mubr.bf16.mxu0 %v2104_v45 }
 0x409   :  { %v2040_v54 = vmax.f32 %v1761_v47, 0.0  ;;  %v1765_v58 = vadd.f32 %v1764_v53, %v8934_v11  ;;  %v1766_v41 = vpop.f32.mrb[107].mxu0  ;;  %2547 = vmatmul.mubr.bf16.gmra.mrb[148].mxu0 %v2103_v39 }
 0x40a   :  { %v2041_v62 = vmax.f32 %v1763_v52, 0.0  ;;  %v1767_v59 = vadd.f32 %v1766_v41, %v8939_v27 }
 0x40b   :  { %5937 = vst [vmem:[#allocation22 + $0x1e0] sm:$0xff] %v2040_v54  ;;  %v2043_v3 = vmax.f32 %v1765_v58, 0.0 }
 0x40c   :  { %5938 = vst [vmem:[#allocation22 + $0x1e8] sm:$0xff] %v2041_v62  ;;  %v2044_v42 = vmax.f32 %v1767_v59, 0.0 }
 0x40d   :  { %v2106_v29 = vpack.c.bf16 %v2043_v3, %v2040_v54  ;;  %5940 = vst [vmem:[#allocation22 + $0x1f8] sm:$0xff] %v2043_v3 }
 0x40e   :  { %v2107_v48 = vpack.c.bf16 %v2044_v42, %v2041_v62  ;;  %5941 = vst [vmem:[#allocation22 + $0x200] sm:$0xff] %v2044_v42  ;;  %v1770_v55 = vpop.f32.mrb[108].mxu0 }
 0x40f   :  { %v1771_v50 = vadd.f32 %v1770_v55, %v8934_v11  ;;  %v1772_v2 = vpop.f32.mrb[109].mxu0 }
 0x410   :  { %v1773_v4 = vadd.f32 %v1772_v2, %v8939_v27  ;;  %v1774_v26 = vpop.f32.mrb[110].mxu0  ;;  %2556 = vmatprep.mubr.bf16.mxu0 %v2107_v48 }
 0x411   :  { %v2046_v20 = vmax.f32 %v1771_v50, 0.0  ;;  %v1775_v22 = vadd.f32 %v1774_v26, %v8934_v11  ;;  %v1776_v43 = vpop.f32.mrb[111].mxu0  ;;  %2557 = vmatmul.mubr.bf16.gmra.mrb[152].mxu0 %v2106_v29 }
 0x412   :  { %v2047_v44 = vmax.f32 %v1773_v4, 0.0  ;;  %v1777_v61 = vadd.f32 %v1776_v43, %v8939_v27 }
 0x413   :  { %5943 = vst [vmem:[#allocation22 + $0x210] sm:$0xff] %v2046_v20  ;;  %v2049_v1 = vmax.f32 %v1775_v22, 0.0 }
 0x414   :  { %5944 = vst [vmem:[#allocation22 + $0x218] sm:$0xff] %v2047_v44  ;;  %v2050_v19 = vmax.f32 %v1777_v61, 0.0  ;;  %v1365_v61 = vsub.s32 2, %v8547_v35 }
 0x415   :  { %v2109_v23 = vpack.c.bf16 %v2049_v1, %v2046_v20  ;;  %5946 = vst [vmem:[#allocation22 + $0x228] sm:$0xff] %v2049_v1 }
 0x416   :  { %v2110_v46 = vpack.c.bf16 %v2050_v19, %v2047_v44  ;;  %5947 = vst [vmem:[#allocation22 + $0x230] sm:$0xff] %v2050_v19  ;;  %v1780_v49 = vpop.f32.mrb[64].mxu1 }
 0x417   :  { %v1781_v7 = vadd.f32 %v1780_v49, %v8934_v11  ;;  %v1782_v8 = vpop.f32.mrb[65].mxu1 }
 0x418   :  { %v1783_v30 = vadd.f32 %v1782_v8, %v8939_v27  ;;  %v1784_v24 = vpop.f32.mrb[66].mxu1  ;;  %2566 = vmatprep.mubr.bf16.mxu0 %v2110_v46  ;;  %v7340_v8 = vld [vmem:[#allocation13 + $0x4] ss:$12 sps:$4 sm:$0xff]  }
 0x419   :  { %v2052_v32 = vmax.f32 %v1781_v7, 0.0  ;;  %v1785_v60 = vadd.f32 %v1784_v24, %v8934_v11  ;;  %v1786_v5 = vpop.f32.mrb[67].mxu1  ;;  %2567 = vmatmul.mubr.bf16.gmra.mrb[156].mxu0 %v2109_v23  ;;  %v7338_v7 = vld [vmem:[#allocation13] ss:$12 sps:$4 sm:$0xff]   ;;  %3195 = vmatprep.subr.bf16.mxu1 %v7340_v8 }
 0x41a   :  { %v2053_v0 = vmax.f32 %v1783_v30, 0.0  ;;  %v1787_v6 = vadd.f32 %v1786_v5, %v8939_v27  ;;  %3196 = vmatpush1.bf16.msra.mxu1 %v7338_v7 }
 0x41b   :  { %5949 = vst [vmem:[#allocation22 + $0x240] sm:$0xff] %v2052_v32  ;;  %v2055_v57 = vmax.f32 %v1785_v60, 0.0 }
 0x41c   :  { %5950 = vst [vmem:[#allocation22 + $0x248] sm:$0xff] %v2053_v0  ;;  %v2056_v10 = vmax.f32 %v1787_v6, 0.0  ;;  %v7343_v6 = vld [vmem:[#allocation13 + $0x1c] ss:$12 sps:$4 sm:$0xff]  }
 0x41d   :  { %v2112_v18 = vpack.c.bf16 %v2055_v57, %v2052_v32  ;;  %5952 = vst [vmem:[#allocation22 + $0x258] sm:$0xff] %v2055_v57  ;;  %v7346_v57 = vld [vmem:[#allocation13 + $0x34] ss:$12 sps:$4 sm:$0xff]   ;;  %3197 = vmatprep.subr.bf16.mxu1 %v7343_v6 }
 0x41e   :  { %v2113_v12 = vpack.c.bf16 %v2056_v10, %v2053_v0  ;;  %5953 = vst [vmem:[#allocation22 + $0x260] sm:$0xff] %v2056_v10  ;;  %v1790_v13 = vpop.f32.mrb[68].mxu1  ;;  %v7341_v0 = vld [vmem:[#allocation13 + $0x18] ss:$12 sps:$4 sm:$0xff]  }
 0x41f   :  { %v1791_v16 = vadd.f32 %v1790_v13, %v8934_v11  ;;  %v1792_v17 = vpop.f32.mrb[69].mxu1  ;;  %3198 = vmatpush1.bf16.msra.mxu1 %v7341_v0 }
 0x420   :  { %v1793_v21 = vadd.f32 %v1792_v17, %v8939_v27  ;;  %v1794_v25 = vpop.f32.mrb[70].mxu1  ;;  %2576 = vmatprep.mubr.bf16.mxu0 %v2113_v12  ;;  %3199 = vmatprep.subr.bf16.mxu1 %v7346_v57 }
 0x421   :  { %v2058_v28 = vmax.f32 %v1791_v16, 0.0  ;;  %v1795_v31 = vadd.f32 %v1794_v25, %v8934_v11  ;;  %v1796_v63 = vpop.f32.mrb[71].mxu1  ;;  %2577 = vmatmul.mubr.bf16.gmra.mrb[160].mxu0 %v2112_v18  ;;  %v7344_v18 = vld [vmem:[#allocation13 + $0x30] ss:$12 sps:$4 sm:$0xff]   ;;  %v7349_v16 = vld [vmem:[#allocation13 + $0x4c] ss:$12 sps:$4 sm:$0xff]  }
 0x422   :  { %v2059_v33 = vmax.f32 %v1793_v21, 0.0  ;;  %v1797_v34 = vadd.f32 %v1796_v63, %v8939_v27  ;;  %v7347_v63 = vld [vmem:[#allocation13 + $0x48] ss:$12 sps:$4 sm:$0xff]  }
 0x423   :  { %5955 = vst [vmem:[#allocation22 + $0x270] sm:$0xff] %v2058_v28  ;;  %v2061_v36 = vmax.f32 %v1795_v31, 0.0  ;;  %3200 = vmatpush1.bf16.msra.mxu1 %v7344_v18 }
 0x424   :  { %5956 = vst [vmem:[#allocation22 + $0x278] sm:$0xff] %v2059_v33  ;;  %v2062_v15 = vmax.f32 %v1797_v34, 0.0  ;;  %3201 = vmatprep.subr.bf16.mxu1 %v7349_v16 }
 0x425   :  { %v2115_v37 = vpack.c.bf16 %v2061_v36, %v2058_v28  ;;  %5958 = vst [vmem:[#allocation22 + $0x288] sm:$0xff] %v2061_v36  ;;  %v7352_v36 = vld [vmem:[#allocation13 + $0x64] ss:$12 sps:$4 sm:$0xff]  }
 0x426   :  { %v2116_v39 = vpack.c.bf16 %v2062_v15, %v2059_v33  ;;  %5959 = vst [vmem:[#allocation22 + $0x290] sm:$0xff] %v2062_v15  ;;  %v1800_v45 = vpop.f32.mrb[72].mxu1 }
 0x427   :  { %v1801_v56 = vadd.f32 %v1800_v45, %v8934_v11  ;;  %v1802_v47 = vpop.f32.mrb[73].mxu1  ;;  %3202 = vmatpush1.bf16.msra.mxu1 %v7347_v63 }
 0x428   :  { %v1803_v51 = vadd.f32 %v1802_v47, %v8939_v27  ;;  %v1804_v52 = vpop.f32.mrb[74].mxu1  ;;  %2586 = vmatprep.mubr.bf16.mxu0 %v2116_v39  ;;  %v7350_v39 = vld [vmem:[#allocation13 + $0x60] ss:$12 sps:$4 sm:$0xff]   ;;  %3203 = vmatprep.subr.bf16.mxu1 %v7352_v36  ;;  %v7355_v47 = vld [vmem:[#allocation13 + $0x7c] ss:$12 sps:$4 sm:$0xff]  }
 0x429   :  { %v2064_v53 = vmax.f32 %v1801_v56, 0.0  ;;  %v1805_v54 = vadd.f32 %v1804_v52, %v8934_v11  ;;  %v1806_v58 = vpop.f32.mrb[75].mxu1  ;;  %2587 = vmatmul.mubr.bf16.gmra.mrb[164].mxu0 %v2115_v37 }
 0x42a   :  { %v2065_v41 = vmax.f32 %v1803_v51, 0.0  ;;  %v1807_v62 = vadd.f32 %v1806_v58, %v8939_v27 }
 0x42b   :  { %5961 = vst [vmem:[#allocation22 + $0x2a0] sm:$0xff] %v2064_v53  ;;  %v2067_v59 = vmax.f32 %v1805_v54, 0.0  ;;  %3204 = vmatpush1.bf16.msra.mxu1 %v7350_v39 }
 0x42c   :  { %5962 = vst [vmem:[#allocation22 + $0x2a8] sm:$0xff] %v2065_v41  ;;  %v2068_v3 = vmax.f32 %v1807_v62, 0.0  ;;  %3205 = vmatprep.subr.bf16.mxu1 %v7355_v47 }
 0x42d   :  { %v2118_v42 = vpack.c.bf16 %v2067_v59, %v2064_v53  ;;  %5964 = vst [vmem:[#allocation22 + $0x2b8] sm:$0xff] %v2067_v59 }
 0x42e   :  { %v2119_v29 = vpack.c.bf16 %v2068_v3, %v2065_v41  ;;  %5965 = vst [vmem:[#allocation22 + $0x2c0] sm:$0xff] %v2068_v3  ;;  %v1810_v48 = vpop.f32.mrb[76].mxu1  ;;  %v7353_v41 = vld [vmem:[#allocation13 + $0x78] ss:$12 sps:$4 sm:$0xff]   ;;  %v7358_v3 = vld [vmem:[#allocation13 + $0x94] ss:$12 sps:$4 sm:$0xff]  }
 0x42f   :  { %v1811_v55 = vadd.f32 %v1810_v48, %v8934_v11  ;;  %v1812_v50 = vpop.f32.mrb[77].mxu1  ;;  %3206 = vmatpush1.bf16.msra.mxu1 %v7353_v41  ;;  %v7356_v48 = vld [vmem:[#allocation13 + $0x90] ss:$12 sps:$4 sm:$0xff]  }
 0x430   :  { %v1813_v2 = vadd.f32 %v1812_v50, %v8939_v27  ;;  %v1814_v4 = vpop.f32.mrb[78].mxu1  ;;  %2596 = vmatprep.mubr.bf16.mxu0 %v2119_v29  ;;  %3207 = vmatprep.subr.bf16.mxu1 %v7358_v3 }
 0x431   :  { %v2070_v26 = vmax.f32 %v1811_v55, 0.0  ;;  %v1815_v20 = vadd.f32 %v1814_v4, %v8934_v11  ;;  %v1816_v22 = vpop.f32.mrb[79].mxu1  ;;  %2597 = vmatmul.mubr.bf16.gmra.mrb[168].mxu0 %v2118_v42  ;;  %v9019_v11 = vrot.slane %v8929_v9, %v1365_v61 }
 0x432   :  { %v2071_v43 = vmax.f32 %v1813_v2, 0.0  ;;  %v1817_v44 = vadd.f32 %v1816_v22, %v8939_v27 }
 0x433   :  { %5967 = vst [vmem:[#allocation22 + $0x2d0] sm:$0xff] %v2070_v26  ;;  %v2073_v1 = vmax.f32 %v1815_v20, 0.0  ;;  %3208 = vmatpush1.bf16.msra.mxu1 %v7356_v48 }
 0x434   :  { %5968 = vst [vmem:[#allocation22 + $0x2d8] sm:$0xff] %v2071_v43  ;;  %v2074_v19 = vmax.f32 %v1817_v44, 0.0 }
 0x435   :  { %v2121_v23 = vpack.c.bf16 %v2073_v1, %v2070_v26  ;;  %5970 = vst [vmem:[#allocation22 + $0x2e8] sm:$0xff] %v2073_v1 }
 0x436   :  { %v2122_v46 = vpack.c.bf16 %v2074_v19, %v2071_v43  ;;  %5971 = vst [vmem:[#allocation22 + $0x2f0] sm:$0xff] %v2074_v19  ;;  %v6624_v49 = vpop.f32.mrb[80].mxu1 }
 0x437   :  { %v6625_v30 = vpop.f32.mrb[81].mxu1 }
 0x438   :  { %v6626_v27 = vadd.f32 %v6625_v30, %v6624_v49  ;;  %v6627_v24 = vpop.f32.mrb[82].mxu1  ;;  %2606 = vmatprep.mubr.bf16.mxu0 %v2122_v46 }
 0x439   :  { %v6628_v32 = vpop.f32.mrb[83].mxu1  ;;  %2607 = vmatmul.mubr.bf16.gmra.mrb[172].mxu0 %v2121_v23 }
 0x43a   :  { %v1854_v60 = vadd.f32 %v6626_v27, %v9019_v11  ;;  %v6629_v5 = vadd.f32 %v6628_v32, %v6627_v24  ;;  %2649 = vmatprep.mubr.bf16.mxu0 %v8268_v14 }
 0x43c   :  { %v1982_v9 = vmax.f32 %v1854_v60, 0.0  ;;  %v1857_v10 = vadd.f32 %v6629_v5, %v9019_v11 }
 0x43e   :  { %5879 = vst [vmem:[#allocation22 + $0x10] sm:$0xff] %v1982_v9  ;;  %v1985_v12 = vmax.f32 %v1857_v10, 0.0  ;;  %v6630_v13 = vpop.f32.mrb[84].mxu1 }
 0x43f   :  { %v6631_v17 = vpop.f32.mrb[85].mxu1 }
 0x440   :  { %v2078_v21 = vpack.c.bf16 %v1985_v12, %v1982_v9  ;;  %5882 = vst [vmem:[#allocation22 + $0x28] sm:$0xff] %v1985_v12  ;;  %v6632_v25 = vadd.f32 %v6631_v17, %v6630_v13  ;;  %v6633_v28 = vpop.f32.mrb[86].mxu1 }
 0x441   :  { %v6634_v31 = vpop.f32.mrb[87].mxu1 }
 0x442   :  { %v1862_v33 = vadd.f32 %v6632_v25, %v9019_v11  ;;  %v6635_v34 = vadd.f32 %v6634_v31, %v6633_v28  ;;  %2650 = vmatmul.mubr.bf16.vlgmr.msra.gmra.mrb[112].mxu0 %v2078_v21 }
 0x443   :  { %2659 = vmatprep.mubr.bf16.mxu0 %v8268_v14 }
 0x444   :  { %v1988_v15 = vmax.f32 %v1862_v33, 0.0  ;;  %v1865_v37 = vadd.f32 %v6635_v34, %v9019_v11 }
 0x446   :  { %5885 = vst [vmem:[#allocation22 + $0x40] sm:$0xff] %v1988_v15  ;;  %v1991_v45 = vmax.f32 %v1865_v37, 0.0  ;;  %v6636_v56 = vpop.f32.mrb[88].mxu1 }
 0x447   :  { %v6637_v51 = vpop.f32.mrb[89].mxu1 }
 0x448   :  { %5888 = vst [vmem:[#allocation22 + $0x58] sm:$0xff] %v1991_v45  ;;  %v6638_v52 = vadd.f32 %v6637_v51, %v6636_v56  ;;  %v6639_v53 = vpop.f32.mrb[90].mxu1  ;;  %v2081_v54 = vpack.c.bf16 %v1991_v45, %v1988_v15 }
 0x449   :  { %v6640_v58 = vpop.f32.mrb[91].mxu1 }
 0x44a   :  { %v1870_v62 = vadd.f32 %v6638_v52, %v9019_v11  ;;  %v6641_v59 = vadd.f32 %v6640_v58, %v6639_v53  ;;  %2660 = vmatmul.mubr.bf16.gmra.mrb[116].mxu0 %v2081_v54 }
 0x44b   :  { %2669 = vmatprep.mubr.bf16.mxu0 %v8268_v14 }
 0x44c   :  { %v1994_v42 = vmax.f32 %v1870_v62, 0.0  ;;  %v1873_v29 = vadd.f32 %v6641_v59, %v9019_v11 }
 0x44e   :  { %5891 = vst [vmem:[#allocation22 + $0x70] sm:$0xff] %v1994_v42  ;;  %v1997_v55 = vmax.f32 %v1873_v29, 0.0  ;;  %v6642_v50 = vpop.f32.mrb[92].mxu1 }
 0x44f   :  { %v6643_v2 = vpop.f32.mrb[93].mxu1 }
 0x450   :  { %5894 = vst [vmem:[#allocation22 + $0x88] sm:$0xff] %v1997_v55  ;;  %v6644_v4 = vadd.f32 %v6643_v2, %v6642_v50  ;;  %v6645_v26 = vpop.f32.mrb[94].mxu1  ;;  %v2084_v20 = vpack.c.bf16 %v1997_v55, %v1994_v42 }
 0x451   :  { %v6646_v22 = vpop.f32.mrb[95].mxu1 }
 0x452   :  { %v1878_v43 = vadd.f32 %v6644_v4, %v9019_v11  ;;  %v6647_v44 = vadd.f32 %v6646_v22, %v6645_v26  ;;  %2670 = vmatmul.mubr.bf16.gmra.mrb[120].mxu0 %v2084_v20 }
 0x453   :  { %2679 = vmatprep.mubr.bf16.mxu0 %v8268_v14 }
 0x454   :  { %v2000_v1 = vmax.f32 %v1878_v43, 0.0  ;;  %v1881_v19 = vadd.f32 %v6647_v44, %v9019_v11 }
 0x456   :  { %5897 = vst [vmem:[#allocation22 + $0xa0] sm:$0xff] %v2000_v1  ;;  %v2003_v23 = vmax.f32 %v1881_v19, 0.0  ;;  %v6648_v46 = vpop.f32.mrb[96].mxu1 }
 0x457   :  { %v6649_v49 = vpop.f32.mrb[97].mxu1 }
 0x458   :  { %5900 = vst [vmem:[#allocation22 + $0xb8] sm:$0xff] %v2003_v23  ;;  %v6650_v7 = vadd.f32 %v6649_v49, %v6648_v46  ;;  %v6651_v8 = vpop.f32.mrb[98].mxu1  ;;  %v2087_v30 = vpack.c.bf16 %v2003_v23, %v2000_v1 }
 0x459   :  { %v6652_v27 = vpop.f32.mrb[99].mxu1 }
 0x45a   :  { %v1886_v24 = vadd.f32 %v6650_v7, %v9019_v11  ;;  %v6653_v32 = vadd.f32 %v6652_v27, %v6651_v8  ;;  %2680 = vmatmul.mubr.bf16.gmra.mrb[124].mxu0 %v2087_v30 }
 0x45b   :  { %2689 = vmatprep.mubr.bf16.mxu0 %v8268_v14 }
 0x45c   :  { %v2006_v60 = vmax.f32 %v1886_v24, 0.0  ;;  %v1889_v5 = vadd.f32 %v6653_v32, %v9019_v11 }
 0x45e   :  { %5903 = vst [vmem:[#allocation22 + $0xd0] sm:$0xff] %v2006_v60  ;;  %v2009_v0 = vmax.f32 %v1889_v5, 0.0  ;;  %v6654_v6 = vpop.f32.mrb[100].mxu1 }
 0x45f   :  { %v6655_v57 = vpop.f32.mrb[101].mxu1 }
 0x460   :  { %5906 = vst [vmem:[#allocation22 + $0xe8] sm:$0xff] %v2009_v0  ;;  %v6656_v9 = vadd.f32 %v6655_v57, %v6654_v6  ;;  %v6657_v10 = vpop.f32.mrb[102].mxu1  ;;  %v2090_v18 = vpack.c.bf16 %v2009_v0, %v2006_v60 }
 0x461   :  { %v6658_v12 = vpop.f32.mrb[103].mxu1 }
 0x462   :  { %v1894_v13 = vadd.f32 %v6656_v9, %v9019_v11  ;;  %v6659_v16 = vadd.f32 %v6658_v12, %v6657_v10  ;;  %2690 = vmatmul.mubr.bf16.gmra.mrb[128].mxu0 %v2090_v18 }
 0x463   :  { %2699 = vmatprep.mubr.bf16.mxu0 %v8268_v14 }
 0x464   :  { %v2012_v17 = vmax.f32 %v1894_v13, 0.0  ;;  %v1897_v21 = vadd.f32 %v6659_v16, %v9019_v11 }
 0x466   :  { %5909 = vst [vmem:[#allocation22 + $0x100] sm:$0xff] %v2012_v17  ;;  %v2015_v25 = vmax.f32 %v1897_v21, 0.0  ;;  %v6660_v28 = vpop.f32.mrb[104].mxu1 }
 0x467   :  { %v6661_v31 = vpop.f32.mrb[105].mxu1 }
 0x468   :  { %5912 = vst [vmem:[#allocation22 + $0x118] sm:$0xff] %v2015_v25  ;;  %v6662_v63 = vadd.f32 %v6661_v31, %v6660_v28  ;;  %v6663_v33 = vpop.f32.mrb[106].mxu1  ;;  %v2093_v34 = vpack.c.bf16 %v2015_v25, %v2012_v17 }
 0x469   :  { %v6664_v36 = vpop.f32.mrb[107].mxu1 }
 0x46a   :  { %v1902_v15 = vadd.f32 %v6662_v63, %v9019_v11  ;;  %v6665_v37 = vadd.f32 %v6664_v36, %v6663_v33  ;;  %2700 = vmatmul.mubr.bf16.gmra.mrb[132].mxu0 %v2093_v34 }
 0x46b   :  { %2709 = vmatprep.mubr.bf16.mxu0 %v8268_v14 }
 0x46c   :  { %v2018_v39 = vmax.f32 %v1902_v15, 0.0  ;;  %v1905_v45 = vadd.f32 %v6665_v37, %v9019_v11 }
 0x46e   :  { %5915 = vst [vmem:[#allocation22 + $0x130] sm:$0xff] %v2018_v39  ;;  %v2021_v56 = vmax.f32 %v1905_v45, 0.0  ;;  %v6666_v47 = vpop.f32.mrb[108].mxu1 }
 0x46f   :  { %v6667_v51 = vpop.f32.mrb[109].mxu1 }
 0x470   :  { %5918 = vst [vmem:[#allocation22 + $0x148] sm:$0xff] %v2021_v56  ;;  %v6668_v52 = vadd.f32 %v6667_v51, %v6666_v47  ;;  %v6669_v53 = vpop.f32.mrb[110].mxu1  ;;  %v2096_v54 = vpack.c.bf16 %v2021_v56, %v2018_v39 }
 0x471   :  { %v6670_v58 = vpop.f32.mrb[111].mxu1 }
 0x472   :  { %v1910_v41 = vadd.f32 %v6668_v52, %v9019_v11  ;;  %v6671_v62 = vadd.f32 %v6670_v58, %v6669_v53  ;;  %2710 = vmatmul.mubr.bf16.gmra.mrb[136].mxu0 %v2096_v54 }
 0x473   :  { %2719 = vmatprep.mubr.bf16.mxu0 %v8268_v14 }
 0x474   :  { %v2024_v59 = vmax.f32 %v1910_v41, 0.0  ;;  %v1913_v3 = vadd.f32 %v6671_v62, %v9019_v11 }
 0x476   :  { %5921 = vst [vmem:[#allocation22 + $0x160] sm:$0xff] %v2024_v59  ;;  %v2027_v42 = vmax.f32 %v1913_v3, 0.0  ;;  %v6672_v29 = vpop.f32.mrb[112].mxu1 }
 0x477   :  { %v6673_v48 = vpop.f32.mrb[113].mxu1 }
 0x478   :  { %5924 = vst [vmem:[#allocation22 + $0x178] sm:$0xff] %v2027_v42  ;;  %v6674_v55 = vadd.f32 %v6673_v48, %v6672_v29  ;;  %v6675_v50 = vpop.f32.mrb[114].mxu1  ;;  %v2099_v2 = vpack.c.bf16 %v2027_v42, %v2024_v59 }
 0x479   :  { %v6676_v4 = vpop.f32.mrb[115].mxu1 }
 0x47a   :  { %v1918_v26 = vadd.f32 %v6674_v55, %v9019_v11  ;;  %v6677_v20 = vadd.f32 %v6676_v4, %v6675_v50  ;;  %2720 = vmatmul.mubr.bf16.gmra.mrb[140].mxu0 %v2099_v2 }
 0x47b   :  { %2729 = vmatprep.mubr.bf16.mxu0 %v8268_v14 }
 0x47c   :  { %v2030_v22 = vmax.f32 %v1918_v26, 0.0  ;;  %v1921_v43 = vadd.f32 %v6677_v20, %v9019_v11 }
 0x47e   :  { %5927 = vst [vmem:[#allocation22 + $0x190] sm:$0xff] %v2030_v22  ;;  %v2033_v44 = vmax.f32 %v1921_v43, 0.0  ;;  %v6678_v1 = vpop.f32.mrb[116].mxu1 }
 0x47f   :  { %v6679_v19 = vpop.f32.mrb[117].mxu1 }
 0x480   :  { %5930 = vst [vmem:[#allocation22 + $0x1a8] sm:$0xff] %v2033_v44  ;;  %v6680_v23 = vadd.f32 %v6679_v19, %v6678_v1  ;;  %v6681_v46 = vpop.f32.mrb[118].mxu1  ;;  %v2102_v49 = vpack.c.bf16 %v2033_v44, %v2030_v22 }
 0x481   :  { %v6682_v7 = vpop.f32.mrb[119].mxu1 }
 0x482   :  { %v1926_v8 = vadd.f32 %v6680_v23, %v9019_v11  ;;  %v6683_v30 = vadd.f32 %v6682_v7, %v6681_v46  ;;  %2730 = vmatmul.mubr.bf16.gmra.mrb[144].mxu0 %v2102_v49  ;;  %v7359_v7 = vld [vmem:[#allocation13 + $0xa8] ss:$12 sps:$4 sm:$0xff]  }
 0x483   :  { %2739 = vmatprep.mubr.bf16.mxu0 %v8268_v14 }
 0x484   :  { %v2036_v27 = vmax.f32 %v1926_v8, 0.0  ;;  %v1929_v24 = vadd.f32 %v6683_v30, %v9019_v11  ;;  %v7361_v8 = vld [vmem:[#allocation13 + $0xac] ss:$12 sps:$4 sm:$0xff]  }
 0x485   :  { %3209 = vmatprep.subr.bf16.mxu1 %v7361_v8 }
 0x486   :  { %5933 = vst [vmem:[#allocation22 + $0x1c0] sm:$0xff] %v2036_v27  ;;  %v2039_v32 = vmax.f32 %v1929_v24, 0.0  ;;  %v6684_v60 = vpop.f32.mrb[120].mxu1  ;;  %3210 = vmatpush1.bf16.msra.mxu1 %v7359_v7 }
 0x487   :  { %v6685_v5 = vpop.f32.mrb[121].mxu1 }
 0x488   :  { %5936 = vst [vmem:[#allocation22 + $0x1d8] sm:$0xff] %v2039_v32  ;;  %v6686_v0 = vadd.f32 %v6685_v5, %v6684_v60  ;;  %v6687_v6 = vpop.f32.mrb[122].mxu1  ;;  %v2105_v57 = vpack.c.bf16 %v2039_v32, %v2036_v27 }
 0x489   :  { %v6688_v9 = vpop.f32.mrb[123].mxu1 }
 0x48a   :  { %v1934_v10 = vadd.f32 %v6686_v0, %v9019_v11  ;;  %v6689_v18 = vadd.f32 %v6688_v9, %v6687_v6  ;;  %2740 = vmatmul.mubr.bf16.gmra.mrb[148].mxu0 %v2105_v57 }
 0x48b   :  { %2749 = vmatprep.mubr.bf16.mxu0 %v8268_v14 }
 0x48c   :  { %v2042_v12 = vmax.f32 %v1934_v10, 0.0  ;;  %v1937_v13 = vadd.f32 %v6689_v18, %v9019_v11 }
 0x48e   :  { %5939 = vst [vmem:[#allocation22 + $0x1f0] sm:$0xff] %v2042_v12  ;;  %v2045_v16 = vmax.f32 %v1937_v13, 0.0  ;;  %v6690_v17 = vpop.f32.mrb[124].mxu1 }
 0x48f   :  { %v6691_v21 = vpop.f32.mrb[125].mxu1 }
 0x490   :  { %5942 = vst [vmem:[#allocation22 + $0x208] sm:$0xff] %v2045_v16  ;;  %v6692_v25 = vadd.f32 %v6691_v21, %v6690_v17  ;;  %v6693_v28 = vpop.f32.mrb[126].mxu1  ;;  %v2108_v31 = vpack.c.bf16 %v2045_v16, %v2042_v12  ;;  %v9069_v16 = vld [vmem:[#allocation13 + $0x8] ss:$12 sps:$4 sm:$0xff]   ;;  %v2172_v21 = vld [vmem:[%s9816_s9] sm:$0x3] }
 0x491   :  { %v6694_v63 = vpop.f32.mrb[127].mxu1  ;;  %6744 = vmatprep.subr.bf16.mxu1 %v9069_v16 }
 0x492   :  { %v1942_v33 = vadd.f32 %v6692_v25, %v9019_v11  ;;  %v6695_v34 = vadd.f32 %v6694_v63, %v6693_v28  ;;  %2750 = vmatmul.mubr.bf16.gmra.mrb[152].mxu0 %v2108_v31  ;;  %v9076_v25 = vrot.slane %v2172_v21, %v8552_v38  ;;  %v9079_v28 = vrot.slane %v2172_v21, %v8559_v40 }
 0x493   :  { %2759 = vmatprep.mubr.bf16.mxu0 %v8268_v14 }
 0x494   :  { %v2048_v36 = vmax.f32 %v1942_v33, 0.0  ;;  %v1945_v15 = vadd.f32 %v6695_v34, %v9019_v11 }
 0x496   :  { %5945 = vst [vmem:[#allocation22 + $0x220] sm:$0xff] %v2048_v36  ;;  %v2051_v37 = vmax.f32 %v1945_v15, 0.0  ;;  %v6696_v39 = vpop.f32.mrb[128].mxu1 }
 0x497   :  { %v6697_v45 = vpop.f32.mrb[129].mxu1 }
 0x498   :  { %5948 = vst [vmem:[#allocation22 + $0x238] sm:$0xff] %v2051_v37  ;;  %v6698_v56 = vadd.f32 %v6697_v45, %v6696_v39  ;;  %v6699_v47 = vpop.f32.mrb[130].mxu1  ;;  %v2111_v51 = vpack.c.bf16 %v2051_v37, %v2048_v36 }
 0x499   :  { %v6700_v52 = vpop.f32.mrb[131].mxu1 }
 0x49a   :  { %v1950_v53 = vadd.f32 %v6698_v56, %v9019_v11  ;;  %v6701_v54 = vadd.f32 %v6700_v52, %v6699_v47  ;;  %2760 = vmatmul.mubr.bf16.gmra.mrb[156].mxu0 %v2111_v51 }
 0x49b   :  { %2769 = vmatprep.mubr.bf16.mxu0 %v8268_v14 }
 0x49c   :  { %v2054_v58 = vmax.f32 %v1950_v53, 0.0  ;;  %v1953_v41 = vadd.f32 %v6701_v54, %v9019_v11 }
 0x49e   :  { %5951 = vst [vmem:[#allocation22 + $0x250] sm:$0xff] %v2054_v58  ;;  %v2057_v62 = vmax.f32 %v1953_v41, 0.0  ;;  %v6702_v59 = vpop.f32.mrb[132].mxu1 }
 0x49f   :  { %v6703_v3 = vpop.f32.mrb[133].mxu1 }
 0x4a0   :  { %5954 = vst [vmem:[#allocation22 + $0x268] sm:$0xff] %v2057_v62  ;;  %v6704_v42 = vadd.f32 %v6703_v3, %v6702_v59  ;;  %v6705_v29 = vpop.f32.mrb[134].mxu1  ;;  %v2114_v48 = vpack.c.bf16 %v2057_v62, %v2054_v58 }
 0x4a1   :  { %v6706_v55 = vpop.f32.mrb[135].mxu1 }
 0x4a2   :  { %v1958_v50 = vadd.f32 %v6704_v42, %v9019_v11  ;;  %v6707_v2 = vadd.f32 %v6706_v55, %v6705_v29  ;;  %2770 = vmatmul.mubr.bf16.gmra.mrb[160].mxu0 %v2114_v48  ;;  %v2810_v48 = vld [vmem:[#allocation5] sm:$0xff] }
 0x4a3   :  { %2779 = vmatprep.mubr.bf16.mxu0 %v8268_v14 }
 0x4a4   :  { %v2060_v4 = vmax.f32 %v1958_v50, 0.0  ;;  %v1961_v26 = vadd.f32 %v6707_v2, %v9019_v11 }
 0x4a6   :  { %5957 = vst [vmem:[#allocation22 + $0x280] sm:$0xff] %v2060_v4  ;;  %v2063_v20 = vmax.f32 %v1961_v26, 0.0  ;;  %v6708_v22 = vpop.f32.mrb[136].mxu1 }
 0x4a7   :  { %v6709_v43 = vpop.f32.mrb[137].mxu1 }
 0x4a8   :  { %5960 = vst [vmem:[#allocation22 + $0x298] sm:$0xff] %v2063_v20  ;;  %v6710_v44 = vadd.f32 %v6709_v43, %v6708_v22  ;;  %v6711_v1 = vpop.f32.mrb[138].mxu1  ;;  %v2117_v19 = vpack.c.bf16 %v2063_v20, %v2060_v4  ;;  %v2811_v20 = vld [vmem:[#allocation5 + $0x8] sm:$0xff] }
 0x4a9   :  { %v6712_v23 = vpop.f32.mrb[139].mxu1 }
 0x4aa   :  { %v1966_v46 = vadd.f32 %v6710_v44, %v9019_v11  ;;  %v6713_v49 = vadd.f32 %v6712_v23, %v6711_v1  ;;  %2780 = vmatmul.mubr.bf16.gmra.mrb[164].mxu0 %v2117_v19 }
 0x4ab   :  { %2789 = vmatprep.mubr.bf16.mxu0 %v8268_v14 }
 0x4ac   :  { %v2066_v30 = vmax.f32 %v1966_v46, 0.0  ;;  %v1969_v27 = vadd.f32 %v6713_v49, %v9019_v11 }
 0x4ae   :  { %5963 = vst [vmem:[#allocation22 + $0x2b0] sm:$0xff] %v2066_v30  ;;  %v2069_v24 = vmax.f32 %v1969_v27, 0.0  ;;  %v6714_v32 = vpop.f32.mrb[140].mxu1 }
 0x4af   :  { %v6715_v60 = vpop.f32.mrb[141].mxu1 }
 0x4b0   :  { %5966 = vst [vmem:[#allocation22 + $0x2c8] sm:$0xff] %v2069_v24  ;;  %v6716_v5 = vadd.f32 %v6715_v60, %v6714_v32  ;;  %v6717_v0 = vpop.f32.mrb[142].mxu1  ;;  %v2120_v6 = vpack.c.bf16 %v2069_v24, %v2066_v30 }
 0x4b1   :  { %v6718_v57 = vpop.f32.mrb[143].mxu1 }
 0x4b2   :  { %v1974_v9 = vadd.f32 %v6716_v5, %v9019_v11  ;;  %v6719_v10 = vadd.f32 %v6718_v57, %v6717_v0  ;;  %2790 = vmatmul.mubr.bf16.gmra.mrb[168].mxu0 %v2120_v6  ;;  %v2812_v5 = vld [vmem:[#allocation5 + $0x10] sm:$0xff] }
 0x4b3   :  { %2799 = vmatprep.mubr.bf16.mxu0 %v8268_v14 }
 0x4b4   :  { %v2072_v18 = vmax.f32 %v1974_v9, 0.0  ;;  %v1977_v12 = vadd.f32 %v6719_v10, %v9019_v11  ;;  %v7363_v9 = vld [vmem:[#allocation13 + $0x20] ss:$12 sps:$4 sm:$0xff]  }
 0x4b6   :  { %5969 = vst [vmem:[#allocation22 + $0x2e0] sm:$0xff] %v2072_v18  ;;  %v2075_v13 = vmax.f32 %v1977_v12, 0.0 }
 0x4b8   :  { %5972 = vst [vmem:[#allocation22 + $0x2f8] sm:$0xff] %v2075_v13  ;;  %v2123_v17 = vpack.c.bf16 %v2075_v13, %v2072_v18  ;;  %v2813_v13 = vld [vmem:[#allocation5 + $0x18] sm:$0xff] }
 0x4ba   :  { %2800 = vmatmul.mubr.bf16.gmra.mrb[172].mxu0 %v2123_v17 }
 0x515   :  { %v2651_v11 = vpop.f32.mrb[112].mxu0 }
 0x516   :  { %v6824_v31 = vadd.f32 %v2651_v11, %v9076_v25  ;;  %v2653_v63 = vpop.f32.mrb[113].mxu0 }
 0x517   :  { %v6825_v33 = vadd.f32 %v2653_v63, %v9079_v28  ;;  %v2655_v34 = vpop.f32.mrb[114].mxu0 }
 0x518   :  { %5973 = vst [vmem:[#allocation23] sm:$0xff] %v6824_v31  ;;  %v6826_v36 = vadd.f32 %v2655_v34, %v9076_v25  ;;  %v2657_v15 = vpop.f32.mrb[115].mxu0 }
 0x519   :  { %v2842_v37 = vmul.f32 0.5, %v6825_v33  ;;  %6005 = vst [vmem:[#allocation25] sm:$0xff] %v6825_v33  ;;  %v6827_v39 = vadd.f32 %v2657_v15, %v9079_v28  ;;  %v7364_v15 = vld [vmem:[#allocation13 + $0x38] ss:$12 sps:$4 sm:$0xff]  }
 0x51a   :  { %5974 = vst [vmem:[#allocation23 + $0x8] sm:$0xff] %v6826_v36 }
 0x51b   :  { %v2874_v45 = vmul.f32 1.442695, %v2842_v37  ;;  %v2843_v56 = vmul.f32 0.5, %v6827_v39  ;;  %6006 = vst [vmem:[#allocation25 + $0x8] sm:$0xff] %v6827_v39 }
 0x51d   :  { %7538 = vpow2.f32 %v2874_v45  ;;  %v2876_v47 = vmul.f32 1.442695, %v2843_v56  ;;  %v2661_v51 = vpop.f32.mrb[116].mxu0 }
 0x51e   :  { %v9086_v52 = vadd.f32 %v2661_v51, %v9076_v25  ;;  %v2663_v53 = vpop.f32.mrb[117].mxu0  ;;  %v2814_v51 = vld [vmem:[#allocation5 + $0x20] sm:$0xff] }
 0x51f   :  { %7540 = vpow2.f32 %v2876_v47  ;;  %v6829_v54 = vadd.f32 %v2663_v53, %v9079_v28  ;;  %v2665_v58 = vpop.f32.mrb[118].mxu0 }
 0x520   :  { %5975 = vst [vmem:[#allocation23 + $0x10] sm:$0xff] %v9086_v52  ;;  %v9091_v41 = vadd.f32 %v2665_v58, %v9076_v25  ;;  %v2667_v62 = vpop.f32.mrb[119].mxu0 }
 0x521   :  { %v2844_v59 = vmul.f32 0.5, %v6829_v54  ;;  %6007 = vst [vmem:[#allocation25 + $0x10] sm:$0xff] %v6829_v54  ;;  %v6831_v3 = vadd.f32 %v2667_v62, %v9079_v28 }
 0x522   :  { %5976 = vst [vmem:[#allocation23 + $0x18] sm:$0xff] %v9091_v41 }
 0x523   :  { %v2878_v42 = vmul.f32 1.442695, %v2844_v59  ;;  %v2845_v29 = vmul.f32 0.5, %v6831_v3  ;;  %6008 = vst [vmem:[#allocation25 + $0x18] sm:$0xff] %v6831_v3  ;;  %v2815_v59 = vld [vmem:[#allocation5 + $0x28] sm:$0xff] }
 0x525   :  { %7542 = vpow2.f32 %v2878_v42  ;;  %v2880_v55 = vmul.f32 1.442695, %v2845_v29  ;;  %v2671_v50 = vpop.f32.mrb[120].mxu0 }
 0x526   :  { %v9096_v2 = vadd.f32 %v2671_v50, %v9076_v25  ;;  %v2673_v4 = vpop.f32.mrb[121].mxu0 }
 0x527   :  { %v7539_v26 = vpop.eup %7538  ;;  %7544 = vpow2.f32 %v2880_v55  ;;  %v6833_v22 = vadd.f32 %v2673_v4, %v9079_v28  ;;  %v2675_v43 = vpop.f32.mrb[122].mxu0 }
 0x528   :  { %v2938_v44 = vmul.f32 %v7539_v26, %v2810_v48  ;;  %5977 = vst [vmem:[#allocation23 + $0x20] sm:$0xff] %v9096_v2  ;;  %v9101_v1 = vadd.f32 %v2675_v43, %v9076_v25  ;;  %v2677_v19 = vpop.f32.mrb[123].mxu0 }
 0x529   :  { %v7541_v23 = vpop.eup %7540  ;;  %v2846_v46 = vmul.f32 0.5, %v6833_v22  ;;  %6009 = vst [vmem:[#allocation25 + $0x20] sm:$0xff] %v6833_v22  ;;  %v6835_v49 = vadd.f32 %v2677_v19, %v9079_v28 }
 0x52a   :  { %v2939_v7 = vmul.f32 %v7541_v23, %v2811_v20  ;;  %5978 = vst [vmem:[#allocation23 + $0x28] sm:$0xff] %v9101_v1  ;;  %v2970_v8 = vadd.f32 %v6824_v31, %v2938_v44  ;;  %v7366_v20 = vld [vmem:[#allocation13 + $0x68] ss:$12 sps:$4 sm:$0xff]  }
 0x52b   :  { %v2882_v30 = vmul.f32 1.442695, %v2846_v46  ;;  %v2847_v27 = vmul.f32 0.5, %v6835_v49  ;;  %6010 = vst [vmem:[#allocation25 + $0x28] sm:$0xff] %v6835_v49  ;;  %v2816_v46 = vld [vmem:[#allocation5 + $0x30] sm:$0xff] }
 0x52c   :  { %v2971_v24 = vadd.f32 %v6826_v36, %v2939_v7  ;;  %6037 = vst [vmem:[#allocation26] sm:$0xff] %v2970_v8 }
 0x52d   :  { %7546 = vpow2.f32 %v2882_v30  ;;  %v2884_v32 = vmul.f32 1.442695, %v2847_v27  ;;  %v2681_v60 = vpop.f32.mrb[124].mxu0 }
 0x52e   :  { %v9106_v0 = vadd.f32 %v2681_v60, %v9076_v25  ;;  %v2683_v6 = vpop.f32.mrb[125].mxu0  ;;  %v9108_v57 = vpack.c.bf16 %v2971_v24, %v2970_v8  ;;  %6038 = vst [vmem:[#allocation26 + $0x8] sm:$0xff] %v2971_v24  ;;  %v2817_v24 = vld [vmem:[#allocation5 + $0x38] sm:$0xff] }
 0x52f   :  { %v7543_v10 = vpop.eup %7542  ;;  %7548 = vpow2.f32 %v2884_v32  ;;  %v6837_v18 = vadd.f32 %v2683_v6, %v9079_v28  ;;  %v2685_v12 = vpop.f32.mrb[126].mxu0 }
 0x530   :  { %5979 = vst [vmem:[#allocation23 + $0x30] sm:$0xff] %v9106_v0  ;;  %v9113_v17 = vadd.f32 %v2685_v12, %v9076_v25  ;;  %v2687_v21 = vpop.f32.mrb[127].mxu0  ;;  %3228 = vmatmul.mubr.bf16.vlgmr.msra.gmra.mrb[144].mxu1 %v9108_v57  ;;  %v2940_v11 = vmul.f32 %v7543_v10, %v2812_v5 }
 0x531   :  { %v7545_v31 = vpop.eup %7544  ;;  %v2848_v63 = vmul.f32 0.5, %v6837_v18  ;;  %6011 = vst [vmem:[#allocation25 + $0x30] sm:$0xff] %v6837_v18  ;;  %v6839_v33 = vadd.f32 %v2687_v21, %v9079_v28  ;;  %6745 = vmatpush3.bf16.msra.mxu1 %v9069_v16  ;;  %3237 = vmatprep.mubr.bf16.mxu1 %v8268_v14 }
 0x532   :  { %5980 = vst [vmem:[#allocation23 + $0x38] sm:$0xff] %v9113_v17  ;;  %v2941_v34 = vmul.f32 %v7545_v31, %v2813_v13  ;;  %v2972_v36 = vadd.f32 %v9086_v52, %v2940_v11  ;;  %6746 = vmatprep.subr.bf16.mxu1 %v7363_v9  ;;  %v7365_v52 = vld [vmem:[#allocation13 + $0x50] ss:$12 sps:$4 sm:$0xff]   ;;  %v7368_v13 = vld [vmem:[#allocation13 + $0x98] ss:$12 sps:$4 sm:$0xff]  }
 0x533   :  { %v2886_v37 = vmul.f32 1.442695, %v2848_v63  ;;  %v2849_v39 = vmul.f32 0.5, %v6839_v33  ;;  %6012 = vst [vmem:[#allocation25 + $0x38] sm:$0xff] %v6839_v33 }
 0x534   :  { %v2973_v45 = vadd.f32 %v9091_v41, %v2941_v34  ;;  %6039 = vst [vmem:[#allocation26 + $0x10] sm:$0xff] %v2972_v36  ;;  %v2818_v34 = vld [vmem:[#allocation5 + $0x40] sm:$0xff] }
 0x535   :  { %7550 = vpow2.f32 %v2886_v37  ;;  %v2888_v56 = vmul.f32 1.442695, %v2849_v39  ;;  %v2691_v47 = vpop.f32.mrb[128].mxu0  ;;  %6747 = vmatpush3.bf16.msra.mxu1 %v7363_v9 }
 0x536   :  { %v9123_v16 = vadd.f32 %v2691_v47, %v9076_v25  ;;  %v2693_v53 = vpop.f32.mrb[129].mxu0  ;;  %v9125_v54 = vpack.c.bf16 %v2973_v45, %v2972_v36  ;;  %6040 = vst [vmem:[#allocation26 + $0x18] sm:$0xff] %v2973_v45  ;;  %6748 = vmatprep.subr.bf16.mxu1 %v7364_v15 }
 0x537   :  { %v7547_v58 = vpop.eup %7546  ;;  %7552 = vpow2.f32 %v2888_v56  ;;  %v6841_v62 = vadd.f32 %v2693_v53, %v9079_v28  ;;  %v2695_v41 = vpop.f32.mrb[130].mxu0  ;;  %v2819_v56 = vld [vmem:[#allocation5 + $0x48] sm:$0xff] }
 0x538   :  { %5981 = vst [vmem:[#allocation23 + $0x40] sm:$0xff] %v9123_v16  ;;  %v9130_v3 = vadd.f32 %v2695_v41, %v9076_v25  ;;  %v2697_v42 = vpop.f32.mrb[131].mxu0  ;;  %3238 = vmatmul.mubr.bf16.gmra.mrb[148].mxu1 %v9125_v54  ;;  %v2942_v29 = vmul.f32 %v7547_v58, %v2814_v51 }
 0x539   :  { %v7549_v48 = vpop.eup %7548  ;;  %v2850_v55 = vmul.f32 0.5, %v6841_v62  ;;  %6013 = vst [vmem:[#allocation25 + $0x40] sm:$0xff] %v6841_v62  ;;  %v6843_v50 = vadd.f32 %v2697_v42, %v9079_v28  ;;  %3247 = vmatprep.mubr.bf16.mxu1 %v8268_v14  ;;  %6749 = vmatpush3.bf16.msra.mxu1 %v7364_v15  ;;  %v7372_v42 = vld [vmem:[#allocation14 + $0x4] ss:$8 sps:$4 sm:$0xff]  }
 0x53a   :  { %5982 = vst [vmem:[#allocation23 + $0x48] sm:$0xff] %v9130_v3  ;;  %v2943_v4 = vmul.f32 %v7549_v48, %v2815_v59  ;;  %v2974_v26 = vadd.f32 %v9096_v2, %v2942_v29  ;;  %6750 = vmatprep.subr.bf16.mxu1 %v7365_v52  ;;  %v7367_v2 = vld [vmem:[#allocation13 + $0x80] ss:$12 sps:$4 sm:$0xff]  }
 0x53b   :  { %v2890_v22 = vmul.f32 1.442695, %v2850_v55  ;;  %v2851_v43 = vmul.f32 0.5, %v6843_v50  ;;  %6014 = vst [vmem:[#allocation25 + $0x48] sm:$0xff] %v6843_v50 }
 0x53c   :  { %v2975_v44 = vadd.f32 %v9101_v1, %v2943_v4  ;;  %6041 = vst [vmem:[#allocation26 + $0x20] sm:$0xff] %v2974_v26 }
 0x53d   :  { %7554 = vpow2.f32 %v2890_v22  ;;  %v2892_v19 = vmul.f32 1.442695, %v2851_v43  ;;  %v2701_v23 = vpop.f32.mrb[132].mxu0  ;;  %6751 = vmatpush3.bf16.msra.mxu1 %v7365_v52 }
 0x53e   :  { %v9139_v49 = vadd.f32 %v2701_v23, %v9076_v25  ;;  %v2703_v7 = vpop.f32.mrb[133].mxu0  ;;  %v9141_v8 = vpack.c.bf16 %v2975_v44, %v2974_v26  ;;  %6042 = vst [vmem:[#allocation26 + $0x28] sm:$0xff] %v2975_v44  ;;  %6752 = vmatprep.subr.bf16.mxu1 %v7366_v20  ;;  %v2820_v26 = vld [vmem:[#allocation5 + $0x50] sm:$0xff] }
 0x53f   :  { %v7551_v30 = vpop.eup %7550  ;;  %7556 = vpow2.f32 %v2892_v19  ;;  %v6845_v27 = vadd.f32 %v2703_v7, %v9079_v28  ;;  %v2705_v1 = vpop.f32.mrb[134].mxu0 }
 0x540   :  { %5983 = vst [vmem:[#allocation23 + $0x50] sm:$0xff] %v9139_v49  ;;  %v9146_v32 = vadd.f32 %v2705_v1, %v9076_v25  ;;  %v2707_v60 = vpop.f32.mrb[135].mxu0  ;;  %3248 = vmatmul.mubr.bf16.gmra.mrb[152].mxu1 %v9141_v8  ;;  %v2944_v5 = vmul.f32 %v7551_v30, %v2816_v46 }
 0x541   :  { %v7553_v6 = vpop.eup %7552  ;;  %v2852_v9 = vmul.f32 0.5, %v6845_v27  ;;  %6015 = vst [vmem:[#allocation25 + $0x50] sm:$0xff] %v6845_v27  ;;  %v6847_v10 = vadd.f32 %v2707_v60, %v9079_v28  ;;  %3257 = vmatprep.mubr.bf16.mxu1 %v8268_v14  ;;  %6753 = vmatpush3.bf16.msra.mxu1 %v7366_v20 }
 0x542   :  { %5984 = vst [vmem:[#allocation23 + $0x58] sm:$0xff] %v9146_v32  ;;  %v2945_v18 = vmul.f32 %v7553_v6, %v2817_v24  ;;  %v2976_v12 = vadd.f32 %v9106_v0, %v2944_v5  ;;  %6754 = vmatprep.subr.bf16.mxu1 %v7367_v2  ;;  %v7369_v0 = vld [vmem:[#allocation13 + $0xb0] ss:$12 sps:$4 sm:$0xff]  }
 0x543   :  { %v2894_v21 = vmul.f32 1.442695, %v2852_v9  ;;  %v2853_v11 = vmul.f32 0.5, %v6847_v10  ;;  %6016 = vst [vmem:[#allocation25 + $0x58] sm:$0xff] %v6847_v10 }
 0x544   :  { %v2977_v31 = vadd.f32 %v9113_v17, %v2945_v18  ;;  %6043 = vst [vmem:[#allocation26 + $0x30] sm:$0xff] %v2976_v12  ;;  %v2822_v18 = vld [vmem:[#allocation5 + $0x60] sm:$0xff] }
 0x545   :  { %7558 = vpow2.f32 %v2894_v21  ;;  %v2896_v63 = vmul.f32 1.442695, %v2853_v11  ;;  %v2711_v33 = vpop.f32.mrb[136].mxu0  ;;  %6755 = vmatpush3.bf16.msra.mxu1 %v7367_v2 }
 0x546   :  { %v9155_v36 = vadd.f32 %v2711_v33, %v9076_v25  ;;  %v2713_v15 = vpop.f32.mrb[137].mxu0  ;;  %v9157_v37 = vpack.c.bf16 %v2977_v31, %v2976_v12  ;;  %6044 = vst [vmem:[#allocation26 + $0x38] sm:$0xff] %v2977_v31  ;;  %6756 = vmatprep.subr.bf16.mxu1 %v7368_v13 }
 0x547   :  { %v7555_v39 = vpop.eup %7554  ;;  %7560 = vpow2.f32 %v2896_v63  ;;  %v6849_v45 = vadd.f32 %v2713_v15, %v9079_v28  ;;  %v2715_v17 = vpop.f32.mrb[138].mxu0  ;;  %v2823_v63 = vld [vmem:[#allocation5 + $0x68] sm:$0xff] }
 0x548   :  { %5985 = vst [vmem:[#allocation23 + $0x60] sm:$0xff] %v9155_v36  ;;  %v9162_v47 = vadd.f32 %v2715_v17, %v9076_v25  ;;  %v2717_v51 = vpop.f32.mrb[139].mxu0  ;;  %3258 = vmatmul.mubr.bf16.gmra.mrb[156].mxu1 %v9157_v37  ;;  %v2946_v53 = vmul.f32 %v7555_v39, %v2818_v34 }
 0x549   :  { %v7557_v52 = vpop.eup %7556  ;;  %v2854_v58 = vmul.f32 0.5, %v6849_v45  ;;  %6017 = vst [vmem:[#allocation25 + $0x60] sm:$0xff] %v6849_v45  ;;  %v6851_v62 = vadd.f32 %v2717_v51, %v9079_v28  ;;  %3267 = vmatprep.mubr.bf16.mxu1 %v8268_v14  ;;  %6757 = vmatpush3.bf16.msra.mxu1 %v7368_v13 }
 0x54a   :  { %5986 = vst [vmem:[#allocation23 + $0x68] sm:$0xff] %v9162_v47  ;;  %v2947_v41 = vmul.f32 %v7557_v52, %v2819_v56  ;;  %v2978_v59 = vadd.f32 %v9123_v16, %v2946_v53  ;;  %6758 = vmatprep.subr.bf16.mxu1 %v7369_v0 }
 0x54b   :  { %v2898_v29 = vmul.f32 1.442695, %v2854_v58  ;;  %v2855_v48 = vmul.f32 0.5, %v6851_v62  ;;  %6018 = vst [vmem:[#allocation25 + $0x68] sm:$0xff] %v6851_v62  ;;  %v2824_v62 = vld [vmem:[#allocation5 + $0x70] sm:$0xff] }
 0x54c   :  { %v2979_v55 = vadd.f32 %v9130_v3, %v2947_v41  ;;  %6045 = vst [vmem:[#allocation26 + $0x40] sm:$0xff] %v2978_v59  ;;  %v2821_v3 = vld [vmem:[#allocation5 + $0x58] sm:$0xff] }
 0x54d   :  { %7562 = vpow2.f32 %v2898_v29  ;;  %v2900_v50 = vmul.f32 1.442695, %v2855_v48  ;;  %v2721_v4 = vpop.f32.mrb[140].mxu0  ;;  %6759 = vmatpush3.bf16.msra.mxu1 %v7369_v0 }
 0x54e   :  { %v9171_v20 = vadd.f32 %v2721_v4, %v9076_v25  ;;  %v2723_v22 = vpop.f32.mrb[141].mxu0  ;;  %v9173_v43 = vpack.c.bf16 %v2979_v55, %v2978_v59  ;;  %6046 = vst [vmem:[#allocation26 + $0x48] sm:$0xff] %v2979_v55  ;;  %3993 = vmatprep.subr.bf16.mxu1 %v7372_v42  ;;  %v2825_v55 = vld [vmem:[#allocation5 + $0x78] sm:$0xff] }
 0x54f   :  { %v7559_v16 = vpop.eup %7558  ;;  %7564 = vpow2.f32 %v2900_v50  ;;  %v6853_v44 = vadd.f32 %v2723_v22, %v9079_v28  ;;  %v2725_v19 = vpop.f32.mrb[142].mxu0 }
 0x550   :  { %5987 = vst [vmem:[#allocation23 + $0x70] sm:$0xff] %v9171_v20  ;;  %v9178_v23 = vadd.f32 %v2725_v19, %v9076_v25  ;;  %v2727_v46 = vpop.f32.mrb[143].mxu0  ;;  %3268 = vmatmul.mubr.bf16.gmra.mrb[160].mxu1 %v9173_v43  ;;  %v2948_v7 = vmul.f32 %v7559_v16, %v2820_v26 }
 0x551   :  { %v7561_v2 = vpop.eup %7560  ;;  %v2856_v30 = vmul.f32 0.5, %v6853_v44  ;;  %6019 = vst [vmem:[#allocation25 + $0x70] sm:$0xff] %v6853_v44  ;;  %v6855_v27 = vadd.f32 %v2727_v46, %v9079_v28  ;;  %3277 = vmatprep.mubr.bf16.mxu1 %v8268_v14 }
 0x552   :  { %5988 = vst [vmem:[#allocation23 + $0x78] sm:$0xff] %v9178_v23  ;;  %v2949_v1 = vmul.f32 %v7561_v2, %v2821_v3  ;;  %v2980_v24 = vadd.f32 %v9139_v49, %v2948_v7 }
 0x553   :  { %v2902_v60 = vmul.f32 1.442695, %v2856_v30  ;;  %v2857_v5 = vmul.f32 0.5, %v6855_v27  ;;  %6020 = vst [vmem:[#allocation25 + $0x78] sm:$0xff] %v6855_v27  ;;  %v2826_v27 = vld [vmem:[#allocation5 + $0x80] sm:$0xff] }
 0x554   :  { %v2981_v6 = vadd.f32 %v9146_v32, %v2949_v1  ;;  %6047 = vst [vmem:[#allocation26 + $0x50] sm:$0xff] %v2980_v24 }
 0x555   :  { %7566 = vpow2.f32 %v2902_v60  ;;  %v2904_v9 = vmul.f32 1.442695, %v2857_v5  ;;  %v2731_v10 = vpop.f32.mrb[144].mxu0 }
 0x556   :  { %v9187_v12 = vadd.f32 %v2731_v10, %v9076_v25  ;;  %v2733_v13 = vpop.f32.mrb[145].mxu0  ;;  %v9189_v21 = vpack.c.bf16 %v2981_v6, %v2980_v24  ;;  %6048 = vst [vmem:[#allocation26 + $0x58] sm:$0xff] %v2981_v6 }
 0x557   :  { %v7563_v11 = vpop.eup %7562  ;;  %7568 = vpow2.f32 %v2904_v9  ;;  %v6857_v49 = vadd.f32 %v2733_v13, %v9079_v28  ;;  %v2735_v31 = vpop.f32.mrb[146].mxu0  ;;  %v2827_v9 = vld [vmem:[#allocation5 + $0x88] sm:$0xff] }
 0x558   :  { %5989 = vst [vmem:[#allocation23 + $0x80] sm:$0xff] %v9187_v12  ;;  %v9194_v32 = vadd.f32 %v2735_v31, %v9076_v25  ;;  %v2737_v33 = vpop.f32.mrb[147].mxu0  ;;  %3278 = vmatmul.mubr.bf16.gmra.mrb[164].mxu1 %v9189_v21  ;;  %v2950_v34 = vmul.f32 %v7563_v11, %v2822_v18 }
 0x559   :  { %v7565_v15 = vpop.eup %7564  ;;  %v2858_v0 = vmul.f32 0.5, %v6857_v49  ;;  %6021 = vst [vmem:[#allocation25 + $0x80] sm:$0xff] %v6857_v49  ;;  %v6859_v39 = vadd.f32 %v2737_v33, %v9079_v28  ;;  %3287 = vmatprep.mubr.bf16.mxu1 %v8268_v14 }
 0x55a   :  { %5990 = vst [vmem:[#allocation23 + $0x88] sm:$0xff] %v9194_v32  ;;  %v2951_v45 = vmul.f32 %v7565_v15, %v2823_v63  ;;  %v2982_v17 = vadd.f32 %v9155_v36, %v2950_v34 }
 0x55b   :  { %v2906_v56 = vmul.f32 1.442695, %v2858_v0  ;;  %v2859_v51 = vmul.f32 0.5, %v6859_v39  ;;  %6022 = vst [vmem:[#allocation25 + $0x88] sm:$0xff] %v6859_v39 }
 0x55c   :  { %v2983_v53 = vadd.f32 %v9162_v47, %v2951_v45  ;;  %6049 = vst [vmem:[#allocation26 + $0x60] sm:$0xff] %v2982_v17  ;;  %v2828_v45 = vld [vmem:[#allocation5 + $0x90] sm:$0xff] }
 0x55d   :  { %7570 = vpow2.f32 %v2906_v56  ;;  %v2908_v52 = vmul.f32 1.442695, %v2859_v51  ;;  %v2741_v58 = vpop.f32.mrb[148].mxu0 }
 0x55e   :  { %v9203_v41 = vadd.f32 %v2741_v58, %v9076_v25  ;;  %v2743_v59 = vpop.f32.mrb[149].mxu0  ;;  %v9205_v42 = vpack.c.bf16 %v2983_v53, %v2982_v17  ;;  %6050 = vst [vmem:[#allocation26 + $0x68] sm:$0xff] %v2983_v53  ;;  %v2829_v58 = vld [vmem:[#allocation5 + $0x98] sm:$0xff] }
 0x55f   :  { %v7567_v29 = vpop.eup %7566  ;;  %7572 = vpow2.f32 %v2908_v52  ;;  %v6861_v36 = vadd.f32 %v2743_v59, %v9079_v28  ;;  %v2745_v48 = vpop.f32.mrb[150].mxu0 }
 0x560   :  { %5991 = vst [vmem:[#allocation23 + $0x90] sm:$0xff] %v9203_v41  ;;  %v9210_v47 = vadd.f32 %v2745_v48, %v9076_v25  ;;  %v2747_v50 = vpop.f32.mrb[151].mxu0  ;;  %3288 = vmatmul.mubr.bf16.gmra.mrb[168].mxu1 %v9205_v42  ;;  %v2952_v4 = vmul.f32 %v7567_v29, %v2824_v62 }
 0x561   :  { %v7569_v26 = vpop.eup %7568  ;;  %v2860_v22 = vmul.f32 0.5, %v6861_v36  ;;  %6023 = vst [vmem:[#allocation25 + $0x90] sm:$0xff] %v6861_v36  ;;  %v6863_v16 = vadd.f32 %v2747_v50, %v9079_v28  ;;  %3297 = vmatprep.mubr.bf16.mxu1 %v8268_v14 }
 0x562   :  { %5992 = vst [vmem:[#allocation23 + $0x98] sm:$0xff] %v9210_v47  ;;  %v2953_v44 = vmul.f32 %v7569_v26, %v2825_v55  ;;  %v2984_v19 = vadd.f32 %v9171_v20, %v2952_v4 }
 0x563   :  { %v2910_v3 = vmul.f32 1.442695, %v2860_v22  ;;  %v2861_v46 = vmul.f32 0.5, %v6863_v16  ;;  %6024 = vst [vmem:[#allocation25 + $0x98] sm:$0xff] %v6863_v16 }
 0x564   :  { %v2985_v7 = vadd.f32 %v9178_v23, %v2953_v44  ;;  %6051 = vst [vmem:[#allocation26 + $0x70] sm:$0xff] %v2984_v19 }
 0x565   :  { %7574 = vpow2.f32 %v2910_v3  ;;  %v2912_v2 = vmul.f32 1.442695, %v2861_v46  ;;  %v2751_v30 = vpop.f32.mrb[152].mxu0 }
 0x566   :  { %v9219_v1 = vadd.f32 %v2751_v30, %v9076_v25  ;;  %v2753_v24 = vpop.f32.mrb[153].mxu0  ;;  %v9221_v60 = vpack.c.bf16 %v2985_v7, %v2984_v19  ;;  %6052 = vst [vmem:[#allocation26 + $0x78] sm:$0xff] %v2985_v7  ;;  %v2830_v19 = vld [vmem:[#allocation5 + $0xa0] sm:$0xff] }
 0x567   :  { %v7571_v5 = vpop.eup %7570  ;;  %7576 = vpow2.f32 %v2912_v2  ;;  %v6865_v20 = vadd.f32 %v2753_v24, %v9079_v28  ;;  %v2755_v6 = vpop.f32.mrb[154].mxu0 }
 0x568   :  { %5993 = vst [vmem:[#allocation23 + $0xa0] sm:$0xff] %v9219_v1  ;;  %v9226_v23 = vadd.f32 %v2755_v6, %v9076_v25  ;;  %v2757_v10 = vpop.f32.mrb[155].mxu0  ;;  %3298 = vmatmul.mubr.bf16.gmra.mrb[172].mxu1 %v9221_v60  ;;  %v2954_v18 = vmul.f32 %v7571_v5, %v2826_v27  ;;  %v2831_v27 = vld [vmem:[#allocation5 + $0xa8] sm:$0xff] }
 0x569   :  { %v7573_v13 = vpop.eup %7572  ;;  %v2862_v11 = vmul.f32 0.5, %v6865_v20  ;;  %6025 = vst [vmem:[#allocation25 + $0xa0] sm:$0xff] %v6865_v20  ;;  %v6867_v49 = vadd.f32 %v2757_v10, %v9079_v28  ;;  %3307 = vmatprep.mubr.bf16.mxu1 %v8268_v14 }
 0x56a   :  { %5994 = vst [vmem:[#allocation23 + $0xa8] sm:$0xff] %v9226_v23  ;;  %v2955_v31 = vmul.f32 %v7573_v13, %v2827_v9  ;;  %v2986_v63 = vadd.f32 %v9187_v12, %v2954_v18 }
 0x56b   :  { %v2914_v33 = vmul.f32 1.442695, %v2862_v11  ;;  %v2863_v34 = vmul.f32 0.5, %v6867_v49  ;;  %6026 = vst [vmem:[#allocation25 + $0xa8] sm:$0xff] %v6867_v49 }
 0x56c   :  { %v2987_v15 = vadd.f32 %v9194_v32, %v2955_v31  ;;  %6053 = vst [vmem:[#allocation26 + $0x80] sm:$0xff] %v2986_v63 }
 0x56d   :  { %7578 = vpow2.f32 %v2914_v33  ;;  %v2916_v0 = vmul.f32 1.442695, %v2863_v34  ;;  %v2761_v39 = vpop.f32.mrb[156].mxu0  ;;  %v2832_v33 = vld [vmem:[#allocation5 + $0xb0] sm:$0xff] }
 0x56e   :  { %v9235_v17 = vadd.f32 %v2761_v39, %v9076_v25  ;;  %v2763_v56 = vpop.f32.mrb[157].mxu0  ;;  %v9237_v51 = vpack.c.bf16 %v2987_v15, %v2986_v63  ;;  %6054 = vst [vmem:[#allocation26 + $0x88] sm:$0xff] %v2987_v15 }
 0x56f   :  { %v7575_v53 = vpop.eup %7574  ;;  %7580 = vpow2.f32 %v2916_v0  ;;  %v6869_v12 = vadd.f32 %v2763_v56, %v9079_v28  ;;  %v2765_v52 = vpop.f32.mrb[158].mxu0  ;;  %v2833_v56 = vld [vmem:[#allocation5 + $0xb8] sm:$0xff] }
 0x570   :  { %5995 = vst [vmem:[#allocation23 + $0xb0] sm:$0xff] %v9235_v17  ;;  %v9242_v32 = vadd.f32 %v2765_v52, %v9076_v25  ;;  %v2767_v62 = vpop.f32.mrb[159].mxu0  ;;  %3308 = vmatmul.mubr.bf16.gmra.mrb[176].mxu1 %v9237_v51  ;;  %v2956_v59 = vmul.f32 %v7575_v53, %v2828_v45 }
 0x571   :  { %v7577_v29 = vpop.eup %7576  ;;  %v2864_v36 = vmul.f32 0.5, %v6869_v12  ;;  %6027 = vst [vmem:[#allocation25 + $0xb0] sm:$0xff] %v6869_v12  ;;  %v6871_v48 = vadd.f32 %v2767_v62, %v9079_v28  ;;  %3317 = vmatprep.mubr.bf16.mxu1 %v8268_v14 }
 0x572   :  { %5996 = vst [vmem:[#allocation23 + $0xb8] sm:$0xff] %v9242_v32  ;;  %v2957_v55 = vmul.f32 %v7577_v29, %v2829_v58  ;;  %v2988_v50 = vadd.f32 %v9203_v41, %v2956_v59 }
 0x573   :  { %v2918_v4 = vmul.f32 1.442695, %v2864_v36  ;;  %v2865_v26 = vmul.f32 0.5, %v6871_v48  ;;  %6028 = vst [vmem:[#allocation25 + $0xb8] sm:$0xff] %v6871_v48 }
 0x574   :  { %v2989_v22 = vadd.f32 %v9210_v47, %v2957_v55  ;;  %6055 = vst [vmem:[#allocation26 + $0x90] sm:$0xff] %v2988_v50 }
 0x575   :  { %7582 = vpow2.f32 %v2918_v4  ;;  %v2920_v16 = vmul.f32 1.442695, %v2865_v26  ;;  %v2771_v44 = vpop.f32.mrb[160].mxu0  ;;  %v2834_v26 = vld [vmem:[#allocation5 + $0xc0] sm:$0xff] }
 0x576   :  { %v9251_v3 = vadd.f32 %v2771_v44, %v9076_v25  ;;  %v2773_v46 = vpop.f32.mrb[161].mxu0  ;;  %v9253_v7 = vpack.c.bf16 %v2989_v22, %v2988_v50  ;;  %6056 = vst [vmem:[#allocation26 + $0x98] sm:$0xff] %v2989_v22 }
 0x577   :  { %v7579_v2 = vpop.eup %7578  ;;  %7584 = vpow2.f32 %v2920_v16  ;;  %v6873_v41 = vadd.f32 %v2773_v46, %v9079_v28  ;;  %v2775_v30 = vpop.f32.mrb[162].mxu0 }
 0x578   :  { %5997 = vst [vmem:[#allocation23 + $0xc0] sm:$0xff] %v9251_v3  ;;  %v9258_v47 = vadd.f32 %v2775_v30, %v9076_v25  ;;  %v2777_v24 = vpop.f32.mrb[163].mxu0  ;;  %3318 = vmatmul.mubr.bf16.gmra.mrb[180].mxu1 %v9253_v7  ;;  %v2958_v5 = vmul.f32 %v7579_v2, %v2830_v19  ;;  %v2835_v2 = vld [vmem:[#allocation5 + $0xc8] sm:$0xff] }
 0x579   :  { %v7581_v20 = vpop.eup %7580  ;;  %v2866_v6 = vmul.f32 0.5, %v6873_v41  ;;  %6029 = vst [vmem:[#allocation25 + $0xc0] sm:$0xff] %v6873_v41  ;;  %v6875_v9 = vadd.f32 %v2777_v24, %v9079_v28  ;;  %3327 = vmatprep.mubr.bf16.mxu1 %v8268_v14 }
 0x57a   :  { %5998 = vst [vmem:[#allocation23 + $0xc8] sm:$0xff] %v9258_v47  ;;  %v2959_v10 = vmul.f32 %v7581_v20, %v2831_v27  ;;  %v2990_v18 = vadd.f32 %v9219_v1, %v2958_v5 }
 0x57b   :  { %v2922_v13 = vmul.f32 1.442695, %v2866_v6  ;;  %v2867_v11 = vmul.f32 0.5, %v6875_v9  ;;  %6030 = vst [vmem:[#allocation25 + $0xc8] sm:$0xff] %v6875_v9 }
 0x57c   :  { %v2991_v49 = vadd.f32 %v9226_v23, %v2959_v10  ;;  %6057 = vst [vmem:[#allocation26 + $0xa0] sm:$0xff] %v2990_v18 }
 0x57d   :  { %7586 = vpow2.f32 %v2922_v13  ;;  %v2924_v31 = vmul.f32 1.442695, %v2867_v11  ;;  %v2781_v63 = vpop.f32.mrb[164].mxu0 }
 0x57e   :  { %v9267_v34 = vadd.f32 %v2781_v63, %v9076_v25  ;;  %v2783_v15 = vpop.f32.mrb[165].mxu0  ;;  %v9269_v0 = vpack.c.bf16 %v2991_v49, %v2990_v18  ;;  %6058 = vst [vmem:[#allocation26 + $0xa8] sm:$0xff] %v2991_v49  ;;  %v2836_v49 = vld [vmem:[#allocation5 + $0xd0] sm:$0xff] }
 0x57f   :  { %v7583_v39 = vpop.eup %7582  ;;  %7588 = vpow2.f32 %v2924_v31  ;;  %v6877_v1 = vadd.f32 %v2783_v15, %v9079_v28  ;;  %v2785_v45 = vpop.f32.mrb[166].mxu0 }
 0x580   :  { %5999 = vst [vmem:[#allocation23 + $0xd0] sm:$0xff] %v9267_v34  ;;  %v9274_v23 = vadd.f32 %v2785_v45, %v9076_v25  ;;  %v2787_v53 = vpop.f32.mrb[167].mxu0  ;;  %3328 = vmatmul.mubr.bf16.gmra.mrb[184].mxu1 %v9269_v0  ;;  %v2960_v12 = vmul.f32 %v7583_v39, %v2832_v33 }
 0x581   :  { %v7585_v52 = vpop.eup %7584  ;;  %v2868_v58 = vmul.f32 0.5, %v6877_v1  ;;  %6031 = vst [vmem:[#allocation25 + $0xd0] sm:$0xff] %v6877_v1  ;;  %v6879_v62 = vadd.f32 %v2787_v53, %v9079_v28  ;;  %3337 = vmatprep.mubr.bf16.mxu1 %v8268_v14  ;;  %v2837_v1 = vld [vmem:[#allocation5 + $0xd8] sm:$0xff] }
 0x582   :  { %6000 = vst [vmem:[#allocation23 + $0xd8] sm:$0xff] %v9274_v23  ;;  %v2961_v59 = vmul.f32 %v7585_v52, %v2833_v56  ;;  %v2992_v29 = vadd.f32 %v9235_v17, %v2960_v12 }
 0x583   :  { %v2926_v36 = vmul.f32 1.442695, %v2868_v58  ;;  %v2869_v48 = vmul.f32 0.5, %v6879_v62  ;;  %6032 = vst [vmem:[#allocation25 + $0xd8] sm:$0xff] %v6879_v62 }
 0x584   :  { %v2993_v55 = vadd.f32 %v9242_v32, %v2961_v59  ;;  %6059 = vst [vmem:[#allocation26 + $0xb0] sm:$0xff] %v2992_v29 }
 0x585   :  { %7590 = vpow2.f32 %v2926_v36  ;;  %v2928_v50 = vmul.f32 1.442695, %v2869_v48  ;;  %v2791_v4 = vpop.f32.mrb[168].mxu0  ;;  %v2838_v48 = vld [vmem:[#allocation5 + $0xe0] sm:$0xff] }
 0x586   :  { %v9283_v22 = vadd.f32 %v2791_v4, %v9076_v25  ;;  %v2793_v16 = vpop.f32.mrb[169].mxu0  ;;  %v9285_v44 = vpack.c.bf16 %v2993_v55, %v2992_v29  ;;  %6060 = vst [vmem:[#allocation26 + $0xb8] sm:$0xff] %v2993_v55 }
 0x587   :  { %v7587_v19 = vpop.eup %7586  ;;  %7592 = vpow2.f32 %v2928_v50  ;;  %v6881_v17 = vadd.f32 %v2793_v16, %v9079_v28  ;;  %v2795_v46 = vpop.f32.mrb[170].mxu0 }
 0x588   :  { %6001 = vst [vmem:[#allocation23 + $0xe0] sm:$0xff] %v9283_v22  ;;  %v6882_v32 = vadd.f32 %v2795_v46, %v9076_v25  ;;  %v2797_v41 = vpop.f32.mrb[171].mxu0  ;;  %3338 = vmatmul.mubr.bf16.gmra.mrb[188].mxu1 %v9285_v44  ;;  %v2962_v30 = vmul.f32 %v7587_v19, %v2834_v26  ;;  %v2840_v19 = vld [vmem:[#allocation5 + $0xf0] sm:$0xff] }
 0x589   :  { %v7589_v27 = vpop.eup %7588  ;;  %v2870_v24 = vmul.f32 0.5, %v6881_v17  ;;  %6033 = vst [vmem:[#allocation25 + $0xe0] sm:$0xff] %v6881_v17  ;;  %v6883_v5 = vadd.f32 %v2797_v41, %v9079_v28  ;;  %3347 = vmatprep.mubr.bf16.mxu1 %v8268_v14 }
 0x58a   :  { %6002 = vst [vmem:[#allocation23 + $0xe8] sm:$0xff] %v6882_v32  ;;  %v2963_v20 = vmul.f32 %v7589_v27, %v2835_v2  ;;  %v2994_v6 = vadd.f32 %v9251_v3, %v2962_v30  ;;  %v2841_v2 = vld [vmem:[#allocation5 + $0xf8] sm:$0xff] }
 0x58b   :  { %v2930_v9 = vmul.f32 1.442695, %v2870_v24  ;;  %v2871_v10 = vmul.f32 0.5, %v6883_v5  ;;  %6034 = vst [vmem:[#allocation25 + $0xe8] sm:$0xff] %v6883_v5 }
 0x58c   :  { %v2995_v18 = vadd.f32 %v9258_v47, %v2963_v20  ;;  %6061 = vst [vmem:[#allocation26 + $0xc0] sm:$0xff] %v2994_v6 }
 0x58d   :  { %7594 = vpow2.f32 %v2930_v9  ;;  %v2932_v13 = vmul.f32 1.442695, %v2871_v10  ;;  %v2801_v11 = vpop.f32.mrb[172].mxu0  ;;  %v7378_v9 = vld [vmem:[#allocation14 + $0x24] ss:$8 sps:$4 sm:$0xff]  }
 0x58e   :  { %v6884_v31 = vadd.f32 %v2801_v11, %v9076_v25  ;;  %v2803_v63 = vpop.f32.mrb[173].mxu0  ;;  %v9296_v33 = vpack.c.bf16 %v2995_v18, %v2994_v6  ;;  %6062 = vst [vmem:[#allocation26 + $0xc8] sm:$0xff] %v2995_v18  ;;  %v7373_v6 = vld [vmem:[#allocation14 + $0x10] ss:$8 sps:$4 sm:$0xff]   ;;  %v7376_v10 = vld [vmem:[#allocation14 + $0x20] ss:$8 sps:$4 sm:$0xff]  }
 0x58f   :  { %v7591_v15 = vpop.eup %7590  ;;  %7596 = vpow2.f32 %v2932_v13  ;;  %v6885_v3 = vadd.f32 %v2803_v63, %v9079_v28  ;;  %v2805_v39 = vpop.f32.mrb[174].mxu0  ;;  %v7381_v18 = vld [vmem:[#allocation14 + $0x34] ss:$8 sps:$4 sm:$0xff]   ;;  %v7384_v13 = vld [vmem:[#allocation14 + $0x44] ss:$8 sps:$4 sm:$0xff]  }
 0x590   :  { %6003 = vst [vmem:[#allocation23 + $0xf0] sm:$0xff] %v6884_v31  ;;  %v6886_v47 = vadd.f32 %v2805_v39, %v9076_v25  ;;  %v2807_v45 = vpop.f32.mrb[175].mxu0  ;;  %3348 = vmatmul.mubr.bf16.gmra.mrb[192].mxu1 %v9296_v33  ;;  %v2964_v56 = vmul.f32 %v7591_v15, %v2836_v49  ;;  %v7385_v11 = vld [vmem:[#allocation14 + $0x50] ss:$8 sps:$4 sm:$0xff]   ;;  %v7390_v49 = vld [vmem:[#allocation14 + $0x64] ss:$8 sps:$4 sm:$0xff]  }
 0x591   :  { %v7593_v53 = vpop.eup %7592  ;;  %v2872_v12 = vmul.f32 0.5, %v6885_v3  ;;  %6035 = vst [vmem:[#allocation25 + $0xf0] sm:$0xff] %v6885_v3  ;;  %v6887_v52 = vadd.f32 %v2807_v45, %v9079_v28  ;;  %3357 = vmatprep.mubr.bf16.mxu1 %v8268_v14  ;;  %v2839_v28 = vld [vmem:[#allocation5 + $0xe8] sm:$0xff]  ;;  %v7397_v15 = vld [vmem:[#allocation14 + $0x90] ss:$8 sps:$4 sm:$0xff]  }
 0x592   :  { %6004 = vst [vmem:[#allocation23 + $0xf8] sm:$0xff] %v6886_v47  ;;  %v2965_v58 = vmul.f32 %v7593_v53, %v2837_v1  ;;  %v2996_v62 = vadd.f32 %v9267_v34, %v2964_v56  ;;  %v7396_v63 = vld [vmem:[#allocation14 + $0x84] ss:$8 sps:$4 sm:$0xff]   ;;  %v7403_v39 = vld [vmem:[#allocation14 + $0xb0] ss:$8 sps:$4 sm:$0xff]  }
 0x593   :  { %v2934_v59 = vmul.f32 1.442695, %v2872_v12  ;;  %v2873_v29 = vmul.f32 0.5, %v6887_v52  ;;  %6036 = vst [vmem:[#allocation25 + $0xf8] sm:$0xff] %v6887_v52  ;;  %v7402_v3 = vld [vmem:[#allocation14 + $0xa4] ss:$8 sps:$4 sm:$0xff]  }
 0x594   :  { %v2997_v25 = vadd.f32 %v9274_v23, %v2965_v58  ;;  %6063 = vst [vmem:[#allocation26 + $0xd0] sm:$0xff] %v2996_v62  ;;  %v7408_v1 = vld [vmem:[#allocation14 + $0xc4] ss:$8 sps:$4 sm:$0xff]   ;;  %v7415_v56 = vld [vmem:[#allocation14 + $0xf0] ss:$8 sps:$4 sm:$0xff]  }
 0x595   :  { %7598 = vpow2.f32 %v2934_v59  ;;  %v2936_v36 = vmul.f32 1.442695, %v2873_v29  ;;  %v7414_v45 = vld [vmem:[#allocation14 + $0xe4] ss:$8 sps:$4 sm:$0xff]   ;;  %v9336_v12 = vld [vmem:[%s9818_s11] sm:$0x7] }
 0x596   :  { %v9305_v55 = vpack.c.bf16 %v2997_v25, %v2996_v62  ;;  %6064 = vst [vmem:[#allocation26 + $0xd8] sm:$0xff] %v2997_v25  ;;  %v7420_v53 = vld [vmem:[#allocation14 + $0x104] ss:$8 sps:$4 sm:$0xff]   ;;  %v9340_v52 = vrot.slane %v9336_v12, %v8552_v38  ;;  %v9344_v58 = vrot.slane %v9336_v12, %v8559_v40 }
 0x597   :  { %v7595_v50 = vpop.eup %7594  ;;  %7600 = vpow2.f32 %v2936_v36 }
 0x598   :  { %3358 = vmatmul.mubr.bf16.gmra.mrb[196].mxu1 %v9305_v55  ;;  %v2966_v4 = vmul.f32 %v7595_v50, %v2838_v48 }
 0x599   :  { %v7597_v26 = vpop.eup %7596  ;;  %3367 = vmatprep.mubr.bf16.mxu1 %v8268_v14 }
 0x59a   :  { %v2967_v34 = vmul.f32 %v7597_v26, %v2839_v28  ;;  %v2998_v16 = vadd.f32 %v9283_v22, %v2966_v4  ;;  %v7370_v22 = vld [vmem:[#allocation14] ss:$8 sps:$4 sm:$0xff]  }
 0x59c   :  { %v2999_v23 = vadd.f32 %v6882_v32, %v2967_v34  ;;  %6065 = vst [vmem:[#allocation26 + $0xe0] sm:$0xff] %v2998_v16  ;;  %v7375_v32 = vld [vmem:[#allocation14 + $0x14] ss:$8 sps:$4 sm:$0xff]  }
 0x59e   :  { %v9310_v17 = vpack.c.bf16 %v2999_v23, %v2998_v16  ;;  %6066 = vst [vmem:[#allocation26 + $0xe8] sm:$0xff] %v2999_v23 }
 0x59f   :  { %v7599_v46 = vpop.eup %7598 }
 0x5a0   :  { %3368 = vmatmul.mubr.bf16.gmra.mrb[200].mxu1 %v9310_v17  ;;  %v2968_v41 = vmul.f32 %v7599_v46, %v2840_v19 }
 0x5a1   :  { %v7601_v30 = vpop.eup %7600  ;;  %3377 = vmatprep.mubr.bf16.mxu1 %v8268_v14 }
 0x5a2   :  { %v2969_v27 = vmul.f32 %v7601_v30, %v2841_v2  ;;  %v3000_v24 = vadd.f32 %v6884_v31, %v2968_v41  ;;  %v7391_v31 = vld [vmem:[#allocation14 + $0x70] ss:$8 sps:$4 sm:$0xff]   ;;  %v7423_v41 = vld [vmem:[#allocation14 + $0x114] ss:$8 sps:$4 sm:$0xff]  }
 0x5a4   :  { %v3001_v5 = vadd.f32 %v6886_v47, %v2969_v27  ;;  %6067 = vst [vmem:[#allocation26 + $0xf0] sm:$0xff] %v3000_v24  ;;  %v7409_v47 = vld [vmem:[#allocation14 + $0xd0] ss:$8 sps:$4 sm:$0xff]  }
 0x5a6   :  { %v9314_v20 = vpack.c.bf16 %v3001_v5, %v3000_v24  ;;  %6068 = vst [vmem:[#allocation26 + $0xf8] sm:$0xff] %v3001_v5 }
 0x5a8   :  { %3378 = vmatmul.mubr.bf16.gmra.mrb[204].mxu1 %v9314_v20 }
 0x5a9   :  { %6760 = vmatprep.mubr.bf16.mxu1 %v9108_v57  ;;  %v7379_v57 = vld [vmem:[#allocation14 + $0x30] ss:$8 sps:$4 sm:$0xff]  }
 0x5b0   :  { %6761 = vmatmul.mubr.bf16.vlgmr.msra.gmra.mrb[208].mxu1 %v9125_v54  ;;  %v7382_v54 = vld [vmem:[#allocation14 + $0x40] ss:$8 sps:$4 sm:$0xff]  }
 0x5b1   :  { %6764 = vmatprep.mubr.bf16.mxu1 %v9141_v8  ;;  %3994 = vmatpush1.bf16.msra.mxu1 %v7370_v22  ;;  %v7387_v8 = vld [vmem:[#allocation14 + $0x54] ss:$8 sps:$4 sm:$0xff]   ;;  %v7421_v22 = vld [vmem:[#allocation14 + $0x110] ss:$8 sps:$4 sm:$0xff]  }
 0x5b2   :  { %3995 = vmatprep.subr.bf16.mxu1 %v7375_v32 }
 0x5b5   :  { %3996 = vmatpush1.bf16.msra.mxu1 %v7373_v6 }
 0x5b6   :  { %3997 = vmatprep.subr.bf16.mxu1 %v7378_v9  ;;  %v7426_v9 = vld [vmem:[#allocation14 + $0x124] ss:$8 sps:$4 sm:$0xff]  }
 0x5b8   :  { %6765 = vmatmul.mubr.bf16.gmra.mrb[212].mxu1 %v9157_v37  ;;  %v7388_v37 = vld [vmem:[#allocation14 + $0x60] ss:$8 sps:$4 sm:$0xff]  }
 0x5b9   :  { %6768 = vmatprep.mubr.bf16.mxu1 %v9173_v43  ;;  %3998 = vmatpush1.bf16.msra.mxu1 %v7376_v10  ;;  %v7393_v43 = vld [vmem:[#allocation14 + $0x74] ss:$8 sps:$4 sm:$0xff]  }
 0x5ba   :  { %3999 = vmatprep.subr.bf16.mxu1 %v7381_v18 }
 0x5bd   :  { %4000 = vmatpush1.bf16.msra.mxu1 %v7379_v57 }
 0x5be   :  { %4001 = vmatprep.subr.bf16.mxu1 %v7384_v13 }
 0x5c0   :  { %6769 = vmatmul.mubr.bf16.gmra.mrb[216].mxu1 %v9189_v21  ;;  %v7394_v21 = vld [vmem:[#allocation14 + $0x80] ss:$8 sps:$4 sm:$0xff]  }
 0x5c1   :  { %6772 = vmatprep.mubr.bf16.mxu1 %v9205_v42  ;;  %4002 = vmatpush1.bf16.msra.mxu1 %v7382_v54  ;;  %v7399_v42 = vld [vmem:[#allocation14 + $0x94] ss:$8 sps:$4 sm:$0xff]  }
 0x5c2   :  { %4003 = vmatprep.subr.bf16.mxu1 %v7387_v8  ;;  %v7424_v8 = vld [vmem:[#allocation14 + $0x120] ss:$8 sps:$4 sm:$0xff]  }
 0x5c5   :  { %4004 = vmatpush1.bf16.msra.mxu1 %v7385_v11 }
 0x5c6   :  { %4005 = vmatprep.subr.bf16.mxu1 %v7390_v49 }
 0x5c8   :  { %6773 = vmatmul.mubr.bf16.gmra.mrb[220].mxu1 %v9221_v60  ;;  %v7400_v60 = vld [vmem:[#allocation14 + $0xa0] ss:$8 sps:$4 sm:$0xff]  }
 0x5c9   :  { %6776 = vmatprep.mubr.bf16.mxu1 %v9237_v51  ;;  %4006 = vmatpush1.bf16.msra.mxu1 %v7388_v37  ;;  %v7405_v51 = vld [vmem:[#allocation14 + $0xb4] ss:$8 sps:$4 sm:$0xff]  }
 0x5ca   :  { %4007 = vmatprep.subr.bf16.mxu1 %v7393_v43  ;;  %v7429_v37 = vld [vmem:[#allocation14 + $0x134] ss:$8 sps:$4 sm:$0xff]  }
 0x5cd   :  { %4008 = vmatpush1.bf16.msra.mxu1 %v7391_v31 }
 0x5ce   :  { %4009 = vmatprep.subr.bf16.mxu1 %v7396_v63 }
 0x5d0   :  { %6777 = vmatmul.mubr.bf16.gmra.mrb[224].mxu1 %v9253_v7  ;;  %v7406_v7 = vld [vmem:[#allocation14 + $0xc0] ss:$8 sps:$4 sm:$0xff]  }
 0x5d1   :  { %6780 = vmatprep.mubr.bf16.mxu1 %v9269_v0  ;;  %4010 = vmatpush1.bf16.msra.mxu1 %v7394_v21  ;;  %v7411_v0 = vld [vmem:[#allocation14 + $0xd4] ss:$8 sps:$4 sm:$0xff]  }
 0x5d2   :  { %4011 = vmatprep.subr.bf16.mxu1 %v7399_v42 }
 0x5d5   :  { %4012 = vmatpush1.bf16.msra.mxu1 %v7397_v15  ;;  %v7427_v15 = vld [vmem:[#allocation14 + $0x130] ss:$8 sps:$4 sm:$0xff]  }
 0x5d6   :  { %4013 = vmatprep.subr.bf16.mxu1 %v7402_v3 }
 0x5d8   :  { %6781 = vmatmul.mubr.bf16.gmra.mrb[228].mxu1 %v9285_v44  ;;  %v7412_v44 = vld [vmem:[#allocation14 + $0xe0] ss:$8 sps:$4 sm:$0xff]  }
 0x5d9   :  { %6784 = vmatprep.mubr.bf16.mxu1 %v9296_v33  ;;  %4014 = vmatpush1.bf16.msra.mxu1 %v7400_v60  ;;  %v7417_v33 = vld [vmem:[#allocation14 + $0xf4] ss:$8 sps:$4 sm:$0xff]  }
 0x5da   :  { %4015 = vmatprep.subr.bf16.mxu1 %v7405_v51  ;;  %v7432_v51 = vld [vmem:[#allocation14 + $0x144] ss:$8 sps:$4 sm:$0xff]  }
 0x5dd   :  { %4016 = vmatpush1.bf16.msra.mxu1 %v7403_v39 }
 0x5de   :  { %4017 = vmatprep.subr.bf16.mxu1 %v7408_v1 }
 0x5e0   :  { %6785 = vmatmul.mubr.bf16.gmra.mrb[232].mxu1 %v9305_v55 }
 0x5e1   :  { %6788 = vmatprep.mubr.bf16.mxu1 %v9310_v17  ;;  %4018 = vmatpush1.bf16.msra.mxu1 %v7406_v7  ;;  %v7418_v17 = vld [vmem:[#allocation14 + $0x100] ss:$8 sps:$4 sm:$0xff]  }
 0x5e2   :  { %4019 = vmatprep.subr.bf16.mxu1 %v7411_v0 }
 0x5e5   :  { %4020 = vmatpush1.bf16.msra.mxu1 %v7409_v47 }
 0x5e6   :  { %4021 = vmatprep.subr.bf16.mxu1 %v7414_v45  ;;  %v7430_v45 = vld [vmem:[#allocation14 + $0x140] ss:$8 sps:$4 sm:$0xff]  }
 0x5e8   :  { %6789 = vmatmul.mubr.bf16.gmra.mrb[236].mxu1 %v9314_v20 }
 0x5e9   :  { %4022 = vmatpush1.bf16.msra.mxu1 %v7412_v44 }
 0x5ea   :  { %4023 = vmatprep.subr.bf16.mxu1 %v7417_v33 }
 0x5ed   :  { %4024 = vmatpush1.bf16.msra.mxu1 %v7415_v56  ;;  %v7435_v56 = vld [vmem:[#allocation14 + $0x154] ss:$8 sps:$4 sm:$0xff]  }
 0x5ee   :  { %4186 = vmatprep.subr.bf16.mxu1 %v7420_v53 }
 0x603   :  { %v3229_v62 = vpop.f32.mrb[144].mxu1 }
 0x604   :  { %v3230_v59 = vadd.f32 %v3229_v62, %v9340_v52  ;;  %v3231_v29 = vpop.f32.mrb[145].mxu1 }
 0x605   :  { %v3232_v25 = vadd.f32 %v3231_v29, %v9344_v58  ;;  %v3233_v36 = vpop.f32.mrb[146].mxu1 }
 0x606   :  { %v3234_v48 = vadd.f32 %v3233_v36, %v9340_v52  ;;  %v3235_v55 = vpop.f32.mrb[147].mxu1  ;;  %v3549_v28 = vmax.f32 %v3230_v59, 0.0  ;;  %v7433_v36 = vld [vmem:[#allocation14 + $0x150] ss:$8 sps:$4 sm:$0xff]  }
 0x607   :  { %v3236_v50 = vadd.f32 %v3235_v55, %v9344_v58  ;;  %v3550_v26 = vmax.f32 %v3232_v25, 0.0 }
 0x608   :  { %v3552_v4 = vmax.f32 %v3234_v48, 0.0 }
 0x609   :  { %v3553_v34 = vmax.f32 %v3236_v50, 0.0  ;;  %v7438_v50 = vld [vmem:[#allocation14 + $0x164] ss:$8 sps:$4 sm:$0xff]  }
 0x60a   :  { %v3645_v16 = vpack.c.bf16 %v3552_v4, %v3549_v28 }
 0x60b   :  { %v3646_v23 = vpack.c.bf16 %v3553_v34, %v3550_v26  ;;  %v3239_v19 = vpop.f32.mrb[148].mxu1 }
 0x60c   :  { %v3240_v46 = vadd.f32 %v3239_v19, %v9340_v52  ;;  %v3241_v2 = vpop.f32.mrb[149].mxu1 }
 0x60d   :  { %v3242_v30 = vadd.f32 %v3241_v2, %v9344_v58  ;;  %v3243_v27 = vpop.f32.mrb[150].mxu1  ;;  %4025 = vmatprep.mubr.bf16.mxu1 %v3646_v23  ;;  %v7436_v23 = vld [vmem:[#allocation14 + $0x160] ss:$8 sps:$4 sm:$0xff]  }
 0x60e   :  { %v3244_v24 = vadd.f32 %v3243_v27, %v9340_v52  ;;  %v3245_v5 = vpop.f32.mrb[151].mxu1  ;;  %4026 = vmatmul.mubr.bf16.vlgmr.msra.gmra.mrb[240].mxu1 %v3645_v16  ;;  %v3555_v32 = vmax.f32 %v3240_v46, 0.0  ;;  %v7441_v46 = vld [vmem:[#allocation14 + $0x174] ss:$8 sps:$4 sm:$0xff]  }
 0x60f   :  { %v3246_v20 = vadd.f32 %v3245_v5, %v9344_v58  ;;  %4187 = vmatpush1.bf16.msra.mxu1 %v7418_v17  ;;  %v3556_v10 = vmax.f32 %v3242_v30, 0.0  ;;  %v7439_v5 = vld [vmem:[#allocation14 + $0x170] ss:$8 sps:$4 sm:$0xff]  }
 0x610   :  { %v3558_v6 = vmax.f32 %v3244_v24, 0.0  ;;  %4188 = vmatprep.subr.bf16.mxu1 %v7423_v41 }
 0x611   :  { %v3559_v18 = vmax.f32 %v3246_v20, 0.0 }
 0x612   :  { %v3648_v57 = vpack.c.bf16 %v3558_v6, %v3555_v32 }
 0x613   :  { %v3649_v13 = vpack.c.bf16 %v3559_v18, %v3556_v10  ;;  %v3249_v54 = vpop.f32.mrb[152].mxu1  ;;  %4189 = vmatpush1.bf16.msra.mxu1 %v7421_v22 }
 0x614   :  { %v3250_v11 = vadd.f32 %v3249_v54, %v9340_v52  ;;  %v3251_v49 = vpop.f32.mrb[153].mxu1  ;;  %4190 = vmatprep.subr.bf16.mxu1 %v7426_v9 }
 0x615   :  { %v3252_v43 = vadd.f32 %v3251_v49, %v9344_v58  ;;  %v3253_v31 = vpop.f32.mrb[154].mxu1  ;;  %4035 = vmatprep.mubr.bf16.mxu1 %v3649_v13 }
 0x616   :  { %v3254_v63 = vadd.f32 %v3253_v31, %v9340_v52  ;;  %v3255_v21 = vpop.f32.mrb[155].mxu1  ;;  %4036 = vmatmul.mubr.bf16.gmra.mrb[244].mxu1 %v3648_v57  ;;  %v3561_v3 = vmax.f32 %v3250_v11, 0.0 }
 0x617   :  { %v3256_v42 = vadd.f32 %v3255_v21, %v9344_v58  ;;  %4191 = vmatpush1.bf16.msra.mxu1 %v7424_v8  ;;  %v3562_v39 = vmax.f32 %v3252_v43, 0.0 }
 0x618   :  { %v3564_v60 = vmax.f32 %v3254_v63, 0.0  ;;  %4192 = vmatprep.subr.bf16.mxu1 %v7429_v37 }
 0x619   :  { %v3565_v1 = vmax.f32 %v3256_v42, 0.0 }
 0x61a   :  { %v3651_v7 = vpack.c.bf16 %v3564_v60, %v3561_v3 }
 0x61b   :  { %v3652_v0 = vpack.c.bf16 %v3565_v1, %v3562_v39  ;;  %v3259_v47 = vpop.f32.mrb[156].mxu1  ;;  %4193 = vmatpush1.bf16.msra.mxu1 %v7427_v15 }
 0x61c   :  { %v3260_v44 = vadd.f32 %v3259_v47, %v9340_v52  ;;  %v3261_v33 = vpop.f32.mrb[157].mxu1  ;;  %4194 = vmatprep.subr.bf16.mxu1 %v7432_v51 }
 0x61d   :  { %v3262_v53 = vadd.f32 %v3261_v33, %v9344_v58  ;;  %v3263_v62 = vpop.f32.mrb[158].mxu1  ;;  %4045 = vmatprep.mubr.bf16.mxu1 %v3652_v0 }
 0x61e   :  { %v3264_v59 = vadd.f32 %v3263_v62, %v9340_v52  ;;  %v3265_v29 = vpop.f32.mrb[159].mxu1  ;;  %4046 = vmatmul.mubr.bf16.gmra.mrb[248].mxu1 %v3651_v7  ;;  %v3567_v48 = vmax.f32 %v3260_v44, 0.0 }
 0x61f   :  { %v3266_v25 = vadd.f32 %v3265_v29, %v9344_v58  ;;  %4195 = vmatpush1.bf16.msra.mxu1 %v7430_v45  ;;  %v3568_v28 = vmax.f32 %v3262_v53, 0.0 }
 0x620   :  { %v3570_v55 = vmax.f32 %v3264_v59, 0.0  ;;  %4196 = vmatprep.subr.bf16.mxu1 %v7435_v56 }
 0x621   :  { %v3571_v4 = vmax.f32 %v3266_v25, 0.0 }
 0x622   :  { %v3654_v26 = vpack.c.bf16 %v3570_v55, %v3567_v48 }
 0x623   :  { %v3655_v34 = vpack.c.bf16 %v3571_v4, %v3568_v28  ;;  %v3269_v16 = vpop.f32.mrb[160].mxu1  ;;  %4197 = vmatpush1.bf16.msra.mxu1 %v7433_v36 }
 0x624   :  { %v3270_v19 = vadd.f32 %v3269_v16, %v9340_v52  ;;  %v3271_v17 = vpop.f32.mrb[161].mxu1  ;;  %4198 = vmatprep.subr.bf16.mxu1 %v7438_v50 }
 0x625   :  { %v3272_v2 = vadd.f32 %v3271_v17, %v9344_v58  ;;  %v3273_v41 = vpop.f32.mrb[162].mxu1  ;;  %4055 = vmatprep.mubr.bf16.mxu1 %v3655_v34 }
 0x626   :  { %v3274_v30 = vadd.f32 %v3273_v41, %v9340_v52  ;;  %v3275_v27 = vpop.f32.mrb[163].mxu1  ;;  %4056 = vmatmul.mubr.bf16.gmra.mrb[252].mxu1 %v3654_v26  ;;  %v3573_v20 = vmax.f32 %v3270_v19, 0.0 }
 0x627   :  { %v3276_v24 = vadd.f32 %v3275_v27, %v9344_v58  ;;  %4199 = vmatpush1.bf16.msra.mxu1 %v7436_v23  ;;  %v3574_v32 = vmax.f32 %v3272_v2, 0.0 }
 0x628   :  { %v3576_v22 = vmax.f32 %v3274_v30, 0.0  ;;  %4200 = vmatprep.subr.bf16.mxu1 %v7441_v46 }
 0x629   :  { %v3577_v6 = vmax.f32 %v3276_v24, 0.0 }
 0x62a   :  { %v3657_v9 = vpack.c.bf16 %v3576_v22, %v3573_v20 }
 0x62b   :  { %v3658_v10 = vpack.c.bf16 %v3577_v6, %v3574_v32  ;;  %v3279_v18 = vpop.f32.mrb[164].mxu1  ;;  %4201 = vmatpush1.bf16.msra.mxu1 %v7439_v5 }
 0x62c   :  { %v3280_v57 = vadd.f32 %v3279_v18, %v9340_v52  ;;  %v3281_v13 = vpop.f32.mrb[165].mxu1 }
 0x62d   :  { %v3282_v54 = vadd.f32 %v3281_v13, %v9344_v58  ;;  %v3283_v8 = vpop.f32.mrb[166].mxu1  ;;  %4065 = vmatprep.mubr.bf16.mxu1 %v3658_v10 }
 0x62e   :  { %v3284_v11 = vadd.f32 %v3283_v8, %v9340_v52  ;;  %v3285_v49 = vpop.f32.mrb[167].mxu1  ;;  %4066 = vmatmul.mubr.bf16.gmra.mrb[0].mxu1 %v3657_v9  ;;  %v3579_v43 = vmax.f32 %v3280_v57, 0.0 }
 0x62f   :  { %v3286_v37 = vadd.f32 %v3285_v49, %v9344_v58  ;;  %v3580_v63 = vmax.f32 %v3282_v54, 0.0 }
 0x630   :  { %v3582_v31 = vmax.f32 %v3284_v11, 0.0 }
 0x631   :  { %v3583_v21 = vmax.f32 %v3286_v37, 0.0 }
 0x632   :  { %v3660_v42 = vpack.c.bf16 %v3582_v31, %v3579_v43 }
 0x633   :  { %v3661_v15 = vpack.c.bf16 %v3583_v21, %v3580_v63  ;;  %v3289_v3 = vpop.f32.mrb[168].mxu1 }
 0x634   :  { %v3290_v60 = vadd.f32 %v3289_v3, %v9340_v52  ;;  %v3291_v51 = vpop.f32.mrb[169].mxu1 }
 0x635   :  { %v3292_v39 = vadd.f32 %v3291_v51, %v9344_v58  ;;  %v3293_v1 = vpop.f32.mrb[170].mxu1  ;;  %4075 = vmatprep.mubr.bf16.mxu1 %v3661_v15 }
 0x636   :  { %v3294_v7 = vadd.f32 %v3293_v1, %v9340_v52  ;;  %v3295_v0 = vpop.f32.mrb[171].mxu1  ;;  %4076 = vmatmul.mubr.bf16.gmra.mrb[4].mxu1 %v3660_v42  ;;  %v3585_v45 = vmax.f32 %v3290_v60, 0.0 }
 0x637   :  { %v3296_v47 = vadd.f32 %v3295_v0, %v9344_v58  ;;  %v3586_v33 = vmax.f32 %v3292_v39, 0.0 }
 0x638   :  { %v3588_v44 = vmax.f32 %v3294_v7, 0.0 }
 0x639   :  { %v3589_v56 = vmax.f32 %v3296_v47, 0.0 }
 0x63a   :  { %v3663_v53 = vpack.c.bf16 %v3588_v44, %v3585_v45 }
 0x63b   :  { %v3664_v62 = vpack.c.bf16 %v3589_v56, %v3586_v33  ;;  %v3299_v59 = vpop.f32.mrb[172].mxu1 }
 0x63c   :  { %v3300_v29 = vadd.f32 %v3299_v59, %v9340_v52  ;;  %v3301_v25 = vpop.f32.mrb[173].mxu1 }
 0x63d   :  { %v3302_v36 = vadd.f32 %v3301_v25, %v9344_v58  ;;  %v3303_v48 = vpop.f32.mrb[174].mxu1  ;;  %4085 = vmatprep.mubr.bf16.mxu1 %v3664_v62 }
 0x63e   :  { %v3304_v55 = vadd.f32 %v3303_v48, %v9340_v52  ;;  %v3305_v50 = vpop.f32.mrb[175].mxu1  ;;  %4086 = vmatmul.mubr.bf16.gmra.mrb[8].mxu1 %v3663_v53  ;;  %v3591_v4 = vmax.f32 %v3300_v29, 0.0 }
 0x63f   :  { %v3306_v28 = vadd.f32 %v3305_v50, %v9344_v58  ;;  %v3592_v34 = vmax.f32 %v3302_v36, 0.0 }
 0x640   :  { %v3594_v26 = vmax.f32 %v3304_v55, 0.0 }
 0x641   :  { %v3595_v16 = vmax.f32 %v3306_v28, 0.0 }
 0x642   :  { %v3666_v23 = vpack.c.bf16 %v3594_v26, %v3591_v4 }
 0x643   :  { %v3667_v19 = vpack.c.bf16 %v3595_v16, %v3592_v34  ;;  %v3309_v17 = vpop.f32.mrb[176].mxu1 }
 0x644   :  { %v3310_v46 = vadd.f32 %v3309_v17, %v9340_v52  ;;  %v3311_v2 = vpop.f32.mrb[177].mxu1 }
 0x645   :  { %v3312_v41 = vadd.f32 %v3311_v2, %v9344_v58  ;;  %v3313_v30 = vpop.f32.mrb[178].mxu1  ;;  %4095 = vmatprep.mubr.bf16.mxu1 %v3667_v19 }
 0x646   :  { %v3314_v27 = vadd.f32 %v3313_v30, %v9340_v52  ;;  %v3315_v24 = vpop.f32.mrb[179].mxu1  ;;  %4096 = vmatmul.mubr.bf16.gmra.mrb[12].mxu1 %v3666_v23  ;;  %v3597_v20 = vmax.f32 %v3310_v46, 0.0 }
 0x647   :  { %v3316_v5 = vadd.f32 %v3315_v24, %v9344_v58  ;;  %v3598_v32 = vmax.f32 %v3312_v41, 0.0 }
 0x648   :  { %v3600_v22 = vmax.f32 %v3314_v27, 0.0 }
 0x649   :  { %v3601_v6 = vmax.f32 %v3316_v5, 0.0  ;;  %v7442_v5 = vld [vmem:[#allocation16] ss:$8 sps:$4 sm:$0xff]  }
 0x64a   :  { %v3669_v9 = vpack.c.bf16 %v3600_v22, %v3597_v20  ;;  %v7444_v20 = vld [vmem:[#allocation16 + $0x4] ss:$8 sps:$4 sm:$0xff]  }
 0x64b   :  { %v3670_v10 = vpack.c.bf16 %v3601_v6, %v3598_v32  ;;  %v3319_v18 = vpop.f32.mrb[180].mxu1  ;;  %4679 = vmatprep.subr.bf16.mxu0 %v7444_v20 }
 0x64c   :  { %v3320_v57 = vadd.f32 %v3319_v18, %v9340_v52  ;;  %v3321_v13 = vpop.f32.mrb[181].mxu1  ;;  %4680 = vmatpush1.bf16.msra.mxu0 %v7442_v5 }
 0x64d   :  { %v3322_v54 = vadd.f32 %v3321_v13, %v9344_v58  ;;  %v3323_v8 = vpop.f32.mrb[182].mxu1  ;;  %4105 = vmatprep.mubr.bf16.mxu1 %v3670_v10 }
 0x64e   :  { %v3324_v11 = vadd.f32 %v3323_v8, %v9340_v52  ;;  %v3325_v49 = vpop.f32.mrb[183].mxu1  ;;  %4106 = vmatmul.mubr.bf16.gmra.mrb[16].mxu1 %v3669_v9  ;;  %v3603_v43 = vmax.f32 %v3320_v57, 0.0 }
 0x64f   :  { %v3326_v37 = vadd.f32 %v3325_v49, %v9344_v58  ;;  %v3604_v63 = vmax.f32 %v3322_v54, 0.0 }
 0x650   :  { %v3606_v31 = vmax.f32 %v3324_v11, 0.0 }
 0x651   :  { %v3607_v21 = vmax.f32 %v3326_v37, 0.0 }
 0x652   :  { %v3672_v42 = vpack.c.bf16 %v3606_v31, %v3603_v43  ;;  %v7445_v31 = vld [vmem:[#allocation16 + $0x10] ss:$8 sps:$4 sm:$0xff]  }
 0x653   :  { %v3673_v15 = vpack.c.bf16 %v3607_v21, %v3604_v63  ;;  %v3329_v3 = vpop.f32.mrb[184].mxu1  ;;  %v7447_v63 = vld [vmem:[#allocation16 + $0x14] ss:$8 sps:$4 sm:$0xff]  }
 0x654   :  { %v3330_v60 = vadd.f32 %v3329_v3, %v9340_v52  ;;  %v3331_v51 = vpop.f32.mrb[185].mxu1  ;;  %4681 = vmatprep.subr.bf16.mxu0 %v7447_v63 }
 0x655   :  { %v3332_v39 = vadd.f32 %v3331_v51, %v9344_v58  ;;  %v3333_v1 = vpop.f32.mrb[186].mxu1  ;;  %4115 = vmatprep.mubr.bf16.mxu1 %v3673_v15  ;;  %4682 = vmatpush1.bf16.msra.mxu0 %v7445_v31 }
 0x656   :  { %v3334_v7 = vadd.f32 %v3333_v1, %v9340_v52  ;;  %v3335_v0 = vpop.f32.mrb[187].mxu1  ;;  %4116 = vmatmul.mubr.bf16.gmra.mrb[20].mxu1 %v3672_v42  ;;  %v3609_v45 = vmax.f32 %v3330_v60, 0.0 }
 0x657   :  { %v3336_v47 = vadd.f32 %v3335_v0, %v9344_v58  ;;  %v3610_v33 = vmax.f32 %v3332_v39, 0.0 }
 0x658   :  { %v3612_v44 = vmax.f32 %v3334_v7, 0.0 }
 0x659   :  { %v3613_v56 = vmax.f32 %v3336_v47, 0.0 }
 0x65a   :  { %v3675_v53 = vpack.c.bf16 %v3612_v44, %v3609_v45 }
 0x65b   :  { %v3676_v62 = vpack.c.bf16 %v3613_v56, %v3610_v33  ;;  %v3339_v59 = vpop.f32.mrb[188].mxu1  ;;  %v7448_v56 = vld [vmem:[#allocation16 + $0x20] ss:$8 sps:$4 sm:$0xff]  }
 0x65c   :  { %v3340_v29 = vadd.f32 %v3339_v59, %v9340_v52  ;;  %v3341_v25 = vpop.f32.mrb[189].mxu1 }
 0x65d   :  { %v3342_v36 = vadd.f32 %v3341_v25, %v9344_v58  ;;  %v3343_v48 = vpop.f32.mrb[190].mxu1  ;;  %4125 = vmatprep.mubr.bf16.mxu1 %v3676_v62 }
 0x65e   :  { %v3344_v55 = vadd.f32 %v3343_v48, %v9340_v52  ;;  %v3345_v50 = vpop.f32.mrb[191].mxu1  ;;  %4126 = vmatmul.mubr.bf16.gmra.mrb[24].mxu1 %v3675_v53  ;;  %v3615_v4 = vmax.f32 %v3340_v29, 0.0  ;;  %v7450_v53 = vld [vmem:[#allocation16 + $0x24] ss:$8 sps:$4 sm:$0xff]  }
 0x65f   :  { %v3346_v28 = vadd.f32 %v3345_v50, %v9344_v58  ;;  %v3616_v34 = vmax.f32 %v3342_v36, 0.0  ;;  %4683 = vmatprep.subr.bf16.mxu0 %v7450_v53 }
 0x660   :  { %v3618_v26 = vmax.f32 %v3344_v55, 0.0  ;;  %4684 = vmatpush1.bf16.msra.mxu0 %v7448_v56  ;;  %v7468_v56 = vld [vmem:[#allocation16 + $0x84] ss:$8 sps:$4 sm:$0xff]  }
 0x661   :  { %v3619_v16 = vmax.f32 %v3346_v28, 0.0 }
 0x662   :  { %v3678_v23 = vpack.c.bf16 %v3618_v26, %v3615_v4 }
 0x663   :  { %v3679_v19 = vpack.c.bf16 %v3619_v16, %v3616_v34  ;;  %v3349_v17 = vpop.f32.mrb[192].mxu1 }
 0x664   :  { %v3350_v46 = vadd.f32 %v3349_v17, %v9340_v52  ;;  %v3351_v2 = vpop.f32.mrb[193].mxu1  ;;  %v7453_v17 = vld [vmem:[#allocation16 + $0x34] ss:$8 sps:$4 sm:$0xff]  }
 0x665   :  { %v3352_v41 = vadd.f32 %v3351_v2, %v9344_v58  ;;  %v3353_v30 = vpop.f32.mrb[194].mxu1  ;;  %4135 = vmatprep.mubr.bf16.mxu1 %v3679_v19  ;;  %v7451_v19 = vld [vmem:[#allocation16 + $0x30] ss:$8 sps:$4 sm:$0xff]   ;;  %4685 = vmatprep.subr.bf16.mxu0 %v7453_v17 }
 0x666   :  { %v3354_v27 = vadd.f32 %v3353_v30, %v9340_v52  ;;  %v3355_v24 = vpop.f32.mrb[195].mxu1  ;;  %4136 = vmatmul.mubr.bf16.gmra.mrb[28].mxu1 %v3678_v23  ;;  %v3621_v32 = vmax.f32 %v3350_v46, 0.0  ;;  %v9413_v30 = vrot.slane %v9336_v12, %v1365_v61  ;;  %4686 = vmatpush1.bf16.msra.mxu0 %v7451_v19  ;;  %v7454_v61 = vld [vmem:[#allocation16 + $0x40] ss:$8 sps:$4 sm:$0xff]   ;;  %v7456_v12 = vld [vmem:[#allocation16 + $0x44] ss:$8 sps:$4 sm:$0xff]  }
 0x667   :  { %v3356_v22 = vadd.f32 %v3355_v24, %v9344_v58  ;;  %v3622_v9 = vmax.f32 %v3352_v41, 0.0  ;;  %4687 = vmatprep.subr.bf16.mxu0 %v7456_v12  ;;  %v7469_v19 = vld [vmem:[#allocation16 + $0x90] ss:$8 sps:$4 sm:$0xff]  }
 0x668   :  { %v3624_v6 = vmax.f32 %v3354_v27, 0.0 }
 0x669   :  { %v3625_v10 = vmax.f32 %v3356_v22, 0.0 }
 0x66a   :  { %v3681_v18 = vpack.c.bf16 %v3624_v6, %v3621_v32  ;;  %4688 = vmatpush1.bf16.msra.mxu0 %v7454_v61 }
 0x66b   :  { %v3682_v57 = vpack.c.bf16 %v3625_v10, %v3622_v9  ;;  %v3359_v13 = vpop.f32.mrb[196].mxu1 }
 0x66c   :  { %v3360_v54 = vadd.f32 %v3359_v13, %v9340_v52  ;;  %v3361_v8 = vpop.f32.mrb[197].mxu1 }
 0x66d   :  { %v3362_v11 = vadd.f32 %v3361_v8, %v9344_v58  ;;  %v3363_v49 = vpop.f32.mrb[198].mxu1  ;;  %4145 = vmatprep.mubr.bf16.mxu1 %v3682_v57 }
 0x66e   :  { %v3364_v37 = vadd.f32 %v3363_v49, %v9340_v52  ;;  %v3365_v43 = vpop.f32.mrb[199].mxu1  ;;  %4146 = vmatmul.mubr.bf16.gmra.mrb[32].mxu1 %v3681_v18  ;;  %v3627_v42 = vmax.f32 %v3360_v54, 0.0  ;;  %v7459_v18 = vld [vmem:[#allocation16 + $0x54] ss:$8 sps:$4 sm:$0xff]  }
 0x66f   :  { %v3366_v21 = vadd.f32 %v3365_v43, %v9344_v58  ;;  %v3628_v3 = vmax.f32 %v3362_v11, 0.0  ;;  %v7457_v11 = vld [vmem:[#allocation16 + $0x50] ss:$8 sps:$4 sm:$0xff]   ;;  %4689 = vmatprep.subr.bf16.mxu0 %v7459_v18 }
 0x670   :  { %v3630_v15 = vmax.f32 %v3364_v37, 0.0  ;;  %v7462_v37 = vld [vmem:[#allocation16 + $0x64] ss:$8 sps:$4 sm:$0xff]   ;;  %4690 = vmatpush1.bf16.msra.mxu0 %v7457_v11 }
 0x671   :  { %v3631_v60 = vmax.f32 %v3366_v21, 0.0  ;;  %4691 = vmatprep.subr.bf16.mxu0 %v7462_v37 }
 0x672   :  { %v3684_v51 = vpack.c.bf16 %v3630_v15, %v3627_v42 }
 0x673   :  { %v3685_v39 = vpack.c.bf16 %v3631_v60, %v3628_v3  ;;  %v3369_v1 = vpop.f32.mrb[200].mxu1  ;;  %v7460_v3 = vld [vmem:[#allocation16 + $0x60] ss:$8 sps:$4 sm:$0xff]  }
 0x674   :  { %v3370_v7 = vadd.f32 %v3369_v1, %v9340_v52  ;;  %v3371_v0 = vpop.f32.mrb[201].mxu1  ;;  %4692 = vmatpush1.bf16.msra.mxu0 %v7460_v3 }
 0x675   :  { %v3372_v47 = vadd.f32 %v3371_v0, %v9344_v58  ;;  %v3373_v45 = vpop.f32.mrb[202].mxu1  ;;  %4155 = vmatprep.mubr.bf16.mxu1 %v3685_v39  ;;  %v7465_v39 = vld [vmem:[#allocation16 + $0x74] ss:$8 sps:$4 sm:$0xff]  }
 0x676   :  { %v3374_v44 = vadd.f32 %v3373_v45, %v9340_v52  ;;  %v3375_v33 = vpop.f32.mrb[203].mxu1  ;;  %4156 = vmatmul.mubr.bf16.gmra.mrb[36].mxu1 %v3684_v51  ;;  %v3633_v59 = vmax.f32 %v3370_v7, 0.0  ;;  %4693 = vmatprep.subr.bf16.mxu0 %v7465_v39  ;;  %v7481_v39 = vld [vmem:[#allocation16 + $0xd0] ss:$8 sps:$4 sm:$0xff]  }
 0x677   :  { %v3376_v62 = vadd.f32 %v3375_v33, %v9344_v58  ;;  %v3634_v25 = vmax.f32 %v3372_v47, 0.0 }
 0x678   :  { %v3636_v29 = vmax.f32 %v3374_v44, 0.0  ;;  %v7463_v44 = vld [vmem:[#allocation16 + $0x70] ss:$8 sps:$4 sm:$0xff]  }
 0x679   :  { %v3637_v36 = vmax.f32 %v3376_v62, 0.0  ;;  %4694 = vmatpush1.bf16.msra.mxu0 %v7463_v44 }
 0x67a   :  { %v3687_v48 = vpack.c.bf16 %v3636_v29, %v3633_v59  ;;  %4695 = vmatprep.subr.bf16.mxu0 %v7468_v56 }
 0x67b   :  { %v3688_v55 = vpack.c.bf16 %v3637_v36, %v3634_v25  ;;  %v3379_v50 = vpop.f32.mrb[204].mxu1 }
 0x67c   :  { %v3380_v28 = vadd.f32 %v3379_v50, %v9340_v52  ;;  %v3381_v4 = vpop.f32.mrb[205].mxu1 }
 0x67d   :  { %v3382_v26 = vadd.f32 %v3381_v4, %v9344_v58  ;;  %v3383_v34 = vpop.f32.mrb[206].mxu1  ;;  %4165 = vmatprep.mubr.bf16.mxu1 %v3688_v55 }
 0x67e   :  { %v3384_v16 = vadd.f32 %v3383_v34, %v9340_v52  ;;  %v3385_v23 = vpop.f32.mrb[207].mxu1  ;;  %4166 = vmatmul.mubr.bf16.gmra.mrb[40].mxu1 %v3687_v48  ;;  %v3639_v2 = vmax.f32 %v3380_v28, 0.0  ;;  %v7466_v48 = vld [vmem:[#allocation16 + $0x80] ss:$8 sps:$4 sm:$0xff]   ;;  %v7471_v28 = vld [vmem:[#allocation16 + $0x94] ss:$8 sps:$4 sm:$0xff]  }
 0x67f   :  { %v3386_v46 = vadd.f32 %v3385_v23, %v9344_v58  ;;  %v3640_v27 = vmax.f32 %v3382_v26, 0.0  ;;  %4696 = vmatpush1.bf16.msra.mxu0 %v7466_v48 }
 0x680   :  { %v3642_v41 = vmax.f32 %v3384_v16, 0.0  ;;  %4697 = vmatprep.subr.bf16.mxu0 %v7471_v28 }
 0x681   :  { %v3643_v24 = vmax.f32 %v3386_v46, 0.0  ;;  %v7474_v46 = vld [vmem:[#allocation16 + $0xa4] ss:$8 sps:$4 sm:$0xff]  }
 0x682   :  { %v3690_v5 = vpack.c.bf16 %v3642_v41, %v3639_v2 }
 0x683   :  { %v3691_v20 = vpack.c.bf16 %v3643_v24, %v3640_v27  ;;  %v6762_v52 = vpop.f32.mrb[208].mxu1  ;;  %4698 = vmatpush1.bf16.msra.mxu0 %v7469_v19 }
 0x684   :  { %v3431_v22 = vadd.f32 %v6762_v52, %v9413_v30  ;;  %v3422_v32 = vpop.f32.mrb[209].mxu1  ;;  %v7472_v52 = vld [vmem:[#allocation16 + $0xa0] ss:$8 sps:$4 sm:$0xff]   ;;  %4699 = vmatprep.subr.bf16.mxu0 %v7474_v46 }
 0x685   :  { %v3423_v6 = vadd.f32 %v3422_v32, %v9413_v30  ;;  %v6763_v58 = vpop.f32.mrb[210].mxu1  ;;  %4175 = vmatprep.mubr.bf16.mxu1 %v3691_v20 }
 0x686   :  { %v3434_v9 = vadd.f32 %v6763_v58, %v9413_v30  ;;  %v3425_v35 = vpop.f32.mrb[211].mxu1  ;;  %4176 = vmatmul.mubr.bf16.gmra.mrb[44].mxu1 %v3690_v5  ;;  %v3557_v57 = vmax.f32 %v3431_v22, 0.0 }
 0x687   :  { %v3426_v10 = vadd.f32 %v3425_v35, %v9413_v30  ;;  %4218 = vmatprep.mubr.bf16.mxu1 %v8268_v14  ;;  %v3551_v54 = vmax.f32 %v3423_v6, 0.0  ;;  %v7477_v6 = vld [vmem:[#allocation16 + $0xb4] ss:$8 sps:$4 sm:$0xff]   ;;  %4700 = vmatpush1.bf16.msra.mxu0 %v7472_v52 }
 0x688   :  { %v3560_v13 = vmax.f32 %v3434_v9, 0.0  ;;  %4701 = vmatprep.subr.bf16.mxu0 %v7477_v6 }
 0x689   :  { %v3554_v8 = vmax.f32 %v3426_v10, 0.0  ;;  %v7475_v10 = vld [vmem:[#allocation16 + $0xb0] ss:$8 sps:$4 sm:$0xff]  }
 0x68a   :  { %v3650_v49 = vpack.c.bf16 %v3560_v13, %v3557_v57  ;;  %v7480_v57 = vld [vmem:[#allocation16 + $0xc4] ss:$8 sps:$4 sm:$0xff]  }
 0x68b   :  { %v3647_v43 = vpack.c.bf16 %v3554_v8, %v3551_v54  ;;  %v6766_v31 = vpop.f32.mrb[212].mxu1  ;;  %4702 = vmatpush1.bf16.msra.mxu0 %v7475_v10 }
 0x68c   :  { %v3447_v63 = vadd.f32 %v6766_v31, %v9413_v30  ;;  %v3438_v21 = vpop.f32.mrb[213].mxu1  ;;  %4703 = vmatprep.subr.bf16.mxu0 %v7480_v57 }
 0x68d   :  { %v3439_v42 = vadd.f32 %v3438_v21, %v9413_v30  ;;  %v6767_v15 = vpop.f32.mrb[214].mxu1  ;;  %v7483_v21 = vld [vmem:[#allocation16 + $0xd4] ss:$8 sps:$4 sm:$0xff]  }
 0x68e   :  { %v3450_v60 = vadd.f32 %v6767_v15, %v9413_v30  ;;  %v3441_v51 = vpop.f32.mrb[215].mxu1  ;;  %4219 = vmatmul.mubr.bf16.vlgmr.msra.gmra.mrb[240].mxu1 %v3647_v43  ;;  %v3569_v7 = vmax.f32 %v3447_v63, 0.0  ;;  %v7478_v43 = vld [vmem:[#allocation16 + $0xc0] ss:$8 sps:$4 sm:$0xff]  }
 0x68f   :  { %v3442_v1 = vadd.f32 %v3441_v51, %v9413_v30  ;;  %4228 = vmatprep.mubr.bf16.mxu1 %v8268_v14  ;;  %v3563_v47 = vmax.f32 %v3439_v42, 0.0  ;;  %4704 = vmatpush1.bf16.msra.mxu0 %v7478_v43 }
 0x690   :  { %v3572_v0 = vmax.f32 %v3450_v60, 0.0  ;;  %4705 = vmatprep.subr.bf16.mxu0 %v7483_v21 }
 0x691   :  { %v3566_v45 = vmax.f32 %v3442_v1, 0.0 }
 0x692   :  { %v3656_v33 = vpack.c.bf16 %v3572_v0, %v3569_v7  ;;  %v7486_v7 = vld [vmem:[#allocation16 + $0xe4] ss:$8 sps:$4 sm:$0xff]  }
 0x693   :  { %v3653_v53 = vpack.c.bf16 %v3566_v45, %v3563_v47  ;;  %v6770_v62 = vpop.f32.mrb[216].mxu1  ;;  %4706 = vmatpush1.bf16.msra.mxu0 %v7481_v39 }
 0x694   :  { %v3463_v59 = vadd.f32 %v6770_v62, %v9413_v30  ;;  %v3454_v29 = vpop.f32.mrb[217].mxu1  ;;  %4707 = vmatprep.subr.bf16.mxu0 %v7486_v7 }
 0x695   :  { %v3455_v25 = vadd.f32 %v3454_v29, %v9413_v30  ;;  %v6771_v36 = vpop.f32.mrb[218].mxu1 }
 0x696   :  { %v3466_v55 = vadd.f32 %v6771_v36, %v9413_v30  ;;  %v3457_v50 = vpop.f32.mrb[219].mxu1  ;;  %4229 = vmatmul.mubr.bf16.gmra.mrb[244].mxu1 %v3650_v49  ;;  %v3581_v26 = vmax.f32 %v3463_v59, 0.0 }
 0x697   :  { %v3458_v4 = vadd.f32 %v3457_v50, %v9413_v30  ;;  %4238 = vmatprep.mubr.bf16.mxu1 %v8268_v14  ;;  %v3575_v16 = vmax.f32 %v3455_v25, 0.0 }
 0x698   :  { %v3584_v34 = vmax.f32 %v3466_v55, 0.0 }
 0x699   :  { %v3578_v23 = vmax.f32 %v3458_v4, 0.0 }
 0x69a   :  { %v9430_v17 = vpack.c.bf16 %v3584_v34, %v3581_v26 }
 0x69b   :  { %v3659_v2 = vpack.c.bf16 %v3578_v23, %v3575_v16  ;;  %v6774_v41 = vpop.f32.mrb[220].mxu1 }
 0x69c   :  { %v3479_v27 = vadd.f32 %v6774_v41, %v9413_v30  ;;  %v3470_v24 = vpop.f32.mrb[221].mxu1 }
 0x69d   :  { %v3471_v5 = vadd.f32 %v3470_v24, %v9413_v30  ;;  %v6775_v20 = vpop.f32.mrb[222].mxu1 }
 0x69e   :  { %v3482_v22 = vadd.f32 %v6775_v20, %v9413_v30  ;;  %v3473_v32 = vpop.f32.mrb[223].mxu1  ;;  %4239 = vmatmul.mubr.bf16.gmra.mrb[248].mxu1 %v3653_v53  ;;  %v3593_v9 = vmax.f32 %v3479_v27, 0.0  ;;  %v7484_v53 = vld [vmem:[#allocation16 + $0xe0] ss:$8 sps:$4 sm:$0xff]  }
 0x69f   :  { %v3474_v58 = vadd.f32 %v3473_v32, %v9413_v30  ;;  %4248 = vmatprep.mubr.bf16.mxu1 %v8268_v14  ;;  %v3587_v61 = vmax.f32 %v3471_v5, 0.0  ;;  %4708 = vmatpush1.bf16.msra.mxu0 %v7484_v53  ;;  %v7495_v53 = vld [vmem:[#allocation17 + $0x14] ss:$8 sps:$4 sm:$0xff]  }
 0x6a0   :  { %v3596_v35 = vmax.f32 %v3482_v22, 0.0 }
 0x6a1   :  { %v3590_v12 = vmax.f32 %v3474_v58, 0.0 }
 0x6a2   :  { %v9437_v18 = vpack.c.bf16 %v3596_v35, %v3593_v9 }
 0x6a3   :  { %v9439_v13 = vpack.c.bf16 %v3590_v12, %v3587_v61  ;;  %v6778_v54 = vpop.f32.mrb[224].mxu1 }
 0x6a4   :  { %v3495_v8 = vadd.f32 %v6778_v54, %v9413_v30  ;;  %v3486_v11 = vpop.f32.mrb[225].mxu1 }
 0x6a5   :  { %v3487_v49 = vadd.f32 %v3486_v11, %v9413_v30  ;;  %v6779_v37 = vpop.f32.mrb[226].mxu1 }
 0x6a6   :  { %v3498_v31 = vadd.f32 %v6779_v37, %v9413_v30  ;;  %v3489_v63 = vpop.f32.mrb[227].mxu1  ;;  %4249 = vmatmul.mubr.bf16.gmra.mrb[252].mxu1 %v3656_v33  ;;  %v3605_v15 = vmax.f32 %v3495_v8, 0.0 }
 0x6a7   :  { %v3490_v42 = vadd.f32 %v3489_v63, %v9413_v30  ;;  %4258 = vmatprep.mubr.bf16.mxu1 %v8268_v14  ;;  %v3599_v60 = vmax.f32 %v3487_v49, 0.0  ;;  %v3741_v49 = vld [vmem:[%s9820_s13] sm:$0x3] }
 0x6a8   :  { %v3608_v3 = vmax.f32 %v3498_v31, 0.0  ;;  %v9476_v37 = vrot.slane %v3741_v49, %v8552_v38  ;;  %v9479_v43 = vrot.slane %v3741_v49, %v8559_v40 }
 0x6a9   :  { %v3602_v51 = vmax.f32 %v3490_v42, 0.0 }
 0x6aa   :  { %v3674_v1 = vpack.c.bf16 %v3608_v3, %v3605_v15 }
 0x6ab   :  { %v3671_v0 = vpack.c.bf16 %v3602_v51, %v3599_v60  ;;  %v6782_v47 = vpop.f32.mrb[228].mxu1 }
 0x6ac   :  { %v3511_v45 = vadd.f32 %v6782_v47, %v9413_v30  ;;  %v3502_v44 = vpop.f32.mrb[229].mxu1 }
 0x6ad   :  { %v3503_v33 = vadd.f32 %v3502_v44, %v9413_v30  ;;  %v6783_v56 = vpop.f32.mrb[230].mxu1  ;;  %v7490_v44 = vld [vmem:[#allocation17] ss:$8 sps:$4 sm:$0xff]  }
 0x6ae   :  { %v3514_v62 = vadd.f32 %v6783_v56, %v9413_v30  ;;  %v3505_v59 = vpop.f32.mrb[231].mxu1  ;;  %4259 = vmatmul.mubr.bf16.gmra.mrb[0].mxu1 %v3659_v2  ;;  %v3617_v25 = vmax.f32 %v3511_v45, 0.0 }
 0x6af   :  { %v3506_v29 = vadd.f32 %v3505_v59, %v9413_v30  ;;  %4268 = vmatprep.mubr.bf16.mxu1 %v8268_v14  ;;  %v3611_v48 = vmax.f32 %v3503_v33, 0.0 }
 0x6b0   :  { %v3620_v36 = vmax.f32 %v3514_v62, 0.0 }
 0x6b1   :  { %v3614_v55 = vmax.f32 %v3506_v29, 0.0 }
 0x6b2   :  { %v3680_v50 = vpack.c.bf16 %v3620_v36, %v3617_v25 }
 0x6b3   :  { %v3677_v28 = vpack.c.bf16 %v3614_v55, %v3611_v48  ;;  %v6786_v4 = vpop.f32.mrb[232].mxu1  ;;  %v7493_v48 = vld [vmem:[#allocation17 + $0x10] ss:$8 sps:$4 sm:$0xff]  }
 0x6b4   :  { %v3527_v26 = vadd.f32 %v6786_v4, %v9413_v30  ;;  %v3518_v34 = vpop.f32.mrb[233].mxu1 }
 0x6b5   :  { %v3519_v16 = vadd.f32 %v3518_v34, %v9413_v30  ;;  %v6787_v23 = vpop.f32.mrb[234].mxu1 }
 0x6b6   :  { %v3530_v19 = vadd.f32 %v6787_v23, %v9413_v30  ;;  %v3521_v46 = vpop.f32.mrb[235].mxu1  ;;  %4269 = vmatmul.mubr.bf16.gmra.mrb[4].mxu1 %v9430_v17  ;;  %v3629_v41 = vmax.f32 %v3527_v26, 0.0 }
 0x6b7   :  { %v3522_v2 = vadd.f32 %v3521_v46, %v9413_v30  ;;  %4278 = vmatprep.mubr.bf16.mxu1 %v8268_v14  ;;  %v3623_v24 = vmax.f32 %v3519_v16, 0.0 }
 0x6b8   :  { %v3632_v27 = vmax.f32 %v3530_v19, 0.0  ;;  %v7496_v19 = vld [vmem:[#allocation17 + $0x20] ss:$8 sps:$4 sm:$0xff]  }
 0x6b9   :  { %v3626_v5 = vmax.f32 %v3522_v2, 0.0 }
 0x6ba   :  { %v3686_v20 = vpack.c.bf16 %v3632_v27, %v3629_v41  ;;  %v7501_v41 = vld [vmem:[#allocation17 + $0x34] ss:$8 sps:$4 sm:$0xff]  }
 0x6bb   :  { %v3683_v52 = vpack.c.bf16 %v3626_v5, %v3623_v24  ;;  %v6790_v22 = vpop.f32.mrb[236].mxu1 }
 0x6bc   :  { %v3543_v32 = vadd.f32 %v6790_v22, %v9413_v30  ;;  %v3534_v6 = vpop.f32.mrb[237].mxu1  ;;  %v7499_v22 = vld [vmem:[#allocation17 + $0x30] ss:$8 sps:$4 sm:$0xff]  }
 0x6bd   :  { %v3535_v58 = vadd.f32 %v3534_v6, %v9413_v30  ;;  %v6791_v9 = vpop.f32.mrb[238].mxu1 }
 0x6be   :  { %v3546_v35 = vadd.f32 %v6791_v9, %v9413_v30  ;;  %v3537_v17 = vpop.f32.mrb[239].mxu1  ;;  %4279 = vmatmul.mubr.bf16.gmra.mrb[8].mxu1 %v9439_v13  ;;  %v3641_v12 = vmax.f32 %v3543_v32, 0.0  ;;  %v7487_v13 = vld [vmem:[#allocation16 + $0xf0] ss:$8 sps:$4 sm:$0xff]  }
 0x6bf   :  { %v3538_v61 = vadd.f32 %v3537_v17, %v9413_v30  ;;  %4288 = vmatprep.mubr.bf16.mxu1 %v8268_v14  ;;  %v3635_v57 = vmax.f32 %v3535_v58, 0.0  ;;  %v7489_v30 = vld [vmem:[#allocation16 + $0xf4] ss:$8 sps:$4 sm:$0xff]   ;;  %v7504_v58 = vld [vmem:[#allocation17 + $0x44] ss:$8 sps:$4 sm:$0xff]  }
 0x6c0   :  { %v3644_v10 = vmax.f32 %v3546_v35, 0.0  ;;  %4709 = vmatprep.subr.bf16.mxu0 %v7489_v30 }
 0x6c1   :  { %v3638_v54 = vmax.f32 %v3538_v61, 0.0  ;;  %4710 = vmatpush1.bf16.msra.mxu0 %v7487_v13 }
 0x6c2   :  { %v3692_v8 = vpack.c.bf16 %v3644_v10, %v3641_v12  ;;  %v7502_v10 = vld [vmem:[#allocation17 + $0x40] ss:$8 sps:$4 sm:$0xff]  }
 0x6c3   :  { %v3689_v11 = vpack.c.bf16 %v3638_v54, %v3635_v57 }
 0x6c6   :  { %4289 = vmatmul.mubr.bf16.gmra.mrb[12].mxu1 %v9437_v18  ;;  %v7492_v18 = vld [vmem:[#allocation17 + $0x4] ss:$8 sps:$4 sm:$0xff]  }
 0x6c7   :  { %4298 = vmatprep.mubr.bf16.mxu1 %v8268_v14  ;;  %5172 = vmatprep.subr.bf16.mxu0 %v7492_v18 }
 0x6ce   :  { %4299 = vmatmul.mubr.bf16.gmra.mrb[16].mxu1 %v3671_v0 }
 0x6cf   :  { %4308 = vmatprep.mubr.bf16.mxu1 %v8268_v14 }
 0x6d6   :  { %4309 = vmatmul.mubr.bf16.gmra.mrb[20].mxu1 %v3674_v1 }
 0x6d7   :  { %4318 = vmatprep.mubr.bf16.mxu1 %v8268_v14 }
 0x6de   :  { %4319 = vmatmul.mubr.bf16.gmra.mrb[24].mxu1 %v3677_v28  ;;  %v7498_v28 = vld [vmem:[#allocation17 + $0x24] ss:$8 sps:$4 sm:$0xff]  }
 0x6df   :  { %4328 = vmatprep.mubr.bf16.mxu1 %v8268_v14 }
 0x6e6   :  { %4329 = vmatmul.mubr.bf16.gmra.mrb[28].mxu1 %v3680_v50 }
 0x6e7   :  { %4338 = vmatprep.mubr.bf16.mxu1 %v8268_v14 }
 0x6ee   :  { %4339 = vmatmul.mubr.bf16.gmra.mrb[32].mxu1 %v3683_v52 }
 0x6ef   :  { %4348 = vmatprep.mubr.bf16.mxu1 %v8268_v14 }
 0x6f6   :  { %4349 = vmatmul.mubr.bf16.gmra.mrb[36].mxu1 %v3686_v20 }
 0x6f7   :  { %4358 = vmatprep.mubr.bf16.mxu1 %v8268_v14 }
 0x6fe   :  { %4359 = vmatmul.mubr.bf16.gmra.mrb[40].mxu1 %v3689_v11 }
 0x6ff   :  { %4368 = vmatprep.mubr.bf16.mxu1 %v8268_v14 }
 0x706   :  { %4369 = vmatmul.mubr.bf16.gmra.mrb[44].mxu1 %v3692_v8  ;;  %v7507_v8 = vld [vmem:[#allocation17 + $0x54] ss:$8 sps:$4 sm:$0xff]  }
 0x761   :  { %v4220_v31 = vpop.f32.mrb[240].mxu1 }
 0x762   :  { %v6888_v63 = vadd.f32 %v4220_v31, %v9476_v37  ;;  %v4222_v21 = vpop.f32.mrb[241].mxu1  ;;  %v7505_v31 = vld [vmem:[#allocation17 + $0x50] ss:$8 sps:$4 sm:$0xff]  }
 0x763   :  { %v6889_v42 = vadd.f32 %v4222_v21, %v9479_v43  ;;  %v4224_v14 = vpop.f32.mrb[242].mxu1 }
 0x764   :  { %v6890_v15 = vadd.f32 %v4224_v14, %v9476_v37  ;;  %v4226_v3 = vpop.f32.mrb[243].mxu1  ;;  %v4379_v51 = vmax.f32 %v6888_v63, 0.0 }
 0x765   :  { %v6891_v60 = vadd.f32 %v4226_v3, %v9479_v43  ;;  %v4380_v1 = vmax.f32 %v6889_v42, 0.0  ;;  %v7510_v42 = vld [vmem:[#allocation17 + $0x64] ss:$8 sps:$4 sm:$0xff]  }
 0x766   :  { %v4381_v39 = vmax.f32 %v6890_v15, 0.0 }
 0x767   :  { %v4382_v7 = vmax.f32 %v6891_v60, 0.0 }
 0x768   :  { %v4443_v0 = vpack.c.bf16 %v4381_v39, %v4379_v51  ;;  %v7508_v39 = vld [vmem:[#allocation17 + $0x60] ss:$8 sps:$4 sm:$0xff]  }
 0x769   :  { %v4444_v47 = vpack.c.bf16 %v4382_v7, %v4380_v1  ;;  %v4230_v45 = vpop.f32.mrb[244].mxu1 }
 0x76a   :  { %v6892_v33 = vadd.f32 %v4230_v45, %v9476_v37  ;;  %v4232_v56 = vpop.f32.mrb[245].mxu1 }
 0x76b   :  { %v6893_v62 = vadd.f32 %v4232_v56, %v9479_v43  ;;  %v4234_v59 = vpop.f32.mrb[246].mxu1  ;;  %4711 = vmatprep.mubr.bf16.mxu0 %v4444_v47 }
 0x76c   :  { %v6894_v29 = vadd.f32 %v4234_v59, %v9476_v37  ;;  %v4236_v25 = vpop.f32.mrb[247].mxu1  ;;  %4712 = vmatmul.mubr.bf16.vlgmr.msra.gmra.mrb[176].mxu0 %v4443_v0  ;;  %v4383_v55 = vmax.f32 %v6892_v33, 0.0  ;;  %v7513_v0 = vld [vmem:[#allocation17 + $0x74] ss:$8 sps:$4 sm:$0xff]  }
 0x76d   :  { %v6895_v36 = vadd.f32 %v4236_v25, %v9479_v43  ;;  %5173 = vmatpush1.bf16.msra.mxu0 %v7490_v44  ;;  %v4384_v4 = vmax.f32 %v6893_v62, 0.0 }
 0x76e   :  { %v4385_v50 = vmax.f32 %v6894_v29, 0.0  ;;  %5174 = vmatprep.subr.bf16.mxu0 %v7495_v53  ;;  %v7511_v53 = vld [vmem:[#allocation17 + $0x70] ss:$8 sps:$4 sm:$0xff]   ;;  %v7516_v29 = vld [vmem:[#allocation17 + $0x84] ss:$8 sps:$4 sm:$0xff]  }
 0x76f   :  { %v4386_v26 = vmax.f32 %v6895_v36, 0.0 }
 0x770   :  { %v4445_v34 = vpack.c.bf16 %v4385_v50, %v4383_v55 }
 0x771   :  { %v4446_v16 = vpack.c.bf16 %v4386_v26, %v4384_v4  ;;  %v4240_v23 = vpop.f32.mrb[248].mxu1  ;;  %5175 = vmatpush1.bf16.msra.mxu0 %v7493_v48 }
 0x772   :  { %v6896_v46 = vadd.f32 %v4240_v23, %v9476_v37  ;;  %v4242_v2 = vpop.f32.mrb[249].mxu1  ;;  %5176 = vmatprep.subr.bf16.mxu0 %v7498_v28  ;;  %v7514_v28 = vld [vmem:[#allocation17 + $0x80] ss:$8 sps:$4 sm:$0xff]  }
 0x773   :  { %v6897_v27 = vadd.f32 %v4242_v2, %v9479_v43  ;;  %v4244_v24 = vpop.f32.mrb[250].mxu1  ;;  %4721 = vmatprep.mubr.bf16.mxu0 %v4446_v16 }
 0x774   :  { %v6898_v5 = vadd.f32 %v4244_v24, %v9476_v37  ;;  %v4246_v20 = vpop.f32.mrb[251].mxu1  ;;  %4722 = vmatmul.mubr.bf16.gmra.mrb[180].mxu0 %v4445_v34  ;;  %v4387_v32 = vmax.f32 %v6896_v46, 0.0  ;;  %v7519_v34 = vld [vmem:[#allocation17 + $0x94] ss:$8 sps:$4 sm:$0xff]  }
 0x775   :  { %v6899_v52 = vadd.f32 %v4246_v20, %v9479_v43  ;;  %5177 = vmatpush1.bf16.msra.mxu0 %v7496_v19  ;;  %v4388_v9 = vmax.f32 %v6897_v27, 0.0 }
 0x776   :  { %v4389_v6 = vmax.f32 %v6898_v5, 0.0  ;;  %5178 = vmatprep.subr.bf16.mxu0 %v7501_v41  ;;  %v7517_v41 = vld [vmem:[#allocation17 + $0x90] ss:$8 sps:$4 sm:$0xff]   ;;  %v7522_v5 = vld [vmem:[#allocation17 + $0xa4] ss:$8 sps:$4 sm:$0xff]  }
 0x777   :  { %v4390_v35 = vmax.f32 %v6899_v52, 0.0 }
 0x778   :  { %v4447_v17 = vpack.c.bf16 %v4389_v6, %v4387_v32 }
 0x779   :  { %v4448_v61 = vpack.c.bf16 %v4390_v35, %v4388_v9  ;;  %v4250_v12 = vpop.f32.mrb[252].mxu1  ;;  %5179 = vmatpush1.bf16.msra.mxu0 %v7499_v22 }
 0x77a   :  { %v6900_v57 = vadd.f32 %v4250_v12, %v9476_v37  ;;  %v4252_v54 = vpop.f32.mrb[253].mxu1  ;;  %5180 = vmatprep.subr.bf16.mxu0 %v7504_v58  ;;  %v7520_v58 = vld [vmem:[#allocation17 + $0xa0] ss:$8 sps:$4 sm:$0xff]  }
 0x77b   :  { %v6901_v11 = vadd.f32 %v4252_v54, %v9479_v43  ;;  %v4254_v30 = vpop.f32.mrb[254].mxu1  ;;  %4731 = vmatprep.mubr.bf16.mxu0 %v4448_v61 }
 0x77c   :  { %v6902_v13 = vadd.f32 %v4254_v30, %v9476_v37  ;;  %v4256_v18 = vpop.f32.mrb[255].mxu1  ;;  %4732 = vmatmul.mubr.bf16.gmra.mrb[184].mxu0 %v4447_v17  ;;  %v4391_v63 = vmax.f32 %v6900_v57, 0.0  ;;  %v7525_v17 = vld [vmem:[#allocation17 + $0xb4] ss:$8 sps:$4 sm:$0xff]  }
 0x77d   :  { %v6903_v49 = vadd.f32 %v4256_v18, %v9479_v43  ;;  %5181 = vmatpush1.bf16.msra.mxu0 %v7502_v10  ;;  %v4392_v14 = vmax.f32 %v6901_v11, 0.0 }
 0x77e   :  { %v4393_v21 = vmax.f32 %v6902_v13, 0.0  ;;  %5182 = vmatprep.subr.bf16.mxu0 %v7507_v8  ;;  %v7523_v8 = vld [vmem:[#allocation17 + $0xb0] ss:$8 sps:$4 sm:$0xff]   ;;  %v7528_v13 = vld [vmem:[#allocation17 + $0xc4] ss:$8 sps:$4 sm:$0xff]  }
 0x77f   :  { %v4394_v15 = vmax.f32 %v6903_v49, 0.0 }
 0x780   :  { %v4449_v3 = vpack.c.bf16 %v4393_v21, %v4391_v63 }
 0x781   :  { %v4450_v60 = vpack.c.bf16 %v4394_v15, %v4392_v14  ;;  %v4260_v51 = vpop.f32.mrb[0].mxu1  ;;  %5183 = vmatpush1.bf16.msra.mxu0 %v7505_v31 }
 0x782   :  { %v6904_v1 = vadd.f32 %v4260_v51, %v9476_v37  ;;  %v4262_v7 = vpop.f32.mrb[1].mxu1  ;;  %5184 = vmatprep.subr.bf16.mxu0 %v7510_v42  ;;  %v7526_v42 = vld [vmem:[#allocation17 + $0xc0] ss:$8 sps:$4 sm:$0xff]  }
 0x783   :  { %v6905_v47 = vadd.f32 %v4262_v7, %v9479_v43  ;;  %v4264_v45 = vpop.f32.mrb[2].mxu1  ;;  %4741 = vmatprep.mubr.bf16.mxu0 %v4450_v60 }
 0x784   :  { %v6906_v44 = vadd.f32 %v4264_v45, %v9476_v37  ;;  %v4266_v33 = vpop.f32.mrb[3].mxu1  ;;  %4742 = vmatmul.mubr.bf16.gmra.mrb[188].mxu0 %v4449_v3  ;;  %v4395_v62 = vmax.f32 %v6904_v1, 0.0  ;;  %v7531_v3 = vld [vmem:[#allocation17 + $0xd4] ss:$8 sps:$4 sm:$0xff]  }
 0x785   :  { %v6907_v56 = vadd.f32 %v4266_v33, %v9479_v43  ;;  %5185 = vmatpush1.bf16.msra.mxu0 %v7508_v39  ;;  %v4396_v25 = vmax.f32 %v6905_v47, 0.0 }
 0x786   :  { %v4397_v59 = vmax.f32 %v6906_v44, 0.0  ;;  %5186 = vmatprep.subr.bf16.mxu0 %v7513_v0  ;;  %v7529_v0 = vld [vmem:[#allocation17 + $0xd0] ss:$8 sps:$4 sm:$0xff]   ;;  %v7534_v44 = vld [vmem:[#allocation17 + $0xe4] ss:$8 sps:$4 sm:$0xff]  }
 0x787   :  { %v4398_v36 = vmax.f32 %v6907_v56, 0.0 }
 0x788   :  { %v4451_v48 = vpack.c.bf16 %v4397_v59, %v4395_v62 }
 0x789   :  { %v4452_v55 = vpack.c.bf16 %v4398_v36, %v4396_v25  ;;  %v4270_v50 = vpop.f32.mrb[4].mxu1  ;;  %5187 = vmatpush1.bf16.msra.mxu0 %v7511_v53 }
 0x78a   :  { %v6908_v4 = vadd.f32 %v4270_v50, %v9476_v37  ;;  %v4272_v26 = vpop.f32.mrb[5].mxu1  ;;  %5188 = vmatprep.subr.bf16.mxu0 %v7516_v29  ;;  %v7532_v29 = vld [vmem:[#allocation17 + $0xe0] ss:$8 sps:$4 sm:$0xff]  }
 0x78b   :  { %v6909_v16 = vadd.f32 %v4272_v26, %v9479_v43  ;;  %v4274_v23 = vpop.f32.mrb[6].mxu1  ;;  %4751 = vmatprep.mubr.bf16.mxu0 %v4452_v55 }
 0x78c   :  { %v6910_v19 = vadd.f32 %v4274_v23, %v9476_v37  ;;  %v4276_v46 = vpop.f32.mrb[7].mxu1  ;;  %4752 = vmatmul.mubr.bf16.gmra.mrb[192].mxu0 %v4451_v48  ;;  %v4399_v27 = vmax.f32 %v6908_v4, 0.0 }
 0x78d   :  { %v6911_v2 = vadd.f32 %v4276_v46, %v9479_v43  ;;  %5189 = vmatpush1.bf16.msra.mxu0 %v7514_v28  ;;  %v4400_v20 = vmax.f32 %v6909_v16, 0.0 }
 0x78e   :  { %v4401_v24 = vmax.f32 %v6910_v19, 0.0  ;;  %5190 = vmatprep.subr.bf16.mxu0 %v7519_v34 }
 0x78f   :  { %v4402_v52 = vmax.f32 %v6911_v2, 0.0 }
 0x790   :  { %v4453_v22 = vpack.c.bf16 %v4401_v24, %v4399_v27 }
 0x791   :  { %v4454_v32 = vpack.c.bf16 %v4402_v52, %v4400_v20  ;;  %v4280_v6 = vpop.f32.mrb[8].mxu1  ;;  %5191 = vmatpush1.bf16.msra.mxu0 %v7517_v41 }
 0x792   :  { %v6912_v9 = vadd.f32 %v4280_v6, %v9476_v37  ;;  %v4282_v35 = vpop.f32.mrb[9].mxu1  ;;  %5192 = vmatprep.subr.bf16.mxu0 %v7522_v5 }
 0x793   :  { %v6913_v61 = vadd.f32 %v4282_v35, %v9479_v43  ;;  %v4284_v12 = vpop.f32.mrb[10].mxu1  ;;  %4761 = vmatprep.mubr.bf16.mxu0 %v4454_v32 }
 0x794   :  { %v6914_v10 = vadd.f32 %v4284_v12, %v9476_v37  ;;  %v4286_v57 = vpop.f32.mrb[11].mxu1  ;;  %4762 = vmatmul.mubr.bf16.gmra.mrb[196].mxu0 %v4453_v22  ;;  %v4403_v11 = vmax.f32 %v6912_v9, 0.0 }
 0x795   :  { %v6915_v54 = vadd.f32 %v4286_v57, %v9479_v43  ;;  %5193 = vmatpush1.bf16.msra.mxu0 %v7520_v58  ;;  %v4404_v18 = vmax.f32 %v6913_v61, 0.0 }
 0x796   :  { %v4405_v30 = vmax.f32 %v6914_v10, 0.0  ;;  %5194 = vmatprep.subr.bf16.mxu0 %v7525_v17 }
 0x797   :  { %v4406_v49 = vmax.f32 %v6915_v54, 0.0 }
 0x798   :  { %v4455_v31 = vpack.c.bf16 %v4405_v30, %v4403_v11 }
 0x799   :  { %v4456_v63 = vpack.c.bf16 %v4406_v49, %v4404_v18  ;;  %v4290_v21 = vpop.f32.mrb[12].mxu1  ;;  %5195 = vmatpush1.bf16.msra.mxu0 %v7523_v8 }
 0x79a   :  { %v6916_v14 = vadd.f32 %v4290_v21, %v9476_v37  ;;  %v4292_v15 = vpop.f32.mrb[13].mxu1  ;;  %5196 = vmatprep.subr.bf16.mxu0 %v7528_v13 }
 0x79b   :  { %v6917_v60 = vadd.f32 %v4292_v15, %v9479_v43  ;;  %v4294_v51 = vpop.f32.mrb[14].mxu1  ;;  %4771 = vmatprep.mubr.bf16.mxu0 %v4456_v63 }
 0x79c   :  { %v6918_v39 = vadd.f32 %v4294_v51, %v9476_v37  ;;  %v4296_v1 = vpop.f32.mrb[15].mxu1  ;;  %4772 = vmatmul.mubr.bf16.gmra.mrb[200].mxu0 %v4455_v31  ;;  %v4407_v47 = vmax.f32 %v6916_v14, 0.0 }
 0x79d   :  { %v6919_v7 = vadd.f32 %v4296_v1, %v9479_v43  ;;  %5197 = vmatpush1.bf16.msra.mxu0 %v7526_v42  ;;  %v4408_v33 = vmax.f32 %v6917_v60, 0.0 }
 0x79e   :  { %v4409_v45 = vmax.f32 %v6918_v39, 0.0  ;;  %5198 = vmatprep.subr.bf16.mxu0 %v7531_v3 }
 0x79f   :  { %v4410_v56 = vmax.f32 %v6919_v7, 0.0 }
 0x7a0   :  { %v4457_v53 = vpack.c.bf16 %v4409_v45, %v4407_v47 }
 0x7a1   :  { %v4458_v62 = vpack.c.bf16 %v4410_v56, %v4408_v33  ;;  %v4300_v59 = vpop.f32.mrb[16].mxu1  ;;  %5199 = vmatpush1.bf16.msra.mxu0 %v7529_v0 }
 0x7a2   :  { %v6920_v25 = vadd.f32 %v4300_v59, %v9476_v37  ;;  %v4302_v36 = vpop.f32.mrb[17].mxu1  ;;  %5200 = vmatprep.subr.bf16.mxu0 %v7534_v44 }
 0x7a3   :  { %v6921_v48 = vadd.f32 %v4302_v36, %v9479_v43  ;;  %v4304_v55 = vpop.f32.mrb[18].mxu1  ;;  %4781 = vmatprep.mubr.bf16.mxu0 %v4458_v62 }
 0x7a4   :  { %v6922_v50 = vadd.f32 %v4304_v55, %v9476_v37  ;;  %v4306_v28 = vpop.f32.mrb[19].mxu1  ;;  %4782 = vmatmul.mubr.bf16.gmra.mrb[204].mxu0 %v4457_v53  ;;  %v4411_v26 = vmax.f32 %v6920_v25, 0.0 }
 0x7a5   :  { %v6923_v4 = vadd.f32 %v4306_v28, %v9479_v43  ;;  %5201 = vmatpush1.bf16.msra.mxu0 %v7532_v29  ;;  %v4412_v16 = vmax.f32 %v6921_v48, 0.0  ;;  %v7537_v48 = vld [vmem:[#allocation17 + $0xf4] ss:$8 sps:$4 sm:$0xff]  }
 0x7a6   :  { %v4413_v34 = vmax.f32 %v6922_v50, 0.0  ;;  %v7535_v50 = vld [vmem:[#allocation17 + $0xf0] ss:$8 sps:$4 sm:$0xff]   ;;  %5202 = vmatprep.subr.bf16.mxu0 %v7537_v48 }
 0x7a7   :  { %v4414_v23 = vmax.f32 %v6923_v4, 0.0 }
 0x7a8   :  { %v4459_v19 = vpack.c.bf16 %v4413_v34, %v4411_v26 }
 0x7a9   :  { %v4460_v46 = vpack.c.bf16 %v4414_v23, %v4412_v16  ;;  %v4310_v2 = vpop.f32.mrb[20].mxu1  ;;  %5203 = vmatpush1.bf16.msra.mxu0 %v7535_v50 }
 0x7aa   :  { %v6924_v41 = vadd.f32 %v4310_v2, %v9476_v37  ;;  %v4312_v27 = vpop.f32.mrb[21].mxu1 }
 0x7ab   :  { %v6925_v24 = vadd.f32 %v4312_v27, %v9479_v43  ;;  %v4314_v5 = vpop.f32.mrb[22].mxu1  ;;  %4791 = vmatprep.mubr.bf16.mxu0 %v4460_v46 }
 0x7ac   :  { %v6926_v20 = vadd.f32 %v4314_v5, %v9476_v37  ;;  %v4316_v52 = vpop.f32.mrb[23].mxu1  ;;  %4792 = vmatmul.mubr.bf16.gmra.mrb[208].mxu0 %v4459_v19  ;;  %v4415_v32 = vmax.f32 %v6924_v41, 0.0 }
 0x7ad   :  { %v6927_v22 = vadd.f32 %v4316_v52, %v9479_v43  ;;  %v4416_v58 = vmax.f32 %v6925_v24, 0.0 }
 0x7ae   :  { %v4417_v6 = vmax.f32 %v6926_v20, 0.0 }
 0x7af   :  { %v4418_v9 = vmax.f32 %v6927_v22, 0.0 }
 0x7b0   :  { %v4461_v35 = vpack.c.bf16 %v4417_v6, %v4415_v32 }
 0x7b1   :  { %v4462_v17 = vpack.c.bf16 %v4418_v9, %v4416_v58  ;;  %v4320_v61 = vpop.f32.mrb[24].mxu1 }
 0x7b2   :  { %v6928_v12 = vadd.f32 %v4320_v61, %v9476_v37  ;;  %v4322_v10 = vpop.f32.mrb[25].mxu1 }
 0x7b3   :  { %v6929_v57 = vadd.f32 %v4322_v10, %v9479_v43  ;;  %v4324_v54 = vpop.f32.mrb[26].mxu1  ;;  %4801 = vmatprep.mubr.bf16.mxu0 %v4462_v17 }
 0x7b4   :  { %v6930_v8 = vadd.f32 %v4324_v54, %v9476_v37  ;;  %v4326_v11 = vpop.f32.mrb[27].mxu1  ;;  %4802 = vmatmul.mubr.bf16.gmra.mrb[212].mxu0 %v4461_v35  ;;  %v4419_v13 = vmax.f32 %v6928_v12, 0.0 }
 0x7b5   :  { %v6931_v30 = vadd.f32 %v4326_v11, %v9479_v43  ;;  %v4420_v49 = vmax.f32 %v6929_v57, 0.0 }
 0x7b6   :  { %v4421_v18 = vmax.f32 %v6930_v8, 0.0 }
 0x7b7   :  { %v4422_v31 = vmax.f32 %v6931_v30, 0.0 }
 0x7b8   :  { %v4463_v63 = vpack.c.bf16 %v4421_v18, %v4419_v13 }
 0x7b9   :  { %v4464_v21 = vpack.c.bf16 %v4422_v31, %v4420_v49  ;;  %v4330_v42 = vpop.f32.mrb[28].mxu1 }
 0x7ba   :  { %v6932_v14 = vadd.f32 %v4330_v42, %v9476_v37  ;;  %v4332_v15 = vpop.f32.mrb[29].mxu1 }
 0x7bb   :  { %v6933_v3 = vadd.f32 %v4332_v15, %v9479_v43  ;;  %v4334_v60 = vpop.f32.mrb[30].mxu1  ;;  %4811 = vmatprep.mubr.bf16.mxu0 %v4464_v21 }
 0x7bc   :  { %v6934_v51 = vadd.f32 %v4334_v60, %v9476_v37  ;;  %v4336_v39 = vpop.f32.mrb[31].mxu1  ;;  %4812 = vmatmul.mubr.bf16.gmra.mrb[216].mxu0 %v4463_v63  ;;  %v4423_v7 = vmax.f32 %v6932_v14, 0.0 }
 0x7bd   :  { %v6935_v1 = vadd.f32 %v4336_v39, %v9479_v43  ;;  %v4424_v47 = vmax.f32 %v6933_v3, 0.0 }
 0x7be   :  { %v4425_v0 = vmax.f32 %v6934_v51, 0.0 }
 0x7bf   :  { %v4426_v45 = vmax.f32 %v6935_v1, 0.0 }
 0x7c0   :  { %v4465_v44 = vpack.c.bf16 %v4425_v0, %v4423_v7 }
 0x7c1   :  { %v4466_v33 = vpack.c.bf16 %v4426_v45, %v4424_v47  ;;  %v4340_v56 = vpop.f32.mrb[32].mxu1 }
 0x7c2   :  { %v6936_v53 = vadd.f32 %v4340_v56, %v9476_v37  ;;  %v4342_v62 = vpop.f32.mrb[33].mxu1 }
 0x7c3   :  { %v6937_v59 = vadd.f32 %v4342_v62, %v9479_v43  ;;  %v4344_v29 = vpop.f32.mrb[34].mxu1  ;;  %4821 = vmatprep.mubr.bf16.mxu0 %v4466_v33 }
 0x7c4   :  { %v6938_v25 = vadd.f32 %v4344_v29, %v9476_v37  ;;  %v4346_v36 = vpop.f32.mrb[35].mxu1  ;;  %4822 = vmatmul.mubr.bf16.gmra.mrb[220].mxu0 %v4465_v44  ;;  %v4427_v28 = vmax.f32 %v6936_v53, 0.0  ;;  %v4507_v44 = vld [vmem:[%s9822_s15] sm:$0x3] }
 0x7c5   :  { %v6939_v55 = vadd.f32 %v4346_v36, %v9479_v43  ;;  %v4428_v26 = vmax.f32 %v6937_v59, 0.0  ;;  %v9549_v33 = vrot.slane %v4507_v44, %v8552_v38 }
 0x7c6   :  { %v4429_v4 = vmax.f32 %v6938_v25, 0.0 }
 0x7c7   :  { %v4430_v34 = vmax.f32 %v6939_v55, 0.0 }
 0x7c8   :  { %v4467_v16 = vpack.c.bf16 %v4429_v4, %v4427_v28 }
 0x7c9   :  { %v4468_v23 = vpack.c.bf16 %v4430_v34, %v4428_v26  ;;  %v4350_v19 = vpop.f32.mrb[36].mxu1 }
 0x7ca   :  { %v6940_v46 = vadd.f32 %v4350_v19, %v9476_v37  ;;  %v4352_v2 = vpop.f32.mrb[37].mxu1 }
 0x7cb   :  { %v6941_v41 = vadd.f32 %v4352_v2, %v9479_v43  ;;  %v4354_v27 = vpop.f32.mrb[38].mxu1  ;;  %4831 = vmatprep.mubr.bf16.mxu0 %v4468_v23 }
 0x7cc   :  { %v6942_v24 = vadd.f32 %v4354_v27, %v9476_v37  ;;  %v4356_v5 = vpop.f32.mrb[39].mxu1  ;;  %4832 = vmatmul.mubr.bf16.gmra.mrb[224].mxu0 %v4467_v16  ;;  %v4431_v52 = vmax.f32 %v6940_v46, 0.0 }
 0x7cd   :  { %v6943_v20 = vadd.f32 %v4356_v5, %v9479_v43  ;;  %v4432_v32 = vmax.f32 %v6941_v41, 0.0 }
 0x7ce   :  { %v4433_v22 = vmax.f32 %v6942_v24, 0.0 }
 0x7cf   :  { %v4434_v6 = vmax.f32 %v6943_v20, 0.0 }
 0x7d0   :  { %v4469_v58 = vpack.c.bf16 %v4433_v22, %v4431_v52 }
 0x7d1   :  { %v4470_v9 = vpack.c.bf16 %v4434_v6, %v4432_v32  ;;  %v4360_v35 = vpop.f32.mrb[40].mxu1 }
 0x7d2   :  { %v6944_v17 = vadd.f32 %v4360_v35, %v9476_v37  ;;  %v4362_v61 = vpop.f32.mrb[41].mxu1 }
 0x7d3   :  { %v6945_v12 = vadd.f32 %v4362_v61, %v9479_v43  ;;  %v4364_v10 = vpop.f32.mrb[42].mxu1  ;;  %4841 = vmatprep.mubr.bf16.mxu0 %v4470_v9 }
 0x7d4   :  { %v6946_v57 = vadd.f32 %v4364_v10, %v9476_v37  ;;  %v4366_v54 = vpop.f32.mrb[43].mxu1  ;;  %4842 = vmatmul.mubr.bf16.gmra.mrb[228].mxu0 %v4469_v58  ;;  %v4435_v11 = vmax.f32 %v6944_v17, 0.0 }
 0x7d5   :  { %v6947_v8 = vadd.f32 %v4366_v54, %v9479_v43  ;;  %v4436_v13 = vmax.f32 %v6945_v12, 0.0 }
 0x7d6   :  { %v4437_v30 = vmax.f32 %v6946_v57, 0.0 }
 0x7d7   :  { %v4438_v18 = vmax.f32 %v6947_v8, 0.0 }
 0x7d8   :  { %v4471_v49 = vpack.c.bf16 %v4437_v30, %v4435_v11 }
 0x7d9   :  { %v4472_v31 = vpack.c.bf16 %v4438_v18, %v4436_v13  ;;  %v4370_v63 = vpop.f32.mrb[44].mxu1 }
 0x7da   :  { %v6948_v21 = vadd.f32 %v4370_v63, %v9476_v37  ;;  %v4372_v42 = vpop.f32.mrb[45].mxu1 }
 0x7db   :  { %v6949_v14 = vadd.f32 %v4372_v42, %v9479_v43  ;;  %v4374_v15 = vpop.f32.mrb[46].mxu1  ;;  %4851 = vmatprep.mubr.bf16.mxu0 %v4472_v31 }
 0x7dc   :  { %v6950_v3 = vadd.f32 %v4374_v15, %v9476_v37  ;;  %v4376_v60 = vpop.f32.mrb[47].mxu1  ;;  %4852 = vmatmul.mubr.bf16.gmra.mrb[232].mxu0 %v4471_v49  ;;  %v4439_v39 = vmax.f32 %v6948_v21, 0.0  ;;  %v9552_v37 = vrot.slane %v4507_v44, %v8559_v40 }
 0x7dd   :  { %v6951_v51 = vadd.f32 %v4376_v60, %v9479_v43  ;;  %v4440_v7 = vmax.f32 %v6949_v14, 0.0 }
 0x7de   :  { %v4441_v1 = vmax.f32 %v6950_v3, 0.0 }
 0x7df   :  { %v4442_v0 = vmax.f32 %v6951_v51, 0.0 }
 0x7e0   :  { %v4473_v47 = vpack.c.bf16 %v4441_v1, %v4439_v39 }
 0x7e1   :  { %v4474_v45 = vpack.c.bf16 %v4442_v0, %v4440_v7 }
 0x7e3   :  { %4861 = vmatprep.mubr.bf16.mxu0 %v4474_v45 }
 0x7e4   :  { %4862 = vmatmul.mubr.bf16.gmra.mrb[236].mxu0 %v4473_v47 }
 0x83f   :  { %v4713_v56 = vpop.f32.mrb[176].mxu0 }
 0x840   :  { %v4714_v43 = vadd.f32 %v4713_v56, %v9549_v33  ;;  %v4715_v53 = vpop.f32.mrb[177].mxu0 }
 0x841   :  { %v4716_v62 = vadd.f32 %v4715_v53, %v9552_v37  ;;  %v4717_v59 = vpop.f32.mrb[178].mxu0 }
 0x842   :  { %v4718_v29 = vadd.f32 %v4717_v59, %v9549_v33  ;;  %v4719_v25 = vpop.f32.mrb[179].mxu0  ;;  %v4872_v48 = vmax.f32 %v4714_v43, 0.0 }
 0x843   :  { %v4720_v36 = vadd.f32 %v4719_v25, %v9552_v37  ;;  %v4873_v50 = vmax.f32 %v4716_v62, 0.0 }
 0x844   :  { %v4874_v55 = vmax.f32 %v4718_v29, 0.0 }
 0x845   :  { %v4875_v28 = vmax.f32 %v4720_v36, 0.0 }
 0x846   :  { %v4936_v4 = vpack.c.bf16 %v4874_v55, %v4872_v48 }
 0x847   :  { %v4937_v26 = vpack.c.bf16 %v4875_v28, %v4873_v50  ;;  %v4723_v34 = vpop.f32.mrb[180].mxu0 }
 0x848   :  { %v4724_v16 = vadd.f32 %v4723_v34, %v9549_v33  ;;  %v4725_v23 = vpop.f32.mrb[181].mxu0 }
 0x849   :  { %v4726_v19 = vadd.f32 %v4725_v23, %v9552_v37  ;;  %v4727_v46 = vpop.f32.mrb[182].mxu0  ;;  %5204 = vmatprep.mubr.bf16.mxu0 %v4937_v26 }
 0x84a   :  { %v4728_v2 = vadd.f32 %v4727_v46, %v9549_v33  ;;  %v4729_v41 = vpop.f32.mrb[183].mxu0  ;;  %5205 = vmatmul.mubr.bf16.vlgmr.msra.gmra.mrb[240].mxu0 %v4936_v4  ;;  %v4876_v24 = vmax.f32 %v4724_v16, 0.0 }
 0x84b   :  { %v4730_v27 = vadd.f32 %v4729_v41, %v9552_v37  ;;  %v4877_v20 = vmax.f32 %v4726_v19, 0.0 }
 0x84c   :  { %v4878_v5 = vmax.f32 %v4728_v2, 0.0 }
 0x84d   :  { %v4879_v52 = vmax.f32 %v4730_v27, 0.0 }
 0x84e   :  { %v4938_v22 = vpack.c.bf16 %v4878_v5, %v4876_v24 }
 0x84f   :  { %v4939_v32 = vpack.c.bf16 %v4879_v52, %v4877_v20  ;;  %v4733_v6 = vpop.f32.mrb[184].mxu0 }
 0x850   :  { %v4734_v58 = vadd.f32 %v4733_v6, %v9549_v33  ;;  %v4735_v9 = vpop.f32.mrb[185].mxu0 }
 0x851   :  { %v4736_v35 = vadd.f32 %v4735_v9, %v9552_v37  ;;  %v4737_v17 = vpop.f32.mrb[186].mxu0  ;;  %5214 = vmatprep.mubr.bf16.mxu0 %v4939_v32 }
 0x852   :  { %v4738_v61 = vadd.f32 %v4737_v17, %v9549_v33  ;;  %v4739_v12 = vpop.f32.mrb[187].mxu0  ;;  %5215 = vmatmul.mubr.bf16.gmra.mrb[244].mxu0 %v4938_v22  ;;  %v4880_v57 = vmax.f32 %v4734_v58, 0.0 }
 0x853   :  { %v4740_v10 = vadd.f32 %v4739_v12, %v9552_v37  ;;  %v4881_v8 = vmax.f32 %v4736_v35, 0.0 }
 0x854   :  { %v4882_v54 = vmax.f32 %v4738_v61, 0.0 }
 0x855   :  { %v4883_v11 = vmax.f32 %v4740_v10, 0.0 }
 0x856   :  { %v4940_v30 = vpack.c.bf16 %v4882_v54, %v4880_v57 }
 0x857   :  { %v4941_v13 = vpack.c.bf16 %v4883_v11, %v4881_v8  ;;  %v4743_v18 = vpop.f32.mrb[188].mxu0 }
 0x858   :  { %v4744_v49 = vadd.f32 %v4743_v18, %v9549_v33  ;;  %v4745_v31 = vpop.f32.mrb[189].mxu0 }
 0x859   :  { %v4746_v63 = vadd.f32 %v4745_v31, %v9552_v37  ;;  %v4747_v21 = vpop.f32.mrb[190].mxu0  ;;  %5224 = vmatprep.mubr.bf16.mxu0 %v4941_v13 }
 0x85a   :  { %v4748_v42 = vadd.f32 %v4747_v21, %v9549_v33  ;;  %v4749_v14 = vpop.f32.mrb[191].mxu0  ;;  %5225 = vmatmul.mubr.bf16.gmra.mrb[248].mxu0 %v4940_v30  ;;  %v4884_v3 = vmax.f32 %v4744_v49, 0.0 }
 0x85b   :  { %v4750_v15 = vadd.f32 %v4749_v14, %v9552_v37  ;;  %v4885_v51 = vmax.f32 %v4746_v63, 0.0 }
 0x85c   :  { %v4886_v60 = vmax.f32 %v4748_v42, 0.0 }
 0x85d   :  { %v4887_v39 = vmax.f32 %v4750_v15, 0.0 }
 0x85e   :  { %v4942_v1 = vpack.c.bf16 %v4886_v60, %v4884_v3 }
 0x85f   :  { %v4943_v7 = vpack.c.bf16 %v4887_v39, %v4885_v51  ;;  %v4753_v0 = vpop.f32.mrb[192].mxu0 }
 0x860   :  { %v4754_v47 = vadd.f32 %v4753_v0, %v9549_v33  ;;  %v4755_v45 = vpop.f32.mrb[193].mxu0 }
 0x861   :  { %v4756_v44 = vadd.f32 %v4755_v45, %v9552_v37  ;;  %v4757_v56 = vpop.f32.mrb[194].mxu0  ;;  %5234 = vmatprep.mubr.bf16.mxu0 %v4943_v7 }
 0x862   :  { %v4758_v43 = vadd.f32 %v4757_v56, %v9549_v33  ;;  %v4759_v53 = vpop.f32.mrb[195].mxu0  ;;  %5235 = vmatmul.mubr.bf16.gmra.mrb[252].mxu0 %v4942_v1  ;;  %v4888_v59 = vmax.f32 %v4754_v47, 0.0 }
 0x863   :  { %v4760_v62 = vadd.f32 %v4759_v53, %v9552_v37  ;;  %v4889_v25 = vmax.f32 %v4756_v44, 0.0 }
 0x864   :  { %v4890_v29 = vmax.f32 %v4758_v43, 0.0 }
 0x865   :  { %v4891_v36 = vmax.f32 %v4760_v62, 0.0 }
 0x866   :  { %v4944_v48 = vpack.c.bf16 %v4890_v29, %v4888_v59 }
 0x867   :  { %v4945_v55 = vpack.c.bf16 %v4891_v36, %v4889_v25  ;;  %v4763_v50 = vpop.f32.mrb[196].mxu0 }
 0x868   :  { %v4764_v28 = vadd.f32 %v4763_v50, %v9549_v33  ;;  %v4765_v4 = vpop.f32.mrb[197].mxu0 }
 0x869   :  { %v4766_v26 = vadd.f32 %v4765_v4, %v9552_v37  ;;  %v4767_v34 = vpop.f32.mrb[198].mxu0  ;;  %5244 = vmatprep.mubr.bf16.mxu0 %v4945_v55 }
 0x86a   :  { %v4768_v16 = vadd.f32 %v4767_v34, %v9549_v33  ;;  %v4769_v23 = vpop.f32.mrb[199].mxu0  ;;  %5245 = vmatmul.mubr.bf16.gmra.mrb[0].mxu0 %v4944_v48  ;;  %v4892_v46 = vmax.f32 %v4764_v28, 0.0 }
 0x86b   :  { %v4770_v19 = vadd.f32 %v4769_v23, %v9552_v37  ;;  %v4893_v41 = vmax.f32 %v4766_v26, 0.0 }
 0x86c   :  { %v4894_v2 = vmax.f32 %v4768_v16, 0.0 }
 0x86d   :  { %v4895_v27 = vmax.f32 %v4770_v19, 0.0 }
 0x86e   :  { %v4946_v24 = vpack.c.bf16 %v4894_v2, %v4892_v46 }
 0x86f   :  { %v4947_v5 = vpack.c.bf16 %v4895_v27, %v4893_v41  ;;  %v4773_v20 = vpop.f32.mrb[200].mxu0 }
 0x870   :  { %v4774_v52 = vadd.f32 %v4773_v20, %v9549_v33  ;;  %v4775_v22 = vpop.f32.mrb[201].mxu0 }
 0x871   :  { %v4776_v32 = vadd.f32 %v4775_v22, %v9552_v37  ;;  %v4777_v6 = vpop.f32.mrb[202].mxu0  ;;  %5254 = vmatprep.mubr.bf16.mxu0 %v4947_v5 }
 0x872   :  { %v4778_v58 = vadd.f32 %v4777_v6, %v9549_v33  ;;  %v4779_v9 = vpop.f32.mrb[203].mxu0  ;;  %5255 = vmatmul.mubr.bf16.gmra.mrb[4].mxu0 %v4946_v24  ;;  %v4896_v17 = vmax.f32 %v4774_v52, 0.0 }
 0x873   :  { %v4780_v35 = vadd.f32 %v4779_v9, %v9552_v37  ;;  %v4897_v12 = vmax.f32 %v4776_v32, 0.0 }
 0x874   :  { %v4898_v61 = vmax.f32 %v4778_v58, 0.0 }
 0x875   :  { %v4899_v10 = vmax.f32 %v4780_v35, 0.0 }
 0x876   :  { %v4948_v57 = vpack.c.bf16 %v4898_v61, %v4896_v17 }
 0x877   :  { %v4949_v54 = vpack.c.bf16 %v4899_v10, %v4897_v12  ;;  %v4783_v8 = vpop.f32.mrb[204].mxu0 }
 0x878   :  { %v4784_v11 = vadd.f32 %v4783_v8, %v9549_v33  ;;  %v4785_v30 = vpop.f32.mrb[205].mxu0 }
 0x879   :  { %v4786_v13 = vadd.f32 %v4785_v30, %v9552_v37  ;;  %v4787_v18 = vpop.f32.mrb[206].mxu0  ;;  %5264 = vmatprep.mubr.bf16.mxu0 %v4949_v54 }
 0x87a   :  { %v4788_v49 = vadd.f32 %v4787_v18, %v9549_v33  ;;  %v4789_v31 = vpop.f32.mrb[207].mxu0  ;;  %5265 = vmatmul.mubr.bf16.gmra.mrb[8].mxu0 %v4948_v57  ;;  %v4900_v21 = vmax.f32 %v4784_v11, 0.0 }
 0x87b   :  { %v4790_v63 = vadd.f32 %v4789_v31, %v9552_v37  ;;  %v4901_v14 = vmax.f32 %v4786_v13, 0.0 }
 0x87c   :  { %v4902_v42 = vmax.f32 %v4788_v49, 0.0 }
 0x87d   :  { %v4903_v15 = vmax.f32 %v4790_v63, 0.0 }
 0x87e   :  { %v4950_v3 = vpack.c.bf16 %v4902_v42, %v4900_v21 }
 0x87f   :  { %v4951_v60 = vpack.c.bf16 %v4903_v15, %v4901_v14  ;;  %v4793_v51 = vpop.f32.mrb[208].mxu0 }
 0x880   :  { %v4794_v39 = vadd.f32 %v4793_v51, %v9549_v33  ;;  %v4795_v1 = vpop.f32.mrb[209].mxu0 }
 0x881   :  { %v4796_v7 = vadd.f32 %v4795_v1, %v9552_v37  ;;  %v4797_v0 = vpop.f32.mrb[210].mxu0  ;;  %5274 = vmatprep.mubr.bf16.mxu0 %v4951_v60 }
 0x882   :  { %v4798_v47 = vadd.f32 %v4797_v0, %v9549_v33  ;;  %v4799_v45 = vpop.f32.mrb[211].mxu0  ;;  %5275 = vmatmul.mubr.bf16.gmra.mrb[12].mxu0 %v4950_v3  ;;  %v4904_v56 = vmax.f32 %v4794_v39, 0.0 }
 0x883   :  { %v4800_v44 = vadd.f32 %v4799_v45, %v9552_v37  ;;  %v4905_v53 = vmax.f32 %v4796_v7, 0.0 }
 0x884   :  { %v4906_v43 = vmax.f32 %v4798_v47, 0.0 }
 0x885   :  { %v4907_v62 = vmax.f32 %v4800_v44, 0.0 }
 0x886   :  { %v4952_v59 = vpack.c.bf16 %v4906_v43, %v4904_v56 }
 0x887   :  { %v4953_v29 = vpack.c.bf16 %v4907_v62, %v4905_v53  ;;  %v4803_v25 = vpop.f32.mrb[212].mxu0 }
 0x888   :  { %v4804_v36 = vadd.f32 %v4803_v25, %v9549_v33  ;;  %v4805_v48 = vpop.f32.mrb[213].mxu0 }
 0x889   :  { %v4806_v55 = vadd.f32 %v4805_v48, %v9552_v37  ;;  %v4807_v50 = vpop.f32.mrb[214].mxu0  ;;  %5284 = vmatprep.mubr.bf16.mxu0 %v4953_v29 }
 0x88a   :  { %v4808_v28 = vadd.f32 %v4807_v50, %v9549_v33  ;;  %v4809_v4 = vpop.f32.mrb[215].mxu0  ;;  %5285 = vmatmul.mubr.bf16.gmra.mrb[16].mxu0 %v4952_v59  ;;  %v4908_v34 = vmax.f32 %v4804_v36, 0.0 }
 0x88b   :  { %v4810_v26 = vadd.f32 %v4809_v4, %v9552_v37  ;;  %v4909_v23 = vmax.f32 %v4806_v55, 0.0 }
 0x88c   :  { %v4910_v16 = vmax.f32 %v4808_v28, 0.0 }
 0x88d   :  { %v4911_v19 = vmax.f32 %v4810_v26, 0.0 }
 0x88e   :  { %v4954_v46 = vpack.c.bf16 %v4910_v16, %v4908_v34 }
 0x88f   :  { %v4955_v2 = vpack.c.bf16 %v4911_v19, %v4909_v23  ;;  %v4813_v41 = vpop.f32.mrb[216].mxu0 }
 0x890   :  { %v4814_v27 = vadd.f32 %v4813_v41, %v9549_v33  ;;  %v4815_v24 = vpop.f32.mrb[217].mxu0 }
 0x891   :  { %v4816_v5 = vadd.f32 %v4815_v24, %v9552_v37  ;;  %v4817_v20 = vpop.f32.mrb[218].mxu0  ;;  %5294 = vmatprep.mubr.bf16.mxu0 %v4955_v2 }
 0x892   :  { %v4818_v52 = vadd.f32 %v4817_v20, %v9549_v33  ;;  %v4819_v22 = vpop.f32.mrb[219].mxu0  ;;  %5295 = vmatmul.mubr.bf16.gmra.mrb[20].mxu0 %v4954_v46  ;;  %v4912_v6 = vmax.f32 %v4814_v27, 0.0 }
 0x893   :  { %v4820_v32 = vadd.f32 %v4819_v22, %v9552_v37  ;;  %v4913_v9 = vmax.f32 %v4816_v5, 0.0 }
 0x894   :  { %v4914_v58 = vmax.f32 %v4818_v52, 0.0 }
 0x895   :  { %v4915_v35 = vmax.f32 %v4820_v32, 0.0 }
 0x896   :  { %v4956_v17 = vpack.c.bf16 %v4914_v58, %v4912_v6 }
 0x897   :  { %v4957_v61 = vpack.c.bf16 %v4915_v35, %v4913_v9  ;;  %v4823_v12 = vpop.f32.mrb[220].mxu0 }
 0x898   :  { %v4824_v10 = vadd.f32 %v4823_v12, %v9549_v33  ;;  %v4825_v57 = vpop.f32.mrb[221].mxu0 }
 0x899   :  { %v4826_v54 = vadd.f32 %v4825_v57, %v9552_v37  ;;  %v4827_v8 = vpop.f32.mrb[222].mxu0  ;;  %5304 = vmatprep.mubr.bf16.mxu0 %v4957_v61 }
 0x89a   :  { %v4828_v11 = vadd.f32 %v4827_v8, %v9549_v33  ;;  %v4829_v30 = vpop.f32.mrb[223].mxu0  ;;  %5305 = vmatmul.mubr.bf16.gmra.mrb[24].mxu0 %v4956_v17  ;;  %v4916_v18 = vmax.f32 %v4824_v10, 0.0 }
 0x89b   :  { %v4830_v13 = vadd.f32 %v4829_v30, %v9552_v37  ;;  %v4917_v31 = vmax.f32 %v4826_v54, 0.0 }
 0x89c   :  { %v4918_v49 = vmax.f32 %v4828_v11, 0.0 }
 0x89d   :  { %v4919_v63 = vmax.f32 %v4830_v13, 0.0 }
 0x89e   :  { %v4958_v21 = vpack.c.bf16 %v4918_v49, %v4916_v18 }
 0x89f   :  { %v4959_v42 = vpack.c.bf16 %v4919_v63, %v4917_v31  ;;  %v4833_v14 = vpop.f32.mrb[224].mxu0  ;;  %v5000_v31 = vld [vmem:[%s9824_s17] sm:$0x3]  ;;  %s8269_s17 = smov [#allocation20]  }
 0x8a0   :  { %v4834_v15 = vadd.f32 %v4833_v14, %v9549_v33  ;;  %v4835_v3 = vpop.f32.mrb[225].mxu0  ;;  %v9622_v63 = vrot.slane %v5000_v31, %v8552_v38  ;;  %s6150_s29 = sshll.u32 %s8269_s17, 4  ;;  %s6151_s29 = int_to_ptr.vmem [resolvable:$true] %s6150_s29 }
 0x8a1   :  { %v4836_v60 = vadd.f32 %v4835_v3, %v9552_v37  ;;  %v4837_v51 = vpop.f32.mrb[226].mxu0  ;;  %5314 = vmatprep.mubr.bf16.mxu0 %v4959_v42  ;;  %s8078_s14 = scalar_lea.vmem %s6151_s29, 8192  ;;  %p8083_p11 = scmp.lt.s32.totalorder %s6151_s29, %s6151_s29 }
 0x8a2   :  { %v4838_v39 = vadd.f32 %v4837_v51, %v9549_v33  ;;  %v4839_v1 = vpop.f32.mrb[227].mxu0  ;;  %5315 = vmatmul.mubr.bf16.gmra.mrb[28].mxu0 %v4958_v21  ;;  %v4920_v0 = vmax.f32 %v4834_v15, 0.0  ;;  %p8079_p10 = scmp.ne.s32.totalorder %s6151_s29, %s8078_s14  ;;  %p8084_p12 = scmp.lt.s32.totalorder %s8078_s14, %s8078_s14 }
 0x8a3   :  { %v4840_v7 = vadd.f32 %v4839_v1, %v9552_v37  ;;  %v4921_v45 = vmax.f32 %v4836_v60, 0.0 }
 0x8a4   :  { %v4922_v47 = vmax.f32 %v4838_v39, 0.0  ;;  %p8085_p13 = por %p8084_p12, %p8083_p11 }
 0x8a5   :  { %v4923_v44 = vmax.f32 %v4840_v7, 0.0 }
 0x8a6   :  { %v4960_v56 = vpack.c.bf16 %v4922_v47, %v4920_v0  ;;  %p8086_p0 = pnand %p8085_p13, %p8079_p10 }
 0x8a7   :  { %v4961_v43 = vpack.c.bf16 %v4923_v44, %v4921_v45  ;;  %v4843_v53 = vpop.f32.mrb[228].mxu0 }
 0x8a8   :  { %v4844_v62 = vadd.f32 %v4843_v53, %v9549_v33  ;;  %v4845_v59 = vpop.f32.mrb[229].mxu0 }
 0x8a9   :  { %v4846_v29 = vadd.f32 %v4845_v59, %v9552_v37  ;;  %v4847_v25 = vpop.f32.mrb[230].mxu0  ;;  %5324 = vmatprep.mubr.bf16.mxu0 %v4961_v43 }
 0x8aa   :  { %v4848_v36 = vadd.f32 %v4847_v25, %v9549_v33  ;;  %v4849_v48 = vpop.f32.mrb[231].mxu0  ;;  %5325 = vmatmul.mubr.bf16.gmra.mrb[32].mxu0 %v4960_v56  ;;  %v4924_v50 = vmax.f32 %v4844_v62, 0.0 }
 0x8ab   :  { %v4850_v55 = vadd.f32 %v4849_v48, %v9552_v37  ;;  %v4925_v4 = vmax.f32 %v4846_v29, 0.0 }
 0x8ac   :  { %v4926_v28 = vmax.f32 %v4848_v36, 0.0 }
 0x8ad   :  { %v4927_v26 = vmax.f32 %v4850_v55, 0.0 }
 0x8ae   :  { %v4962_v34 = vpack.c.bf16 %v4926_v28, %v4924_v50 }
 0x8af   :  { %v4963_v16 = vpack.c.bf16 %v4927_v26, %v4925_v4  ;;  %v4853_v23 = vpop.f32.mrb[232].mxu0 }
 0x8b0   :  { %v4854_v19 = vadd.f32 %v4853_v23, %v9549_v33  ;;  %v4855_v46 = vpop.f32.mrb[233].mxu0 }
 0x8b1   :  { %v4856_v2 = vadd.f32 %v4855_v46, %v9552_v37  ;;  %v4857_v41 = vpop.f32.mrb[234].mxu0  ;;  %5334 = vmatprep.mubr.bf16.mxu0 %v4963_v16 }
 0x8b2   :  { %v4858_v27 = vadd.f32 %v4857_v41, %v9549_v33  ;;  %v4859_v24 = vpop.f32.mrb[235].mxu0  ;;  %5335 = vmatmul.mubr.bf16.gmra.mrb[36].mxu0 %v4962_v34  ;;  %v4928_v20 = vmax.f32 %v4854_v19, 0.0 }
 0x8b3   :  { %v4860_v5 = vadd.f32 %v4859_v24, %v9552_v37  ;;  %v4929_v22 = vmax.f32 %v4856_v2, 0.0 }
 0x8b4   :  { %v4930_v52 = vmax.f32 %v4858_v27, 0.0 }
 0x8b5   :  { %v4931_v32 = vmax.f32 %v4860_v5, 0.0 }
 0x8b6   :  { %v4964_v6 = vpack.c.bf16 %v4930_v52, %v4928_v20 }
 0x8b7   :  { %v4965_v58 = vpack.c.bf16 %v4931_v32, %v4929_v22  ;;  %v4863_v9 = vpop.f32.mrb[236].mxu0 }
 0x8b8   :  { %v4864_v35 = vadd.f32 %v4863_v9, %v9549_v33  ;;  %v4865_v17 = vpop.f32.mrb[237].mxu0 }
 0x8b9   :  { %v4866_v61 = vadd.f32 %v4865_v17, %v9552_v37  ;;  %v4867_v12 = vpop.f32.mrb[238].mxu0  ;;  %5344 = vmatprep.mubr.bf16.mxu0 %v4965_v58 }
 0x8ba   :  { %v4868_v10 = vadd.f32 %v4867_v12, %v9549_v33  ;;  %v4869_v57 = vpop.f32.mrb[239].mxu0  ;;  %5345 = vmatmul.mubr.bf16.gmra.mrb[40].mxu0 %v4964_v6  ;;  %v4932_v8 = vmax.f32 %v4864_v35, 0.0  ;;  %v9625_v33 = vrot.slane %v5000_v31, %v8559_v40 }
 0x8bb   :  { %v4870_v54 = vadd.f32 %v4869_v57, %v9552_v37  ;;  %v4933_v30 = vmax.f32 %v4866_v61, 0.0 }
 0x8bc   :  { %v4934_v11 = vmax.f32 %v4868_v10, 0.0 }
 0x8bd   :  { %v4935_v13 = vmax.f32 %v4870_v54, 0.0 }
 0x8be   :  { %v4966_v18 = vpack.c.bf16 %v4934_v11, %v4932_v8 }
 0x8bf   :  { %v4967_v49 = vpack.c.bf16 %v4935_v13, %v4933_v30 }
 0x8c1   :  { %5354 = vmatprep.mubr.bf16.mxu0 %v4967_v49 }
 0x8c2   :  { %5355 = vmatmul.mubr.bf16.gmra.mrb[44].mxu0 %v4966_v18 }
 0x91d   :  { %v5206_v21 = vpop.f32.mrb[240].mxu0 }
 0x91e   :  { %v5207_v37 = vadd.f32 %v5206_v21, %v9622_v63  ;;  %v5208_v42 = vpop.f32.mrb[241].mxu0 }
 0x91f   :  { %v5209_v14 = vadd.f32 %v5208_v42, %v9625_v33  ;;  %v5210_v15 = vpop.f32.mrb[242].mxu0 }
 0x920   :  { %v6544_v3 = vmul.f32 -1.442695, %v5207_v37  ;;  %v5211_v60 = vadd.f32 %v5210_v15, %v9622_v63  ;;  %v5212_v51 = vpop.f32.mrb[243].mxu0 }
 0x921   :  { %v6545_v39 = vmul.f32 -1.442695, %v5209_v14  ;;  %v5213_v1 = vadd.f32 %v5212_v51, %v9625_v33 }
 0x922   :  { %7602 = vpow2.f32 %v6544_v3  ;;  %v6546_v38 = vmul.f32 -1.442695, %v5211_v60 }
 0x923   :  { %7604 = vpow2.f32 %v6545_v39  ;;  %v6547_v7 = vmul.f32 -1.442695, %v5213_v1 }
 0x924   :  { %7606 = vpow2.f32 %v6546_v38 }
 0x925   :  { %7608 = vpow2.f32 %v6547_v7  ;;  %v5216_v40 = vpop.f32.mrb[244].mxu0 }
 0x926   :  { %v5217_v0 = vadd.f32 %v5216_v40, %v9622_v63  ;;  %v5218_v47 = vpop.f32.mrb[245].mxu0 }
 0x927   :  { %v5219_v45 = vadd.f32 %v5218_v47, %v9625_v33  ;;  %v5220_v44 = vpop.f32.mrb[246].mxu0 }
 0x928   :  { %v6548_v56 = vmul.f32 -1.442695, %v5217_v0  ;;  %v5221_v43 = vadd.f32 %v5220_v44, %v9622_v63  ;;  %v5222_v53 = vpop.f32.mrb[247].mxu0 }
 0x929   :  { %v6549_v62 = vmul.f32 -1.442695, %v5219_v45  ;;  %v5223_v59 = vadd.f32 %v5222_v53, %v9625_v33 }
 0x92a   :  { %7610 = vpow2.f32 %v6548_v56  ;;  %v6550_v29 = vmul.f32 -1.442695, %v5221_v43 }
 0x92b   :  { %7612 = vpow2.f32 %v6549_v62  ;;  %v6551_v25 = vmul.f32 -1.442695, %v5223_v59 }
 0x92c   :  { %v7603_v36 = vpop.eup %7602  ;;  %7614 = vpow2.f32 %v6550_v29 }
 0x92d   :  { %v7605_v48 = vpop.eup %7604  ;;  %v5557_v55 = vadd.f32 1.0, %v7603_v36  ;;  %7616 = vpow2.f32 %v6551_v25  ;;  %v5226_v50 = vpop.f32.mrb[248].mxu0 }
 0x92e   :  { %v7607_v28 = vpop.eup %7606  ;;  %v5558_v4 = vadd.f32 1.0, %v7605_v48  ;;  %v5227_v26 = vadd.f32 %v5226_v50, %v9622_v63  ;;  %v5228_v34 = vpop.f32.mrb[249].mxu0 }
 0x92f   :  { %v7609_v16 = vpop.eup %7608  ;;  %7618 = vrcp.f32 %v5557_v55  ;;  %v5559_v23 = vadd.f32 1.0, %v7607_v28  ;;  %v5229_v19 = vadd.f32 %v5228_v34, %v9625_v33  ;;  %v5230_v46 = vpop.f32.mrb[250].mxu0 }
 0x930   :  { %7620 = vrcp.f32 %v5558_v4  ;;  %v5560_v2 = vadd.f32 1.0, %v7609_v16  ;;  %v6552_v41 = vmul.f32 -1.442695, %v5227_v26  ;;  %v5231_v27 = vadd.f32 %v5230_v46, %v9622_v63  ;;  %v5232_v24 = vpop.f32.mrb[251].mxu0 }
 0x931   :  { %7622 = vrcp.f32 %v5559_v23  ;;  %v6553_v5 = vmul.f32 -1.442695, %v5229_v19  ;;  %v5233_v20 = vadd.f32 %v5232_v24, %v9625_v33 }
 0x932   :  { %7624 = vrcp.f32 %v5560_v2  ;;  %v6554_v52 = vmul.f32 -1.442695, %v5231_v27 }
 0x933   :  { %7626 = vpow2.f32 %v6552_v41  ;;  %v6555_v22 = vmul.f32 -1.442695, %v5233_v20 }
 0x934   :  { %v7611_v32 = vpop.eup %7610  ;;  %7628 = vpow2.f32 %v6553_v5 }
 0x935   :  { %v7613_v6 = vpop.eup %7612  ;;  %v5561_v58 = vadd.f32 1.0, %v7611_v32  ;;  %7630 = vpow2.f32 %v6554_v52  ;;  %v5236_v9 = vpop.f32.mrb[252].mxu0 }
 0x936   :  { %v7615_v35 = vpop.eup %7614  ;;  %v5562_v17 = vadd.f32 1.0, %v7613_v6  ;;  %7632 = vpow2.f32 %v6555_v22  ;;  %v5237_v61 = vadd.f32 %v5236_v9, %v9622_v63  ;;  %v5238_v12 = vpop.f32.mrb[253].mxu0 }
 0x937   :  { %v7617_v10 = vpop.eup %7616  ;;  %7634 = vrcp.f32 %v5561_v58  ;;  %v5563_v57 = vadd.f32 1.0, %v7615_v35  ;;  %v5239_v54 = vadd.f32 %v5238_v12, %v9625_v33  ;;  %v5240_v8 = vpop.f32.mrb[254].mxu0 }
 0x938   :  { %7636 = vrcp.f32 %v5562_v17  ;;  %v5564_v11 = vadd.f32 1.0, %v7617_v10  ;;  %v6556_v30 = vmul.f32 -1.442695, %v5237_v61  ;;  %v5241_v13 = vadd.f32 %v5240_v8, %v9622_v63  ;;  %v5242_v18 = vpop.f32.mrb[255].mxu0 }
 0x939   :  { %v7619_v49 = vpop.eup %7618  ;;  %7638 = vrcp.f32 %v5563_v57  ;;  %v6557_v31 = vmul.f32 -1.442695, %v5239_v54  ;;  %v5243_v21 = vadd.f32 %v5242_v18, %v9625_v33 }
 0x93a   :  { %v7621_v37 = vpop.eup %7620  ;;  %6069 = vst [vmem:[#allocation28] sm:$0xff] %v7619_v49  ;;  %7640 = vrcp.f32 %v5564_v11  ;;  %v6558_v42 = vmul.f32 -1.442695, %v5241_v13 }
 0x93b   :  { %v7623_v14 = vpop.eup %7622  ;;  %6070 = vst [vmem:[#allocation28 + $0x8] sm:$0xff] %v7621_v37  ;;  %7642 = vpow2.f32 %v6556_v30  ;;  %v6559_v15 = vmul.f32 -1.442695, %v5243_v21 }
 0x93c   :  { %8089 = shalt.err (!%p8086_p0)
}
 0x93d   :  { %s8090_s12 = scalar_lea.hbm %s9826_s19, 8192 }
 0x93e   :  { %p8091_p1 = scmp.ne.s32.totalorder %s9826_s19, %s8090_s12  ;;  %p8094_p2 = scmp.lt.u32.totalorder %s8090_s12, %s9826_s19 }
 0x940   :  { %p8096_p3 = pnand %p8094_p2, %p8091_p1 }
 0x942   :  { %8099 = shalt.err (!%p8096_p3)
}
 0x943   :  { %s9869_s10 = smov 16   ;;  %s9870_s22 = smov 256   ;;  %v7625_v3 = vpop.eup %7624  ;;  %6071 = vst [vmem:[#allocation28 + $0x10] sm:$0xff] %v7623_v14  ;;  %7644 = vpow2.f32 %v6557_v31 }
 0x944   :  { %6156 = dma.vmem_to_hbm [thread:$0]  %s6151_s29, 8192, %s9826_s19, [#allocation21], %s9870_s22, %s9870_s22, %s9869_s10  }
 0x945   :  { %s8100_s5 = scalar_lea.vmem %s9643_s25, 4096  ;;  %p8105_p5 = scmp.lt.s32.totalorder %s9643_s25, %s9643_s25 }
 0x946   :  { %p8101_p4 = scmp.ne.s32.totalorder %s9643_s25, %s8100_s5  ;;  %p8106_p6 = scmp.lt.s32.totalorder %s8100_s5, %s8100_s5 }
 0x948   :  { %p8107_p7 = por %p8106_p6, %p8105_p5 }
 0x94a   :  { %p8108_p8 = pnand %p8107_p7, %p8101_p4 }
 0x94c   :  { %8111 = shalt.err (!%p8108_p8)
}
 0x94d   :  { %s8112_s11 = scalar_lea.hbm %s9828_s21, 4096 }
 0x94e   :  { %p8113_p9 = scmp.ne.s32.totalorder %s9828_s21, %s8112_s11  ;;  %p8116_p10 = scmp.lt.u32.totalorder %s8112_s11, %s9828_s21 }
 0x950   :  { %p8118_p11 = pnand %p8116_p10, %p8113_p9 }
 0x952   :  { %8121 = shalt.err (!%p8118_p11)
}
 0x953   :  { %6180 = dma.vmem_to_hbm [thread:$0]  %s9643_s25, 4096, %s9828_s21, [#allocation24], %s9864_s3, %s9864_s3, %s8254_s8   ;;  %v7627_v60 = vpop.eup %7626  ;;  %6072 = vst [vmem:[#allocation28 + $0x18] sm:$0xff] %v7625_v3  ;;  %7646 = vpow2.f32 %v6558_v42  ;;  %v5246_v51 = vpop.f32.mrb[0].mxu0 }
 0x954   :  { %v7629_v39 = vpop.eup %7628  ;;  %v5565_v1 = vadd.f32 1.0, %v7627_v60  ;;  %7648 = vpow2.f32 %v6559_v15  ;;  %v5247_v38 = vadd.f32 %v5246_v51, %v9622_v63  ;;  %v5248_v7 = vpop.f32.mrb[1].mxu0  ;;  %s8271_s17 = smov [#allocation26]   ;;  %s8272_s0 = smov [#allocation19]  }
 0x955   :  { %s6198_s29 = sshll.u32 %s8271_s17, 4  ;;  %s6138_s14 = sshll.u32 %s8272_s0, 4  ;;  %v7631_v40 = vpop.eup %7630  ;;  %v5566_v0 = vadd.f32 1.0, %v7629_v39  ;;  %v5249_v47 = vadd.f32 %v5248_v7, %v9625_v33  ;;  %v5250_v45 = vpop.f32.mrb[2].mxu0  ;;  %s6199_s29 = int_to_ptr.vmem [resolvable:$true] %s6198_s29  ;;  %s9682_s14 = int_to_ptr.vmem [resolvable:$true] %s6138_s14 }
 0x956   :  { %v7633_v44 = vpop.eup %7632  ;;  %7650 = vrcp.f32 %v5565_v1  ;;  %v5567_v56 = vadd.f32 1.0, %v7631_v40  ;;  %v6560_v43 = vmul.f32 -1.442695, %v5247_v38  ;;  %v5251_v53 = vadd.f32 %v5250_v45, %v9622_v63  ;;  %v5252_v62 = vpop.f32.mrb[3].mxu0  ;;  %s8122_s21 = scalar_lea.vmem %s6199_s29, 4096  ;;  %p8127_p13 = scmp.lt.s32.totalorder %s6199_s29, %s6199_s29 }
 0x957   :  { %p8123_p12 = scmp.ne.s32.totalorder %s6199_s29, %s8122_s21  ;;  %p8128_p0 = scmp.lt.s32.totalorder %s8122_s21, %s8122_s21 }
 0x959   :  { %p8129_p1 = por %p8128_p0, %p8127_p13 }
 0x95b   :  { %p8130_p2 = pnand %p8129_p1, %p8123_p12 }
 0x95d   :  { %8133 = shalt.err (!%p8130_p2)
}
 0x95e   :  { %s8134_s16 = scalar_lea.hbm %s9830_s23, 4096 }
 0x95f   :  { %p8135_p3 = scmp.ne.s32.totalorder %s9830_s23, %s8134_s16  ;;  %p8138_p4 = scmp.lt.u32.totalorder %s8134_s16, %s9830_s23 }
 0x961   :  { %p8140_p5 = pnand %p8138_p4, %p8135_p3 }
 0x963   :  { %8143 = shalt.err (!%p8140_p5)
}
 0x964   :  { %6204 = dma.vmem_to_hbm [thread:$0]  %s6199_s29, 4096, %s9830_s23, [#allocation27], %s9864_s3, %s9864_s3, %s8254_s8   ;;  %v7635_v59 = vpop.eup %7634  ;;  %7652 = vrcp.f32 %v5566_v0  ;;  %v5568_v29 = vadd.f32 1.0, %v7633_v44  ;;  %v6561_v25 = vmul.f32 -1.442695, %v5249_v47  ;;  %v5253_v36 = vadd.f32 %v5252_v62, %v9625_v33 }
 0x965   :  { %s8144_s2 = scalar_lea.vmem %s9682_s14, 8192  ;;  %p8149_p7 = scmp.lt.s32.totalorder %s9682_s14, %s9682_s14 }
 0x966   :  { %p8145_p6 = scmp.ne.s32.totalorder %s9682_s14, %s8144_s2  ;;  %p8150_p8 = scmp.lt.s32.totalorder %s8144_s2, %s8144_s2 }
 0x968   :  { %p8151_p9 = por %p8150_p8, %p8149_p7 }
 0x96a   :  { %p8152_p10 = pnand %p8151_p9, %p8145_p6 }
 0x96c   :  { %8155 = shalt.err (!%p8152_p10)
}
 0x96d   :  { %s8156_s28 = scalar_lea.hbm %s9825_s18, 8192 }
 0x96e   :  { %p8157_p11 = scmp.ne.s32.totalorder %s9825_s18, %s8156_s28  ;;  %p8160_p12 = scmp.lt.u32.totalorder %s8156_s28, %s9825_s18 }
 0x970   :  { %p8162_p13 = pnand %p8160_p12, %p8157_p11 }
 0x972   :  { %8165 = shalt.err (!%p8162_p13)
}
 0x973   :  { %6144 = dma.vmem_to_hbm [thread:$0]  %s9682_s14, 8192, %s9825_s18, [#allocation4], %s9870_s22, %s9870_s22, %s9869_s10   ;;  %v7637_v48 = vpop.eup %7636  ;;  %6073 = vst [vmem:[#allocation28 + $0x20] sm:$0xff] %v7635_v59  ;;  %7654 = vrcp.f32 %v5567_v56  ;;  %v6562_v55 = vmul.f32 -1.442695, %v5251_v53  ;;  %v5256_v34 = vpop.f32.mrb[4].mxu0 }
 0x974   :  { %v7639_v50 = vpop.eup %7638  ;;  %6074 = vst [vmem:[#allocation28 + $0x28] sm:$0xff] %v7637_v48  ;;  %7656 = vrcp.f32 %v5568_v29  ;;  %v6563_v28 = vmul.f32 -1.442695, %v5253_v36  ;;  %s8273_s15 = smov [#allocation22]  }
 0x975   :  { %s6162_s4 = sshll.u32 %s8273_s15, 4  ;;  %v7641_v4 = vpop.eup %7640  ;;  %6075 = vst [vmem:[#allocation28 + $0x30] sm:$0xff] %v7639_v50  ;;  %7658 = vpow2.f32 %v6560_v43  ;;  %s6163_s4 = int_to_ptr.vmem [resolvable:$true] %s6162_s4 }
 0x976   :  { %v7643_v26 = vpop.eup %7642  ;;  %6076 = vst [vmem:[#allocation28 + $0x38] sm:$0xff] %v7641_v4  ;;  %7660 = vpow2.f32 %v6561_v25  ;;  %s8166_s17 = scalar_lea.vmem %s6163_s4, 12288  ;;  %p8171_p1 = scmp.lt.s32.totalorder %s6163_s4, %s6163_s4 }
 0x977   :  { %p8167_p0 = scmp.ne.s32.totalorder %s6163_s4, %s8166_s17  ;;  %p8172_p2 = scmp.lt.s32.totalorder %s8166_s17, %s8166_s17 }
 0x979   :  { %p8173_p3 = por %p8172_p2, %p8171_p1 }
 0x97b   :  { %p8174_p4 = pnand %p8173_p3, %p8167_p0 }
 0x97d   :  { %8177 = shalt.err (!%p8174_p4)
}
 0x97e   :  { %s9871_s0 = sld [smem:[#allocation48_spill]] }
 0x984   :  { %s8178_s14 = scalar_lea.hbm %s9871_s0, 12288 }
 0x985   :  { %p8179_p5 = scmp.ne.s32.totalorder %s9871_s0, %s8178_s14  ;;  %p8182_p6 = scmp.lt.u32.totalorder %s8178_s14, %s9871_s0 }
 0x987   :  { %p8184_p7 = pnand %p8182_p6, %p8179_p5 }
 0x989   :  { %8187 = shalt.err (!%p8184_p7)
}
 0x98a   :  { %s8274_s12 = smov 384   ;;  %s8275_s26 = smov 24   ;;  %v7645_v16 = vpop.eup %7644  ;;  %v5569_v23 = vadd.f32 1.0, %v7643_v26  ;;  %7662 = vpow2.f32 %v6562_v55  ;;  %v5257_v19 = vadd.f32 %v5256_v34, %v9622_v63  ;;  %v5258_v46 = vpop.f32.mrb[5].mxu0 }
 0x98b   :  { %6168 = dma.vmem_to_hbm [thread:$0]  %s6163_s4, 12288, %s9871_s0, [#allocation21], %s8274_s12, %s8274_s12, %s8275_s26   ;;  %v7647_v2 = vpop.eup %7646  ;;  %v5570_v41 = vadd.f32 1.0, %v7645_v16  ;;  %7664 = vpow2.f32 %v6563_v28  ;;  %v5259_v27 = vadd.f32 %v5258_v46, %v9625_v33  ;;  %v5260_v24 = vpop.f32.mrb[6].mxu0 }
 0x98c   :  { %s8276_s1 = smov [#allocation25]   ;;  %v7649_v5 = vpop.eup %7648  ;;  %7666 = vrcp.f32 %v5569_v23  ;;  %v5571_v20 = vadd.f32 1.0, %v7647_v2  ;;  %v6564_v52 = vmul.f32 -1.442695, %v5257_v19  ;;  %v5261_v22 = vadd.f32 %v5260_v24, %v9622_v63  ;;  %v5262_v32 = vpop.f32.mrb[7].mxu0 }
 0x98d   :  { %s6186_s24 = sshll.u32 %s8276_s1, 4  ;;  %s6187_s24 = int_to_ptr.vmem [resolvable:$true] %s6186_s24 }
 0x98e   :  { %s8188_s2 = scalar_lea.vmem %s6187_s24, 4096  ;;  %p8193_p9 = scmp.lt.s32.totalorder %s6187_s24, %s6187_s24 }
 0x98f   :  { %p8189_p8 = scmp.ne.s32.totalorder %s6187_s24, %s8188_s2  ;;  %p8194_p10 = scmp.lt.s32.totalorder %s8188_s2, %s8188_s2 }
 0x991   :  { %p8195_p11 = por %p8194_p10, %p8193_p9 }
 0x993   :  { %p8196_p12 = pnand %p8195_p11, %p8189_p8 }
 0x995   :  { %8199 = shalt.err (!%p8196_p12)
}
 0x996   :  { %s9872_s28 = sld [smem:[#allocation49_spill]] }
 0x99c   :  { %s8200_s11 = scalar_lea.hbm %s9872_s28, 4096 }
 0x99d   :  { %p8201_p13 = scmp.ne.s32.totalorder %s9872_s28, %s8200_s11  ;;  %p8204_p0 = scmp.lt.u32.totalorder %s8200_s11, %s9872_s28 }
 0x99f   :  { %p8206_p1 = pnand %p8204_p0, %p8201_p13 }
 0x9a1   :  { %8209 = shalt.err (!%p8206_p1)
}
 0x9a2   :  { %6192 = dma.vmem_to_hbm [thread:$0]  %s6187_s24, 4096, %s9872_s28, [#allocation24], %s9864_s3, %s9864_s3, %s8254_s8   ;;  %7668 = vrcp.f32 %v5570_v41  ;;  %v5572_v6 = vadd.f32 1.0, %v7649_v5  ;;  %v6565_v58 = vmul.f32 -1.442695, %v5259_v27  ;;  %v5263_v9 = vadd.f32 %v5262_v32, %v9625_v33  ;;  %v7651_v35 = vpop.eup %7650  ;;  %v5266_v54 = vpop.f32.mrb[8].mxu0 }
 0x9a3   :  { %7670 = vrcp.f32 %v5571_v20  ;;  %v6566_v17 = vmul.f32 -1.442695, %v5261_v22  ;;  %v7653_v61 = vpop.eup %7652  ;;  %6077 = vst [vmem:[#allocation28 + $0x40] sm:$0xff] %v7651_v35  ;;  %v5267_v11 = vadd.f32 %v5266_v54, %v9622_v63  ;;  %v5268_v30 = vpop.f32.mrb[9].mxu0  ;;  %s8277_s8 = smov [#allocation28]  }
 0x9a4   :  { %7672 = vrcp.f32 %v5572_v6  ;;  %v6567_v12 = vmul.f32 -1.442695, %v5263_v9  ;;  %v7655_v10 = vpop.eup %7654  ;;  %6078 = vst [vmem:[#allocation28 + $0x48] sm:$0xff] %v7653_v61  ;;  %v5269_v49 = vadd.f32 %v5268_v30, %v9625_v33  ;;  %v5270_v31 = vpop.f32.mrb[10].mxu0  ;;  %s6210_s3 = sshll.u32 %s8277_s8, 4  ;;  %s6211_s3 = int_to_ptr.vmem [resolvable:$true] %s6210_s3 }
 0x9a5   :  { %7674 = vpow2.f32 %v6564_v52  ;;  %v7657_v57 = vpop.eup %7656  ;;  %6079 = vst [vmem:[#allocation28 + $0x50] sm:$0xff] %v7655_v10  ;;  %v5271_v42 = vadd.f32 %v5270_v31, %v9622_v63  ;;  %v5272_v14 = vpop.f32.mrb[11].mxu0  ;;  %v6568_v60 = vmul.f32 -1.442695, %v5267_v11  ;;  %s8210_s4 = scalar_lea.vmem %s6211_s3, 8192  ;;  %p8215_p3 = scmp.lt.s32.totalorder %s6211_s3, %s6211_s3 }
 0x9a6   :  { %7676 = vpow2.f32 %v6565_v58  ;;  %v7659_v8 = vpop.eup %7658  ;;  %6080 = vst [vmem:[#allocation28 + $0x58] sm:$0xff] %v7657_v57  ;;  %v5273_v51 = vadd.f32 %v5272_v14, %v9625_v33  ;;  %v6569_v38 = vmul.f32 -1.442695, %v5269_v49  ;;  %v5276_v44 = vpop.f32.mrb[12].mxu0  ;;  %p8211_p2 = scmp.ne.s32.totalorder %s6211_s3, %s8210_s4  ;;  %p8216_p4 = scmp.lt.s32.totalorder %s8210_s4, %s8210_s4 }
 0x9a7   :  { %7678 = vpow2.f32 %v6566_v17  ;;  %v7661_v13 = vpop.eup %7660  ;;  %v5573_v18 = vadd.f32 1.0, %v7659_v8  ;;  %v6570_v40 = vmul.f32 -1.442695, %v5271_v42  ;;  %v5277_v43 = vadd.f32 %v5276_v44, %v9622_v63  ;;  %v5278_v53 = vpop.f32.mrb[13].mxu0 }
 0x9a8   :  { %7680 = vpow2.f32 %v6567_v12  ;;  %v7663_v21 = vpop.eup %7662  ;;  %v5574_v37 = vadd.f32 1.0, %v7661_v13  ;;  %v6571_v47 = vmul.f32 -1.442695, %v5273_v51  ;;  %v5279_v29 = vadd.f32 %v5278_v53, %v9625_v33  ;;  %v5280_v25 = vpop.f32.mrb[14].mxu0  ;;  %p8217_p5 = por %p8216_p4, %p8215_p3 }
 0x9a9   :  { %v7665_v15 = vpop.eup %7664  ;;  %7682 = vrcp.f32 %v5573_v18  ;;  %v5575_v3 = vadd.f32 1.0, %v7663_v21  ;;  %v5281_v55 = vadd.f32 %v5280_v25, %v9622_v63  ;;  %v5282_v50 = vpop.f32.mrb[15].mxu0  ;;  %v6572_v26 = vmul.f32 -1.442695, %v5277_v43 }
 0x9aa   :  { %v7667_v39 = vpop.eup %7666  ;;  %7684 = vrcp.f32 %v5574_v37  ;;  %v5576_v1 = vadd.f32 1.0, %v7665_v15  ;;  %v5283_v34 = vadd.f32 %v5282_v50, %v9625_v33  ;;  %v6573_v23 = vmul.f32 -1.442695, %v5279_v29  ;;  %v5286_v24 = vpop.f32.mrb[16].mxu0  ;;  %p8218_p6 = pnand %p8217_p5, %p8211_p2 }
 0x9ab   :  { %6081 = vst [vmem:[#allocation28 + $0x60] sm:$0xff] %v7667_v39  ;;  %7686 = vrcp.f32 %v5575_v3  ;;  %v6574_v46 = vmul.f32 -1.442695, %v5281_v55  ;;  %v5287_v20 = vadd.f32 %v5286_v24, %v9622_v63  ;;  %v5288_v52 = vpop.f32.mrb[17].mxu0 }
 0x9ac   :  { %v7669_v7 = vpop.eup %7668  ;;  %7688 = vrcp.f32 %v5576_v1  ;;  %v6575_v41 = vmul.f32 -1.442695, %v5283_v34  ;;  %v5289_v32 = vadd.f32 %v5288_v52, %v9625_v33  ;;  %v5290_v6 = vpop.f32.mrb[18].mxu0 }
 0x9ad   :  { %v7671_v0 = vpop.eup %7670  ;;  %6082 = vst [vmem:[#allocation28 + $0x68] sm:$0xff] %v7669_v7  ;;  %7690 = vpow2.f32 %v6568_v60  ;;  %v5291_v35 = vadd.f32 %v5290_v6, %v9622_v63  ;;  %v5292_v17 = vpop.f32.mrb[19].mxu0  ;;  %v6576_v8 = vmul.f32 -1.442695, %v5287_v20 }
 0x9ae   :  { %v7673_v45 = vpop.eup %7672  ;;  %6083 = vst [vmem:[#allocation28 + $0x70] sm:$0xff] %v7671_v0  ;;  %7692 = vpow2.f32 %v6569_v38  ;;  %v5293_v10 = vadd.f32 %v5292_v17, %v9625_v33  ;;  %v6577_v13 = vmul.f32 -1.442695, %v5289_v32  ;;  %v5296_v37 = vpop.f32.mrb[20].mxu0 }
 0x9af   :  { %v7675_v56 = vpop.eup %7674  ;;  %6084 = vst [vmem:[#allocation28 + $0x78] sm:$0xff] %v7673_v45  ;;  %7694 = vpow2.f32 %v6570_v40  ;;  %v6578_v49 = vmul.f32 -1.442695, %v5291_v35  ;;  %v5297_v14 = vadd.f32 %v5296_v37, %v9622_v63  ;;  %v5298_v15 = vpop.f32.mrb[21].mxu0 }
 0x9b0   :  { %v7677_v62 = vpop.eup %7676  ;;  %v5577_v59 = vadd.f32 1.0, %v7675_v56  ;;  %7696 = vpow2.f32 %v6571_v47  ;;  %v6579_v21 = vmul.f32 -1.442695, %v5293_v10  ;;  %v5299_v60 = vadd.f32 %v5298_v15, %v9625_v33  ;;  %v5300_v51 = vpop.f32.mrb[22].mxu0 }
 0x9b1   :  { %v7679_v36 = vpop.eup %7678  ;;  %v5578_v48 = vadd.f32 1.0, %v7677_v62  ;;  %v5301_v38 = vadd.f32 %v5300_v51, %v9622_v63  ;;  %v5302_v7 = vpop.f32.mrb[23].mxu0  ;;  %v6580_v56 = vmul.f32 -1.442695, %v5297_v14 }
 0x9b2   :  { %v7681_v28 = vpop.eup %7680  ;;  %7698 = vrcp.f32 %v5577_v59  ;;  %v5579_v4 = vadd.f32 1.0, %v7679_v36  ;;  %v5303_v47 = vadd.f32 %v5302_v7, %v9625_v33  ;;  %v6581_v53 = vmul.f32 -1.442695, %v5299_v60  ;;  %v5306_v36 = vpop.f32.mrb[24].mxu0 }
 0x9b3   :  { %7700 = vrcp.f32 %v5578_v48  ;;  %v5580_v16 = vadd.f32 1.0, %v7681_v28  ;;  %v7683_v19 = vpop.eup %7682  ;;  %v6582_v59 = vmul.f32 -1.442695, %v5301_v38  ;;  %v5307_v55 = vadd.f32 %v5306_v36, %v9622_v63  ;;  %v5308_v50 = vpop.f32.mrb[25].mxu0 }
 0x9b4   :  { %7702 = vrcp.f32 %v5579_v4  ;;  %v7685_v2 = vpop.eup %7684  ;;  %6085 = vst [vmem:[#allocation28 + $0x80] sm:$0xff] %v7683_v19  ;;  %v6583_v25 = vmul.f32 -1.442695, %v5303_v47  ;;  %v5309_v4 = vadd.f32 %v5308_v50, %v9625_v33 }
 0x9b5   :  { %7704 = vrcp.f32 %v5580_v16  ;;  %v7687_v27 = vpop.eup %7686  ;;  %6086 = vst [vmem:[#allocation28 + $0x88] sm:$0xff] %v7685_v2  ;;  %v6584_v16 = vmul.f32 -1.442695, %v5307_v55 }
 0x9b6   :  { %7706 = vpow2.f32 %v6572_v26  ;;  %v7689_v5 = vpop.eup %7688  ;;  %6087 = vst [vmem:[#allocation28 + $0x90] sm:$0xff] %v7687_v27  ;;  %v5310_v26 = vpop.f32.mrb[26].mxu0  ;;  %v6585_v52 = vmul.f32 -1.442695, %v5309_v4 }
 0x9b7   :  { %7708 = vpow2.f32 %v6573_v23  ;;  %v7691_v22 = vpop.eup %7690  ;;  %6088 = vst [vmem:[#allocation28 + $0x98] sm:$0xff] %v7689_v5  ;;  %v5311_v23 = vadd.f32 %v5310_v26, %v9622_v63  ;;  %v5312_v19 = vpop.f32.mrb[27].mxu0 }
 0x9b8   :  { %7710 = vpow2.f32 %v6574_v46  ;;  %v7693_v58 = vpop.eup %7692  ;;  %v5581_v9 = vadd.f32 1.0, %v7691_v22  ;;  %v5316_v35 = vpop.f32.mrb[28].mxu0 }
 0x9b9   :  { %7712 = vpow2.f32 %v6575_v41  ;;  %v7695_v61 = vpop.eup %7694  ;;  %v5582_v12 = vadd.f32 1.0, %v7693_v58  ;;  %v5313_v41 = vadd.f32 %v5312_v19, %v9625_v33  ;;  %v6586_v6 = vmul.f32 -1.442695, %v5311_v23 }
 0x9ba   :  { %v7697_v57 = vpop.eup %7696  ;;  %7714 = vrcp.f32 %v5581_v9  ;;  %v5583_v54 = vadd.f32 1.0, %v7695_v61  ;;  %v5317_v61 = vadd.f32 %v5316_v35, %v9622_v63 }
 0x9bb   :  { %7716 = vrcp.f32 %v5582_v12  ;;  %v5584_v30 = vadd.f32 1.0, %v7697_v57  ;;  %v6587_v9 = vmul.f32 -1.442695, %v5313_v41  ;;  %v5318_v12 = vpop.f32.mrb[29].mxu0 }
 0x9bc   :  { %v7699_v11 = vpop.eup %7698  ;;  %7718 = vrcp.f32 %v5583_v54  ;;  %v5320_v57 = vpop.f32.mrb[30].mxu0 }
 0x9bd   :  { %v7701_v18 = vpop.eup %7700  ;;  %6089 = vst [vmem:[#allocation28 + $0xa0] sm:$0xff] %v7699_v11  ;;  %7720 = vrcp.f32 %v5584_v30  ;;  %v5319_v11 = vadd.f32 %v5318_v12, %v9625_v33  ;;  %v5322_v30 = vpop.f32.mrb[31].mxu0 }
 0x9be   :  { %v7703_v31 = vpop.eup %7702  ;;  %6090 = vst [vmem:[#allocation28 + $0xa8] sm:$0xff] %v7701_v18  ;;  %7722 = vpow2.f32 %v6576_v8  ;;  %v6588_v8 = vmul.f32 -1.442695, %v5317_v61  ;;  %v5323_v37 = vadd.f32 %v5322_v30, %v9625_v33  ;;  %v5326_v38 = vpop.f32.mrb[32].mxu0 }
 0x9bf   :  { %v7705_v42 = vpop.eup %7704  ;;  %6091 = vst [vmem:[#allocation28 + $0xb0] sm:$0xff] %v7703_v31  ;;  %7724 = vpow2.f32 %v6577_v13  ;;  %v6589_v60 = vmul.f32 -1.442695, %v5319_v11  ;;  %v5328_v47 = vpop.f32.mrb[33].mxu0 }
 0x9c0   :  { %v7707_v3 = vpop.eup %7706  ;;  %6092 = vst [vmem:[#allocation28 + $0xb8] sm:$0xff] %v7705_v42  ;;  %7726 = vpow2.f32 %v6578_v49  ;;  %v5321_v49 = vadd.f32 %v5320_v57, %v9622_v63 }
 0x9c1   :  { %v7709_v39 = vpop.eup %7708  ;;  %v5585_v1 = vadd.f32 1.0, %v7707_v3  ;;  %7728 = vpow2.f32 %v6579_v21 }
 0x9c2   :  { %v7711_v40 = vpop.eup %7710  ;;  %v5586_v0 = vadd.f32 1.0, %v7709_v39 }
 0x9c3   :  { %v7713_v45 = vpop.eup %7712  ;;  %7730 = vrcp.f32 %v5585_v1  ;;  %v5587_v44 = vadd.f32 1.0, %v7711_v40  ;;  %v6590_v1 = vmul.f32 -1.442695, %v5321_v49  ;;  %v6591_v40 = vmul.f32 -1.442695, %v5323_v37 }
 0x9c4   :  { %7732 = vrcp.f32 %v5586_v0  ;;  %v5588_v43 = vadd.f32 1.0, %v7713_v45  ;;  %v7715_v62 = vpop.eup %7714  ;;  %v5327_v0 = vadd.f32 %v5326_v38, %v9622_v63 }
 0x9c5   :  { %7734 = vrcp.f32 %v5587_v44  ;;  %v7717_v29 = vpop.eup %7716  ;;  %6093 = vst [vmem:[#allocation28 + $0xc0] sm:$0xff] %v7715_v62  ;;  %v5330_v44 = vpop.f32.mrb[34].mxu0 }
 0x9c6   :  { %7736 = vrcp.f32 %v5588_v43  ;;  %v7719_v48 = vpop.eup %7718  ;;  %6094 = vst [vmem:[#allocation28 + $0xc8] sm:$0xff] %v7717_v29  ;;  %v6592_v43 = vmul.f32 -1.442695, %v5327_v0  ;;  %v5332_v62 = vpop.f32.mrb[35].mxu0  ;;  %v5331_v29 = vadd.f32 %v5330_v44, %v9622_v63 }
 0x9c7   :  { %7738 = vpow2.f32 %v6580_v56  ;;  %v7721_v28 = vpop.eup %7720  ;;  %6095 = vst [vmem:[#allocation28 + $0xd0] sm:$0xff] %v7719_v48  ;;  %v5333_v48 = vadd.f32 %v5332_v62, %v9625_v33  ;;  %v5336_v19 = vpop.f32.mrb[36].mxu0 }
 0x9c8   :  { %7740 = vpow2.f32 %v6581_v53  ;;  %v7723_v34 = vpop.eup %7722  ;;  %6096 = vst [vmem:[#allocation28 + $0xd8] sm:$0xff] %v7721_v28  ;;  %v5329_v53 = vadd.f32 %v5328_v47, %v9625_v33  ;;  %v6594_v23 = vmul.f32 -1.442695, %v5331_v29  ;;  %v5337_v41 = vadd.f32 %v5336_v19, %v9622_v63 }
 0x9c9   :  { %7742 = vpow2.f32 %v6582_v59  ;;  %v7725_v46 = vpop.eup %7724  ;;  %v5589_v2 = vadd.f32 1.0, %v7723_v34 }
 0x9ca   :  { %7744 = vpow2.f32 %v6583_v25  ;;  %v7727_v27 = vpop.eup %7726  ;;  %v5590_v24 = vadd.f32 1.0, %v7725_v46  ;;  %v6593_v26 = vmul.f32 -1.442695, %v5329_v53 }
 0x9cb   :  { %7746 = vpow2.f32 %v6584_v16  ;;  %v7729_v5 = vpop.eup %7728  ;;  %v5591_v20 = vadd.f32 1.0, %v7727_v27  ;;  %v5338_v27 = vpop.f32.mrb[37].mxu0 }
 0x9cc   :  { %7748 = vrcp.f32 %v5589_v2  ;;  %v5592_v32 = vadd.f32 1.0, %v7729_v5  ;;  %v6595_v2 = vmul.f32 -1.442695, %v5333_v48  ;;  %v5339_v5 = vadd.f32 %v5338_v27, %v9625_v33 }
 0x9cd   :  { %v7731_v22 = vpop.eup %7730  ;;  %7750 = vrcp.f32 %v5590_v24 }
 0x9ce   :  { %v7733_v58 = vpop.eup %7732  ;;  %6097 = vst [vmem:[#allocation28 + $0xe0] sm:$0xff] %v7731_v22  ;;  %7752 = vrcp.f32 %v5591_v20  ;;  %v5340_v20 = vpop.f32.mrb[38].mxu0  ;;  %v6596_v22 = vmul.f32 -1.442695, %v5337_v41 }
 0x9cf   :  { %v7735_v17 = vpop.eup %7734  ;;  %6098 = vst [vmem:[#allocation28 + $0xe8] sm:$0xff] %v7733_v58  ;;  %7754 = vrcp.f32 %v5592_v32  ;;  %v5342_v32 = vpop.f32.mrb[39].mxu0  ;;  %v6597_v58 = vmul.f32 -1.442695, %v5339_v5 }
 0x9d0   :  { %v7737_v10 = vpop.eup %7736  ;;  %6099 = vst [vmem:[#allocation28 + $0xf0] sm:$0xff] %v7735_v17  ;;  %7756 = vpow2.f32 %v6585_v52  ;;  %v5343_v17 = vadd.f32 %v5342_v32, %v9625_v33  ;;  %v5346_v30 = vpop.f32.mrb[40].mxu0 }
 0x9d1   :  { %v7739_v54 = vpop.eup %7738  ;;  %6100 = vst [vmem:[#allocation28 + $0xf8] sm:$0xff] %v7737_v10  ;;  %7758 = vpow2.f32 %v6586_v6 }
 0x9d2   :  { %v7741_v13 = vpop.eup %7740  ;;  %v5593_v18 = vadd.f32 1.0, %v7739_v54  ;;  %7760 = vpow2.f32 %v6587_v9  ;;  %v5341_v9 = vadd.f32 %v5340_v20, %v9622_v63  ;;  %v6599_v49 = vmul.f32 -1.442695, %v5343_v17 }
 0x9d3   :  { %v7743_v31 = vpop.eup %7742  ;;  %v5594_v21 = vadd.f32 1.0, %v7741_v13  ;;  %7762 = vpow2.f32 %v6588_v8 }
 0x9d4   :  { %v7745_v42 = vpop.eup %7744  ;;  %7764 = vrcp.f32 %v5593_v18  ;;  %v5595_v14 = vadd.f32 1.0, %v7743_v31  ;;  %v6598_v11 = vmul.f32 -1.442695, %v5341_v9  ;;  %v5347_v31 = vadd.f32 %v5346_v30, %v9622_v63 }
 0x9d5   :  { %v7747_v15 = vpop.eup %7746  ;;  %7766 = vrcp.f32 %v5594_v21  ;;  %v5596_v3 = vadd.f32 1.0, %v7745_v42  ;;  %v5348_v21 = vpop.f32.mrb[41].mxu0 }
 0x9d6   :  { %v7749_v51 = vpop.eup %7748  ;;  %7768 = vrcp.f32 %v5595_v14  ;;  %v5597_v39 = vadd.f32 1.0, %v7747_v15  ;;  %v5349_v42 = vadd.f32 %v5348_v21, %v9625_v33  ;;  %v5350_v14 = vpop.f32.mrb[42].mxu0 }
 0x9d7   :  { %v7751_v7 = vpop.eup %7750  ;;  %6101 = vst [vmem:[#allocation28 + $0x100] sm:$0xff] %v7749_v51  ;;  %7770 = vrcp.f32 %v5596_v3  ;;  %v6600_v3 = vmul.f32 -1.442695, %v5347_v31  ;;  %v5351_v38 = vadd.f32 %v5350_v14, %v9622_v63 }
 0x9d8   :  { %v7753_v45 = vpop.eup %7752  ;;  %6102 = vst [vmem:[#allocation28 + $0x108] sm:$0xff] %v7751_v7  ;;  %7772 = vrcp.f32 %v5597_v39  ;;  %v6601_v39 = vmul.f32 -1.442695, %v5349_v42 }
 0x9d9   :  { %v7755_v56 = vpop.eup %7754  ;;  %6103 = vst [vmem:[#allocation28 + $0x110] sm:$0xff] %v7753_v45  ;;  %7774 = vpow2.f32 %v6589_v60  ;;  %v5352_v60 = vpop.f32.mrb[43].mxu0 }
 0x9da   :  { %v7757_v59 = vpop.eup %7756  ;;  %6104 = vst [vmem:[#allocation28 + $0x118] sm:$0xff] %v7755_v56  ;;  %7776 = vpow2.f32 %v6590_v1  ;;  %v5353_v0 = vadd.f32 %v5352_v60, %v9625_v33 }
 0x9db   :  { %v7759_v25 = vpop.eup %7758  ;;  %v5598_v36 = vadd.f32 1.0, %v7757_v59  ;;  %7778 = vpow2.f32 %v6591_v40  ;;  %v6602_v59 = vmul.f32 -1.442695, %v5351_v38 }
 0x9dc   :  { %v7761_v55 = vpop.eup %7760  ;;  %v5599_v50 = vadd.f32 1.0, %v7759_v25  ;;  %7780 = vpow2.f32 %v6592_v43  ;;  %v5356_v43 = vpop.f32.mrb[44].mxu0 }
 0x9dd   :  { %v7763_v28 = vpop.eup %7762  ;;  %7782 = vrcp.f32 %v5598_v36  ;;  %v5600_v4 = vadd.f32 1.0, %v7761_v55  ;;  %v5357_v29 = vadd.f32 %v5356_v43, %v9622_v63  ;;  %v5358_v25 = vpop.f32.mrb[45].mxu0  ;;  %v6603_v55 = vmul.f32 -1.442695, %v5353_v0 }
 0x9de   :  { %v7765_v34 = vpop.eup %7764  ;;  %7784 = vrcp.f32 %v5599_v50  ;;  %v5601_v16 = vadd.f32 1.0, %v7763_v28  ;;  %v5359_v50 = vadd.f32 %v5358_v25, %v9625_v33  ;;  %v5360_v28 = vpop.f32.mrb[46].mxu0 }
 0x9df   :  { %v7767_v46 = vpop.eup %7766  ;;  %6105 = vst [vmem:[#allocation28 + $0x120] sm:$0xff] %v7765_v34  ;;  %7786 = vrcp.f32 %v5600_v4  ;;  %v5362_v34 = vpop.f32.mrb[47].mxu0 }
 0x9e0   :  { %v7769_v24 = vpop.eup %7768  ;;  %6106 = vst [vmem:[#allocation28 + $0x128] sm:$0xff] %v7767_v46  ;;  %7788 = vrcp.f32 %v5601_v16  ;;  %v5361_v46 = vadd.f32 %v5360_v28, %v9622_v63  ;;  %v5363_v41 = vadd.f32 %v5362_v34, %v9625_v33 }
 0x9e1   :  { %v7771_v52 = vpop.eup %7770  ;;  %6107 = vst [vmem:[#allocation28 + $0x130] sm:$0xff] %v7769_v24  ;;  %7790 = vpow2.f32 %v6593_v26  ;;  %v6604_v26 = vmul.f32 -1.442695, %v5357_v29 }
 0x9e2   :  { %v7773_v6 = vpop.eup %7772  ;;  %6108 = vst [vmem:[#allocation28 + $0x138] sm:$0xff] %v7771_v52  ;;  %7792 = vpow2.f32 %v6594_v23  ;;  %v6605_v23 = vmul.f32 -1.442695, %v5359_v50  ;;  %v6606_v32 = vmul.f32 -1.442695, %v5361_v46 }
 0x9e3   :  { %v7775_v35 = vpop.eup %7774  ;;  %6109 = vst [vmem:[#allocation28 + $0x140] sm:$0xff] %v7773_v6  ;;  %7794 = vpow2.f32 %v6595_v2  ;;  %v6607_v9 = vmul.f32 -1.442695, %v5363_v41 }
 0x9e4   :  { %v7777_v61 = vpop.eup %7776  ;;  %v5602_v12 = vadd.f32 1.0, %v7775_v35  ;;  %7796 = vpow2.f32 %v6596_v22 }
 0x9e5   :  { %v7779_v10 = vpop.eup %7778  ;;  %v5603_v57 = vadd.f32 1.0, %v7777_v61  ;;  %7798 = vpow2.f32 %v6597_v58 }
 0x9e6   :  { %v7781_v54 = vpop.eup %7780  ;;  %7800 = vrcp.f32 %v5602_v12  ;;  %v5604_v8 = vadd.f32 1.0, %v7779_v10 }
 0x9e7   :  { %v7783_v13 = vpop.eup %7782  ;;  %7802 = vrcp.f32 %v5603_v57  ;;  %v5605_v18 = vadd.f32 1.0, %v7781_v54 }
 0x9e8   :  { %v7785_v37 = vpop.eup %7784  ;;  %6110 = vst [vmem:[#allocation28 + $0x148] sm:$0xff] %v7783_v13  ;;  %7804 = vrcp.f32 %v5604_v8 }
 0x9e9   :  { %v7787_v15 = vpop.eup %7786  ;;  %6111 = vst [vmem:[#allocation28 + $0x150] sm:$0xff] %v7785_v37  ;;  %7806 = vrcp.f32 %v5605_v18 }
 0x9ea   :  { %v7789_v51 = vpop.eup %7788  ;;  %6112 = vst [vmem:[#allocation28 + $0x158] sm:$0xff] %v7787_v15  ;;  %7808 = vpow2.f32 %v6598_v11 }
 0x9eb   :  { %v7791_v1 = vpop.eup %7790  ;;  %6113 = vst [vmem:[#allocation28 + $0x160] sm:$0xff] %v7789_v51  ;;  %7810 = vpow2.f32 %v6599_v49 }
 0x9ec   :  { %v7793_v7 = vpop.eup %7792  ;;  %v5606_v40 = vadd.f32 1.0, %v7791_v1  ;;  %7812 = vpow2.f32 %v6600_v3 }
 0x9ed   :  { %v7795_v47 = vpop.eup %7794  ;;  %v5607_v45 = vadd.f32 1.0, %v7793_v7  ;;  %7814 = vpow2.f32 %v6601_v39 }
 0x9ee   :  { %v7797_v44 = vpop.eup %7796  ;;  %7816 = vrcp.f32 %v5606_v40  ;;  %v5608_v56 = vadd.f32 1.0, %v7795_v47 }
 0x9ef   :  { %v7799_v53 = vpop.eup %7798  ;;  %7818 = vrcp.f32 %v5607_v45  ;;  %v5609_v62 = vadd.f32 1.0, %v7797_v44 }
 0x9f0   :  { %v7801_v36 = vpop.eup %7800  ;;  %7820 = vrcp.f32 %v5608_v56  ;;  %v5610_v48 = vadd.f32 1.0, %v7799_v53 }
 0x9f1   :  { %v7803_v4 = vpop.eup %7802  ;;  %6114 = vst [vmem:[#allocation28 + $0x168] sm:$0xff] %v7801_v36  ;;  %7822 = vrcp.f32 %v5609_v62 }
 0x9f2   :  { %v7805_v16 = vpop.eup %7804  ;;  %6115 = vst [vmem:[#allocation28 + $0x170] sm:$0xff] %v7803_v4  ;;  %7824 = vrcp.f32 %v5610_v48 }
 0x9f3   :  { %v7807_v19 = vpop.eup %7806  ;;  %6116 = vst [vmem:[#allocation28 + $0x178] sm:$0xff] %v7805_v16  ;;  %7826 = vpow2.f32 %v6602_v59 }
 0x9f4   :  { %v7809_v2 = vpop.eup %7808  ;;  %6117 = vst [vmem:[#allocation28 + $0x180] sm:$0xff] %v7807_v19  ;;  %7828 = vpow2.f32 %v6603_v55 }
 0x9f5   :  { %v7811_v27 = vpop.eup %7810  ;;  %v5611_v24 = vadd.f32 1.0, %v7809_v2  ;;  %7830 = vpow2.f32 %v6604_v26 }
 0x9f6   :  { %v7813_v5 = vpop.eup %7812  ;;  %v5612_v20 = vadd.f32 1.0, %v7811_v27  ;;  %7832 = vpow2.f32 %v6605_v23 }
 0x9f7   :  { %v7815_v52 = vpop.eup %7814  ;;  %7834 = vrcp.f32 %v5611_v24  ;;  %v5613_v22 = vadd.f32 1.0, %v7813_v5 }
 0x9f8   :  { %v7817_v6 = vpop.eup %7816  ;;  %7836 = vrcp.f32 %v5612_v20  ;;  %v5614_v58 = vadd.f32 1.0, %v7815_v52 }
 0x9f9   :  { %v7819_v63 = vpop.eup %7818  ;;  %6118 = vst [vmem:[#allocation28 + $0x188] sm:$0xff] %v7817_v6  ;;  %7838 = vrcp.f32 %v5613_v22 }
 0x9fa   :  { %v7821_v35 = vpop.eup %7820  ;;  %6119 = vst [vmem:[#allocation28 + $0x190] sm:$0xff] %v7819_v63  ;;  %7840 = vrcp.f32 %v5614_v58 }
 0x9fb   :  { %v7823_v33 = vpop.eup %7822  ;;  %6120 = vst [vmem:[#allocation28 + $0x198] sm:$0xff] %v7821_v35  ;;  %7842 = vpow2.f32 %v6606_v32 }
 0x9fc   :  { %v7825_v17 = vpop.eup %7824  ;;  %6121 = vst [vmem:[#allocation28 + $0x1a0] sm:$0xff] %v7823_v33  ;;  %7844 = vpow2.f32 %v6607_v9 }
 0x9fd   :  { %v7827_v61 = vpop.eup %7826  ;;  %6122 = vst [vmem:[#allocation28 + $0x1a8] sm:$0xff] %v7825_v17 }
 0x9fe   :  { %v7829_v12 = vpop.eup %7828  ;;  %v5615_v10 = vadd.f32 1.0, %v7827_v61 }
 0x9ff   :  { %v7831_v57 = vpop.eup %7830  ;;  %v5616_v54 = vadd.f32 1.0, %v7829_v12 }
 0xa00   :  { %v7833_v8 = vpop.eup %7832  ;;  %7846 = vrcp.f32 %v5615_v10  ;;  %v5617_v11 = vadd.f32 1.0, %v7831_v57 }
 0xa01   :  { %v7835_v30 = vpop.eup %7834  ;;  %7848 = vrcp.f32 %v5616_v54  ;;  %v5618_v13 = vadd.f32 1.0, %v7833_v8 }
 0xa02   :  { %v7837_v18 = vpop.eup %7836  ;;  %6123 = vst [vmem:[#allocation28 + $0x1b0] sm:$0xff] %v7835_v30  ;;  %7850 = vrcp.f32 %v5617_v11 }
 0xa03   :  { %v7839_v49 = vpop.eup %7838  ;;  %6124 = vst [vmem:[#allocation28 + $0x1b8] sm:$0xff] %v7837_v18  ;;  %7852 = vrcp.f32 %v5618_v13 }
 0xa04   :  { %v7841_v31 = vpop.eup %7840  ;;  %6125 = vst [vmem:[#allocation28 + $0x1c0] sm:$0xff] %v7839_v49 }
 0xa05   :  { %v7843_v21 = vpop.eup %7842  ;;  %6126 = vst [vmem:[#allocation28 + $0x1c8] sm:$0xff] %v7841_v31 }
 0xa06   :  { %v7845_v37 = vpop.eup %7844  ;;  %v5619_v42 = vadd.f32 1.0, %v7843_v21 }
 0xa07   :  { %v5620_v14 = vadd.f32 1.0, %v7845_v37 }
 0xa08   :  { %7854 = vrcp.f32 %v5619_v42 }
 0xa09   :  { %7856 = vrcp.f32 %v5620_v14 }
 0xa0a   :  { %v7847_v15 = vpop.eup %7846 }
 0xa0b   :  { %v7849_v3 = vpop.eup %7848  ;;  %6127 = vst [vmem:[#allocation28 + $0x1d0] sm:$0xff] %v7847_v15 }
 0xa0c   :  { %v7851_v60 = vpop.eup %7850  ;;  %6128 = vst [vmem:[#allocation28 + $0x1d8] sm:$0xff] %v7849_v3 }
 0xa0d   :  { %v7853_v51 = vpop.eup %7852  ;;  %6129 = vst [vmem:[#allocation28 + $0x1e0] sm:$0xff] %v7851_v60 }
 0xa0e   :  { %6130 = vst [vmem:[#allocation28 + $0x1e8] sm:$0xff] %v7853_v51 }
 0xa12   :  { %v7855_v39 = vpop.eup %7854 }
 0xa13   :  { %v7857_v1 = vpop.eup %7856  ;;  %6131 = vst [vmem:[#allocation28 + $0x1f0] sm:$0xff] %v7855_v39 }
 0xa14   :  { %6132 = vst [vmem:[#allocation28 + $0x1f8] sm:$0xff] %v7857_v1 }
 0xa15   :  { %8221 = shalt.err (!%p8218_p6)
}
 0xa16   :  { %s9873_s29 = sld [smem:[#allocation50_spill]] }
 0xa1c   :  { %s8222_s0 = scalar_lea.hbm %s9873_s29, 8192 }
 0xa1d   :  { %p8223_p7 = scmp.ne.s32.totalorder %s9873_s29, %s8222_s0  ;;  %p8226_p8 = scmp.lt.u32.totalorder %s8222_s0, %s9873_s29 }
 0xa1f   :  { %p8228_p9 = pnand %p8226_p8, %p8223_p7 }
 0xa21   :  { %8231 = shalt.err (!%p8228_p9)
}
 0xa22   :  { %6216 = dma.vmem_to_hbm [thread:$0]  %s6211_s3, 8192, %s9873_s29, [#allocation27], %s9870_s22, %s9870_s22, %s9869_s10  }
 0xa23   :  { %8244 = dma.done.wait [#allocation4], 8192  }
 0xa24   :  { %8245 = vsyncadd [#allocation4], 4294959104 }
 0xa25   :  { %8246 = dma.done.wait [#allocation21], 20480  }
 0xa26   :  { %8247 = vsyncadd [#allocation21], 4294946816 }
 0xa27   :  { %8248 = dma.done.wait [#allocation24], 8192  }
 0xa28   :  { %8249 = vsyncadd [#allocation24], 4294959104 }
 0xa29   :  { %8250 = dma.done.wait [#allocation27], 12288  }
 0xa2a   :  { %8251 = vsyncadd [#allocation27], 4294955008 }
 0xa2b   :  { %6238 = vsyncpa [#allocation3], 1 }
 0xa2c   :  { %6239 = vsyncpa [#allocation6], 1 }
 0xa2d   :  { %6240 = vsyncpa [#allocation9], 1 }
 0xa2e   :  { %6241 = vsyncpa [#allocation12], 1 }
 0xa2f   :  { %6242 = vsyncpa [#allocation15], 1 }
 0xa30   :  { %6243 = vsyncpa [#allocation18], 1 }
 0xa31   :  { %6244 = vsyncpa [#allocation4], 1 }
 0xa32   :  { %6245 = vsyncpa [#allocation21], 1 }
 0xa33   :  { %6246 = vsyncpa [#allocation24], 1 }
 0xa34   :  { %6247 = vsyncpa [#allocation27], 1 }

</bundles_post_ra>
